<compile_context>
chip_gen: v5e
topology: v5e:2x2
jax: 0.10.0
libtpu: 0.0.40
codegen_flags: <defaults>
</compile_context>

<pallas_src>
import functools

import jax
import jax.numpy as jnp
from jax import lax
from jax.experimental import pallas as pl
from jax.experimental.pallas import tpu as pltpu


# ----------------------------------------------------------------------------
# Budgets / tile-size heuristics
# ----------------------------------------------------------------------------
@functools.lru_cache(maxsize=None)
def _vmem_limit_bytes():
    """Per-generation scoped-VMEM budget (~75% of physical): ~96 MiB on the
    128 MiB parts (v5e/v6e), ~48 MiB on v7x (64 MiB physical)."""
    try:
        cap = getattr(pltpu.get_tpu_info(), "vmem_capacity_bytes", None)
        if cap:
            return int(cap) * 3 // 4
    except Exception:
        pass
    return 48 * 1024 * 1024


def _pick_cout_tile(cout):
    """Whole-Cout tile whenever the (bf16) weight slab fits comfortably:
    avoids both redundant weight re-fetches and redundant im2col rebuilds."""
    if cout <= 512:
        return cout
    for tn in (512, 256, 128):
        if cout % tn == 0:
            return tn
    return cout


def _pick_row_tile(h, w, cin, itemsize, *, pooled, max_rows=None):
    """Largest row-strip height `th` dividing `h` such that
      * the im2col scratch (th*w)*(9*cin)*itemsize stays ~<=4 MiB (K-aware),
      * M = th*w stays ~<=2048,
      * block second-minor dims are (8)-friendly for conv and pooled outputs.
    Falls back to th=h (full plane, always a legal block)."""
    if max_rows is None:
        bytes_per_row = max(w * 9 * cin * itemsize, 1)
        k_cap = (4 << 20) // bytes_per_row            # im2col scratch <= ~4 MiB
        m_cap = -(-2048 // max(w, 1))                 # M = th*w <= ~2048
        max_rows = max(2, min(k_cap, m_cap))
    step = 2 if pooled else 1
    best = None
    for th in range(step, h + 1, step):
        if h % th or th > max_rows:
            continue
        if (th * w) % 8 and th * w != h * w:
            continue
        if pooled and ((th // 2) * (w // 2)) % 8 and \
                (th // 2) * (w // 2) != (h // 2) * (w // 2):
            continue
        best = th
    return best if best is not None else h


# ----------------------------------------------------------------------------
# Conv3x3 (pad=1, stride=1) + folded BN + ReLU  (optionally fused 2x2 maxpool)
# ----------------------------------------------------------------------------
def _build_im2col(xp_ref, cols_ref, row0, rows, width, cin):
    """Gather the 9 shifted 3x3 taps of a `rows`-row strip from the padded
    plane (VMEM) into the cols scratch at fixed lane offsets, so the conv is
    ONE MXU matmul with contraction K = 9*cin."""
    for ky in range(3):
        for kx in range(3):
            t = ky * 3 + kx
            tap = xp_ref[0, pl.ds(row0 + ky, rows), pl.ds(kx, width), :]
            cols_ref[:, pl.ds(t * cin, cin)] = tap.reshape(rows * width, cin)


def _make_conv_bn_relu_kernel(rows, width, cin):
    def kernel(xp_ref, w_ref, s_ref, b_ref, o_ref, cols_ref):
        # xp_ref: (1, H+2, W+2, Cin)  w_ref: (9*Cin, TN)  s/b: (1, TN) f32
        # o_ref : (1, rows*width, TN)   cols_ref: VMEM (rows*width, 9*Cin)
        row0 = pl.multiple_of(pl.program_id(1) * rows, rows)

        # Rebuild the im2col scratch only once per (image, strip); it is reused
        # across all Cout tiles (innermost grid axis).
        @pl.when(pl.program_id(2) == 0)
        def _():
            _build_im2col(xp_ref, cols_ref, row0, rows, width, cin)

        acc = jnp.dot(cols_ref[...], w_ref[...],
                      preferred_element_type=jnp.float32)
        acc = acc * s_ref[...] + b_ref[...]            # folded BatchNorm (eval)
        o_ref[0] = jnp.maximum(acc, 0.0).astype(o_ref.dtype)   # ReLU
    return kernel


def _make_conv_bn_relu_pool_kernel(rows, width, cin):
    rows_o, width_o = rows // 2, width // 2

    def kernel(xp_ref, w_ref, s_ref, b_ref, ov_ref, oi_ref, cols_ref):
        # ov_ref/oi_ref: (1, rows_o*width_o, TN)
        strip = pl.program_id(1)
        row0 = pl.multiple_of(strip * rows, rows)

        @pl.when(pl.program_id(2) == 0)
        def _():
            _build_im2col(xp_ref, cols_ref, row0, rows, width, cin)

        acc = jnp.dot(cols_ref[...], w_ref[...],
                      preferred_element_type=jnp.float32)
        acc = acc * s_ref[...] + b_ref[...]
        y = jnp.maximum(acc, 0.0)                      # (rows*width, TN), f32
        tn = y.shape[-1]

        # 2x2 max + argmax done entirely in vregs (no full-strip scratch store).
        y4 = y.reshape(rows, width_o, 2, tn)
        c0 = y4[:, :, 0, :].reshape(rows_o, 2, width_o, tn)   # even columns
        c1 = y4[:, :, 1, :].reshape(rows_o, 2, width_o, tn)   # odd columns
        v00, v10 = c0[:, 0], c0[:, 1]
        v01, v11 = c1[:, 0], c1[:, 1]

        # PyTorch flat index over the full (H, W) pre-pool plane: idx = h*W + w.
        ri = lax.broadcasted_iota(jnp.int32, v00.shape, 0)
        ci = lax.broadcasted_iota(jnp.int32, v00.shape, 1)
        base = (2 * (strip * rows_o + ri)) * width + 2 * ci

        best_v, best_i = v00, base
        # strict '>' keeps the FIRST max in window scan order (v00,v01,v10,v11)
        for val, off in ((v01, 1), (v10, width), (v11, width + 1)):
            upd = val > best_v
            best_v = jnp.where(upd, val, best_v)
            best_i = jnp.where(upd, base + off, best_i)

        ov_ref[0] = best_v.reshape(rows_o * width_o, tn).astype(ov_ref.dtype)
        oi_ref[0] = best_i.reshape(rows_o * width_o, tn)
    return kernel


def _plane_spec(h, w, cin_p, itemsize):
    shape = (1, h + 2, w + 2, cin_p)
    idx = lambda i, j, k: (i, 0, 0, 0)
    plane_bytes = (h + 2) * (w + 2) * cin_p * itemsize
    # The plane's block index only changes with the batch axis, so its second
    # pipeline buffer is a permanent VMEM cost for a prefetch used once per
    # (strips x cout-tiles) steps -> single-buffer large planes (v7x headroom).
    if plane_bytes > (2 << 20) and hasattr(pl, "Buffered"):
        try:
            return pl.BlockSpec(shape, idx, pipeline_mode=pl.Buffered(1))
        except TypeError:
            pass
    return pl.BlockSpec(shape, idx)


def _conv_in_specs(h, w, cin_p, tn, itemsize):
    return [
        _plane_spec(h, w, cin_p, itemsize),
        # weights / BN scale / bias: indexed by the (innermost) Cout tile only.
        pl.BlockSpec((9 * cin_p, tn), lambda i, j, k: (0, k)),
        pl.BlockSpec((1, tn), lambda i, j, k: (0, k)),
        pl.BlockSpec((1, tn), lambda i, j, k: (0, k)),
    ]


def _pad_cin(x_nhwc, w9, cin, cout):
    """Pad Cin to a multiple of 8 (only hits the first conv: cin=3/4)."""
    cin_p = -(-cin // 8) * 8
    pad_c = cin_p - cin
    if pad_c:
        w9 = jnp.pad(w9.reshape(9, cin, cout),
                     ((0, 0), (0, pad_c), (0, 0))).reshape(9 * cin_p, cout)
    return w9, cin_p, pad_c


def conv3x3_bn_relu(x_nhwc, w9, scale, bias, *, max_block_rows=None):
    """3x3 conv (pad=1, stride=1) + folded BN + ReLU.
    x_nhwc: (N,H,W,Cin); w9: (9*Cin, Cout) in (ky,kx,cin)-major row order."""
    n, h, w, cin = x_nhwc.shape
    kc, cout = w9.shape
    assert kc == 9 * cin
    dtype = x_nhwc.dtype
    itemsize = jnp.dtype(dtype).itemsize
    w9, cin_p, pad_c = _pad_cin(x_nhwc, w9, cin, cout)
    tn = _pick_cout_tile(cout)
    th = _pick_row_tile(h, w, cin_p, itemsize, pooled=False,
                        max_rows=max_block_rows)
    # single fused pad: 1-pixel spatial halo + channel pad
    xp = jnp.pad(x_nhwc, ((0, 0), (1, 1), (1, 1), (0, pad_c)))
    out = pl.pallas_call(
        _make_conv_bn_relu_kernel(th, w, cin_p),
        out_shape=jax.ShapeDtypeStruct((n, h * w, cout), dtype),
        grid=(n, h // th, cout // tn),
        in_specs=_conv_in_specs(h, w, cin_p, tn, itemsize),
        out_specs=pl.BlockSpec((1, th * w, tn), lambda i, j, k: (i, j, k)),
        scratch_shapes=[pltpu.VMEM((th * w, 9 * cin_p), dtype)],
        compiler_params=pltpu.CompilerParams(
            dimension_semantics=("parallel", "parallel", "arbitrary"),
            vmem_limit_bytes=_vmem_limit_bytes()),
    )(xp, w9, scale, bias)
    return out.reshape(n, h, w, cout)


def conv3x3_bn_relu_maxpool(x_nhwc, w9, scale, bias, *, max_block_rows=None):
    """Last conv of a block with MaxPool2d(2, return_indices=True) fused into
    the epilogue: the pre-pool activation never leaves vregs/VMEM.  Returns
    pooled values (N,H/2,W/2,Cout) and int32 PyTorch-style flat indices."""
    n, h, w, cin = x_nhwc.shape
    kc, cout = w9.shape
    assert kc == 9 * cin and h % 2 == 0 and w % 2 == 0
    ho, wo = h // 2, w // 2
    dtype = x_nhwc.dtype
    itemsize = jnp.dtype(dtype).itemsize
    w9, cin_p, pad_c = _pad_cin(x_nhwc, w9, cin, cout)
    tn = _pick_cout_tile(cout)
    th = _pick_row_tile(h, w, cin_p, itemsize, pooled=True,
                        max_rows=max_block_rows)
    assert th % 2 == 0 and h % th == 0
    tho = th // 2
    xp = jnp.pad(x_nhwc, ((0, 0), (1, 1), (1, 1), (0, pad_c)))
    pool_spec = pl.BlockSpec((1, tho * wo, tn), lambda i, j, k: (i, j, k))
    vals, idx = pl.pallas_call(
        _make_conv_bn_relu_pool_kernel(th, w, cin_p),
        out_shape=(jax.ShapeDtypeStruct((n, ho * wo, cout), dtype),
                   jax.ShapeDtypeStruct((n, ho * wo, cout), jnp.int32)),
        grid=(n, h // th, cout // tn),
        in_specs=_conv_in_specs(h, w, cin_p, tn, itemsize),
        out_specs=(pool_spec, pool_spec),
        scratch_shapes=[pltpu.VMEM((th * w, 9 * cin_p), dtype)],
        compiler_params=pltpu.CompilerParams(
            dimension_semantics=("parallel", "parallel", "arbitrary"),
            vmem_limit_bytes=_vmem_limit_bytes()),
    )(xp, w9, scale, bias)
    return vals.reshape(n, ho, wo, cout), idx.reshape(n, ho, wo, cout)


# ----------------------------------------------------------------------------
# Parameter init (deterministic, synthetic) — mirrors Conv2d(3x3) + BatchNorm2d
# ----------------------------------------------------------------------------
def init_conv_bn_params(key, cin, cout):
    kw, kg, kb, km, kv = jax.random.split(key, 5)
    w = jax.random.normal(kw, (cout, cin, 3, 3), jnp.float32) * 0.1   # torch layout
    gamma = 1.0 + 0.1 * jax.random.normal(kg, (cout,), jnp.float32)
    beta = 0.1 * jax.random.normal(kb, (cout,), jnp.float32)
    rmean = 0.05 * jax.random.normal(km, (cout,), jnp.float32)
    rvar = 1.0 + 0.1 * jax.random.uniform(kv, (cout,), jnp.float32)
    eps = 1e-5
    scale = gamma / jnp.sqrt(rvar + eps)
    bias = beta - rmean * scale
    # (Cout,Cin,kh,kw) -> (kh,kw,Cin,Cout) -> (9*Cin, Cout); row = (ky*3+kx)*Cin+c,
    # matching the in-kernel im2col lane order.
    w9 = jnp.transpose(w, (2, 3, 1, 0)).reshape(9 * cin, cout)
    return w9, scale.reshape(1, cout), bias.reshape(1, cout)


def init_encoder_params(key, in_channels, cfg):
    params = []
    cin = in_channels
    for block_cfg in cfg:
        bparams = []
        for cout in block_cfg:
            key, sub = jax.random.split(key)
            bparams.append(init_conv_bn_params(sub, cin, cout))
            cin = cout
        params.append(bparams)
    return params


# ----------------------------------------------------------------------------
# VGGBNEncoder forward: blocks of [Conv-BN-ReLU]* + MaxPool(return_indices)
# ----------------------------------------------------------------------------
def vgg_bn_encoder_forward(x_nchw, params, *, compute_dtype=jnp.bfloat16,
                           max_block_rows=None):
    x = jnp.transpose(x_nchw, (0, 2, 3, 1)).astype(compute_dtype)   # NCHW->NHWC
    indices_list = []
    for bparams in params:
        for (w9, scale, bias) in bparams[:-1]:
            x = conv3x3_bn_relu(x, w9.astype(compute_dtype), scale, bias,
                                max_block_rows=max_block_rows)
        w9, scale, bias = bparams[-1]
        x, idx = conv3x3_bn_relu_maxpool(x, w9.astype(compute_dtype), scale,
                                         bias, max_block_rows=max_block_rows)
        indices_list.append(jnp.transpose(idx, (0, 3, 1, 2)))       # -> NCHW
    return jnp.transpose(x, (0, 3, 1, 2)), indices_list[::-1]


# ----------------------------------------------------------------------------
# Pure-JAX reference with matching bf16 casts (correctness sanity check)
# ----------------------------------------------------------------------------
def _ref_conv_bn_relu(x_nhwc, w9, scale, bias):
    cin = x_nhwc.shape[-1]
    cout = w9.shape[-1]
    w = w9.reshape(3, 3, cin, cout)
    y = lax.conv_general_dilated(
        x_nhwc, w, (1, 1), 'SAME',
        dimension_numbers=('NHWC', 'HWIO', 'NHWC'),
        preferred_element_type=jnp.float32)
    y = y * scale.reshape(1, 1, 1, -1) + bias.reshape(1, 1, 1, -1)
    return jnp.maximum(y, 0.0).astype(x_nhwc.dtype)


def _ref_forward_values(x_nchw, params, compute_dtype=jnp.bfloat16):
    x = jnp.transpose(x_nchw, (0, 2, 3, 1)).astype(compute_dtype)
    pre_pool = []
    for bparams in params:
        for (w9, scale, bias) in bparams:
            x = _ref_conv_bn_relu(x, w9.astype(compute_dtype), scale, bias)
        pre_pool.append(x)
        quads = jnp.stack([x[:, 0::2, 0::2, :], x[:, 0::2, 1::2, :],
                           x[:, 1::2, 0::2, :], x[:, 1::2, 1::2, :]], axis=0)
        x = jnp.max(quads, axis=0)
    return jnp.transpose(x, (0, 3, 1, 2)), pre_pool


if __name__ == "__main__":
    # Tiny VGG-BN-like config: 2 blocks, each [Conv-BN-ReLU, Conv-BN-ReLU, MaxPool]
    cfg = [[8, 8], [16, 16]]
    in_channels = 4
    x = jax.random.normal(jax.random.PRNGKey(0), (2, in_channels, 16, 16),
                          jnp.float32)
    params = init_encoder_params(jax.random.PRNGKey(1), in_channels, cfg)

    # max_block_rows=8 forces 2 row-strips on the 16x16 block so the spatial
    # tiling / dynamic strip-offset / im2col-caching path is exercised.
    fwd = jax.jit(functools.partial(vgg_bn_encoder_forward, max_block_rows=8))
    out, indices_list = fwd(x, params)
    out = jax.block_until_ready(out)
    indices_list = [jax.block_until_ready(i) for i in indices_list]

    # shape checks: final feature map and reversed indices list
    assert out.shape == (2, 16, 4, 4), out.shape
    assert indices_list[0].shape == (2, 16, 4, 4), indices_list[0].shape
    assert indices_list[1].shape == (2, 8, 8, 8), indices_list[1].shape
    assert indices_list[0].dtype == jnp.int32

    # numerical sanity check vs pure-JAX reference (both paths in bf16 with
    # f32 accumulation, so the tolerance only needs to cover rounding skew).
    ref_out, ref_pre_pool = _ref_forward_values(x, params)
    out_f = out.astype(jnp.float32)
    ref_f = ref_out.astype(jnp.float32)
    assert jnp.allclose(out_f, ref_f, atol=5e-2, rtol=5e-2), \
        float(jnp.max(jnp.abs(out_f - ref_f)))

    # PyTorch index semantics: gathering the pre-pool plane at the returned
    # flat indices must reproduce the pooled values.
    # (indices_list is reversed: [-1] is block 0, [0] is the last block)
    for blk, idx_nchw in zip(range(len(cfg)), indices_list[::-1]):
        pre = jnp.transpose(ref_pre_pool[blk], (0, 3, 1, 2)).astype(jnp.float32)
        n_, c_, h_, w_ = pre.shape
        flat = pre.reshape(n_, c_, h_ * w_)
        gathered = jnp.take_along_axis(
            flat, idx_nchw.reshape(n_, c_, -1), axis=2
        ).reshape(idx_nchw.shape)
        quads = jnp.stack([pre[:, :, 0::2, 0::2], pre[:, :, 0::2, 1::2],
                           pre[:, :, 1::2, 0::2], pre[:, :, 1::2, 1::2]], axis=0)
        pooled = jnp.max(quads, axis=0)
        assert jnp.allclose(gathered, pooled, atol=5e-2), blk

    print("KERNEL_OK")
</pallas_src>

<mosaic_0001>
module attributes {stable_mosaic.version = 11 : i64} {
  func.func @kernel(%arg0: i32, %arg1: i32, %arg2: i32, %arg3: memref<1x18x18x8xbf16, #tpu.memory_space<vmem>>, %arg4: memref<72x8xbf16, #tpu.memory_space<vmem>>, %arg5: memref<1x8xf32, #tpu.memory_space<vmem>>, %arg6: memref<1x8xf32, #tpu.memory_space<vmem>>, %arg7: memref<1x128x8xbf16, #tpu.memory_space<vmem>>, %arg8: memref<128x72xbf16, #tpu.memory_space<vmem>>) attributes {dimension_semantics = [#tpu.dimension_semantics<parallel>, #tpu.dimension_semantics<parallel>, #tpu.dimension_semantics<arbitrary>], iteration_bounds = array<i64: 2, 2, 1>, scalar_prefetch = 0 : i64, scratch_operands = 1 : i64, tpu.core_type = #tpu.core_type<tc>, window_params = [{transform_indices = @transform_0, window_bounds = array<i64: 1, 18, 18, 8>}, {transform_indices = @transform_1, window_bounds = array<i64: 72, 8>}, {transform_indices = @transform_2, window_bounds = array<i64: 1, 8>}, {transform_indices = @transform_3, window_bounds = array<i64: 1, 8>}, {transform_indices = @transform_4, window_bounds = array<i64: 1, 128, 8>}]} {
    %c8_i32 = arith.constant 8 : i32
    %0 = arith.muli %arg1, %c8_i32 : i32
    %1 = tpu.assume_multiple %0, 8 : i32
    %c0_i32 = arith.constant 0 : i32
    %2 = arith.cmpi eq, %arg2, %c0_i32 : i32
    %3 = arith.extui %2 : i1 to i32
    %c0_i32_0 = arith.constant 0 : i32
    %4 = arith.cmpi ne, %3, %c0_i32_0 : i32
    scf.if %4 {
      %c0_i32_12 = arith.constant 0 : i32
      %20 = arith.addi %1, %c0_i32_12 : i32
      %c0_13 = arith.constant 0 : index
      %21 = arith.index_cast %20 : i32 to index
      %c0_14 = arith.constant 0 : index
      %c0_15 = arith.constant 0 : index
      %22 = vector.load %arg3[%c0_13, %21, %c0_14, %c0_15] : memref<1x18x18x8xbf16, #tpu.memory_space<vmem>>, vector<1x8x16x8xbf16>
      %23 = vector.shape_cast %22 : vector<1x8x16x8xbf16> to vector<8x16x8xbf16>
      %24 = vector.shape_cast %23 : vector<8x16x8xbf16> to vector<128x8xbf16>
      %c0_16 = arith.constant 0 : index
      %c0_17 = arith.constant 0 : index
      %25 = vector.load %arg8[%c0_16, %c0_17] : memref<128x72xbf16, #tpu.memory_space<vmem>>, vector<128x8xbf16>
      tpu.vector_store %arg8[%c0_16, %c0_17], %24 {strides = array<i32>} : memref<128x72xbf16, #tpu.memory_space<vmem>>, vector<128x8xbf16>,
      %c0_i32_18 = arith.constant 0 : i32
      %26 = arith.addi %1, %c0_i32_18 : i32
      %c0_19 = arith.constant 0 : index
      %27 = arith.index_cast %26 : i32 to index
      %c1 = arith.constant 1 : index
      %c0_20 = arith.constant 0 : index
      %28 = vector.load %arg3[%c0_19, %27, %c1, %c0_20] : memref<1x18x18x8xbf16, #tpu.memory_space<vmem>>, vector<1x8x16x8xbf16>
      %29 = vector.shape_cast %28 : vector<1x8x16x8xbf16> to vector<8x16x8xbf16>
      %30 = vector.shape_cast %29 : vector<8x16x8xbf16> to vector<128x8xbf16>
      %c0_21 = arith.constant 0 : index
      %c8 = arith.constant 8 : index
      %31 = vector.load %arg8[%c0_21, %c8] : memref<128x72xbf16, #tpu.memory_space<vmem>>, vector<128x8xbf16>
      tpu.vector_store %arg8[%c0_21, %c8], %30 {strides = array<i32>} : memref<128x72xbf16, #tpu.memory_space<vmem>>, vector<128x8xbf16>,
      %c0_i32_22 = arith.constant 0 : i32
      %32 = arith.addi %1, %c0_i32_22 : i32
      %c0_23 = arith.constant 0 : index
      %33 = arith.index_cast %32 : i32 to index
      %c2 = arith.constant 2 : index
      %c0_24 = arith.constant 0 : index
      %34 = vector.load %arg3[%c0_23, %33, %c2, %c0_24] : memref<1x18x18x8xbf16, #tpu.memory_space<vmem>>, vector<1x8x16x8xbf16>
      %35 = vector.shape_cast %34 : vector<1x8x16x8xbf16> to vector<8x16x8xbf16>
      %36 = vector.shape_cast %35 : vector<8x16x8xbf16> to vector<128x8xbf16>
      %c0_25 = arith.constant 0 : index
      %c16 = arith.constant 16 : index
      %37 = vector.load %arg8[%c0_25, %c16] : memref<128x72xbf16, #tpu.memory_space<vmem>>, vector<128x8xbf16>
      tpu.vector_store %arg8[%c0_25, %c16], %36 {strides = array<i32>} : memref<128x72xbf16, #tpu.memory_space<vmem>>, vector<128x8xbf16>,
      %c1_i32 = arith.constant 1 : i32
      %38 = arith.addi %1, %c1_i32 : i32
      %c0_26 = arith.constant 0 : index
      %39 = arith.index_cast %38 : i32 to index
      %c0_27 = arith.constant 0 : index
      %c0_28 = arith.constant 0 : index
      %40 = vector.load %arg3[%c0_26, %39, %c0_27, %c0_28] : memref<1x18x18x8xbf16, #tpu.memory_space<vmem>>, vector<1x8x16x8xbf16>
      %41 = vector.shape_cast %40 : vector<1x8x16x8xbf16> to vector<8x16x8xbf16>
      %42 = vector.shape_cast %41 : vector<8x16x8xbf16> to vector<128x8xbf16>
      %c0_29 = arith.constant 0 : index
      %c24 = arith.constant 24 : index
      %43 = vector.load %arg8[%c0_29, %c24] : memref<128x72xbf16, #tpu.memory_space<vmem>>, vector<128x8xbf16>
      tpu.vector_store %arg8[%c0_29, %c24], %42 {strides = array<i32>} : memref<128x72xbf16, #tpu.memory_space<vmem>>, vector<128x8xbf16>,
      %c1_i32_30 = arith.constant 1 : i32
      %44 = arith.addi %1, %c1_i32_30 : i32
      %c0_31 = arith.constant 0 : index
      %45 = arith.index_cast %44 : i32 to index
      %c1_32 = arith.constant 1 : index
      %c0_33 = arith.constant 0 : index
      %46 = vector.load %arg3[%c0_31, %45, %c1_32, %c0_33] : memref<1x18x18x8xbf16, #tpu.memory_space<vmem>>, vector<1x8x16x8xbf16>
      %47 = vector.shape_cast %46 : vector<1x8x16x8xbf16> to vector<8x16x8xbf16>
      %48 = vector.shape_cast %47 : vector<8x16x8xbf16> to vector<128x8xbf16>
      %c0_34 = arith.constant 0 : index
      %c32 = arith.constant 32 : index
      %49 = vector.load %arg8[%c0_34, %c32] : memref<128x72xbf16, #tpu.memory_space<vmem>>, vector<128x8xbf16>
      tpu.vector_store %arg8[%c0_34, %c32], %48 {strides = array<i32>} : memref<128x72xbf16, #tpu.memory_space<vmem>>, vector<128x8xbf16>,
      %c1_i32_35 = arith.constant 1 : i32
      %50 = arith.addi %1, %c1_i32_35 : i32
      %c0_36 = arith.constant 0 : index
      %51 = arith.index_cast %50 : i32 to index
      %c2_37 = arith.constant 2 : index
      %c0_38 = arith.constant 0 : index
      %52 = vector.load %arg3[%c0_36, %51, %c2_37, %c0_38] : memref<1x18x18x8xbf16, #tpu.memory_space<vmem>>, vector<1x8x16x8xbf16>
      %53 = vector.shape_cast %52 : vector<1x8x16x8xbf16> to vector<8x16x8xbf16>
      %54 = vector.shape_cast %53 : vector<8x16x8xbf16> to vector<128x8xbf16>
      %c0_39 = arith.constant 0 : index
      %c40 = arith.constant 40 : index
      %55 = vector.load %arg8[%c0_39, %c40] : memref<128x72xbf16, #tpu.memory_space<vmem>>, vector<128x8xbf16>
      tpu.vector_store %arg8[%c0_39, %c40], %54 {strides = array<i32>} : memref<128x72xbf16, #tpu.memory_space<vmem>>, vector<128x8xbf16>,
      %c2_i32 = arith.constant 2 : i32
      %56 = arith.addi %1, %c2_i32 : i32
      %c0_40 = arith.constant 0 : index
      %57 = arith.index_cast %56 : i32 to index
      %c0_41 = arith.constant 0 : index
      %c0_42 = arith.constant 0 : index
      %58 = vector.load %arg3[%c0_40, %57, %c0_41, %c0_42] : memref<1x18x18x8xbf16, #tpu.memory_space<vmem>>, vector<1x8x16x8xbf16>
      %59 = vector.shape_cast %58 : vector<1x8x16x8xbf16> to vector<8x16x8xbf16>
      %60 = vector.shape_cast %59 : vector<8x16x8xbf16> to vector<128x8xbf16>
      %c0_43 = arith.constant 0 : index
      %c48 = arith.constant 48 : index
      %61 = vector.load %arg8[%c0_43, %c48] : memref<128x72xbf16, #tpu.memory_space<vmem>>, vector<128x8xbf16>
      tpu.vector_store %arg8[%c0_43, %c48], %60 {strides = array<i32>} : memref<128x72xbf16, #tpu.memory_space<vmem>>, vector<128x8xbf16>,
      %c2_i32_44 = arith.constant 2 : i32
      %62 = arith.addi %1, %c2_i32_44 : i32
      %c0_45 = arith.constant 0 : index
      %63 = arith.index_cast %62 : i32 to index
      %c1_46 = arith.constant 1 : index
      %c0_47 = arith.constant 0 : index
      %64 = vector.load %arg3[%c0_45, %63, %c1_46, %c0_47] : memref<1x18x18x8xbf16, #tpu.memory_space<vmem>>, vector<1x8x16x8xbf16>
      %65 = vector.shape_cast %64 : vector<1x8x16x8xbf16> to vector<8x16x8xbf16>
      %66 = vector.shape_cast %65 : vector<8x16x8xbf16> to vector<128x8xbf16>
      %c0_48 = arith.constant 0 : index
      %c56 = arith.constant 56 : index
      %67 = vector.load %arg8[%c0_48, %c56] : memref<128x72xbf16, #tpu.memory_space<vmem>>, vector<128x8xbf16>
      tpu.vector_store %arg8[%c0_48, %c56], %66 {strides = array<i32>} : memref<128x72xbf16, #tpu.memory_space<vmem>>, vector<128x8xbf16>,
      %c2_i32_49 = arith.constant 2 : i32
      %68 = arith.addi %1, %c2_i32_49 : i32
      %c0_50 = arith.constant 0 : index
      %69 = arith.index_cast %68 : i32 to index
      %c2_51 = arith.constant 2 : index
      %c0_52 = arith.constant 0 : index
      %70 = vector.load %arg3[%c0_50, %69, %c2_51, %c0_52] : memref<1x18x18x8xbf16, #tpu.memory_space<vmem>>, vector<1x8x16x8xbf16>
      %71 = vector.shape_cast %70 : vector<1x8x16x8xbf16> to vector<8x16x8xbf16>
      %72 = vector.shape_cast %71 : vector<8x16x8xbf16> to vector<128x8xbf16>
      %c0_53 = arith.constant 0 : index
      %c64 = arith.constant 64 : index
      %73 = vector.load %arg8[%c0_53, %c64] : memref<128x72xbf16, #tpu.memory_space<vmem>>, vector<128x8xbf16>
      tpu.vector_store %arg8[%c0_53, %c64], %72 {strides = array<i32>} : memref<128x72xbf16, #tpu.memory_space<vmem>>, vector<128x8xbf16>,
    } else {
    }
    %c0 = arith.constant 0 : index
    %c0_1 = arith.constant 0 : index
    %5 = vector.load %arg8[%c0, %c0_1] : memref<128x72xbf16, #tpu.memory_space<vmem>>, vector<128x72xbf16>
    %c0_2 = arith.constant 0 : index
    %c0_3 = arith.constant 0 : index
    %6 = vector.load %arg4[%c0_2, %c0_3] : memref<72x8xbf16, #tpu.memory_space<vmem>>, vector<72x8xbf16>
    %cst = arith.constant dense<0.000000e+00> : vector<128x8xf32>
    %7 = tpu.matmul %5, %6, %cst {dimension_numbers = #tpu.dot_dimension_numbers<[1], [0], [0], [1], [0, 0, 1, 1], [], []>} : vector<128x72xbf16>, vector<72x8xbf16>, vector<128x8xf32> -> vector<128x8xf32>
    %c0_4 = arith.constant 0 : index
    %c0_5 = arith.constant 0 : index
    %8 = vector.load %arg5[%c0_4, %c0_5] : memref<1x8xf32, #tpu.memory_space<vmem>>, vector<1x8xf32>
    %9 = vector.broadcast %8 : vector<1x8xf32> to vector<128x8xf32>
    %10 = arith.mulf %7, %9 : vector<128x8xf32>
    %c0_6 = arith.constant 0 : index
    %c0_7 = arith.constant 0 : index
    %11 = vector.load %arg6[%c0_6, %c0_7] : memref<1x8xf32, #tpu.memory_space<vmem>>, vector<1x8xf32>
    %12 = vector.broadcast %11 : vector<1x8xf32> to vector<128x8xf32>
    %13 = arith.addf %10, %12 : vector<128x8xf32>
    %cst_8 = arith.constant 0.000000e+00 : f32
    %14 = vector.broadcast %cst_8 : f32 to vector<128x8xf32>
    %15 = arith.maximumf %13, %14 : vector<128x8xf32>
    %16 = arith.truncf %15 : vector<128x8xf32> to vector<128x8xbf16>
    %c0_9 = arith.constant 0 : index
    %c0_10 = arith.constant 0 : index
    %c0_11 = arith.constant 0 : index
    %17 = vector.load %arg7[%c0_9, %c0_10, %c0_11] : memref<1x128x8xbf16, #tpu.memory_space<vmem>>, vector<1x128x8xbf16>
    %18 = vector.shape_cast %17 : vector<1x128x8xbf16> to vector<128x8xbf16>
    %19 = vector.shape_cast %16 : vector<128x8xbf16> to vector<1x128x8xbf16>
    tpu.vector_store %arg7[%c0_9, %c0_10, %c0_11], %19 {strides = array<i32>} : memref<1x128x8xbf16, #tpu.memory_space<vmem>>, vector<1x128x8xbf16>,
    return
  }
  func.func @transform_0(%arg0: i32, %arg1: i32, %arg2: i32) -> (i32, i32, i32, i32) {
    %c0_i32 = arith.constant 0 : i32
    %c0_i32_0 = arith.constant 0 : i32
    %c0_i32_1 = arith.constant 0 : i32
    %c0_i32_2 = arith.constant 0 : i32
    return %arg0, %c0_i32, %c0_i32_0, %c0_i32_1 : i32, i32, i32, i32
  }
  func.func @transform_1(%arg0: i32, %arg1: i32, %arg2: i32) -> (i32, i32) {
    %c0_i32 = arith.constant 0 : i32
    %c0_i32_0 = arith.constant 0 : i32
    return %c0_i32, %arg2 : i32, i32
  }
  func.func @transform_2(%arg0: i32, %arg1: i32, %arg2: i32) -> (i32, i32) {
    %c0_i32 = arith.constant 0 : i32
    %c0_i32_0 = arith.constant 0 : i32
    return %c0_i32, %arg2 : i32, i32
  }
  func.func @transform_3(%arg0: i32, %arg1: i32, %arg2: i32) -> (i32, i32) {
    %c0_i32 = arith.constant 0 : i32
    %c0_i32_0 = arith.constant 0 : i32
    return %c0_i32, %arg2 : i32, i32
  }
  func.func @transform_4(%arg0: i32, %arg1: i32, %arg2: i32) -> (i32, i32, i32) {
    %c0_i32 = arith.constant 0 : i32
    return %arg0, %arg1, %arg2 : i32, i32, i32
  }
}

module attributes {stable_mosaic.version = 11 : i64} {
  func.func @kernel(%arg0: i32, %arg1: i32, %arg2: i32, %arg3: memref<1x18x18x8xbf16, #tpu.memory_space<vmem>>, %arg4: memref<72x8xbf16, #tpu.memory_space<vmem>>, %arg5: memref<1x8xf32, #tpu.memory_space<vmem>>, %arg6: memref<1x8xf32, #tpu.memory_space<vmem>>, %arg7: memref<1x32x8xbf16, #tpu.memory_space<vmem>>, %arg8: memref<1x32x8xi32, #tpu.memory_space<vmem>>, %arg9: memref<128x72xbf16, #tpu.memory_space<vmem>>) attributes {dimension_semantics = [#tpu.dimension_semantics<parallel>, #tpu.dimension_semantics<parallel>, #tpu.dimension_semantics<arbitrary>], iteration_bounds = array<i64: 2, 2, 1>, scalar_prefetch = 0 : i64, scratch_operands = 1 : i64, tpu.core_type = #tpu.core_type<tc>, window_params = [{transform_indices = @transform_0, window_bounds = array<i64: 1, 18, 18, 8>}, {transform_indices = @transform_1, window_bounds = array<i64: 72, 8>}, {transform_indices = @transform_2, window_bounds = array<i64: 1, 8>}, {transform_indices = @transform_3, window_bounds = array<i64: 1, 8>}, {transform_indices = @transform_4, window_bounds = array<i64: 1, 32, 8>}, {transform_indices = @transform_5, window_bounds = array<i64: 1, 32, 8>}]} {
    %c8_i32 = arith.constant 8 : i32
    %0 = arith.muli %arg1, %c8_i32 : i32
    %1 = tpu.assume_multiple %0, 8 : i32
    %c0_i32 = arith.constant 0 : i32
    %2 = arith.cmpi eq, %arg2, %c0_i32 : i32
    %3 = arith.extui %2 : i1 to i32
    %c0_i32_0 = arith.constant 0 : i32
    %4 = arith.cmpi ne, %3, %c0_i32_0 : i32
    scf.if %4 {
      %c0_i32_17 = arith.constant 0 : i32
      %67 = arith.addi %1, %c0_i32_17 : i32
      %c0_18 = arith.constant 0 : index
      %68 = arith.index_cast %67 : i32 to index
      %c0_19 = arith.constant 0 : index
      %c0_20 = arith.constant 0 : index
      %69 = vector.load %arg3[%c0_18, %68, %c0_19, %c0_20] : memref<1x18x18x8xbf16, #tpu.memory_space<vmem>>, vector<1x8x16x8xbf16>
      %70 = vector.shape_cast %69 : vector<1x8x16x8xbf16> to vector<8x16x8xbf16>
      %71 = vector.shape_cast %70 : vector<8x16x8xbf16> to vector<128x8xbf16>
      %c0_21 = arith.constant 0 : index
      %c0_22 = arith.constant 0 : index
      %72 = vector.load %arg9[%c0_21, %c0_22] : memref<128x72xbf16, #tpu.memory_space<vmem>>, vector<128x8xbf16>
      tpu.vector_store %arg9[%c0_21, %c0_22], %71 {strides = array<i32>} : memref<128x72xbf16, #tpu.memory_space<vmem>>, vector<128x8xbf16>,
      %c0_i32_23 = arith.constant 0 : i32
      %73 = arith.addi %1, %c0_i32_23 : i32
      %c0_24 = arith.constant 0 : index
      %74 = arith.index_cast %73 : i32 to index
      %c1 = arith.constant 1 : index
      %c0_25 = arith.constant 0 : index
      %75 = vector.load %arg3[%c0_24, %74, %c1, %c0_25] : memref<1x18x18x8xbf16, #tpu.memory_space<vmem>>, vector<1x8x16x8xbf16>
      %76 = vector.shape_cast %75 : vector<1x8x16x8xbf16> to vector<8x16x8xbf16>
      %77 = vector.shape_cast %76 : vector<8x16x8xbf16> to vector<128x8xbf16>
      %c0_26 = arith.constant 0 : index
      %c8 = arith.constant 8 : index
      %78 = vector.load %arg9[%c0_26, %c8] : memref<128x72xbf16, #tpu.memory_space<vmem>>, vector<128x8xbf16>
      tpu.vector_store %arg9[%c0_26, %c8], %77 {strides = array<i32>} : memref<128x72xbf16, #tpu.memory_space<vmem>>, vector<128x8xbf16>,
      %c0_i32_27 = arith.constant 0 : i32
      %79 = arith.addi %1, %c0_i32_27 : i32
      %c0_28 = arith.constant 0 : index
      %80 = arith.index_cast %79 : i32 to index
      %c2 = arith.constant 2 : index
      %c0_29 = arith.constant 0 : index
      %81 = vector.load %arg3[%c0_28, %80, %c2, %c0_29] : memref<1x18x18x8xbf16, #tpu.memory_space<vmem>>, vector<1x8x16x8xbf16>
      %82 = vector.shape_cast %81 : vector<1x8x16x8xbf16> to vector<8x16x8xbf16>
      %83 = vector.shape_cast %82 : vector<8x16x8xbf16> to vector<128x8xbf16>
      %c0_30 = arith.constant 0 : index
      %c16 = arith.constant 16 : index
      %84 = vector.load %arg9[%c0_30, %c16] : memref<128x72xbf16, #tpu.memory_space<vmem>>, vector<128x8xbf16>
      tpu.vector_store %arg9[%c0_30, %c16], %83 {strides = array<i32>} : memref<128x72xbf16, #tpu.memory_space<vmem>>, vector<128x8xbf16>,
      %c1_i32_31 = arith.constant 1 : i32
      %85 = arith.addi %1, %c1_i32_31 : i32
      %c0_32 = arith.constant 0 : index
      %86 = arith.index_cast %85 : i32 to index
      %c0_33 = arith.constant 0 : index
      %c0_34 = arith.constant 0 : index
      %87 = vector.load %arg3[%c0_32, %86, %c0_33, %c0_34] : memref<1x18x18x8xbf16, #tpu.memory_space<vmem>>, vector<1x8x16x8xbf16>
      %88 = vector.shape_cast %87 : vector<1x8x16x8xbf16> to vector<8x16x8xbf16>
      %89 = vector.shape_cast %88 : vector<8x16x8xbf16> to vector<128x8xbf16>
      %c0_35 = arith.constant 0 : index
      %c24 = arith.constant 24 : index
      %90 = vector.load %arg9[%c0_35, %c24] : memref<128x72xbf16, #tpu.memory_space<vmem>>, vector<128x8xbf16>
      tpu.vector_store %arg9[%c0_35, %c24], %89 {strides = array<i32>} : memref<128x72xbf16, #tpu.memory_space<vmem>>, vector<128x8xbf16>,
      %c1_i32_36 = arith.constant 1 : i32
      %91 = arith.addi %1, %c1_i32_36 : i32
      %c0_37 = arith.constant 0 : index
      %92 = arith.index_cast %91 : i32 to index
      %c1_38 = arith.constant 1 : index
      %c0_39 = arith.constant 0 : index
      %93 = vector.load %arg3[%c0_37, %92, %c1_38, %c0_39] : memref<1x18x18x8xbf16, #tpu.memory_space<vmem>>, vector<1x8x16x8xbf16>
      %94 = vector.shape_cast %93 : vector<1x8x16x8xbf16> to vector<8x16x8xbf16>
      %95 = vector.shape_cast %94 : vector<8x16x8xbf16> to vector<128x8xbf16>
      %c0_40 = arith.constant 0 : index
      %c32 = arith.constant 32 : index
      %96 = vector.load %arg9[%c0_40, %c32] : memref<128x72xbf16, #tpu.memory_space<vmem>>, vector<128x8xbf16>
      tpu.vector_store %arg9[%c0_40, %c32], %95 {strides = array<i32>} : memref<128x72xbf16, #tpu.memory_space<vmem>>, vector<128x8xbf16>,
      %c1_i32_41 = arith.constant 1 : i32
      %97 = arith.addi %1, %c1_i32_41 : i32
      %c0_42 = arith.constant 0 : index
      %98 = arith.index_cast %97 : i32 to index
      %c2_43 = arith.constant 2 : index
      %c0_44 = arith.constant 0 : index
      %99 = vector.load %arg3[%c0_42, %98, %c2_43, %c0_44] : memref<1x18x18x8xbf16, #tpu.memory_space<vmem>>, vector<1x8x16x8xbf16>
      %100 = vector.shape_cast %99 : vector<1x8x16x8xbf16> to vector<8x16x8xbf16>
      %101 = vector.shape_cast %100 : vector<8x16x8xbf16> to vector<128x8xbf16>
      %c0_45 = arith.constant 0 : index
      %c40 = arith.constant 40 : index
      %102 = vector.load %arg9[%c0_45, %c40] : memref<128x72xbf16, #tpu.memory_space<vmem>>, vector<128x8xbf16>
      tpu.vector_store %arg9[%c0_45, %c40], %101 {strides = array<i32>} : memref<128x72xbf16, #tpu.memory_space<vmem>>, vector<128x8xbf16>,
      %c2_i32_46 = arith.constant 2 : i32
      %103 = arith.addi %1, %c2_i32_46 : i32
      %c0_47 = arith.constant 0 : index
      %104 = arith.index_cast %103 : i32 to index
      %c0_48 = arith.constant 0 : index
      %c0_49 = arith.constant 0 : index
      %105 = vector.load %arg3[%c0_47, %104, %c0_48, %c0_49] : memref<1x18x18x8xbf16, #tpu.memory_space<vmem>>, vector<1x8x16x8xbf16>
      %106 = vector.shape_cast %105 : vector<1x8x16x8xbf16> to vector<8x16x8xbf16>
      %107 = vector.shape_cast %106 : vector<8x16x8xbf16> to vector<128x8xbf16>
      %c0_50 = arith.constant 0 : index
      %c48 = arith.constant 48 : index
      %108 = vector.load %arg9[%c0_50, %c48] : memref<128x72xbf16, #tpu.memory_space<vmem>>, vector<128x8xbf16>
      tpu.vector_store %arg9[%c0_50, %c48], %107 {strides = array<i32>} : memref<128x72xbf16, #tpu.memory_space<vmem>>, vector<128x8xbf16>,
      %c2_i32_51 = arith.constant 2 : i32
      %109 = arith.addi %1, %c2_i32_51 : i32
      %c0_52 = arith.constant 0 : index
      %110 = arith.index_cast %109 : i32 to index
      %c1_53 = arith.constant 1 : index
      %c0_54 = arith.constant 0 : index
      %111 = vector.load %arg3[%c0_52, %110, %c1_53, %c0_54] : memref<1x18x18x8xbf16, #tpu.memory_space<vmem>>, vector<1x8x16x8xbf16>
      %112 = vector.shape_cast %111 : vector<1x8x16x8xbf16> to vector<8x16x8xbf16>
      %113 = vector.shape_cast %112 : vector<8x16x8xbf16> to vector<128x8xbf16>
      %c0_55 = arith.constant 0 : index
      %c56 = arith.constant 56 : index
      %114 = vector.load %arg9[%c0_55, %c56] : memref<128x72xbf16, #tpu.memory_space<vmem>>, vector<128x8xbf16>
      tpu.vector_store %arg9[%c0_55, %c56], %113 {strides = array<i32>} : memref<128x72xbf16, #tpu.memory_space<vmem>>, vector<128x8xbf16>,
      %c2_i32_56 = arith.constant 2 : i32
      %115 = arith.addi %1, %c2_i32_56 : i32
      %c0_57 = arith.constant 0 : index
      %116 = arith.index_cast %115 : i32 to index
      %c2_58 = arith.constant 2 : index
      %c0_59 = arith.constant 0 : index
      %117 = vector.load %arg3[%c0_57, %116, %c2_58, %c0_59] : memref<1x18x18x8xbf16, #tpu.memory_space<vmem>>, vector<1x8x16x8xbf16>
      %118 = vector.shape_cast %117 : vector<1x8x16x8xbf16> to vector<8x16x8xbf16>
      %119 = vector.shape_cast %118 : vector<8x16x8xbf16> to vector<128x8xbf16>
      %c0_60 = arith.constant 0 : index
      %c64 = arith.constant 64 : index
      %120 = vector.load %arg9[%c0_60, %c64] : memref<128x72xbf16, #tpu.memory_space<vmem>>, vector<128x8xbf16>
      tpu.vector_store %arg9[%c0_60, %c64], %119 {strides = array<i32>} : memref<128x72xbf16, #tpu.memory_space<vmem>>, vector<128x8xbf16>,
    } else {
    }
    %c0 = arith.constant 0 : index
    %c0_1 = arith.constant 0 : index
    %5 = vector.load %arg9[%c0, %c0_1] : memref<128x72xbf16, #tpu.memory_space<vmem>>, vector<128x72xbf16>
    %c0_2 = arith.constant 0 : index
    %c0_3 = arith.constant 0 : index
    %6 = vector.load %arg4[%c0_2, %c0_3] : memref<72x8xbf16, #tpu.memory_space<vmem>>, vector<72x8xbf16>
    %cst = arith.constant dense<0.000000e+00> : vector<128x8xf32>
    %7 = tpu.matmul %5, %6, %cst {dimension_numbers = #tpu.dot_dimension_numbers<[1], [0], [0], [1], [0, 0, 1, 1], [], []>} : vector<128x72xbf16>, vector<72x8xbf16>, vector<128x8xf32> -> vector<128x8xf32>
    %c0_4 = arith.constant 0 : index
    %c0_5 = arith.constant 0 : index
    %8 = vector.load %arg5[%c0_4, %c0_5] : memref<1x8xf32, #tpu.memory_space<vmem>>, vector<1x8xf32>
    %9 = vector.broadcast %8 : vector<1x8xf32> to vector<128x8xf32>
    %10 = arith.mulf %7, %9 : vector<128x8xf32>
    %c0_6 = arith.constant 0 : index
    %c0_7 = arith.constant 0 : index
    %11 = vector.load %arg6[%c0_6, %c0_7] : memref<1x8xf32, #tpu.memory_space<vmem>>, vector<1x8xf32>
    %12 = vector.broadcast %11 : vector<1x8xf32> to vector<128x8xf32>
    %13 = arith.addf %10, %12 : vector<128x8xf32>
    %cst_8 = arith.constant 0.000000e+00 : f32
    %14 = vector.broadcast %cst_8 : f32 to vector<128x8xf32>
    %15 = arith.maximumf %13, %14 : vector<128x8xf32>
    %16 = vector.shape_cast %15 : vector<128x8xf32> to vector<8x8x2x8xf32>
    %17 = vector.extract_strided_slice %16 {offsets = [0, 0, 0, 0], sizes = [8, 8, 1, 8], strides = [1, 1, 1, 1]} : vector<8x8x2x8xf32> to vector<8x8x1x8xf32>
    %18 = vector.shape_cast %17 : vector<8x8x1x8xf32> to vector<8x8x8xf32>
    %19 = vector.shape_cast %18 : vector<8x8x8xf32> to vector<4x2x8x8xf32>
    %20 = vector.extract_strided_slice %16 {offsets = [0, 0, 1, 0], sizes = [8, 8, 1, 8], strides = [1, 1, 1, 1]} : vector<8x8x2x8xf32> to vector<8x8x1x8xf32>
    %21 = vector.shape_cast %20 : vector<8x8x1x8xf32> to vector<8x8x8xf32>
    %22 = vector.shape_cast %21 : vector<8x8x8xf32> to vector<4x2x8x8xf32>
    %23 = vector.extract_strided_slice %19 {offsets = [0, 0, 0, 0], sizes = [4, 1, 8, 8], strides = [1, 1, 1, 1]} : vector<4x2x8x8xf32> to vector<4x1x8x8xf32>
    %24 = vector.shape_cast %23 : vector<4x1x8x8xf32> to vector<4x8x8xf32>
    %25 = vector.extract_strided_slice %19 {offsets = [0, 1, 0, 0], sizes = [4, 1, 8, 8], strides = [1, 1, 1, 1]} : vector<4x2x8x8xf32> to vector<4x1x8x8xf32>
    %26 = vector.shape_cast %25 : vector<4x1x8x8xf32> to vector<4x8x8xf32>
    %27 = vector.extract_strided_slice %22 {offsets = [0, 0, 0, 0], sizes = [4, 1, 8, 8], strides = [1, 1, 1, 1]} : vector<4x2x8x8xf32> to vector<4x1x8x8xf32>
    %28 = vector.shape_cast %27 : vector<4x1x8x8xf32> to vector<4x8x8xf32>
    %29 = vector.extract_strided_slice %22 {offsets = [0, 1, 0, 0], sizes = [4, 1, 8, 8], strides = [1, 1, 1, 1]} : vector<4x2x8x8xf32> to vector<4x1x8x8xf32>
    %30 = vector.shape_cast %29 : vector<4x1x8x8xf32> to vector<4x8x8xf32>
    %31 = tpu.iota {dimensions = array<i32: 0>} : vector<4x8x8xi32>
    %32 = tpu.iota {dimensions = array<i32: 1>} : vector<4x8x8xi32>
    %c4_i32 = arith.constant 4 : i32
    %33 = arith.muli %arg1, %c4_i32 : i32
    %34 = vector.broadcast %33 : i32 to vector<4x8x8xi32>
    %35 = arith.addi %34, %31 : vector<4x8x8xi32>
    %c2_i32 = arith.constant 2 : i32
    %36 = vector.broadcast %c2_i32 : i32 to vector<4x8x8xi32>
    %37 = arith.muli %36, %35 : vector<4x8x8xi32>
    %c16_i32 = arith.constant 16 : i32
    %38 = vector.broadcast %c16_i32 : i32 to vector<4x8x8xi32>
    %39 = arith.muli %37, %38 : vector<4x8x8xi32>
    %c2_i32_9 = arith.constant 2 : i32
    %40 = vector.broadcast %c2_i32_9 : i32 to vector<4x8x8xi32>
    %41 = arith.muli %40, %32 : vector<4x8x8xi32>
    %42 = arith.addi %39, %41 : vector<4x8x8xi32>
    %43 = arith.cmpf ogt, %28, %24 : vector<4x8x8xf32>
    %44 = arith.select %43, %28, %24 : vector<4x8x8xi1>, vector<4x8x8xf32>
    %c1_i32 = arith.constant 1 : i32
    %45 = vector.broadcast %c1_i32 : i32 to vector<4x8x8xi32>
    %46 = arith.addi %42, %45 : vector<4x8x8xi32>
    %47 = arith.select %43, %46, %42 : vector<4x8x8xi1>, vector<4x8x8xi32>
    %48 = arith.cmpf ogt, %26, %44 : vector<4x8x8xf32>
    %49 = arith.select %48, %26, %44 : vector<4x8x8xi1>, vector<4x8x8xf32>
    %c16_i32_10 = arith.constant 16 : i32
    %50 = vector.broadcast %c16_i32_10 : i32 to vector<4x8x8xi32>
    %51 = arith.addi %42, %50 : vector<4x8x8xi32>
    %52 = arith.select %48, %51, %47 : vector<4x8x8xi1>, vector<4x8x8xi32>
    %53 = arith.cmpf ogt, %30, %49 : vector<4x8x8xf32>
    %54 = arith.select %53, %30, %49 : vector<4x8x8xi1>, vector<4x8x8xf32>
    %c17_i32 = arith.constant 17 : i32
    %55 = vector.broadcast %c17_i32 : i32 to vector<4x8x8xi32>
    %56 = arith.addi %42, %55 : vector<4x8x8xi32>
    %57 = arith.select %53, %56, %52 : vector<4x8x8xi1>, vector<4x8x8xi32>
    %58 = vector.shape_cast %54 : vector<4x8x8xf32> to vector<32x8xf32>
    %59 = arith.truncf %58 : vector<32x8xf32> to vector<32x8xbf16>
    %c0_11 = arith.constant 0 : index
    %c0_12 = arith.constant 0 : index
    %c0_13 = arith.constant 0 : index
    %60 = vector.load %arg7[%c0_11, %c0_12, %c0_13] : memref<1x32x8xbf16, #tpu.memory_space<vmem>>, vector<1x32x8xbf16>
    %61 = vector.shape_cast %60 : vector<1x32x8xbf16> to vector<32x8xbf16>
    %62 = vector.shape_cast %59 : vector<32x8xbf16> to vector<1x32x8xbf16>
    tpu.vector_store %arg7[%c0_11, %c0_12, %c0_13], %62 {strides = array<i32>} : memref<1x32x8xbf16, #tpu.memory_space<vmem>>, vector<1x32x8xbf16>,
    %63 = vector.shape_cast %57 : vector<4x8x8xi32> to vector<32x8xi32>
    %c0_14 = arith.constant 0 : index
    %c0_15 = arith.constant 0 : index
    %c0_16 = arith.constant 0 : index
    %64 = vector.load %arg8[%c0_14, %c0_15, %c0_16] : memref<1x32x8xi32, #tpu.memory_space<vmem>>, vector<1x32x8xi32>
    %65 = vector.shape_cast %64 : vector<1x32x8xi32> to vector<32x8xi32>
    %66 = vector.shape_cast %63 : vector<32x8xi32> to vector<1x32x8xi32>
    tpu.vector_store %arg8[%c0_14, %c0_15, %c0_16], %66 {strides = array<i32>} : memref<1x32x8xi32, #tpu.memory_space<vmem>>, vector<1x32x8xi32>,
    return
  }
  func.func @transform_0(%arg0: i32, %arg1: i32, %arg2: i32) -> (i32, i32, i32, i32) {
    %c0_i32 = arith.constant 0 : i32
    %c0_i32_0 = arith.constant 0 : i32
    %c0_i32_1 = arith.constant 0 : i32
    %c0_i32_2 = arith.constant 0 : i32
    return %arg0, %c0_i32, %c0_i32_0, %c0_i32_1 : i32, i32, i32, i32
  }
  func.func @transform_1(%arg0: i32, %arg1: i32, %arg2: i32) -> (i32, i32) {
    %c0_i32 = arith.constant 0 : i32
    %c0_i32_0 = arith.constant 0 : i32
    return %c0_i32, %arg2 : i32, i32
  }
  func.func @transform_2(%arg0: i32, %arg1: i32, %arg2: i32) -> (i32, i32) {
    %c0_i32 = arith.constant 0 : i32
    %c0_i32_0 = arith.constant 0 : i32
    return %c0_i32, %arg2 : i32, i32
  }
  func.func @transform_3(%arg0: i32, %arg1: i32, %arg2: i32) -> (i32, i32) {
    %c0_i32 = arith.constant 0 : i32
    %c0_i32_0 = arith.constant 0 : i32
    return %c0_i32, %arg2 : i32, i32
  }
  func.func @transform_4(%arg0: i32, %arg1: i32, %arg2: i32) -> (i32, i32, i32) {
    %c0_i32 = arith.constant 0 : i32
    return %arg0, %arg1, %arg2 : i32, i32, i32
  }
  func.func @transform_5(%arg0: i32, %arg1: i32, %arg2: i32) -> (i32, i32, i32) {
    %c0_i32 = arith.constant 0 : i32
    return %arg0, %arg1, %arg2 : i32, i32, i32
  }
}

module attributes {stable_mosaic.version = 11 : i64} {
  func.func @kernel(%arg0: i32, %arg1: i32, %arg2: i32, %arg3: memref<1x10x10x8xbf16, #tpu.memory_space<vmem>>, %arg4: memref<72x16xbf16, #tpu.memory_space<vmem>>, %arg5: memref<1x16xf32, #tpu.memory_space<vmem>>, %arg6: memref<1x16xf32, #tpu.memory_space<vmem>>, %arg7: memref<1x64x16xbf16, #tpu.memory_space<vmem>>, %arg8: memref<64x72xbf16, #tpu.memory_space<vmem>>) attributes {dimension_semantics = [#tpu.dimension_semantics<parallel>, #tpu.dimension_semantics<parallel>, #tpu.dimension_semantics<arbitrary>], iteration_bounds = array<i64: 2, 1, 1>, scalar_prefetch = 0 : i64, scratch_operands = 1 : i64, tpu.core_type = #tpu.core_type<tc>, window_params = [{transform_indices = @transform_0, window_bounds = array<i64: 1, 10, 10, 8>}, {transform_indices = @transform_1, window_bounds = array<i64: 72, 16>}, {transform_indices = @transform_2, window_bounds = array<i64: 1, 16>}, {transform_indices = @transform_3, window_bounds = array<i64: 1, 16>}, {transform_indices = @transform_4, window_bounds = array<i64: 1, 64, 16>}]} {
    %c8_i32 = arith.constant 8 : i32
    %0 = arith.muli %arg1, %c8_i32 : i32
    %1 = tpu.assume_multiple %0, 8 : i32
    %c0_i32 = arith.constant 0 : i32
    %2 = arith.cmpi eq, %arg2, %c0_i32 : i32
    %3 = arith.extui %2 : i1 to i32
    %c0_i32_0 = arith.constant 0 : i32
    %4 = arith.cmpi ne, %3, %c0_i32_0 : i32
    scf.if %4 {
      %c0_i32_12 = arith.constant 0 : i32
      %20 = arith.addi %1, %c0_i32_12 : i32
      %c0_13 = arith.constant 0 : index
      %21 = arith.index_cast %20 : i32 to index
      %c0_14 = arith.constant 0 : index
      %c0_15 = arith.constant 0 : index
      %22 = vector.load %arg3[%c0_13, %21, %c0_14, %c0_15] : memref<1x10x10x8xbf16, #tpu.memory_space<vmem>>, vector<1x8x8x8xbf16>
      %23 = vector.shape_cast %22 : vector<1x8x8x8xbf16> to vector<8x8x8xbf16>
      %24 = vector.shape_cast %23 : vector<8x8x8xbf16> to vector<64x8xbf16>
      %c0_16 = arith.constant 0 : index
      %c0_17 = arith.constant 0 : index
      %25 = vector.load %arg8[%c0_16, %c0_17] : memref<64x72xbf16, #tpu.memory_space<vmem>>, vector<64x8xbf16>
      tpu.vector_store %arg8[%c0_16, %c0_17], %24 {strides = array<i32>} : memref<64x72xbf16, #tpu.memory_space<vmem>>, vector<64x8xbf16>,
      %c0_i32_18 = arith.constant 0 : i32
      %26 = arith.addi %1, %c0_i32_18 : i32
      %c0_19 = arith.constant 0 : index
      %27 = arith.index_cast %26 : i32 to index
      %c1 = arith.constant 1 : index
      %c0_20 = arith.constant 0 : index
      %28 = vector.load %arg3[%c0_19, %27, %c1, %c0_20] : memref<1x10x10x8xbf16, #tpu.memory_space<vmem>>, vector<1x8x8x8xbf16>
      %29 = vector.shape_cast %28 : vector<1x8x8x8xbf16> to vector<8x8x8xbf16>
      %30 = vector.shape_cast %29 : vector<8x8x8xbf16> to vector<64x8xbf16>
      %c0_21 = arith.constant 0 : index
      %c8 = arith.constant 8 : index
      %31 = vector.load %arg8[%c0_21, %c8] : memref<64x72xbf16, #tpu.memory_space<vmem>>, vector<64x8xbf16>
      tpu.vector_store %arg8[%c0_21, %c8], %30 {strides = array<i32>} : memref<64x72xbf16, #tpu.memory_space<vmem>>, vector<64x8xbf16>,
      %c0_i32_22 = arith.constant 0 : i32
      %32 = arith.addi %1, %c0_i32_22 : i32
      %c0_23 = arith.constant 0 : index
      %33 = arith.index_cast %32 : i32 to index
      %c2 = arith.constant 2 : index
      %c0_24 = arith.constant 0 : index
      %34 = vector.load %arg3[%c0_23, %33, %c2, %c0_24] : memref<1x10x10x8xbf16, #tpu.memory_space<vmem>>, vector<1x8x8x8xbf16>
      %35 = vector.shape_cast %34 : vector<1x8x8x8xbf16> to vector<8x8x8xbf16>
      %36 = vector.shape_cast %35 : vector<8x8x8xbf16> to vector<64x8xbf16>
      %c0_25 = arith.constant 0 : index
      %c16 = arith.constant 16 : index
      %37 = vector.load %arg8[%c0_25, %c16] : memref<64x72xbf16, #tpu.memory_space<vmem>>, vector<64x8xbf16>
      tpu.vector_store %arg8[%c0_25, %c16], %36 {strides = array<i32>} : memref<64x72xbf16, #tpu.memory_space<vmem>>, vector<64x8xbf16>,
      %c1_i32 = arith.constant 1 : i32
      %38 = arith.addi %1, %c1_i32 : i32
      %c0_26 = arith.constant 0 : index
      %39 = arith.index_cast %38 : i32 to index
      %c0_27 = arith.constant 0 : index
      %c0_28 = arith.constant 0 : index
      %40 = vector.load %arg3[%c0_26, %39, %c0_27, %c0_28] : memref<1x10x10x8xbf16, #tpu.memory_space<vmem>>, vector<1x8x8x8xbf16>
      %41 = vector.shape_cast %40 : vector<1x8x8x8xbf16> to vector<8x8x8xbf16>
      %42 = vector.shape_cast %41 : vector<8x8x8xbf16> to vector<64x8xbf16>
      %c0_29 = arith.constant 0 : index
      %c24 = arith.constant 24 : index
      %43 = vector.load %arg8[%c0_29, %c24] : memref<64x72xbf16, #tpu.memory_space<vmem>>, vector<64x8xbf16>
      tpu.vector_store %arg8[%c0_29, %c24], %42 {strides = array<i32>} : memref<64x72xbf16, #tpu.memory_space<vmem>>, vector<64x8xbf16>,
      %c1_i32_30 = arith.constant 1 : i32
      %44 = arith.addi %1, %c1_i32_30 : i32
      %c0_31 = arith.constant 0 : index
      %45 = arith.index_cast %44 : i32 to index
      %c1_32 = arith.constant 1 : index
      %c0_33 = arith.constant 0 : index
      %46 = vector.load %arg3[%c0_31, %45, %c1_32, %c0_33] : memref<1x10x10x8xbf16, #tpu.memory_space<vmem>>, vector<1x8x8x8xbf16>
      %47 = vector.shape_cast %46 : vector<1x8x8x8xbf16> to vector<8x8x8xbf16>
      %48 = vector.shape_cast %47 : vector<8x8x8xbf16> to vector<64x8xbf16>
      %c0_34 = arith.constant 0 : index
      %c32 = arith.constant 32 : index
      %49 = vector.load %arg8[%c0_34, %c32] : memref<64x72xbf16, #tpu.memory_space<vmem>>, vector<64x8xbf16>
      tpu.vector_store %arg8[%c0_34, %c32], %48 {strides = array<i32>} : memref<64x72xbf16, #tpu.memory_space<vmem>>, vector<64x8xbf16>,
      %c1_i32_35 = arith.constant 1 : i32
      %50 = arith.addi %1, %c1_i32_35 : i32
      %c0_36 = arith.constant 0 : index
      %51 = arith.index_cast %50 : i32 to index
      %c2_37 = arith.constant 2 : index
      %c0_38 = arith.constant 0 : index
      %52 = vector.load %arg3[%c0_36, %51, %c2_37, %c0_38] : memref<1x10x10x8xbf16, #tpu.memory_space<vmem>>, vector<1x8x8x8xbf16>
      %53 = vector.shape_cast %52 : vector<1x8x8x8xbf16> to vector<8x8x8xbf16>
      %54 = vector.shape_cast %53 : vector<8x8x8xbf16> to vector<64x8xbf16>
      %c0_39 = arith.constant 0 : index
      %c40 = arith.constant 40 : index
      %55 = vector.load %arg8[%c0_39, %c40] : memref<64x72xbf16, #tpu.memory_space<vmem>>, vector<64x8xbf16>
      tpu.vector_store %arg8[%c0_39, %c40], %54 {strides = array<i32>} : memref<64x72xbf16, #tpu.memory_space<vmem>>, vector<64x8xbf16>,
      %c2_i32 = arith.constant 2 : i32
      %56 = arith.addi %1, %c2_i32 : i32
      %c0_40 = arith.constant 0 : index
      %57 = arith.index_cast %56 : i32 to index
      %c0_41 = arith.constant 0 : index
      %c0_42 = arith.constant 0 : index
      %58 = vector.load %arg3[%c0_40, %57, %c0_41, %c0_42] : memref<1x10x10x8xbf16, #tpu.memory_space<vmem>>, vector<1x8x8x8xbf16>
      %59 = vector.shape_cast %58 : vector<1x8x8x8xbf16> to vector<8x8x8xbf16>
      %60 = vector.shape_cast %59 : vector<8x8x8xbf16> to vector<64x8xbf16>
      %c0_43 = arith.constant 0 : index
      %c48 = arith.constant 48 : index
      %61 = vector.load %arg8[%c0_43, %c48] : memref<64x72xbf16, #tpu.memory_space<vmem>>, vector<64x8xbf16>
      tpu.vector_store %arg8[%c0_43, %c48], %60 {strides = array<i32>} : memref<64x72xbf16, #tpu.memory_space<vmem>>, vector<64x8xbf16>,
      %c2_i32_44 = arith.constant 2 : i32
      %62 = arith.addi %1, %c2_i32_44 : i32
      %c0_45 = arith.constant 0 : index
      %63 = arith.index_cast %62 : i32 to index
      %c1_46 = arith.constant 1 : index
      %c0_47 = arith.constant 0 : index
      %64 = vector.load %arg3[%c0_45, %63, %c1_46, %c0_47] : memref<1x10x10x8xbf16, #tpu.memory_space<vmem>>, vector<1x8x8x8xbf16>
      %65 = vector.shape_cast %64 : vector<1x8x8x8xbf16> to vector<8x8x8xbf16>
      %66 = vector.shape_cast %65 : vector<8x8x8xbf16> to vector<64x8xbf16>
      %c0_48 = arith.constant 0 : index
      %c56 = arith.constant 56 : index
      %67 = vector.load %arg8[%c0_48, %c56] : memref<64x72xbf16, #tpu.memory_space<vmem>>, vector<64x8xbf16>
      tpu.vector_store %arg8[%c0_48, %c56], %66 {strides = array<i32>} : memref<64x72xbf16, #tpu.memory_space<vmem>>, vector<64x8xbf16>,
      %c2_i32_49 = arith.constant 2 : i32
      %68 = arith.addi %1, %c2_i32_49 : i32
      %c0_50 = arith.constant 0 : index
      %69 = arith.index_cast %68 : i32 to index
      %c2_51 = arith.constant 2 : index
      %c0_52 = arith.constant 0 : index
      %70 = vector.load %arg3[%c0_50, %69, %c2_51, %c0_52] : memref<1x10x10x8xbf16, #tpu.memory_space<vmem>>, vector<1x8x8x8xbf16>
      %71 = vector.shape_cast %70 : vector<1x8x8x8xbf16> to vector<8x8x8xbf16>
      %72 = vector.shape_cast %71 : vector<8x8x8xbf16> to vector<64x8xbf16>
      %c0_53 = arith.constant 0 : index
      %c64 = arith.constant 64 : index
      %73 = vector.load %arg8[%c0_53, %c64] : memref<64x72xbf16, #tpu.memory_space<vmem>>, vector<64x8xbf16>
      tpu.vector_store %arg8[%c0_53, %c64], %72 {strides = array<i32>} : memref<64x72xbf16, #tpu.memory_space<vmem>>, vector<64x8xbf16>,
    } else {
    }
    %c0 = arith.constant 0 : index
    %c0_1 = arith.constant 0 : index
    %5 = vector.load %arg8[%c0, %c0_1] : memref<64x72xbf16, #tpu.memory_space<vmem>>, vector<64x72xbf16>
    %c0_2 = arith.constant 0 : index
    %c0_3 = arith.constant 0 : index
    %6 = vector.load %arg4[%c0_2, %c0_3] : memref<72x16xbf16, #tpu.memory_space<vmem>>, vector<72x16xbf16>
    %cst = arith.constant dense<0.000000e+00> : vector<64x16xf32>
    %7 = tpu.matmul %5, %6, %cst {dimension_numbers = #tpu.dot_dimension_numbers<[1], [0], [0], [1], [0, 0, 1, 1], [], []>} : vector<64x72xbf16>, vector<72x16xbf16>, vector<64x16xf32> -> vector<64x16xf32>
    %c0_4 = arith.constant 0 : index
    %c0_5 = arith.constant 0 : index
    %8 = vector.load %arg5[%c0_4, %c0_5] : memref<1x16xf32, #tpu.memory_space<vmem>>, vector<1x16xf32>
    %9 = vector.broadcast %8 : vector<1x16xf32> to vector<64x16xf32>
    %10 = arith.mulf %7, %9 : vector<64x16xf32>
    %c0_6 = arith.constant 0 : index
    %c0_7 = arith.constant 0 : index
    %11 = vector.load %arg6[%c0_6, %c0_7] : memref<1x16xf32, #tpu.memory_space<vmem>>, vector<1x16xf32>
    %12 = vector.broadcast %11 : vector<1x16xf32> to vector<64x16xf32>
    %13 = arith.addf %10, %12 : vector<64x16xf32>
    %cst_8 = arith.constant 0.000000e+00 : f32
    %14 = vector.broadcast %cst_8 : f32 to vector<64x16xf32>
    %15 = arith.maximumf %13, %14 : vector<64x16xf32>
    %16 = arith.truncf %15 : vector<64x16xf32> to vector<64x16xbf16>
    %c0_9 = arith.constant 0 : index
    %c0_10 = arith.constant 0 : index
    %c0_11 = arith.constant 0 : index
    %17 = vector.load %arg7[%c0_9, %c0_10, %c0_11] : memref<1x64x16xbf16, #tpu.memory_space<vmem>>, vector<1x64x16xbf16>
    %18 = vector.shape_cast %17 : vector<1x64x16xbf16> to vector<64x16xbf16>
    %19 = vector.shape_cast %16 : vector<64x16xbf16> to vector<1x64x16xbf16>
    tpu.vector_store %arg7[%c0_9, %c0_10, %c0_11], %19 {strides = array<i32>} : memref<1x64x16xbf16, #tpu.memory_space<vmem>>, vector<1x64x16xbf16>,
    return
  }
  func.func @transform_0(%arg0: i32, %arg1: i32, %arg2: i32) -> (i32, i32, i32, i32) {
    %c0_i32 = arith.constant 0 : i32
    %c0_i32_0 = arith.constant 0 : i32
    %c0_i32_1 = arith.constant 0 : i32
    %c0_i32_2 = arith.constant 0 : i32
    return %arg0, %c0_i32, %c0_i32_0, %c0_i32_1 : i32, i32, i32, i32
  }
  func.func @transform_1(%arg0: i32, %arg1: i32, %arg2: i32) -> (i32, i32) {
    %c0_i32 = arith.constant 0 : i32
    %c0_i32_0 = arith.constant 0 : i32
    return %c0_i32, %arg2 : i32, i32
  }
  func.func @transform_2(%arg0: i32, %arg1: i32, %arg2: i32) -> (i32, i32) {
    %c0_i32 = arith.constant 0 : i32
    %c0_i32_0 = arith.constant 0 : i32
    return %c0_i32, %arg2 : i32, i32
  }
  func.func @transform_3(%arg0: i32, %arg1: i32, %arg2: i32) -> (i32, i32) {
    %c0_i32 = arith.constant 0 : i32
    %c0_i32_0 = arith.constant 0 : i32
    return %c0_i32, %arg2 : i32, i32
  }
  func.func @transform_4(%arg0: i32, %arg1: i32, %arg2: i32) -> (i32, i32, i32) {
    %c0_i32 = arith.constant 0 : i32
    return %arg0, %arg1, %arg2 : i32, i32, i32
  }
}

module attributes {stable_mosaic.version = 11 : i64} {
  func.func @kernel(%arg0: i32, %arg1: i32, %arg2: i32, %arg3: memref<1x10x10x16xbf16, #tpu.memory_space<vmem>>, %arg4: memref<144x16xbf16, #tpu.memory_space<vmem>>, %arg5: memref<1x16xf32, #tpu.memory_space<vmem>>, %arg6: memref<1x16xf32, #tpu.memory_space<vmem>>, %arg7: memref<1x16x16xbf16, #tpu.memory_space<vmem>>, %arg8: memref<1x16x16xi32, #tpu.memory_space<vmem>>, %arg9: memref<64x144xbf16, #tpu.memory_space<vmem>>) attributes {dimension_semantics = [#tpu.dimension_semantics<parallel>, #tpu.dimension_semantics<parallel>, #tpu.dimension_semantics<arbitrary>], iteration_bounds = array<i64: 2, 1, 1>, scalar_prefetch = 0 : i64, scratch_operands = 1 : i64, tpu.core_type = #tpu.core_type<tc>, window_params = [{transform_indices = @transform_0, window_bounds = array<i64: 1, 10, 10, 16>}, {transform_indices = @transform_1, window_bounds = array<i64: 144, 16>}, {transform_indices = @transform_2, window_bounds = array<i64: 1, 16>}, {transform_indices = @transform_3, window_bounds = array<i64: 1, 16>}, {transform_indices = @transform_4, window_bounds = array<i64: 1, 16, 16>}, {transform_indices = @transform_5, window_bounds = array<i64: 1, 16, 16>}]} {
    %c8_i32 = arith.constant 8 : i32
    %0 = arith.muli %arg1, %c8_i32 : i32
    %1 = tpu.assume_multiple %0, 8 : i32
    %c0_i32 = arith.constant 0 : i32
    %2 = arith.cmpi eq, %arg2, %c0_i32 : i32
    %3 = arith.extui %2 : i1 to i32
    %c0_i32_0 = arith.constant 0 : i32
    %4 = arith.cmpi ne, %3, %c0_i32_0 : i32
    scf.if %4 {
      %c0_i32_18 = arith.constant 0 : i32
      %67 = arith.addi %1, %c0_i32_18 : i32
      %c0_19 = arith.constant 0 : index
      %68 = arith.index_cast %67 : i32 to index
      %c0_20 = arith.constant 0 : index
      %c0_21 = arith.constant 0 : index
      %69 = vector.load %arg3[%c0_19, %68, %c0_20, %c0_21] : memref<1x10x10x16xbf16, #tpu.memory_space<vmem>>, vector<1x8x8x16xbf16>
      %70 = vector.shape_cast %69 : vector<1x8x8x16xbf16> to vector<8x8x16xbf16>
      %71 = vector.shape_cast %70 : vector<8x8x16xbf16> to vector<64x16xbf16>
      %c0_22 = arith.constant 0 : index
      %c0_23 = arith.constant 0 : index
      %72 = vector.load %arg9[%c0_22, %c0_23] : memref<64x144xbf16, #tpu.memory_space<vmem>>, vector<64x16xbf16>
      tpu.vector_store %arg9[%c0_22, %c0_23], %71 {strides = array<i32>} : memref<64x144xbf16, #tpu.memory_space<vmem>>, vector<64x16xbf16>,
      %c0_i32_24 = arith.constant 0 : i32
      %73 = arith.addi %1, %c0_i32_24 : i32
      %c0_25 = arith.constant 0 : index
      %74 = arith.index_cast %73 : i32 to index
      %c1 = arith.constant 1 : index
      %c0_26 = arith.constant 0 : index
      %75 = vector.load %arg3[%c0_25, %74, %c1, %c0_26] : memref<1x10x10x16xbf16, #tpu.memory_space<vmem>>, vector<1x8x8x16xbf16>
      %76 = vector.shape_cast %75 : vector<1x8x8x16xbf16> to vector<8x8x16xbf16>
      %77 = vector.shape_cast %76 : vector<8x8x16xbf16> to vector<64x16xbf16>
      %c0_27 = arith.constant 0 : index
      %c16 = arith.constant 16 : index
      %78 = vector.load %arg9[%c0_27, %c16] : memref<64x144xbf16, #tpu.memory_space<vmem>>, vector<64x16xbf16>
      tpu.vector_store %arg9[%c0_27, %c16], %77 {strides = array<i32>} : memref<64x144xbf16, #tpu.memory_space<vmem>>, vector<64x16xbf16>,
      %c0_i32_28 = arith.constant 0 : i32
      %79 = arith.addi %1, %c0_i32_28 : i32
      %c0_29 = arith.constant 0 : index
      %80 = arith.index_cast %79 : i32 to index
      %c2 = arith.constant 2 : index
      %c0_30 = arith.constant 0 : index
      %81 = vector.load %arg3[%c0_29, %80, %c2, %c0_30] : memref<1x10x10x16xbf16, #tpu.memory_space<vmem>>, vector<1x8x8x16xbf16>
      %82 = vector.shape_cast %81 : vector<1x8x8x16xbf16> to vector<8x8x16xbf16>
      %83 = vector.shape_cast %82 : vector<8x8x16xbf16> to vector<64x16xbf16>
      %c0_31 = arith.constant 0 : index
      %c32 = arith.constant 32 : index
      %84 = vector.load %arg9[%c0_31, %c32] : memref<64x144xbf16, #tpu.memory_space<vmem>>, vector<64x16xbf16>
      tpu.vector_store %arg9[%c0_31, %c32], %83 {strides = array<i32>} : memref<64x144xbf16, #tpu.memory_space<vmem>>, vector<64x16xbf16>,
      %c1_i32_32 = arith.constant 1 : i32
      %85 = arith.addi %1, %c1_i32_32 : i32
      %c0_33 = arith.constant 0 : index
      %86 = arith.index_cast %85 : i32 to index
      %c0_34 = arith.constant 0 : index
      %c0_35 = arith.constant 0 : index
      %87 = vector.load %arg3[%c0_33, %86, %c0_34, %c0_35] : memref<1x10x10x16xbf16, #tpu.memory_space<vmem>>, vector<1x8x8x16xbf16>
      %88 = vector.shape_cast %87 : vector<1x8x8x16xbf16> to vector<8x8x16xbf16>
      %89 = vector.shape_cast %88 : vector<8x8x16xbf16> to vector<64x16xbf16>
      %c0_36 = arith.constant 0 : index
      %c48 = arith.constant 48 : index
      %90 = vector.load %arg9[%c0_36, %c48] : memref<64x144xbf16, #tpu.memory_space<vmem>>, vector<64x16xbf16>
      tpu.vector_store %arg9[%c0_36, %c48], %89 {strides = array<i32>} : memref<64x144xbf16, #tpu.memory_space<vmem>>, vector<64x16xbf16>,
      %c1_i32_37 = arith.constant 1 : i32
      %91 = arith.addi %1, %c1_i32_37 : i32
      %c0_38 = arith.constant 0 : index
      %92 = arith.index_cast %91 : i32 to index
      %c1_39 = arith.constant 1 : index
      %c0_40 = arith.constant 0 : index
      %93 = vector.load %arg3[%c0_38, %92, %c1_39, %c0_40] : memref<1x10x10x16xbf16, #tpu.memory_space<vmem>>, vector<1x8x8x16xbf16>
      %94 = vector.shape_cast %93 : vector<1x8x8x16xbf16> to vector<8x8x16xbf16>
      %95 = vector.shape_cast %94 : vector<8x8x16xbf16> to vector<64x16xbf16>
      %c0_41 = arith.constant 0 : index
      %c64 = arith.constant 64 : index
      %96 = vector.load %arg9[%c0_41, %c64] : memref<64x144xbf16, #tpu.memory_space<vmem>>, vector<64x16xbf16>
      tpu.vector_store %arg9[%c0_41, %c64], %95 {strides = array<i32>} : memref<64x144xbf16, #tpu.memory_space<vmem>>, vector<64x16xbf16>,
      %c1_i32_42 = arith.constant 1 : i32
      %97 = arith.addi %1, %c1_i32_42 : i32
      %c0_43 = arith.constant 0 : index
      %98 = arith.index_cast %97 : i32 to index
      %c2_44 = arith.constant 2 : index
      %c0_45 = arith.constant 0 : index
      %99 = vector.load %arg3[%c0_43, %98, %c2_44, %c0_45] : memref<1x10x10x16xbf16, #tpu.memory_space<vmem>>, vector<1x8x8x16xbf16>
      %100 = vector.shape_cast %99 : vector<1x8x8x16xbf16> to vector<8x8x16xbf16>
      %101 = vector.shape_cast %100 : vector<8x8x16xbf16> to vector<64x16xbf16>
      %c0_46 = arith.constant 0 : index
      %c80 = arith.constant 80 : index
      %102 = vector.load %arg9[%c0_46, %c80] : memref<64x144xbf16, #tpu.memory_space<vmem>>, vector<64x16xbf16>
      tpu.vector_store %arg9[%c0_46, %c80], %101 {strides = array<i32>} : memref<64x144xbf16, #tpu.memory_space<vmem>>, vector<64x16xbf16>,
      %c2_i32_47 = arith.constant 2 : i32
      %103 = arith.addi %1, %c2_i32_47 : i32
      %c0_48 = arith.constant 0 : index
      %104 = arith.index_cast %103 : i32 to index
      %c0_49 = arith.constant 0 : index
      %c0_50 = arith.constant 0 : index
      %105 = vector.load %arg3[%c0_48, %104, %c0_49, %c0_50] : memref<1x10x10x16xbf16, #tpu.memory_space<vmem>>, vector<1x8x8x16xbf16>
      %106 = vector.shape_cast %105 : vector<1x8x8x16xbf16> to vector<8x8x16xbf16>
      %107 = vector.shape_cast %106 : vector<8x8x16xbf16> to vector<64x16xbf16>
      %c0_51 = arith.constant 0 : index
      %c96 = arith.constant 96 : index
      %108 = vector.load %arg9[%c0_51, %c96] : memref<64x144xbf16, #tpu.memory_space<vmem>>, vector<64x16xbf16>
      tpu.vector_store %arg9[%c0_51, %c96], %107 {strides = array<i32>} : memref<64x144xbf16, #tpu.memory_space<vmem>>, vector<64x16xbf16>,
      %c2_i32_52 = arith.constant 2 : i32
      %109 = arith.addi %1, %c2_i32_52 : i32
      %c0_53 = arith.constant 0 : index
      %110 = arith.index_cast %109 : i32 to index
      %c1_54 = arith.constant 1 : index
      %c0_55 = arith.constant 0 : index
      %111 = vector.load %arg3[%c0_53, %110, %c1_54, %c0_55] : memref<1x10x10x16xbf16, #tpu.memory_space<vmem>>, vector<1x8x8x16xbf16>
      %112 = vector.shape_cast %111 : vector<1x8x8x16xbf16> to vector<8x8x16xbf16>
      %113 = vector.shape_cast %112 : vector<8x8x16xbf16> to vector<64x16xbf16>
      %c0_56 = arith.constant 0 : index
      %c112 = arith.constant 112 : index
      %114 = vector.load %arg9[%c0_56, %c112] : memref<64x144xbf16, #tpu.memory_space<vmem>>, vector<64x16xbf16>
      tpu.vector_store %arg9[%c0_56, %c112], %113 {strides = array<i32>} : memref<64x144xbf16, #tpu.memory_space<vmem>>, vector<64x16xbf16>,
      %c2_i32_57 = arith.constant 2 : i32
      %115 = arith.addi %1, %c2_i32_57 : i32
      %c0_58 = arith.constant 0 : index
      %116 = arith.index_cast %115 : i32 to index
      %c2_59 = arith.constant 2 : index
      %c0_60 = arith.constant 0 : index
      %117 = vector.load %arg3[%c0_58, %116, %c2_59, %c0_60] : memref<1x10x10x16xbf16, #tpu.memory_space<vmem>>, vector<1x8x8x16xbf16>
      %118 = vector.shape_cast %117 : vector<1x8x8x16xbf16> to vector<8x8x16xbf16>
      %119 = vector.shape_cast %118 : vector<8x8x16xbf16> to vector<64x16xbf16>
      %c0_61 = arith.constant 0 : index
      %c128 = arith.constant 128 : index
      %120 = vector.load %arg9[%c0_61, %c128] : memref<64x144xbf16, #tpu.memory_space<vmem>>, vector<64x16xbf16>
      tpu.vector_store %arg9[%c0_61, %c128], %119 {strides = array<i32>} : memref<64x144xbf16, #tpu.memory_space<vmem>>, vector<64x16xbf16>,
    } else {
    }
    %c0 = arith.constant 0 : index
    %c0_1 = arith.constant 0 : index
    %5 = vector.load %arg9[%c0, %c0_1] : memref<64x144xbf16, #tpu.memory_space<vmem>>, vector<64x144xbf16>
    %c0_2 = arith.constant 0 : index
    %c0_3 = arith.constant 0 : index
    %6 = vector.load %arg4[%c0_2, %c0_3] : memref<144x16xbf16, #tpu.memory_space<vmem>>, vector<144x16xbf16>
    %cst = arith.constant dense<0.000000e+00> : vector<64x16xf32>
    %7 = tpu.matmul %5, %6, %cst {dimension_numbers = #tpu.dot_dimension_numbers<[1], [0], [0], [1], [0, 0, 1, 1], [], []>} : vector<64x144xbf16>, vector<144x16xbf16>, vector<64x16xf32> -> vector<64x16xf32>
    %c0_4 = arith.constant 0 : index
    %c0_5 = arith.constant 0 : index
    %8 = vector.load %arg5[%c0_4, %c0_5] : memref<1x16xf32, #tpu.memory_space<vmem>>, vector<1x16xf32>
    %9 = vector.broadcast %8 : vector<1x16xf32> to vector<64x16xf32>
    %10 = arith.mulf %7, %9 : vector<64x16xf32>
    %c0_6 = arith.constant 0 : index
    %c0_7 = arith.constant 0 : index
    %11 = vector.load %arg6[%c0_6, %c0_7] : memref<1x16xf32, #tpu.memory_space<vmem>>, vector<1x16xf32>
    %12 = vector.broadcast %11 : vector<1x16xf32> to vector<64x16xf32>
    %13 = arith.addf %10, %12 : vector<64x16xf32>
    %cst_8 = arith.constant 0.000000e+00 : f32
    %14 = vector.broadcast %cst_8 : f32 to vector<64x16xf32>
    %15 = arith.maximumf %13, %14 : vector<64x16xf32>
    %16 = vector.shape_cast %15 : vector<64x16xf32> to vector<8x4x2x16xf32>
    %17 = vector.extract_strided_slice %16 {offsets = [0, 0, 0, 0], sizes = [8, 4, 1, 16], strides = [1, 1, 1, 1]} : vector<8x4x2x16xf32> to vector<8x4x1x16xf32>
    %18 = vector.shape_cast %17 : vector<8x4x1x16xf32> to vector<8x4x16xf32>
    %19 = vector.shape_cast %18 : vector<8x4x16xf32> to vector<4x2x4x16xf32>
    %20 = vector.extract_strided_slice %16 {offsets = [0, 0, 1, 0], sizes = [8, 4, 1, 16], strides = [1, 1, 1, 1]} : vector<8x4x2x16xf32> to vector<8x4x1x16xf32>
    %21 = vector.shape_cast %20 : vector<8x4x1x16xf32> to vector<8x4x16xf32>
    %22 = vector.shape_cast %21 : vector<8x4x16xf32> to vector<4x2x4x16xf32>
    %23 = vector.extract_strided_slice %19 {offsets = [0, 0, 0, 0], sizes = [4, 1, 4, 16], strides = [1, 1, 1, 1]} : vector<4x2x4x16xf32> to vector<4x1x4x16xf32>
    %24 = vector.shape_cast %23 : vector<4x1x4x16xf32> to vector<4x4x16xf32>
    %25 = vector.extract_strided_slice %19 {offsets = [0, 1, 0, 0], sizes = [4, 1, 4, 16], strides = [1, 1, 1, 1]} : vector<4x2x4x16xf32> to vector<4x1x4x16xf32>
    %26 = vector.shape_cast %25 : vector<4x1x4x16xf32> to vector<4x4x16xf32>
    %27 = vector.extract_strided_slice %22 {offsets = [0, 0, 0, 0], sizes = [4, 1, 4, 16], strides = [1, 1, 1, 1]} : vector<4x2x4x16xf32> to vector<4x1x4x16xf32>
    %28 = vector.shape_cast %27 : vector<4x1x4x16xf32> to vector<4x4x16xf32>
    %29 = vector.extract_strided_slice %22 {offsets = [0, 1, 0, 0], sizes = [4, 1, 4, 16], strides = [1, 1, 1, 1]} : vector<4x2x4x16xf32> to vector<4x1x4x16xf32>
    %30 = vector.shape_cast %29 : vector<4x1x4x16xf32> to vector<4x4x16xf32>
    %31 = tpu.iota {dimensions = array<i32: 0>} : vector<4x4x16xi32>
    %32 = tpu.iota {dimensions = array<i32: 1>} : vector<4x4x16xi32>
    %c4_i32 = arith.constant 4 : i32
    %33 = arith.muli %arg1, %c4_i32 : i32
    %34 = vector.broadcast %33 : i32 to vector<4x4x16xi32>
    %35 = arith.addi %34, %31 : vector<4x4x16xi32>
    %c2_i32 = arith.constant 2 : i32
    %36 = vector.broadcast %c2_i32 : i32 to vector<4x4x16xi32>
    %37 = arith.muli %36, %35 : vector<4x4x16xi32>
    %c8_i32_9 = arith.constant 8 : i32
    %38 = vector.broadcast %c8_i32_9 : i32 to vector<4x4x16xi32>
    %39 = arith.muli %37, %38 : vector<4x4x16xi32>
    %c2_i32_10 = arith.constant 2 : i32
    %40 = vector.broadcast %c2_i32_10 : i32 to vector<4x4x16xi32>
    %41 = arith.muli %40, %32 : vector<4x4x16xi32>
    %42 = arith.addi %39, %41 : vector<4x4x16xi32>
    %43 = arith.cmpf ogt, %28, %24 : vector<4x4x16xf32>
    %44 = arith.select %43, %28, %24 : vector<4x4x16xi1>, vector<4x4x16xf32>
    %c1_i32 = arith.constant 1 : i32
    %45 = vector.broadcast %c1_i32 : i32 to vector<4x4x16xi32>
    %46 = arith.addi %42, %45 : vector<4x4x16xi32>
    %47 = arith.select %43, %46, %42 : vector<4x4x16xi1>, vector<4x4x16xi32>
    %48 = arith.cmpf ogt, %26, %44 : vector<4x4x16xf32>
    %49 = arith.select %48, %26, %44 : vector<4x4x16xi1>, vector<4x4x16xf32>
    %c8_i32_11 = arith.constant 8 : i32
    %50 = vector.broadcast %c8_i32_11 : i32 to vector<4x4x16xi32>
    %51 = arith.addi %42, %50 : vector<4x4x16xi32>
    %52 = arith.select %48, %51, %47 : vector<4x4x16xi1>, vector<4x4x16xi32>
    %53 = arith.cmpf ogt, %30, %49 : vector<4x4x16xf32>
    %54 = arith.select %53, %30, %49 : vector<4x4x16xi1>, vector<4x4x16xf32>
    %c9_i32 = arith.constant 9 : i32
    %55 = vector.broadcast %c9_i32 : i32 to vector<4x4x16xi32>
    %56 = arith.addi %42, %55 : vector<4x4x16xi32>
    %57 = arith.select %53, %56, %52 : vector<4x4x16xi1>, vector<4x4x16xi32>
    %58 = vector.shape_cast %54 : vector<4x4x16xf32> to vector<16x16xf32>
    %59 = arith.truncf %58 : vector<16x16xf32> to vector<16x16xbf16>
    %c0_12 = arith.constant 0 : index
    %c0_13 = arith.constant 0 : index
    %c0_14 = arith.constant 0 : index
    %60 = vector.load %arg7[%c0_12, %c0_13, %c0_14] : memref<1x16x16xbf16, #tpu.memory_space<vmem>>, vector<1x16x16xbf16>
    %61 = vector.shape_cast %60 : vector<1x16x16xbf16> to vector<16x16xbf16>
    %62 = vector.shape_cast %59 : vector<16x16xbf16> to vector<1x16x16xbf16>
    tpu.vector_store %arg7[%c0_12, %c0_13, %c0_14], %62 {strides = array<i32>} : memref<1x16x16xbf16, #tpu.memory_space<vmem>>, vector<1x16x16xbf16>,
    %63 = vector.shape_cast %57 : vector<4x4x16xi32> to vector<16x16xi32>
    %c0_15 = arith.constant 0 : index
    %c0_16 = arith.constant 0 : index
    %c0_17 = arith.constant 0 : index
    %64 = vector.load %arg8[%c0_15, %c0_16, %c0_17] : memref<1x16x16xi32, #tpu.memory_space<vmem>>, vector<1x16x16xi32>
    %65 = vector.shape_cast %64 : vector<1x16x16xi32> to vector<16x16xi32>
    %66 = vector.shape_cast %63 : vector<16x16xi32> to vector<1x16x16xi32>
    tpu.vector_store %arg8[%c0_15, %c0_16, %c0_17], %66 {strides = array<i32>} : memref<1x16x16xi32, #tpu.memory_space<vmem>>, vector<1x16x16xi32>,
    return
  }
  func.func @transform_0(%arg0: i32, %arg1: i32, %arg2: i32) -> (i32, i32, i32, i32) {
    %c0_i32 = arith.constant 0 : i32
    %c0_i32_0 = arith.constant 0 : i32
    %c0_i32_1 = arith.constant 0 : i32
    %c0_i32_2 = arith.constant 0 : i32
    return %arg0, %c0_i32, %c0_i32_0, %c0_i32_1 : i32, i32, i32, i32
  }
  func.func @transform_1(%arg0: i32, %arg1: i32, %arg2: i32) -> (i32, i32) {
    %c0_i32 = arith.constant 0 : i32
    %c0_i32_0 = arith.constant 0 : i32
    return %c0_i32, %arg2 : i32, i32
  }
  func.func @transform_2(%arg0: i32, %arg1: i32, %arg2: i32) -> (i32, i32) {
    %c0_i32 = arith.constant 0 : i32
    %c0_i32_0 = arith.constant 0 : i32
    return %c0_i32, %arg2 : i32, i32
  }
  func.func @transform_3(%arg0: i32, %arg1: i32, %arg2: i32) -> (i32, i32) {
    %c0_i32 = arith.constant 0 : i32
    %c0_i32_0 = arith.constant 0 : i32
    return %c0_i32, %arg2 : i32, i32
  }
  func.func @transform_4(%arg0: i32, %arg1: i32, %arg2: i32) -> (i32, i32, i32) {
    %c0_i32 = arith.constant 0 : i32
    return %arg0, %arg1, %arg2 : i32, i32, i32
  }
  func.func @transform_5(%arg0: i32, %arg1: i32, %arg2: i32) -> (i32, i32, i32) {
    %c0_i32 = arith.constant 0 : i32
    return %arg0, %arg1, %arg2 : i32, i32, i32
  }
}

</mosaic_0001>

<bundles_post_ra>
// kernel: vgg_bn_encoder_forward.6
= control target key start
LH: loop header
LB: loop body
LE: loop exit
PB: predicated region body
PF: predicated region fallthrough
CT: control target
= control target key end

     0   :  { %s1764_s15 = smov 0   ;;  %s1766_s16 = smov 0   ;;  %s2217_s0 = inlined_call_operand.vmem [shape: bf16[2,10,10,8], index: 0, kind: input, shape index: {}]   ;;  %s2218_s1 = inlined_call_operand.vmem [shape: bf16[72,16], index: 1, kind: input, shape index: {}]   ;;  %s2219_s2 = inlined_call_operand.vmem [shape: f32[1,16], index: 2, kind: input, shape index: {}]   ;;  %s2220_s3 = inlined_call_operand.vmem [shape: f32[1,16], index: 3, kind: input, shape index: {}]   ;;  %s2221_s4 = inlined_call_operand.vmem [shape: bf16[2,64,16], index: 4, kind: output, shape index: {}]  }
   0x1   :  { %s1768_s17 = smov 0  }
   0x2 LB: > { %s33_s18 = sadd.s32 1, %s1725_s16  ;;  %p1502_p0 = scmp.ge.s32.totalorder %s1729_s17, 1  ;;  %s1729_s17 = sphi %s1768_s17, %s14_s17   ;;  %s1725_s16 = sphi %s1766_s16, %s2227_s16   ;;  %s1721_s15 = sphi %s1764_s15, %s2226_s15  }
   0x3   : > { %p35_p1 = scmp.ge.s32.totalorder %s33_s18, 2  ;;  %p210_p2 = scmp.lt.s32.totalorder %s1729_s17, 3 }
   0x5   : > { %s2229_s18 = smov (%p35_p1, %s33_s18), 0  ;;  %p211_p3 = pnand %p1502_p0, %p210_p2 }
   0x6   : > { %p253_p4 = scmp.lt.s32.totalorder (!%p211_p3), %s1721_s15, 1  ;;  %s1731_s23 = smov (!%p211_p3), 16  }
   0x7   : > { %214 = sbr.rel (%p211_p3) target bundleno = 455 (0x1c7), region = 36  ;;  %s1732_s24 = smov (!%p211_p3), 8  }
   0x8   : > { %s1733_s25 = smov (!%p211_p3), 24   ;;  %s1734_s26 = smov (!%p211_p3), 32  }
   0x9   : > { %s1735_s27 = smov (!%p211_p3), 40   ;;  %s1736_s28 = smov (!%p211_p3), 48  }
   0xa   : > { %s1737_s29 = smov (!%p211_p3), 56   ;;  %s1738_s30 = smov (!%p211_p3), 64  }
   0xc   : > { %s2231_s15 = smov (!%p253_p4, %s1721_s15), 1  ;;  %vm503_vm0 = vcmask 1042432   ;;  %vm504_vm1 = vcmask 1046532   ;;  %vm323_vm3 = vsmask.f32 3328  ;;  %vm298_vm6 = vcmask 60416  }
   0xd   : > { %s1672_s19 = smul.u32 80, %s2231_s15  ;;  %vm1790_vm2 = vmor %vm503_vm0, %vm504_vm1  ;;  %vm324_vm4 = vsmask.f32 7440  ;;  %vm462_vm7 = vcmask 126016   ;;  %vm562_vm8 = vcmask 191616   ;;  %vm615_vm9 = vcmask 257216  }
   0xe   : > { %vm1814_vm5 = vmor %vm323_vm3, %vm324_vm4  ;;  %vm776_vm10 = vcmask 322816   ;;  %vm873_vm11 = vcmask 388416   ;;  %vm926_vm12 = vcmask 454016   ;;  %vm1270_vm13 = vcmask 1043456   ;;  %v1656_v0 = vld [vmem:[%s2218_s1 + $0x18] sm:$0xff] }
   0xf   : > { %s1788_s22 = scalar_lea.vmem %s2217_s0, %s1672_s19  ;;  %vm1087_vm14 = vcmask 519616   ;;  %vm1184_vm15 = vcmask 585216   ;;  %vm1257_vm0 = vcmask 588800   ;;  %vm1343_vm1 = vcmask 125952  }
  0x10   : > { %v485_v1 = vld [vmem:[%s1788_s22 + $0x38] sm:$0xe]  ;;  %v486_v2 = vld [vmem:[%s1788_s22 + $0x3c] sm:$0x1]  ;;  %v483_v3 = vld [vmem:[%s1788_s22 + $0x30] sm:$0xe] }
  0x11   : > { %v1513_v4 = vrot.slane %v485_v1, 9  ;;  %v536_v5 = vrot.slane %v486_v2, 5  ;;  %v484_v6 = vld [vmem:[%s1788_s22 + $0x34] sm:$0x1]  ;;  %v1512_v7 = vrot.slane %v483_v3, 9 }
  0x12   : > { %v532_v8 = vrot.slane %v484_v6, 5  ;;  %v319_v9 = vld [vmem:[%s1788_s22 + $0x30] sm:$0xf]  ;;  %v320_v10 = vld [vmem:[%s1788_s22 + $0x34] sm:$0x1] }
  0x13   : > { %v537_v11 = vsel %vm1790_vm2, %v1513_v4, %v536_v5  ;;  %v411_v12 = vshrl.u32 %v319_v9, 16  ;;  %v414_v13 = vshll.u32 %v319_v9, 16  ;;  %v420_v14 = vshll.u32 %v320_v10, 16  ;;  %v315_v15 = vld [vmem:[%s1788_s22 + $0x20] sm:$0xf] }
  0x14   : > { %552 = vrot.lane.b32.xlu1 %v537_v11, %s1731_s23  ;;  %v533_v16 = vsel %vm1790_vm2, %v1512_v7, %v532_v8  ;;  %v316_v17 = vld [vmem:[%s1788_s22 + $0x24] sm:$0x1]  ;;  %v383_v18 = vshrl.u32 %v315_v15, 16  ;;  %v386_v19 = vshll.u32 %v315_v15, 16  ;;  %v321_v20 = vld [vmem:[%s1788_s22 + $0x38] sm:$0xf] }
  0x15   : > { %550 = vrot.lane.b32.xlu0 %v533_v16, %s1731_s23  ;;  %v413_v21 = vrot.slane %v411_v12, 4  ;;  %v416_v22 = vrot.slane %v414_v13, 5  ;;  %v392_v23 = vshll.u32 %v316_v17, 16  ;;  %v322_v24 = vld [vmem:[%s1788_s22 + $0x3c] sm:$0x1]  ;;  %v425_v27 = vshrl.u32 %v321_v20, 16 }
  0x16   : > { %v385_v25 = vrot.slane %v383_v18, 4  ;;  %v388_v26 = vrot.slane %v386_v19, 5  ;;  %v428_v28 = vshll.u32 %v321_v20, 16  ;;  %v317_v29 = vld [vmem:[%s1788_s22 + $0x28] sm:$0xf]  ;;  %v422_v31 = vrot.slane %v420_v14, 5 }
  0x17   : > { %v417_v30 = vor.u32 %v416_v22, %v413_v21  ;;  %v394_v32 = vrot.slane %v392_v23, 5  ;;  %v318_v33 = vld [vmem:[%s1788_s22 + $0x2c] sm:$0x1]  ;;  %v397_v34 = vshrl.u32 %v317_v29, 16  ;;  %v427_v37 = vrot.slane %v425_v27, 4 }
  0x18   : > { %v389_v36 = vor.u32 %v388_v26, %v385_v25  ;;  %v430_v38 = vrot.slane %v428_v28, 5  ;;  %v400_v39 = vshll.u32 %v317_v29, 16  ;;  %v434_v41 = vshll.u32 %v322_v24, 16  ;;  %v479_v47 = vld [vmem:[%s1788_s22 + $0x20] sm:$0xe] }
  0x19   : > { %v418_v40 = vrot.slane %v417_v30, 4  ;;  %v399_v42 = vrot.slane %v397_v34, 4  ;;  %v406_v43 = vshll.u32 %v318_v33, 16  ;;  %v480_v48 = vld [vmem:[%s1788_s22 + $0x24] sm:$0x1]  ;;  %v1510_v50 = vrot.slane %v479_v47, 9 }
  0x1a   : > { %v390_v44 = vrot.slane %v389_v36, 4  ;;  %v431_v45 = vor.u32 %v430_v38, %v427_v37  ;;  %v402_v46 = vrot.slane %v400_v39, 5  ;;  %v524_v51 = vrot.slane %v480_v48, 5  ;;  %v1532_v59 = vld [vmem:[%s1788_s22 + $0x30] sm:$0xf] }
  0x1b   : > { %v423_v49 = vsel %vm1814_vm5, %v418_v40, %v422_v31  ;;  %v436_v55 = vrot.slane %v434_v41, 5  ;;  %v408_v58 = vrot.slane %v406_v43, 5  ;;  %v481_v60 = vld [vmem:[%s1788_s22 + $0x28] sm:$0xe]  ;;  %v482_v62 = vld [vmem:[%s1788_s22 + $0x2c] sm:$0x1] }
  0x1c   : > { %450 = vrot.lane.b32.xlu1 %v423_v49, %s1732_s24  ;;  %v395_v52 = vsel %vm1814_vm5, %v390_v44, %v394_v32  ;;  %v403_v53 = vor.u32 %v402_v46, %v399_v42  ;;  %v432_v54 = vrot.slane %v431_v45, 4  ;;  %v525_v56 = vsel %vm1790_vm2, %v1510_v50, %v524_v51  ;;  %v1530_v61 = vld [vmem:[%s1788_s22 + $0x28] sm:$0xf]  ;;  %v1533_v11 = vld [vmem:[%s1788_s22 + $0x34] sm:$0x1] }
  0x1d   : > { %446 = vrot.lane.b32.xlu0 %v395_v52, %s1732_s24  ;;  %546 = vrot.lane.b32.xlu2 %v525_v56, %s1731_s23  ;;  %v1511_v63 = vrot.slane %v481_v60, 9  ;;  %v528_v1 = vrot.slane %v482_v62, 5  ;;  %v711_v3 = vshrl.u32 %v1532_v59, 16  ;;  %v714_v4 = vshll.u32 %v1532_v59, 16  ;;  %v1531_v14 = vld [vmem:[%s1788_s22 + $0x2c] sm:$0x1] }
  0x1e   : > { %v404_v57 = vrot.slane %v403_v53, 4  ;;  %v437_v2 = vsel %vm1814_vm5, %v432_v54, %v436_v55  ;;  %v697_v6 = vshrl.u32 %v1530_v61, 16  ;;  %v700_v7 = vshll.u32 %v1530_v61, 16  ;;  %v1536_v15 = vld [vmem:[%s1788_s22 + $0x40] sm:$0xf] }
  0x1f   : > { %v529_v8 = vsel %vm1790_vm2, %v1511_v63, %v528_v1  ;;  %v713_v9 = vrot.slane %v711_v3, 4  ;;  %v716_v10 = vrot.slane %v714_v4, 5  ;;  %v1520_v16 = vld [vmem:[%s1788_s22 + $0x38] sm:$0xf]  ;;  %v720_v18 = vshll.u32 %v1533_v11, 16 }
  0x20   : > { %v409_v5 = vsel %vm1814_vm5, %v404_v57, %v408_v58  ;;  %v699_v12 = vrot.slane %v697_v6, 4  ;;  %v702_v13 = vrot.slane %v700_v7, 5  ;;  %v1519_v19 = vld [vmem:[%s1788_s22 + $0x30] sm:$0xf]  ;;  %v706_v21 = vshll.u32 %v1531_v14, 16 }
  0x21   : > { %v717_v17 = vor.u32 %v716_v10, %v713_v9  ;;  %v739_v22 = vshrl.u32 %v1536_v15, 16  ;;  %v742_v23 = vshll.u32 %v1536_v15, 16  ;;  %v1518_v24 = vld [vmem:[%s1788_s22 + $0x28] sm:$0xf]  ;;  %v1534_v25 = vld [vmem:[%s1788_s22 + $0x38] sm:$0xf] }
  0x22   : > { %v703_v20 = vor.u32 %v702_v13, %v699_v12  ;;  %v725_v26 = vshrl.u32 %v1534_v25, 16  ;;  %v728_v27 = vshll.u32 %v1534_v25, 16  ;;  %v722_v29 = vrot.slane %v720_v18, 5  ;;  %v1537_v34 = vld [vmem:[%s1788_s22 + $0x44] sm:$0x1] }
  0x23   : > { %v718_v28 = vrot.slane %v717_v17, 4  ;;  %v708_v31 = vrot.slane %v706_v21, 5  ;;  %v741_v32 = vrot.slane %v739_v22, 4  ;;  %v744_v33 = vrot.slane %v742_v23, 5  ;;  %v1535_v38 = vld [vmem:[%s1788_s22 + $0x3c] sm:$0x1] }
  0x24   : > { %452 = vrot.lane.b32.xlu1 %v437_v2, %s1732_s24  ;;  %v704_v30 = vrot.slane %v703_v20, 4  ;;  %v727_v36 = vrot.slane %v725_v26, 4  ;;  %v730_v37 = vrot.slane %v728_v27, 5  ;;  %v1546_v41 = vld [vmem:[%s1788_s22 + $0x28] sm:$0xe]  ;;  %v748_v44 = vshll.u32 %v1537_v34, 16 }
  0x25   : > { %448 = vrot.lane.b32.xlu0 %v409_v5, %s1732_s24  ;;  %548 = vrot.lane.b32.xlu2 %v529_v8, %s1731_s23  ;;  %v723_v39 = vsel %vm1814_vm5, %v718_v28, %v722_v29  ;;  %v1547_v42 = vld [vmem:[%s1788_s22 + $0x2c] sm:$0x1]  ;;  %v745_v43 = vor.u32 %v744_v33, %v741_v32  ;;  %v1521_v45 = vld [vmem:[%s1788_s22 + $0x40] sm:$0xf]  ;;  %v734_v47 = vshll.u32 %v1535_v38, 16  ;;  %v1558_v48 = vrot.slane %v1546_v41, 9 }
  0x26   : > { %v709_v40 = vsel %vm1814_vm5, %v704_v30, %v708_v31  ;;  %v731_v46 = vor.u32 %v730_v37, %v727_v36  ;;  %v835_v49 = vrot.slane %v1547_v42, 5  ;;  %v750_v51 = vrot.slane %v748_v44, 5  ;;  %v1552_v56 = vld [vmem:[%s1788_s22 + $0x40] sm:$0xe]  ;;  %v1553_v57 = vld [vmem:[%s1788_s22 + $0x44] sm:$0x1] }
  0x27   : > { %v746_v50 = vrot.slane %v745_v43, 4  ;;  %v736_v53 = vrot.slane %v734_v47, 5  ;;  %v1550_v58 = vld [vmem:[%s1788_s22 + $0x38] sm:$0xe]  ;;  %v1551_v59 = vld [vmem:[%s1788_s22 + $0x3c] sm:$0x1] }
  0x28   : > { %v732_v52 = vrot.slane %v731_v46, 4  ;;  %v836_v54 = vsel %vm1790_vm2, %v1558_v48, %v835_v49  ;;  %v1548_v61 = vld [vmem:[%s1788_s22 + $0x30] sm:$0xe]  ;;  %v1549_v62 = vld [vmem:[%s1788_s22 + $0x34] sm:$0x1]  ;;  %v1561_v63 = vrot.slane %v1552_v56, 9 }
  0x29   : > { %v751_v55 = vsel %vm1814_vm5, %v746_v50, %v750_v51  ;;  %v847_v1 = vrot.slane %v1553_v57, 5  ;;  %v309_v2 = vld [vmem:[%s1788_s22 + $0x8] sm:$0xf]  ;;  %v307_v3 = vld [vmem:[%s1788_s22] sm:$0xf]  ;;  %v1560_v4 = vrot.slane %v1550_v58, 9 }
  0x2a   : > { %v737_v60 = vsel %vm1814_vm5, %v732_v52, %v736_v53  ;;  %v843_v5 = vrot.slane %v1551_v59, 5  ;;  %v1559_v6 = vrot.slane %v1548_v61, 9  ;;  %v839_v7 = vrot.slane %v1549_v62, 5  ;;  %v310_v14 = vld [vmem:[%s1788_s22 + $0xc] sm:$0x1] }
  0x2b   : > { %v341_v8 = vshrl.u32 %v309_v2, 16  ;;  %v344_v9 = vshll.u32 %v309_v2, 16  ;;  %v327_v10 = vshrl.u32 %v307_v3, 16  ;;  %v330_v11 = vshll.u32 %v307_v3, 16  ;;  %v308_v18 = vld [vmem:[%s1788_s22 + $0x4] sm:$0x1] }
  0x2c   : > { %603 = vrot.lane.b32.xlu1 %v1520_v16, %s1733_s25  ;;  %v848_v12 = vsel %vm1790_vm2, %v1561_v63, %v847_v1  ;;  %v844_v13 = vsel %vm1790_vm2, %v1560_v4, %v843_v5  ;;  %v840_v15 = vsel %vm1790_vm2, %v1559_v6, %v839_v7  ;;  %v1578_v21 = vld [vmem:[%s1788_s22 + $0x30] sm:$0xf]  ;;  %v350_v22 = vshll.u32 %v310_v14, 16  ;;  %v1568_v27 = vld [vmem:[%s1788_s22 + $0x40] sm:$0xf] }
  0x2d   : > { %601 = vrot.lane.b32.xlu0 %v1519_v19, %s1733_s25  ;;  %599 = vrot.lane.b32.xlu2 %v1518_v24, %s1733_s25  ;;  %v343_v16 = vrot.slane %v341_v8, 4  ;;  %v346_v17 = vrot.slane %v344_v9, 5  ;;  %v329_v19 = vrot.slane %v327_v10, 4  ;;  %v332_v20 = vrot.slane %v330_v11, 5  ;;  %v313_v24 = vld [vmem:[%s1788_s22 + $0x18] sm:$0xf] }
  0x2e   : > { %v336_v23 = vshll.u32 %v308_v18, 16  ;;  %v1008_v28 = vshrl.u32 %v1578_v21, 16  ;;  %v1011_v29 = vshll.u32 %v1578_v21, 16  ;;  %v1567_v30 = vld [vmem:[%s1788_s22 + $0x38] sm:$0xf]  ;;  %v369_v31 = vshrl.u32 %v313_v24, 16 }
  0x2f   : > { %v347_v25 = vor.u32 %v346_v17, %v343_v16  ;;  %v333_v26 = vor.u32 %v332_v20, %v329_v19  ;;  %v372_v32 = vshll.u32 %v313_v24, 16  ;;  %v352_v33 = vrot.slane %v350_v22, 5  ;;  %v1566_v36 = vld [vmem:[%s1788_s22 + $0x30] sm:$0xf]  ;;  %v1579_v44 = vld [vmem:[%s1788_s22 + $0x34] sm:$0x1] }
  0x30   : > { %v338_v34 = vrot.slane %v336_v23, 5  ;;  %v311_v37 = vld [vmem:[%s1788_s22 + $0x10] sm:$0xf]  ;;  %v1010_v42 = vrot.slane %v1008_v28, 4  ;;  %v1013_v43 = vrot.slane %v1011_v29, 5  ;;  %v1017_v56 = vshll.u32 %v1579_v44, 16 }
  0x31   : > { %v348_v38 = vrot.slane %v347_v25, 4  ;;  %v358_v41 = vshll.u32 %v311_v37, 16  ;;  %v374_v46 = vrot.slane %v372_v32, 5  ;;  %v1584_v47 = vld [vmem:[%s1788_s22 + $0x48] sm:$0xf] }
  0x32   : > { %v314_v48 = vld [vmem:[%s1788_s22 + $0x1c] sm:$0x1]  ;;  %v1582_v49 = vld [vmem:[%s1788_s22 + $0x40] sm:$0xf]  ;;  %v1050_v57 = vshrl.u32 %v1584_v47, 16  ;;  %v1053_v58 = vshll.u32 %v1584_v47, 16 }
  0x33   : > { %v360_v51 = vrot.slane %v358_v41, 5  ;;  %v353_v52 = vsel %vm1814_vm5, %v348_v38, %v352_v33  ;;  %v1036_v61 = vshrl.u32 %v1582_v49, 16  ;;  %v1039_v62 = vshll.u32 %v1582_v49, 16  ;;  %v1569_v63 = vld [vmem:[%s1788_s22 + $0x48] sm:$0xf] }
  0x34   : > { %762 = vrot.lane.b32.xlu1 %v723_v39, %s1734_s26  ;;  %v334_v39 = vrot.slane %v333_v26, 4  ;;  %v1580_v3 = vld [vmem:[%s1788_s22 + $0x38] sm:$0xf]  ;;  %v1019_v7 = vrot.slane %v1017_v56, 5  ;;  %v1052_v8 = vrot.slane %v1050_v57, 4  ;;  %v1055_v9 = vrot.slane %v1053_v58, 5 }
  0x35   : > { %760 = vrot.lane.b32.xlu0 %v709_v40, %s1734_s26  ;;  %605 = vrot.lane.b32.xlu2 %v1521_v45, %s1733_s25  ;;  %v355_v40 = vshrl.u32 %v311_v37, 16  ;;  %v371_v45 = vrot.slane %v369_v31, 4  ;;  %v1022_v4 = vshrl.u32 %v1580_v3, 16  ;;  %v1025_v5 = vshll.u32 %v1580_v3, 16  ;;  %v1581_v20 = vld [vmem:[%s1788_s22 + $0x3c] sm:$0x1] }
  0x36   : > { %v339_v53 = vsel %vm1814_vm5, %v334_v39, %v338_v34  ;;  %v1041_v14 = vrot.slane %v1039_v62, 5  ;;  %v1056_v22 = vor.u32 %v1055_v9, %v1052_v8  ;;  %v1031_v29 = vshll.u32 %v1581_v20, 16  ;;  %v475_v39 = vld [vmem:[%s1788_s22 + $0x10] sm:$0xe]  ;;  %v473_v41 = vld [vmem:[%s1788_s22 + $0x8] sm:$0xe] }
  0x37   : > { %v357_v50 = vrot.slane %v355_v40, 4  ;;  %v375_v59 = vor.u32 %v374_v46, %v371_v45  ;;  %v1024_v18 = vrot.slane %v1022_v4, 4  ;;  %v1027_v19 = vrot.slane %v1025_v5, 5  ;;  %v476_v40 = vld [vmem:[%s1788_s22 + $0x14] sm:$0x1] }
  0x38   : > { %v471_v44 = vld [vmem:[%s1788_s22] sm:$0xe]  ;;  %v472_v45 = vld [vmem:[%s1788_s22 + $0x4] sm:$0x1]  ;;  %v1508_v46 = vrot.slane %v475_v39, 9  ;;  %v516_v47 = vrot.slane %v476_v40, 5 }
  0x39   : > { %v361_v1 = vor.u32 %v360_v51, %v357_v50  ;;  %v376_v10 = vrot.slane %v375_v59, 4  ;;  %v1028_v28 = vor.u32 %v1027_v19, %v1024_v18  ;;  %v1506_v50 = vrot.slane %v471_v44, 9  ;;  %v1594_v56 = vld [vmem:[%s1788_s22 + $0x30] sm:$0xe]  ;;  %v1595_v57 = vld [vmem:[%s1788_s22 + $0x34] sm:$0x1] }
  0x3a   : > { %v508_v51 = vrot.slane %v472_v45, 5  ;;  %v477_v59 = vld [vmem:[%s1788_s22 + $0x18] sm:$0xe]  ;;  %v294_v3 = vld [vmem:[%s1788_s22 + $0x20] sm:$0xf] }
  0x3b   : > { %v362_v16 = vrot.slane %v361_v1, 4  ;;  %v1029_v34 = vrot.slane %v1028_v28, 4  ;;  %v1146_v1 = vrot.slane %v1595_v57, 5  ;;  %v1509_v4 = vrot.slane %v477_v59, 9  ;;  %303 = vst.msk [vmem:[#allocation2 + $0x10] sm:$0xf] %vm298_vm6, %v294_v3 }
  0x3c   : > { %857 = vrot.lane.b32.xlu1 %v836_v54, %s1735_s27  ;;  %v312_v54 = vld [vmem:[%s1788_s22 + $0x14] sm:$0x1]  ;;  %v509_v58 = vsel %vm1790_vm2, %v1506_v50, %v508_v51  ;;  %v1600_v8 = vld [vmem:[%s1788_s22 + $0x48] sm:$0xe]  ;;  %v1601_v9 = vld [vmem:[%s1788_s22 + $0x4c] sm:$0x1] }
  0x3d   : > { %766 = vrot.lane.b32.xlu0 %v751_v55, %s1734_s26  ;;  %764 = vrot.lane.b32.xlu2 %v737_v60, %s1734_s26  ;;  %v1014_v55 = vor.u32 %v1013_v43, %v1010_v42  ;;  %v378_v60 = vshll.u32 %v314_v48, 16  ;;  %v364_v2 = vshll.u32 %v312_v54, 16  ;;  %v474_v42 = vld [vmem:[%s1788_s22 + $0xc] sm:$0x1]  ;;  %v1507_v48 = vrot.slane %v473_v41, 9 }
  0x3e   : > { %v512_v49 = vrot.slane %v474_v42, 5  ;;  %v1596_v54 = vld [vmem:[%s1788_s22 + $0x38] sm:$0xe]  ;;  %v1524_v18 = vld [vmem:[%s1788_s22 + $0x10] sm:$0xf] }
  0x3f   : > { %v1015_v6 = vrot.slane %v1014_v55, 4  ;;  %v380_v11 = vrot.slane %v378_v60, 5  ;;  %v366_v17 = vrot.slane %v364_v2, 5  ;;  %v1597_v55 = vld [vmem:[%s1788_s22 + $0x3c] sm:$0x1] }
  0x40   : > { %v478_v60 = vld [vmem:[%s1788_s22 + $0x1c] sm:$0x1]  ;;  %v1150_v62 = vrot.slane %v1597_v55, 5  ;;  %v296_v2 = vld [vmem:[%s1788_s22 + $0x30] sm:$0xf] }
  0x41   : > { %v1020_v21 = vsel %vm1814_vm5, %v1015_v6, %v1019_v7  ;;  %v381_v24 = vsel %vm1814_vm5, %v376_v10, %v380_v11  ;;  %v520_v5 = vrot.slane %v478_v60, 5  ;;  %305 = vst.msk [vmem:[#allocation2 + $0x18] sm:$0xf] %vm298_vm6, %v296_v2  ;;  %v1598_v11 = vld [vmem:[%s1788_s22 + $0x40] sm:$0xe] }
  0x42   : > { %v1608_v19 = vrot.slane %v1598_v11, 9  ;;  %v1523_v40 = vld [vmem:[%s1788_s22 + $0xc] sm:$0x1] }
  0x43   : > { %v521_v10 = vsel %vm1790_vm2, %v1509_v4, %v520_v5  ;;  %v650_v51 = vshll.u32 %v1523_v40, 16 }
  0x44   : > { %863 = vrot.lane.b32.xlu1 %v848_v12, %s1735_s27  ;;  %v1585_v12 = vld [vmem:[%s1788_s22 + $0x4c] sm:$0x1] }
  0x45   : > { %861 = vrot.lane.b32.xlu0 %v844_v13, %s1735_s27  ;;  %859 = vrot.lane.b32.xlu2 %v840_v15, %s1735_s27  ;;  %v1038_v13 = vrot.slane %v1036_v61, 4  ;;  %v1583_v15 = vld [vmem:[%s1788_s22 + $0x44] sm:$0x1]  ;;  %v1059_v23 = vshll.u32 %v1585_v12, 16  ;;  %v1607_v61 = vrot.slane %v1596_v54, 9 }
  0x46   : > { %v1045_v26 = vshll.u32 %v1583_v15, 16  ;;  %v1599_v12 = vld [vmem:[%s1788_s22 + $0x44] sm:$0x1]  ;;  %v1526_v15 = vld [vmem:[%s1788_s22 + $0x18] sm:$0xf] }
  0x47   : > { %v1042_v25 = vor.u32 %v1041_v14, %v1038_v13  ;;  %v1061_v31 = vrot.slane %v1059_v23, 5  ;;  %v1151_v6 = vsel %vm1790_vm2, %v1607_v61, %v1150_v62  ;;  %v1609_v13 = vrot.slane %v1600_v8, 9  ;;  %v1528_v54 = vld [vmem:[%s1788_s22 + $0x20] sm:$0xf]  ;;  %v1538_v8 = vld [vmem:[%s1788_s22 + $0x8] sm:$0xe] }
  0x48   : > { %v1047_v33 = vrot.slane %v1045_v26, 5  ;;  %v1158_v14 = vrot.slane %v1601_v9, 5  ;;  %v1154_v20 = vrot.slane %v1599_v12, 5  ;;  %v669_v23 = vshrl.u32 %v1526_v15, 16  ;;  %v1539_v9 = vld [vmem:[%s1788_s22 + $0xc] sm:$0x1] }
  0x49   : > { %v1043_v32 = vrot.slane %v1042_v25, 4  ;;  %v655_v26 = vshrl.u32 %v1524_v18, 16  ;;  %v686_v59 = vshll.u32 %v1528_v54, 16  ;;  %v652_v62 = vrot.slane %v650_v51, 5  ;;  %v1570_v51 = vld [vmem:[%s1788_s22 + $0x10] sm:$0xf] }
  0x4a   : > { %v1159_v25 = vsel %vm1790_vm2, %v1609_v13, %v1158_v14  ;;  %v1155_v28 = vsel %vm1790_vm2, %v1608_v19, %v1154_v20 }
  0x4b   : > { %v1048_v38 = vsel %vm1814_vm5, %v1043_v32, %v1047_v33  ;;  %v1527_v32 = vld [vmem:[%s1788_s22 + $0x1c] sm:$0x1]  ;;  %v657_v33 = vrot.slane %v655_v26, 4  ;;  %v688_v3 = vrot.slane %v686_v59, 5  ;;  %v1545_v26 = vld [vmem:[%s1788_s22 + $0x24] sm:$0x1] }
  0x4c   : > { %914 = vrot.lane.b32.xlu1 %v1568_v27, %s1736_s28  ;;  %v367_v27 = vsel %vm1814_vm5, %v362_v16, %v366_v17  ;;  %v297_v16 = vld [vmem:[%s1788_s22 + $0x38] sm:$0xf]  ;;  %v295_v17 = vld [vmem:[%s1788_s22 + $0x28] sm:$0xf]  ;;  %v678_v45 = vshll.u32 %v1527_v32, 16 }
  0x4d   : > { %912 = vrot.lane.b32.xlu0 %v1567_v30, %s1736_s28  ;;  %910 = vrot.lane.b32.xlu2 %v1566_v36, %s1736_s28  ;;  %v1057_v30 = vrot.slane %v1056_v22, 4  ;;  %v1033_v36 = vrot.slane %v1031_v29, 5  ;;  %306 = vst.msk [vmem:[#allocation2 + $0x1c] sm:$0xf] %vm298_vm6, %v297_v16  ;;  %v1514_v22 = vld [vmem:[%s1788_s22 + $0x8] sm:$0xf] }
  0x4e   : > { %304 = vst.msk [vmem:[#allocation2 + $0x14] sm:$0xf] %vm298_vm6, %v295_v17  ;;  %v671_v29 = vrot.slane %v669_v23, 4  ;;  %v1554_v16 = vrot.slane %v1538_v8, 9  ;;  %v819_v17 = vrot.slane %v1539_v9, 5 }
  0x4f   : > { %v1062_v37 = vsel %vm1814_vm5, %v1057_v30, %v1061_v31  ;;  %v1034_v43 = vsel %vm1814_vm5, %v1029_v34, %v1033_v36  ;;  %v1522_v31 = vld [vmem:[%s1788_s22 + $0x8] sm:$0xf]  ;;  %v1574_v32 = vld [vmem:[%s1788_s22 + $0x20] sm:$0xf]  ;;  %v1571_v59 = vld [vmem:[%s1788_s22 + $0x14] sm:$0x1] }
  0x50   : > { %v641_v36 = vshrl.u32 %v1522_v31, 16 }
  0x52   : > { %v643_v41 = vrot.slane %v641_v36, 4 }
  0x54   : > { %440 = vrot.lane.b32.xlu1 %v353_v52, %s1732_s24  ;;  %v517_v52 = vsel %vm1790_vm2, %v1508_v46, %v516_v47  ;;  %v1516_v46 = vld [vmem:[%s1788_s22 + $0x18] sm:$0xf] }
  0x55   : > { %438 = vrot.lane.b32.xlu0 %v339_v53, %s1732_s24  ;;  %916 = vrot.lane.b32.xlu2 %v1569_v63, %s1736_s28  ;;  %v513_v53 = vsel %vm1790_vm2, %v1507_v48, %v512_v49  ;;  %v1606_v63 = vrot.slane %v1594_v56, 9  ;;  %v1515_v49 = vld [vmem:[%s1788_s22 + $0x10] sm:$0xf] }
  0x57   : > { %v1147_v7 = vsel %vm1790_vm2, %v1606_v63, %v1146_v1  ;;  %v1529_v1 = vld [vmem:[%s1788_s22 + $0x24] sm:$0x1] }
  0x58   : > { %v692_v12 = vshll.u32 %v1529_v1, 16 }
  0x5a   : > { %v694_v20 = vrot.slane %v692_v12, 5 }
  0x5c   : > { %1071 = vrot.lane.b32.xlu1 %v1020_v21, %s1737_s29 }
  0x5d   : > { %444 = vrot.lane.b32.xlu0 %v381_v24, %s1732_s24  ;;  %442 = vrot.lane.b32.xlu2 %v367_v27, %s1732_s24  ;;  %v672_v24 = vshll.u32 %v1526_v15, 16  ;;  %v658_v27 = vshll.u32 %v1524_v18, 16 }
  0x5f   : > { %v674_v30 = vrot.slane %v672_v24, 5  ;;  %v660_v34 = vrot.slane %v658_v27, 5  ;;  %v820_v24 = vsel %vm1790_vm2, %v1554_v16, %v819_v17 }
  0x61   : > { %v675_v44 = vor.u32 %v674_v30, %v671_v29  ;;  %v661_v47 = vor.u32 %v660_v34, %v657_v33  ;;  %v1543_v29 = vld [vmem:[%s1788_s22 + $0x1c] sm:$0x1]  ;;  %v1572_v33 = vld [vmem:[%s1788_s22 + $0x18] sm:$0xf] }
  0x63   : > { %v662_v56 = vrot.slane %v661_v47, 4 }
  0x64   : > { %1077 = vrot.lane.b32.xlu1 %v1062_v37, %s1737_s29  ;;  %v644_v37 = vshll.u32 %v1522_v31, 16  ;;  %v831_v31 = vrot.slane %v1545_v26, 5  ;;  %v1588_v26 = vld [vmem:[%s1788_s22 + $0x18] sm:$0xe] }
  0x65   : > { %1075 = vrot.lane.b32.xlu0 %v1048_v38, %s1737_s29  ;;  %1073 = vrot.lane.b32.xlu2 %v1034_v43, %s1737_s29  ;;  %v1525_v38 = vld [vmem:[%s1788_s22 + $0x14] sm:$0x1]  ;;  %v1517_v43 = vld [vmem:[%s1788_s22 + $0x20] sm:$0xf] }
  0x66   : > { %v646_v42 = vrot.slane %v644_v37, 5  ;;  %v664_v48 = vshll.u32 %v1525_v38, 16  ;;  %v827_v37 = vrot.slane %v1543_v29, 5  ;;  %v1562_v38 = vld [vmem:[%s1788_s22 + $0x10] sm:$0xf] }
  0x67   : > { %v1589_v29 = vld [vmem:[%s1788_s22 + $0x1c] sm:$0x1] }
  0x68   : > { %v647_v50 = vor.u32 %v646_v42, %v643_v41  ;;  %v666_v57 = vrot.slane %v664_v48, 5  ;;  %v980_v41 = vshrl.u32 %v1574_v32, 16  ;;  %v983_v42 = vshll.u32 %v1574_v32, 16 }
  0x6a   : > { %v648_v61 = vrot.slane %v647_v50, 4  ;;  %v667_v5 = vsel %vm1814_vm5, %v662_v56, %v666_v57  ;;  %v982_v47 = vrot.slane %v980_v41, 4  ;;  %v985_v48 = vrot.slane %v983_v42, 5 }
  0x6c   : > { %542 = vrot.lane.b32.xlu1 %v517_v52, %s1731_s23  ;;  %v676_v52 = vrot.slane %v675_v44, 4  ;;  %v969_v44 = vshll.u32 %v1572_v33, 16 }
  0x6d   : > { %540 = vrot.lane.b32.xlu0 %v513_v53, %s1731_s23  ;;  %538 = vrot.lane.b32.xlu2 %v509_v58, %s1731_s23  ;;  %v680_v53 = vrot.slane %v678_v45, 5  ;;  %v683_v58 = vshrl.u32 %v1528_v54, 16  ;;  %v952_v54 = vshrl.u32 %v1570_v51, 16 }
  0x6e   : > { %v971_v50 = vrot.slane %v969_v44, 5  ;;  %v293_v44 = vld [vmem:[%s1788_s22 + $0x18] sm:$0xf] }
  0x6f   : > { %v685_v2 = vrot.slane %v683_v58, 4  ;;  %v681_v4 = vsel %vm1814_vm5, %v676_v52, %v680_v53  ;;  %v1573_v53 = vld [vmem:[%s1788_s22 + $0x1c] sm:$0x1]  ;;  %302 = vst.msk [vmem:[#allocation2 + $0xc] sm:$0xf] %vm298_vm6, %v293_v44 }
  0x71   : > { %v689_v11 = vor.u32 %v688_v3, %v685_v2  ;;  %v975_v2 = vshll.u32 %v1573_v53, 16  ;;  %v1564_v3 = vld [vmem:[%s1788_s22 + $0x20] sm:$0xf] }
  0x73   : > { %v690_v19 = vrot.slane %v689_v11, 4  ;;  %v1576_v11 = vld [vmem:[%s1788_s22 + $0x28] sm:$0xf] }
  0x74   : > { %1170 = vrot.lane.b32.xlu1 %v1151_v6, %s1738_s30  ;;  %v1540_v6 = vld [vmem:[%s1788_s22 + $0x10] sm:$0xe]  ;;  %v997_v16 = vshll.u32 %v1576_v11, 16 }
  0x75   : > { %1168 = vrot.lane.b32.xlu0 %v1147_v7, %s1738_s30  ;;  %544 = vrot.lane.b32.xlu2 %v521_v10, %s1731_s23  ;;  %v1541_v7 = vld [vmem:[%s1788_s22 + $0x14] sm:$0x1]  ;;  %v653_v10 = vsel %vm1814_vm5, %v648_v61, %v652_v62  ;;  %v1555_v13 = vrot.slane %v1540_v6, 9  ;;  %v695_v27 = vsel %vm1814_vm5, %v690_v19, %v694_v20  ;;  %v1565_v62 = vld [vmem:[%s1788_s22 + $0x28] sm:$0xf]  ;;  %s1648_s23 = sshll.u32 %s2231_s15, 5 }
  0x76   : > { %v823_v14 = vrot.slane %v1541_v7, 5  ;;  %v1563_v6 = vld [vmem:[%s1788_s22 + $0x18] sm:$0xf]  ;;  %v290_v19 = vld [vmem:[%s1788_s22] sm:$0xf] }
  0x77   : > { %v1979_v21 = vpop.permute.xlu2 %546  ;;  %299 = vst.msk [vmem:[#allocation2] sm:$0xf] %vm298_vm6, %v290_v19 }
  0x78   : > { %v824_v23 = vsel %vm1790_vm2, %v1555_v13, %v823_v14 }
  0x7c   : > { %591 = vrot.lane.b32.xlu1 %v1514_v22, %s1733_s25 }
  0x7d   : > { %1174 = vrot.lane.b32.xlu0 %v1159_v25, %s1738_s30  ;;  %1172 = vrot.lane.b32.xlu2 %v1155_v28, %s1738_s30  ;;  %v1544_v25 = vld [vmem:[%s1788_s22 + $0x20] sm:$0xe]  ;;  %v1542_v28 = vld [vmem:[%s1788_s22 + $0x18] sm:$0xe] }
  0x7e   : > { %v1557_v30 = vrot.slane %v1544_v25, 9  ;;  %v1556_v36 = vrot.slane %v1542_v28, 9 }
  0x7f   : > { %v1993_v39 = vpop.permute.xlu2 %548 }
  0x80   : > { %v832_v45 = vsel %vm1790_vm2, %v1557_v30, %v831_v31  ;;  %v1587_v30 = vld [vmem:[%s1788_s22 + $0x14] sm:$0x1] }
  0x84   : > { %597 = vrot.lane.b32.xlu1 %v1517_v43, %s1733_s25  ;;  %v966_v43 = vshrl.u32 %v1572_v33, 16 }
  0x85   : > { %595 = vrot.lane.b32.xlu0 %v1516_v46, %s1733_s25  ;;  %593 = vrot.lane.b32.xlu2 %v1515_v49, %s1733_s25  ;;  %v828_v46 = vsel %vm1790_vm2, %v1556_v36, %v827_v37  ;;  %v1134_v36 = vrot.slane %v1589_v29, 5 }
  0x86   : > { %v2002_v55 = vpop.permute.xlu1 %552  ;;  %v968_v49 = vrot.slane %v966_v43, 4 }
  0x87   : > { %v551_v60 = vpop.permute.xlu0 %550  ;;  %v600_v63 = vpop.permute.xlu2 %599 }
  0x88   : > { %v972_v1 = vor.u32 %v971_v50, %v968_v49  ;;  %v1590_v50 = vld [vmem:[%s1788_s22 + $0x20] sm:$0xe] }
  0x8a   : > { %v973_v9 = vrot.slane %v972_v1, 4 }
  0x8c   : > { %756 = vrot.lane.b32.xlu1 %v681_v4, %s1734_s26 }
  0x8d   : > { %754 = vrot.lane.b32.xlu0 %v667_v5, %s1734_s26  ;;  %752 = vrot.lane.b32.xlu2 %v653_v10, %s1734_s26  ;;  %v961_v5 = vshll.u32 %v1571_v59, 16  ;;  %v977_v10 = vrot.slane %v975_v2, 5 }
  0x8e   : > { %v451_v15 = vpop.permute.xlu1 %450 }
  0x8f   : > { %469 = vst.msk [vmem:[#allocation2 + $0x18] sm:$0xf] %vm462_vm7, %v451_v15  ;;  %v447_v18 = vpop.permute.xlu0 %446  ;;  %v606_v22 = vpop.permute.xlu2 %605  ;;  %v963_v14 = vrot.slane %v961_v5, 5  ;;  %v994_v15 = vshrl.u32 %v1576_v11, 16  ;;  %v978_v28 = vsel %vm1814_vm5, %v973_v9, %v977_v10  ;;  %v1653_v9 = vld [vmem:[%s2218_s1] sm:$0xff] }
  0x90   : > { %467 = vst.msk [vmem:[#allocation2 + $0x10] sm:$0xf] %vm462_vm7, %v447_v18  ;;  %v291_v18 = vld [vmem:[%s1788_s22 + $0x8] sm:$0xf] }
  0x91   : > { %567 = vst.msk [vmem:[#allocation2 + $0x10] sm:$0xf] %vm562_vm8, %v1979_v21 }
  0x92   : > { %620 = vst.msk [vmem:[#allocation2 + $0x10] sm:$0xf] %vm615_vm9, %v600_v63  ;;  %v986_v63 = vor.u32 %v985_v48, %v982_v47  ;;  %v1592_v47 = vld [vmem:[%s1788_s22 + $0x28] sm:$0xe]  ;;  %v1593_v48 = vld [vmem:[%s1788_s22 + $0x2c] sm:$0x1] }
  0x93   : > { %569 = vst.msk [vmem:[#allocation2 + $0x18] sm:$0xf] %vm562_vm8, %v551_v60  ;;  %v954_v60 = vrot.slane %v952_v54, 4  ;;  %v1605_v53 = vrot.slane %v1592_v47, 9  ;;  %v1142_v54 = vrot.slane %v1593_v48, 5 }
  0x94   : > { %851 = vrot.lane.b32.xlu1 %v824_v23, %s1735_s27  ;;  %v987_v8 = vrot.slane %v986_v63, 4  ;;  %v996_v23 = vrot.slane %v994_v15, 4  ;;  %300 = vst.msk [vmem:[#allocation2 + $0x4] sm:$0xf] %vm298_vm6, %v291_v18 }
  0x95   : > { %849 = vrot.lane.b32.xlu0 %v820_v24, %s1735_s27  ;;  %758 = vrot.lane.b32.xlu2 %v695_v27, %s1734_s26  ;;  %v999_v24 = vrot.slane %v997_v16, 5  ;;  %v292_v27 = vld [vmem:[%s1788_s22 + $0x10] sm:$0xf]  ;;  %s2190_s26 = scalar_lea.vmem %s2221_s4, %s1648_s23 }
  0x96   : > { %v453_v21 = vpop.permute.xlu1 %452  ;;  %301 = vst.msk [vmem:[#allocation2 + $0x8] sm:$0xf] %vm298_vm6, %v292_v27 }
  0x97   : > { %470 = vst.msk [vmem:[#allocation2 + $0x1c] sm:$0xf] %vm462_vm7, %v453_v21  ;;  %v449_v34 = vpop.permute.xlu0 %448  ;;  %v765_v40 = vpop.permute.xlu2 %764  ;;  %v1586_v21 = vld [vmem:[%s1788_s22 + $0x10] sm:$0xe]  ;;  %v1000_v32 = vor.u32 %v999_v24, %v996_v23 }
  0x98   : > { %468 = vst.msk [vmem:[#allocation2 + $0x14] sm:$0xf] %vm462_vm7, %v449_v34  ;;  %v1603_v34 = vrot.slane %v1588_v26, 9 }
  0x99   : > { %568 = vst.msk [vmem:[#allocation2 + $0x14] sm:$0xf] %vm562_vm8, %v1993_v39  ;;  %v1575_v39 = vld [vmem:[%s1788_s22 + $0x24] sm:$0x1]  ;;  %v1001_v42 = vrot.slane %v1000_v32, 4 }
  0x9a   : > { %570 = vst.msk [vmem:[#allocation2 + $0x1c] sm:$0xf] %vm562_vm8, %v2002_v55  ;;  %v955_v55 = vshll.u32 %v1570_v51, 16  ;;  %v989_v57 = vshll.u32 %v1575_v39, 16  ;;  %v1591_v51 = vld [vmem:[%s1788_s22 + $0x24] sm:$0x1] }
  0x9b   : > { %623 = vst.msk [vmem:[#allocation2 + $0x1c] sm:$0xf] %vm615_vm9, %v606_v22  ;;  %v1577_v22 = vld [vmem:[%s1788_s22 + $0x2c] sm:$0x1] }
  0x9c   : > { %902 = vrot.lane.b32.xlu1 %v1562_v38, %s1736_s28  ;;  %v957_v61 = vrot.slane %v955_v55, 5  ;;  %v991_v7 = vrot.slane %v989_v57, 5  ;;  %v1003_v33 = vshll.u32 %v1577_v22, 16  ;;  %v1602_v38 = vrot.slane %v1586_v21, 9 }
  0x9d   : > { %855 = vrot.lane.b32.xlu0 %v832_v45, %s1735_s27  ;;  %853 = vrot.lane.b32.xlu2 %v828_v46, %s1735_s27  ;;  %v1135_v46 = vsel %vm1790_vm2, %v1603_v34, %v1134_v36  ;;  %v1138_v57 = vrot.slane %v1591_v51, 5  ;;  %v1706_v51 = vld [vmem:[%s2220_s3] ss:$0 sm:$0xff] }
  0x9e   : > { %v604_v52 = vpop.permute.xlu1 %603  ;;  %v958_v4 = vor.u32 %v957_v61, %v954_v60  ;;  %v992_v25 = vsel %vm1814_vm5, %v987_v8, %v991_v7  ;;  %v1005_v43 = vrot.slane %v1003_v33, 5  ;;  %v1143_v60 = vsel %vm1790_vm2, %v1605_v53, %v1142_v54  ;;  %v1654_v8 = vld [vmem:[%s2218_s1 + $0x8] sm:$0xff] }
  0x9f   : > { %622 = vst.msk [vmem:[#allocation2 + $0x18] sm:$0xf] %vm615_vm9, %v604_v52  ;;  %v602_v56 = vpop.permute.xlu0 %601  ;;  %v860_v58 = vpop.permute.xlu2 %859 }
  0xa0   : > { %621 = vst.msk [vmem:[#allocation2 + $0x14] sm:$0xf] %vm615_vm9, %v602_v56  ;;  %v959_v13 = vrot.slane %v958_v4, 4  ;;  %v1006_v49 = vsel %vm1814_vm5, %v1001_v42, %v1005_v43  ;;  %v1604_v56 = vrot.slane %v1590_v50, 9  ;;  %v1655_v4 = vld [vmem:[%s2218_s1 + $0x10] sm:$0xff] }
  0xa1   : > { %783 = vst.msk [vmem:[#allocation2 + $0x18] sm:$0xf] %vm776_vm10, %v765_v40  ;;  %v1130_v40 = vrot.slane %v1587_v30, 5  ;;  %v1705_v50 = vld [vmem:[%s2219_s2] ss:$0 sm:$0xff] }
  0xa2   : > { %v964_v31 = vsel %vm1814_vm5, %v959_v13, %v963_v14  ;;  %v1139_v61 = vsel %vm1790_vm2, %v1604_v56, %v1138_v57 }
  0xa3   : > { %v1131_v39 = vsel %vm1790_vm2, %v1602_v38, %v1130_v40 }
  0xa4   : > { %908 = vrot.lane.b32.xlu1 %v1565_v62, %s1736_s28 }
  0xa5   : > { %906 = vrot.lane.b32.xlu0 %v1564_v3, %s1736_s28  ;;  %904 = vrot.lane.b32.xlu2 %v1563_v6, %s1736_s28 }
  0xa6   : > { %v763_v12 = vpop.permute.xlu1 %762 }
  0xa7   : > { %782 = vst.msk [vmem:[#allocation2 + $0x14] sm:$0xf] %vm776_vm10, %v763_v12  ;;  %v761_v17 = vpop.permute.xlu0 %760  ;;  %v911_v20 = vpop.permute.xlu2 %910 }
  0xa8   : > { %781 = vst.msk [vmem:[#allocation2 + $0x10] sm:$0xf] %vm776_vm10, %v761_v17 }
  0xa9   : > { %879 = vst.msk [vmem:[#allocation2 + $0x14] sm:$0xf] %vm873_vm11, %v860_v58  ;;  %v1209_v58 = vld [vmem:[%s2218_s1 + $0x20] sm:$0xf] }
  0xaa   : > { %v1247_v59 = vunpack.c.l.b16 %v1209_v58 }
  0xac   : > { %1067 = vrot.lane.b32.xlu1 %v992_v25, %s1737_s29  ;;  %v1252_v62 = vpack.c.b16 %v1247_v59, %v1247_v59 }
  0xad   : > { %1065 = vrot.lane.b32.xlu0 %v978_v28, %s1737_s29  ;;  %1063 = vrot.lane.b32.xlu2 %v964_v31, %s1737_s29 }
  0xae   : > { %v858_v37 = vpop.permute.xlu1 %857  ;;  %v1272_v63 = vsel %vm1270_vm13, %v1252_v62, 0 }
  0xaf   : > { %878 = vst.msk [vmem:[#allocation2 + $0x10] sm:$0xf] %vm873_vm11, %v858_v37  ;;  %v767_v41 = vpop.permute.xlu0 %766  ;;  %v917_v45 = vpop.permute.xlu2 %916  ;;  %1658 = vmatpush.bf16.msra.mxu2 %v1272_v63  ;;  %1659 = vmatpush.bf16.msra.mxu3 %v1272_v63 }
  0xb0   : > { %784 = vst.msk [vmem:[#allocation2 + $0x1c] sm:$0xf] %vm776_vm10, %v767_v41  ;;  %1277 = vmatpush.bf16.msra.mxu0 %v1272_v63  ;;  %1657 = vmatpush.bf16.msra.mxu1 %v1272_v63 }
  0xb1   : > { %931 = vst.msk [vmem:[#allocation2 + $0x10] sm:$0xf] %vm926_vm12, %v911_v20 }
  0xb3   : > { %1661 = vmatpush.bf16.msra.mxu2 %v1656_v0  ;;  %1662 = vmatpush.bf16.msra.mxu3 %v1656_v0 }
  0xb4   : > { %1162 = vrot.lane.b32.xlu1 %v1135_v46, %s1738_s30  ;;  %1278 = vmatpush.bf16.msra.mxu0 %v1656_v0 }
  0xb5   : > { %1160 = vrot.lane.b32.xlu0 %v1131_v39, %s1738_s30  ;;  %1069 = vrot.lane.b32.xlu2 %v1006_v49, %s1737_s29 }
  0xb6   : > { %v864_v52 = vpop.permute.xlu1 %863  ;;  %1660 = vmatpush.bf16.msra.mxu1 %v1656_v0 }
  0xb7   : > { %881 = vst.msk [vmem:[#allocation2 + $0x1c] sm:$0xf] %vm873_vm11, %v864_v52  ;;  %v862_v55 = vpop.permute.xlu0 %861  ;;  %v443_v35 = vpop.permute.xlu2 %442  ;;  %1664 = vmatpush.bf16.msra.mxu2 %v1655_v4  ;;  %1665 = vmatpush.bf16.msra.mxu3 %v1655_v4 }
  0xb8   : > { %880 = vst.msk [vmem:[#allocation2 + $0x18] sm:$0xf] %vm873_vm11, %v862_v55  ;;  %1279 = vmatpush.bf16.msra.mxu0 %v1655_v4 }
  0xb9   : > { %934 = vst.msk [vmem:[#allocation2 + $0x1c] sm:$0xf] %vm926_vm12, %v917_v45 }
  0xba   : > { %465 = vst.msk [vmem:[#allocation2 + $0x8] sm:$0xf] %vm462_vm7, %v443_v35  ;;  %1663 = vmatpush.bf16.msra.mxu1 %v1655_v4 }
  0xbb   : > { %1667 = vmatpush.bf16.msra.mxu2 %v1654_v8  ;;  %1668 = vmatpush.bf16.msra.mxu3 %v1654_v8 }
  0xbc   : > { %1280 = vmatpush.bf16.msra.mxu0 %v1654_v8 }
  0xbd   : > { %1166 = vrot.lane.b32.xlu0 %v1143_v60, %s1738_s30  ;;  %1164 = vrot.lane.b32.xlu2 %v1139_v61, %s1738_s30 }
  0xbe   : > { %v915_v1 = vpop.permute.xlu1 %914  ;;  %1666 = vmatpush.bf16.msra.mxu1 %v1654_v8 }
  0xbf   : > { %933 = vst.msk [vmem:[#allocation2 + $0x18] sm:$0xf] %vm926_vm12, %v915_v1  ;;  %v913_v2 = vpop.permute.xlu0 %912  ;;  %v1074_v3 = vpop.permute.xlu2 %1073  ;;  %1670 = vmatpush.bf16.msra.mxu2 %v1653_v9  ;;  %1671 = vmatpush.bf16.msra.mxu3 %v1653_v9 }
  0xc0   : > { %932 = vst.msk [vmem:[#allocation2 + $0x14] sm:$0xf] %vm926_vm12, %v913_v2  ;;  %1281 = vmatpush.bf16.msra.mxu0 %v1653_v9 }
  0xc1   : > { %1093 = vst.msk [vmem:[#allocation2 + $0x14] sm:$0xf] %vm1087_vm14, %v1074_v3 }
  0xc2   : > { %1669 = vmatpush.bf16.msra.mxu1 %v1653_v9 }
  0xc6   : > { %v441_v5 = vpop.permute.xlu1 %440 }
  0xc7   : > { %464 = vst.msk [vmem:[#allocation2 + $0x4] sm:$0xf] %vm462_vm7, %v441_v5  ;;  %v439_v6 = vpop.permute.xlu0 %438  ;;  %v539_v7 = vpop.permute.xlu2 %538 }
  0xc8   : > { %463 = vst.msk [vmem:[#allocation2] sm:$0xf] %vm462_vm7, %v439_v6 }
  0xc9   : > { %563 = vst.msk [vmem:[#allocation2] sm:$0xf] %vm562_vm8, %v539_v7 }
  0xce   : > { %v1072_v10 = vpop.permute.xlu1 %1071 }
  0xcf   : > { %1092 = vst.msk [vmem:[#allocation2 + $0x10] sm:$0xf] %vm1087_vm14, %v1072_v10  ;;  %v445_v11 = vpop.permute.xlu0 %444  ;;  %v545_v12 = vpop.permute.xlu2 %544 }
  0xd0   : > { %466 = vst.msk [vmem:[#allocation2 + $0xc] sm:$0xf] %vm462_vm7, %v445_v11 }
  0xd1   : > { %566 = vst.msk [vmem:[#allocation2 + $0xc] sm:$0xf] %vm562_vm8, %v545_v12 }
  0xd6   : > { %v1078_v13 = vpop.permute.xlu1 %1077 }
  0xd7   : > { %1095 = vst.msk [vmem:[#allocation2 + $0x1c] sm:$0xf] %vm1087_vm14, %v1078_v13  ;;  %v1076_v14 = vpop.permute.xlu0 %1075  ;;  %v1173_v15 = vpop.permute.xlu2 %1172 }
  0xd8   : > { %1094 = vst.msk [vmem:[#allocation2 + $0x18] sm:$0xf] %vm1087_vm14, %v1076_v14 }
  0xd9   : > { %1191 = vst.msk [vmem:[#allocation2 + $0x18] sm:$0xf] %vm1184_vm15, %v1173_v15 }
  0xde   : > { %v543_v16 = vpop.permute.xlu1 %542 }
  0xdf   : > { %565 = vst.msk [vmem:[#allocation2 + $0x8] sm:$0xf] %vm562_vm8, %v543_v16  ;;  %v541_v17 = vpop.permute.xlu0 %540  ;;  %v594_v18 = vpop.permute.xlu2 %593 }
  0xe0   : > { %564 = vst.msk [vmem:[#allocation2 + $0x4] sm:$0xf] %vm562_vm8, %v541_v17 }
  0xe1   : > { %617 = vst.msk [vmem:[#allocation2 + $0x4] sm:$0xf] %vm615_vm9, %v594_v18 }
  0xe6   : > { %v1171_v19 = vpop.permute.xlu1 %1170 }
  0xe7   : > { %1190 = vst.msk [vmem:[#allocation2 + $0x14] sm:$0xf] %vm1184_vm15, %v1171_v19  ;;  %v1169_v20 = vpop.permute.xlu0 %1168  ;;  %v753_v22 = vpop.permute.xlu2 %752 }
  0xe8   : > { %1189 = vst.msk [vmem:[#allocation2 + $0x10] sm:$0xf] %vm1184_vm15, %v1169_v20 }
  0xee   : > { %v592_v23 = vpop.permute.xlu1 %591 }
  0xef   : > { %616 = vst.msk [vmem:[#allocation2] sm:$0xf] %vm615_vm9, %v592_v23  ;;  %v1175_v24 = vpop.permute.xlu0 %1174  ;;  %v1651_v25 = vld [vmem:[#allocation2 + $0x10] sm:$0xff]  ;;  %v759_v26 = vpop.permute.xlu2 %758 }
  0xf0   : > { %1192 = vst.msk [vmem:[#allocation2 + $0x1c] sm:$0xf] %vm1184_vm15, %v1175_v24  ;;  %1644 = vmatmul.msk.bf16.vlgmr.msra.gmra.mxu2 %vm1257_vm0, %v1651_v25 }
  0xf1   : > { %777 = vst.msk [vmem:[#allocation2] sm:$0xf] %vm776_vm10, %v753_v22 }
  0xf6   : > { %v598_v27 = vpop.permute.xlu1 %597 }
  0xf7   : > { %619 = vst.msk [vmem:[#allocation2 + $0xc] sm:$0xf] %vm615_vm9, %v598_v27  ;;  %v596_v28 = vpop.permute.xlu0 %595  ;;  %v1652_v29 = vld [vmem:[#allocation2 + $0x18] sm:$0xff]  ;;  %v854_v21 = vpop.permute.xlu2 %853 }
  0xf8   : > { %618 = vst.msk [vmem:[#allocation2 + $0x8] sm:$0xf] %vm615_vm9, %v596_v28  ;;  %1645 = vmatmul.msk.bf16.vlgmr.msra.gmra.mxu3 %vm1257_vm0, %v1652_v29 }
  0xf9   : > { %780 = vst.msk [vmem:[#allocation2 + $0xc] sm:$0xf] %vm776_vm10, %v759_v26 }
  0xfe   : > { %v757_v30 = vpop.permute.xlu1 %756 }
  0xff   : > { %779 = vst.msk [vmem:[#allocation2 + $0x8] sm:$0xf] %vm776_vm10, %v757_v30  ;;  %v755_v31 = vpop.permute.xlu0 %754  ;;  %v905_v32 = vpop.permute.xlu2 %904 }
 0x100   : > { %778 = vst.msk [vmem:[#allocation2 + $0x4] sm:$0xf] %vm776_vm10, %v755_v31 }
 0x101   : > { %876 = vst.msk [vmem:[#allocation2 + $0x8] sm:$0xf] %vm873_vm11, %v854_v21 }
 0x106   : > { %v852_v33 = vpop.permute.xlu1 %851 }
 0x107   : > { %875 = vst.msk [vmem:[#allocation2 + $0x4] sm:$0xf] %vm873_vm11, %v852_v33  ;;  %v850_v34 = vpop.permute.xlu0 %849  ;;  %v1064_v36 = vpop.permute.xlu2 %1063 }
 0x108   : > { %874 = vst.msk [vmem:[#allocation2] sm:$0xf] %vm873_vm11, %v850_v34 }
 0x109   : > { %928 = vst.msk [vmem:[#allocation2 + $0x4] sm:$0xf] %vm926_vm12, %v905_v32 }
 0x10e   : > { %v903_v37 = vpop.permute.xlu1 %902 }
 0x10f   : > { %927 = vst.msk [vmem:[#allocation2] sm:$0xf] %vm926_vm12, %v903_v37  ;;  %v856_v38 = vpop.permute.xlu0 %855  ;;  %v1070_v40 = vpop.permute.xlu2 %1069 }
 0x110   : > { %877 = vst.msk [vmem:[#allocation2 + $0xc] sm:$0xf] %vm873_vm11, %v856_v38 }
 0x111   : > { %1088 = vst.msk [vmem:[#allocation2] sm:$0xf] %vm1087_vm14, %v1064_v36 }
 0x116   : > { %v909_v41 = vpop.permute.xlu1 %908 }
 0x117   : > { %930 = vst.msk [vmem:[#allocation2 + $0xc] sm:$0xf] %vm926_vm12, %v909_v41  ;;  %v907_v42 = vpop.permute.xlu0 %906  ;;  %v1165_v44 = vpop.permute.xlu2 %1164 }
 0x118   : > { %929 = vst.msk [vmem:[#allocation2 + $0x8] sm:$0xf] %vm926_vm12, %v907_v42 }
 0x119   : > { %1091 = vst.msk [vmem:[#allocation2 + $0xc] sm:$0xf] %vm1087_vm14, %v1070_v40 }
 0x11e   : > { %v1068_v43 = vpop.permute.xlu1 %1067 }
 0x11f   : > { %1090 = vst.msk [vmem:[#allocation2 + $0x8] sm:$0xf] %vm1087_vm14, %v1068_v43  ;;  %v1066_v45 = vpop.permute.xlu0 %1065 }
 0x120   : > { %1089 = vst.msk [vmem:[#allocation2 + $0x4] sm:$0xf] %vm1087_vm14, %v1066_v45 }
 0x121   : > { %1187 = vst.msk [vmem:[#allocation2 + $0x8] sm:$0xf] %vm1184_vm15, %v1165_v44 }
 0x126   : > { %v1163_v46 = vpop.permute.xlu1 %1162 }
 0x127   : > { %1186 = vst.msk [vmem:[#allocation2 + $0x4] sm:$0xf] %vm1184_vm15, %v1163_v46  ;;  %v1161_v39 = vpop.permute.xlu0 %1160 }
 0x128   : > { %1185 = vst.msk [vmem:[#allocation2] sm:$0xf] %vm1184_vm15, %v1161_v39 }
 0x12f   : > { %v1167_v47 = vpop.permute.xlu0 %1166  ;;  %v1649_v48 = vld [vmem:[#allocation2] sm:$0xff] }
 0x130   : > { %1188 = vst.msk [vmem:[#allocation2 + $0xc] sm:$0xf] %vm1184_vm15, %v1167_v47  ;;  %1642 = vmatmul.msk.bf16.vlgmr.msra.gmra.mxu0 %vm1257_vm0, %v1649_v48 }
 0x137   : > { %v1650_v49 = vld [vmem:[#allocation2 + $0x8] sm:$0xff] }
 0x138   : > { %1643 = vmatmul.msk.bf16.vlgmr.msra.gmra.mxu1 %vm1257_vm0, %v1650_v49 }
 0x173   : > { %v1293_v52 = vpop.f32.mrf.mxu2 }
 0x174   : > { %v1311_v53 = vmul.f32 %v1705_v50, %v1293_v52 }
 0x176   : > { %v1323_v54 = vadd.f32 %v1706_v51, %v1311_v53 }
 0x178   : > { %v1331_v55 = vmax.f32 %v1323_v54, 0.0 }
 0x17a   : > { %v1339_v56 = vpack.c.bf16 %v1331_v55, %v1331_v55 }
 0x17b   : > { %v1295_v57 = vpop.f32.mrf.mxu2  ;;  %v1298_v35 = vpop.f32.mrf.mxu3 }
 0x17c   : > { %1348 = vst.msk [vmem:[%s2190_s26 + $0x10] sm:$0xf] %vm1343_vm1, %v1339_v56  ;;  %v1312_v58 = vmul.f32 %v1705_v50, %v1295_v57  ;;  %v1313_v59 = vmul.f32 %v1705_v50, %v1298_v35 }
 0x17e   : > { %v1324_v60 = vadd.f32 %v1706_v51, %v1312_v58  ;;  %v1325_v61 = vadd.f32 %v1706_v51, %v1313_v59 }
 0x180   : > { %v1332_v62 = vmax.f32 %v1324_v60, 0.0  ;;  %v1333_v63 = vmax.f32 %v1325_v61, 0.0 }
 0x182   : > { %v1340_v1 = vpack.c.bf16 %v1332_v62, %v1332_v62  ;;  %v1341_v2 = vpack.c.bf16 %v1333_v63, %v1333_v63 }
 0x183   : > { %v1300_v3 = vpop.f32.mrf.mxu3 }
 0x184   : > { %1349 = vst.msk [vmem:[%s2190_s26 + $0x14] sm:$0xf] %vm1343_vm1, %v1340_v1  ;;  %v1314_v0 = vmul.f32 %v1705_v50, %v1300_v3 }
 0x185   : > { %1350 = vst.msk [vmem:[%s2190_s26 + $0x18] sm:$0xf] %vm1343_vm1, %v1341_v2 }
 0x186   : > { %v1326_v4 = vadd.f32 %v1706_v51, %v1314_v0 }
 0x188   : > { %v1334_v5 = vmax.f32 %v1326_v4, 0.0 }
 0x18a   : > { %v1342_v6 = vpack.c.bf16 %v1334_v5, %v1334_v5 }
 0x18c   : > { %1351 = vst.msk [vmem:[%s2190_s26 + $0x1c] sm:$0xf] %vm1343_vm1, %v1342_v6 }
 0x1ad   : > { %v1283_v7 = vpop.f32.mrf.mxu0 }
 0x1ae   : > { %v1307_v8 = vmul.f32 %v1705_v50, %v1283_v7 }
 0x1b0   : > { %v1319_v9 = vadd.f32 %v1706_v51, %v1307_v8 }
 0x1b2   : > { %v1327_v10 = vmax.f32 %v1319_v9, 0.0 }
 0x1b4   : > { %v1335_v11 = vpack.c.bf16 %v1327_v10, %v1327_v10 }
 0x1b5   : > { %v1285_v12 = vpop.f32.mrf.mxu0  ;;  %v1288_v13 = vpop.f32.mrf.mxu1 }
 0x1b6   : > { %1344 = vst.msk [vmem:[%s2190_s26] sm:$0xf] %vm1343_vm1, %v1335_v11  ;;  %v1308_v14 = vmul.f32 %v1705_v50, %v1285_v12  ;;  %v1309_v15 = vmul.f32 %v1705_v50, %v1288_v13 }
 0x1b8   : > { %v1320_v16 = vadd.f32 %v1706_v51, %v1308_v14  ;;  %v1321_v17 = vadd.f32 %v1706_v51, %v1309_v15 }
 0x1ba   : > { %v1328_v18 = vmax.f32 %v1320_v16, 0.0  ;;  %v1329_v19 = vmax.f32 %v1321_v17, 0.0 }
 0x1bc   : > { %v1336_v20 = vpack.c.bf16 %v1328_v18, %v1328_v18  ;;  %v1337_v22 = vpack.c.bf16 %v1329_v19, %v1329_v19 }
 0x1bd   : > { %v1290_v23 = vpop.f32.mrf.mxu1 }
 0x1be   : > { %1345 = vst.msk [vmem:[%s2190_s26 + $0x4] sm:$0xf] %vm1343_vm1, %v1336_v20  ;;  %v1310_v24 = vmul.f32 %v1705_v50, %v1290_v23 }
 0x1bf   : > { %1346 = vst.msk [vmem:[%s2190_s26 + $0x8] sm:$0xf] %vm1343_vm1, %v1337_v22 }
 0x1c0   : > { %v1322_v25 = vadd.f32 %v1706_v51, %v1310_v24 }
 0x1c2   : > { %v1330_v26 = vmax.f32 %v1322_v25, 0.0 }
 0x1c4   : > { %v1338_v27 = vpack.c.bf16 %v1330_v26, %v1330_v26 }
 0x1c6   : > { %1347 = vst.msk [vmem:[%s2190_s26 + $0xc] sm:$0xf] %vm1343_vm1, %v1338_v27 }
 0x1c7 PF: > { %s14_s17 = sadd.s32 1, %s1729_s17   ;;  %s2226_s15 = smov %s1725_s16 }
 0x1c8   : > { %p11_p5 = scmp.ge.s32.totalorder %s14_s17, 4   ;;  %s2227_s16 = smov %s2229_s18 }
 0x1ca   :  { %13 = sbr.rel (!%p11_p5) target bundleno = 2 (0x2), region = 82 }

// kernel: vgg_bn_encoder_forward.4
= control target key start
LH: loop header
LB: loop body
LE: loop exit
PB: predicated region body
PF: predicated region fallthrough
CT: control target
= control target key end

     0   :  { %s2667_s15 = smov 0   ;;  %s2669_s16 = smov 0   ;;  %s3513_s0 = inlined_call_operand.vmem [shape: bf16[2,18,18,8], index: 0, kind: input, shape index: {}]   ;;  %s3514_s1 = inlined_call_operand.vmem [shape: bf16[72,8], index: 1, kind: input, shape index: {}]   ;;  %s3515_s2 = inlined_call_operand.vmem [shape: f32[1,8], index: 2, kind: input, shape index: {}]   ;;  %s3516_s3 = inlined_call_operand.vmem [shape: f32[1,8], index: 3, kind: input, shape index: {}]   ;;  %s3517_s4 = inlined_call_operand.vmem [shape: bf16[2,256,8], index: 4, kind: output, shape index: {}]  }
   0x1   :  { %s2671_s17 = smov 0   ;;  %s2673_s18 = smov 0  }
   0x2   :  { %s2675_s19 = smov 0  }
   0x3 LB: > { %s29_s20 = sadd.s32 1, %s2624_s17  ;;  %s33_s21 = sadd.s32 1, %s2628_s18  ;;  %s2632_s19 = sphi %s2675_s19, %s14_s19   ;;  %s2628_s18 = sphi %s2673_s18, %s3525_s18   ;;  %s2624_s17 = sphi %s2671_s17, %s3524_s17   ;;  %s2620_s16 = sphi %s2669_s16, %s3523_s16   ;;  %s2616_s15 = sphi %s2667_s15, %s3522_s15  }
   0x4   : > { %p31_p0 = scmp.ge.s32.totalorder %s29_s20, 2  ;;  %p2293_p1 = scmp.ge.s32.totalorder %s2632_s19, 1 }
   0x5   : > { %p210_p2 = scmp.lt.s32.totalorder %s2632_s19, 5 }
   0x6   : > { %s3527_s20 = smov (%p31_p0, %s29_s20), 0  ;;  %s3529_s21 = smov (!%p31_p0, %s33_s21), %s2628_s18 }
   0x7   : > { %p211_p3 = pnand %p2293_p1, %p210_p2  ;;  %p35_p4 = scmp.ge.s32.totalorder %s3529_s21, 2 }
   0x8   : > { %p253_p5 = scmp.lt.s32.totalorder (!%p211_p3), %s2620_s16, 1  ;;  %s2515_s22 = smul.u32 (!%p211_p3), 96, %s2616_s15 }
   0x9   : > { %s3531_s21 = smov (%p35_p4, %s3529_s21), 0  ;;  %214 = sbr.rel (%p211_p3) target bundleno = 632 (0x278), region = 36 }
   0xa   : > { %s2634_s28 = smov (!%p211_p3), 8   ;;  %s2635_s29 = smov (!%p211_p3), 16  }
   0xb   : > { %s2636_s30 = smov (!%p211_p3), 24   ;;  %s2637_s5 = smov (!%p211_p3), 32  }
   0xc   : > { %s2638_s6 = smov (!%p211_p3), 40   ;;  %s2639_s7 = smov (!%p211_p3), 48  }
   0xd   : > { %s2640_s8 = smov (!%p211_p3), 56   ;;  %s2641_s9 = smov (!%p211_p3), 64  }
   0xe   : > { %s3533_s16 = smov (!%p253_p5, %s2620_s16), 1  ;;  %vm347_vm0 = vsmask.f32 3328  ;;  %vm348_vm1 = vsmask.f32 7440  ;;  %vm655_vm3 = vcmask 1042432  }
   0xf   : > { %s2543_s23 = smul.u32 216, %s3533_s16  ;;  %vm2717_vm2 = vmor %vm347_vm0, %vm348_vm1  ;;  %vm656_vm4 = vcmask 1046532   ;;  %vm306_vm6 = vcmask 60416   ;;  %vm590_vm7 = vcmask 126016   ;;  %vm762_vm8 = vcmask 191616  }
  0x10   : > { %vm2785_vm5 = vmor %vm655_vm3, %vm656_vm4  ;;  %vm863_vm9 = vcmask 257216   ;;  %vm1144_vm10 = vcmask 322816   ;;  %vm1998_vm11 = vcmask 1043456   ;;  %vm1313_vm12 = vcmask 388416  }
  0x11   : > { %s257_s26 = scalar_lea.vmem %s3513_s0, %s2543_s23  ;;  %vm1414_vm13 = vcmask 454016   ;;  %vm1695_vm14 = vcmask 519616   ;;  %vm1864_vm15 = vcmask 585216   ;;  %vm1973_vm0 = vcmask 588800  }
  0x12   : > { %s2706_s27 = scalar_lea.vmem %s257_s26, %s2515_s22 }
  0x13   : > { %v326_v0 = vld [vmem:[%s2706_s27 + $0xc] sm:$0xf]  ;;  %v327_v1 = vld [vmem:[%s2706_s27 + $0x10] sm:$0xf]  ;;  %v323_v2 = vld [vmem:[%s2706_s27] sm:$0xf] }
  0x14   : > { %v375_v3 = vshrl.u32 %v326_v0, 16  ;;  %v378_v4 = vshll.u32 %v326_v0, 16  ;;  %v384_v5 = vshll.u32 %v327_v1, 16  ;;  %v388_v6 = vshrl.u32 %v327_v1, 16  ;;  %v324_v7 = vld [vmem:[%s2706_s27 + $0x4] sm:$0xf] }
  0x15   : > { %v351_v8 = vshrl.u32 %v323_v2, 16  ;;  %v354_v9 = vshll.u32 %v323_v2, 16  ;;  %v360_v10 = vshll.u32 %v324_v7, 16  ;;  %v364_v11 = vshrl.u32 %v324_v7, 16  ;;  %v328_v12 = vld [vmem:[%s2706_s27 + $0x14] sm:$0x1] }
  0x16   : > { %v377_v13 = vrot.slane %v375_v3, 4  ;;  %v380_v14 = vrot.slane %v378_v4, 5  ;;  %v386_v15 = vrot.slane %v384_v5, 5  ;;  %v390_v16 = vrot.slane %v388_v6, 4  ;;  %v325_v17 = vld [vmem:[%s2706_s27 + $0x8] sm:$0x1] }
  0x17   : > { %v353_v18 = vrot.slane %v351_v8, 4  ;;  %v356_v19 = vrot.slane %v354_v9, 5  ;;  %v366_v20 = vrot.slane %v364_v11, 4  ;;  %v333_v21 = vld [vmem:[%s2706_s27 + $0x28] sm:$0xf]  ;;  %v362_v23 = vrot.slane %v360_v10, 5 }
  0x18   : > { %v381_v22 = vor.u32 %v380_v14, %v377_v13  ;;  %v391_v24 = vor.u32 %v390_v16, %v386_v15  ;;  %v394_v27 = vshll.u32 %v328_v12, 16  ;;  %v432_v28 = vshll.u32 %v333_v21, 16  ;;  %v332_v30 = vld [vmem:[%s2706_s27 + $0x24] sm:$0xf]  ;;  %v329_v35 = vld [vmem:[%s2706_s27 + $0x18] sm:$0xf] }
  0x19   : > { %v357_v26 = vor.u32 %v356_v19, %v353_v18  ;;  %v436_v29 = vshrl.u32 %v333_v21, 16  ;;  %v367_v32 = vor.u32 %v366_v20, %v362_v23  ;;  %v370_v33 = vshll.u32 %v325_v17, 16  ;;  %v330_v40 = vld [vmem:[%s2706_s27 + $0x1c] sm:$0xf]  ;;  %v334_v44 = vld [vmem:[%s2706_s27 + $0x2c] sm:$0x1] }
  0x1a   : > { %v382_v31 = vrot.slane %v381_v22, 4  ;;  %v2725_v37 = vrot.slane %v432_v28, 5  ;;  %v423_v39 = vshrl.u32 %v332_v30, 16  ;;  %v392_v42 = vrot.slane %v391_v24, 4  ;;  %v338_v50 = vld [vmem:[%s2706_s27 + $0x3c] sm:$0xf] }
  0x1b   : > { %v358_v34 = vrot.slane %v357_v26, 4  ;;  %v438_v38 = vrot.slane %v436_v29, 4  ;;  %v396_v43 = vrot.slane %v394_v27, 5  ;;  %v426_v45 = vshll.u32 %v332_v30, 16  ;;  %v336_v59 = vld [vmem:[%s2706_s27 + $0x34] sm:$0xf] }
  0x1c   : > { %v387_v36 = vsel %vm2717_vm2, %v382_v31, %v386_v15  ;;  %v368_v46 = vrot.slane %v367_v32, 4  ;;  %v372_v47 = vrot.slane %v370_v33, 5  ;;  %v399_v48 = vshrl.u32 %v329_v35, 16  ;;  %v331_v6 = vld [vmem:[%s2706_s27 + $0x20] sm:$0x1] }
  0x1d   : > { %546 = vrot.lane.b32.xlu1 %v387_v36, %s2634_s28  ;;  %v363_v41 = vsel %vm2717_vm2, %v358_v34, %v362_v23  ;;  %v402_v49 = vshll.u32 %v329_v35, 16  ;;  %v425_v51 = vrot.slane %v423_v39, 4  ;;  %v428_v52 = vrot.slane %v426_v45, 5  ;;  %v339_v10 = vld [vmem:[%s2706_s27 + $0x40] sm:$0xf] }
  0x1e   : > { %542 = vrot.lane.b32.xlu0 %v363_v41, %s2634_s28  ;;  %v408_v53 = vshll.u32 %v330_v40, 16  ;;  %v412_v54 = vshrl.u32 %v330_v40, 16  ;;  %v439_v55 = vor.u32 %v438_v38, %v2725_v37  ;;  %v442_v56 = vshll.u32 %v334_v44, 16  ;;  %v337_v15 = vld [vmem:[%s2706_s27 + $0x38] sm:$0x1] }
  0x1f   : > { %v401_v57 = vrot.slane %v399_v48, 4  ;;  %v404_v58 = vrot.slane %v402_v49, 5  ;;  %v471_v61 = vshrl.u32 %v338_v50, 16  ;;  %v474_v62 = vshll.u32 %v338_v50, 16  ;;  %v342_v20 = vld [vmem:[%s2706_s27 + $0x4c] sm:$0xf] }
  0x20   : > { %v414_v60 = vrot.slane %v412_v54, 4  ;;  %v397_v63 = vsel %vm2717_vm2, %v392_v42, %v396_v43  ;;  %v410_v1 = vrot.slane %v408_v53, 5  ;;  %v373_v2 = vsel %vm2717_vm2, %v368_v46, %v372_v47  ;;  %v335_v21 = vld [vmem:[%s2706_s27 + $0x30] sm:$0xf]  ;;  %v341_v26 = vld [vmem:[%s2706_s27 + $0x48] sm:$0xf] }
  0x21   : > { %v405_v0 = vor.u32 %v404_v58, %v401_v57  ;;  %v429_v3 = vor.u32 %v428_v52, %v425_v51  ;;  %v456_v4 = vshll.u32 %v336_v59, 16  ;;  %v460_v5 = vshrl.u32 %v336_v59, 16  ;;  %v343_v48 = vld [vmem:[%s2706_s27 + $0x50] sm:$0x1]  ;;  %v345_v53 = vld [vmem:[%s2706_s27 + $0x58] sm:$0xf] }
  0x22   : > { %v440_v7 = vrot.slane %v439_v55, 4  ;;  %v444_v8 = vrot.slane %v442_v56, 5  ;;  %v473_v11 = vrot.slane %v471_v61, 4  ;;  %v476_v12 = vrot.slane %v474_v62, 5  ;;  %v340_v55 = vld [vmem:[%s2706_s27 + $0x44] sm:$0x1] }
  0x23   : > { %v406_v9 = vrot.slane %v405_v0, 4  ;;  %v415_v13 = vor.u32 %v414_v60, %v410_v1  ;;  %v458_v16 = vrot.slane %v456_v4, 5  ;;  %v462_v17 = vrot.slane %v460_v5, 4  ;;  %v344_v56 = vld [vmem:[%s2706_s27 + $0x54] sm:$0xf] }
  0x24   : > { %v418_v18 = vshll.u32 %v331_v6, 16  ;;  %v430_v19 = vrot.slane %v429_v3, 4  ;;  %v445_v22 = vsel %vm2717_vm2, %v440_v7, %v444_v8  ;;  %v477_v27 = vor.u32 %v476_v12, %v473_v11 }
  0x25   : > { %548 = vrot.lane.b32.xlu1 %v397_v63, %s2634_s28  ;;  %v411_v14 = vsel %vm2717_vm2, %v406_v9, %v410_v1  ;;  %v416_v23 = vrot.slane %v415_v13, 4  ;;  %v480_v28 = vshll.u32 %v339_v10, 16  ;;  %v484_v29 = vshrl.u32 %v339_v10, 16  ;;  %v346_v10 = vld [vmem:[%s2706_s27 + $0x5c] sm:$0x1] }
  0x26   : > { %544 = vrot.lane.b32.xlu0 %v373_v2, %s2634_s28  ;;  %550 = vrot.lane.b32.xlu2 %v411_v14, %s2634_s28  ;;  %v420_v24 = vrot.slane %v418_v18, 5  ;;  %v466_v30 = vshll.u32 %v337_v15, 16  ;;  %v463_v31 = vor.u32 %v462_v17, %v458_v16  ;;  %v504_v32 = vshll.u32 %v342_v20, 16  ;;  %v607_v17 = vld [vmem:[%s2706_s27] sm:$0xe] }
  0x27   : > { %v508_v33 = vshrl.u32 %v342_v20, 16  ;;  %v447_v34 = vshrl.u32 %v335_v21, 16  ;;  %v435_v35 = vsel %vm2717_vm2, %v430_v19, %v2725_v37  ;;  %v495_v36 = vshrl.u32 %v341_v26, 16  ;;  %v608_v18 = vld [vmem:[%s2706_s27 + $0x4] sm:$0xf] }
  0x28   : > { %v498_v38 = vshll.u32 %v341_v26, 16  ;;  %v450_v39 = vshll.u32 %v335_v21, 16  ;;  %v421_v40 = vsel %vm2717_vm2, %v416_v23, %v420_v24  ;;  %v478_v42 = vrot.slane %v477_v27, 4 }
  0x29   : > { %v449_v41 = vrot.slane %v447_v34, 4  ;;  %v482_v43 = vrot.slane %v480_v28, 5  ;;  %v464_v45 = vrot.slane %v463_v31, 4  ;;  %v468_v37 = vrot.slane %v466_v30, 5  ;;  %v612_v34 = vld [vmem:[%s2706_s27 + $0x14] sm:$0x1] }
  0x2a   : > { %v452_v44 = vrot.slane %v450_v39, 5  ;;  %v506_v46 = vrot.slane %v504_v32, 5  ;;  %v510_v47 = vrot.slane %v508_v33, 4  ;;  %v497_v49 = vrot.slane %v495_v36, 4 }
  0x2b   : > { %v500_v50 = vrot.slane %v498_v38, 5  ;;  %v486_v52 = vrot.slane %v484_v29, 4  ;;  %v483_v57 = vsel %vm2717_vm2, %v478_v42, %v482_v43  ;;  %v469_v58 = vsel %vm2717_vm2, %v464_v45, %v468_v37  ;;  %v611_v29 = vld [vmem:[%s2706_s27 + $0x10] sm:$0xf]  ;;  %v609_v38 = vld [vmem:[%s2706_s27 + $0x8] sm:$0x1] }
  0x2c   : > { %v453_v51 = vor.u32 %v452_v44, %v449_v41  ;;  %v511_v59 = vor.u32 %v510_v47, %v506_v46  ;;  %v514_v60 = vshll.u32 %v343_v48, 16  ;;  %v528_v62 = vshll.u32 %v345_v53, 16  ;;  %v614_v42 = vld [vmem:[%s2706_s27 + $0x1c] sm:$0xf]  ;;  %v617_v47 = vld [vmem:[%s2706_s27 + $0x28] sm:$0xf] }
  0x2d   : > { %556 = vrot.lane.b32.xlu1 %v445_v22, %s2634_s28  ;;  %v501_v61 = vor.u32 %v500_v50, %v497_v49  ;;  %v532_v63 = vshrl.u32 %v345_v53, 16  ;;  %v487_v0 = vor.u32 %v486_v52, %v482_v43  ;;  %v490_v2 = vshll.u32 %v340_v55, 16  ;;  %v615_v49 = vld [vmem:[%s2706_s27 + $0x20] sm:$0x1] }
  0x2e   : > { %554 = vrot.lane.b32.xlu0 %v435_v35, %s2634_s28  ;;  %552 = vrot.lane.b32.xlu2 %v421_v40, %s2634_s28  ;;  %v454_v54 = vrot.slane %v453_v51, 4  ;;  %v519_v3 = vshrl.u32 %v344_v56, 16  ;;  %v522_v4 = vshll.u32 %v344_v56, 16  ;;  %v512_v5 = vrot.slane %v511_v59, 4  ;;  %v610_v35 = vld [vmem:[%s2706_s27 + $0xc] sm:$0xe] }
  0x2f   : > { %v516_v6 = vrot.slane %v514_v60, 5  ;;  %v502_v7 = vrot.slane %v501_v61, 4  ;;  %v530_v8 = vrot.slane %v528_v62, 5  ;;  %v534_v9 = vrot.slane %v532_v63, 4  ;;  %v613_v51 = vld [vmem:[%s2706_s27 + $0x18] sm:$0xe] }
  0x30   : > { %v459_v1 = vsel %vm2717_vm2, %v454_v54, %v458_v16  ;;  %v488_v11 = vrot.slane %v487_v0, 4  ;;  %v492_v12 = vrot.slane %v490_v2, 5  ;;  %v521_v13 = vrot.slane %v519_v3, 4  ;;  %v620_v56 = vld [vmem:[%s2706_s27 + $0x34] sm:$0xf] }
  0x31   : > { %v524_v14 = vrot.slane %v522_v4, 5  ;;  %v517_v15 = vsel %vm2717_vm2, %v512_v5, %v516_v6  ;;  %v507_v16 = vsel %vm2717_vm2, %v502_v7, %v506_v46  ;;  %v535_v19 = vor.u32 %v534_v9, %v530_v8  ;;  %v616_v46 = vld [vmem:[%s2706_s27 + $0x24] sm:$0xe]  ;;  %v621_v61 = vld [vmem:[%s2706_s27 + $0x38] sm:$0x1] }
  0x32   : > { %v538_v20 = vshll.u32 %v346_v10, 16  ;;  %v493_v21 = vsel %vm2717_vm2, %v488_v11, %v492_v12  ;;  %v2301_v23 = vrot.slane %v607_v17, 9  ;;  %v660_v24 = vrot.slane %v608_v18, 5  ;;  %v619_v62 = vld [vmem:[%s2706_s27 + $0x30] sm:$0xe] }
  0x33   : > { %v525_v22 = vor.u32 %v524_v14, %v521_v13  ;;  %v536_v27 = vrot.slane %v535_v19, 4  ;;  %v667_v32 = vrot.slane %v611_v29, 5  ;;  %v670_v40 = vrot.slane %v612_v34, 5  ;;  %v618_v0 = vld [vmem:[%s2706_s27 + $0x2c] sm:$0x1] }
  0x34   : > { %v540_v28 = vrot.slane %v538_v20, 5  ;;  %v661_v31 = vsel %vm2785_vm5, %v2301_v23, %v660_v24  ;;  %v2302_v41 = vrot.slane %v610_v35, 9  ;;  %v662_v43 = vrot.slane %v660_v24, 4  ;;  %v623_v4 = vld [vmem:[%s2706_s27 + $0x40] sm:$0xf] }
  0x35   : > { %562 = vrot.lane.b32.xlu1 %v483_v57, %s2634_s28  ;;  %v526_v30 = vrot.slane %v525_v22, 4  ;;  %v669_v39 = vrot.slane %v667_v32, 4  ;;  %v663_v44 = vrot.slane %v609_v38, 5  ;;  %v674_v48 = vrot.slane %v614_v42, 5  ;;  %v625_v9 = vld [vmem:[%s2706_s27 + $0x48] sm:$0xe] }
  0x36   : > { %560 = vrot.lane.b32.xlu0 %v469_v58, %s2634_s28  ;;  %558 = vrot.lane.b32.xlu2 %v459_v1, %s2634_s28  ;;  %v541_v33 = vsel %vm2717_vm2, %v536_v27, %v540_v28  ;;  %v668_v37 = vsel %vm2785_vm5, %v2302_v41, %v667_v32  ;;  %v2304_v52 = vrot.slane %v616_v46, 9  ;;  %v681_v53 = vrot.slane %v617_v47, 5  ;;  %v626_v10 = vld [vmem:[%s2706_s27 + $0x4c] sm:$0xf]  ;;  %v624_v12 = vld [vmem:[%s2706_s27 + $0x44] sm:$0x1] }
  0x37   : > { %v531_v36 = vsel %vm2717_vm2, %v526_v30, %v530_v8  ;;  %v671_v45 = vsel %vm2785_vm5, %v669_v39, %v670_v40  ;;  %v664_v50 = vsel %vm2785_vm5, %v662_v43, %v663_v44  ;;  %v676_v54 = vrot.slane %v674_v48, 4  ;;  %v622_v14 = vld [vmem:[%s2706_s27 + $0x3c] sm:$0xe]  ;;  %v629_v19 = vld [vmem:[%s2706_s27 + $0x58] sm:$0xf] }
  0x38   : > { %v677_v55 = vrot.slane %v615_v49, 5  ;;  %v2303_v57 = vrot.slane %v613_v51, 9  ;;  %v682_v58 = vsel %vm2785_vm5, %v2304_v52, %v681_v53  ;;  %v688_v59 = vrot.slane %v620_v56, 5  ;;  %v630_v24 = vld [vmem:[%s2706_s27 + $0x5c] sm:$0x1] }
  0x39   : > { %v691_v2 = vrot.slane %v621_v61, 5  ;;  %v2305_v3 = vrot.slane %v619_v62, 9  ;;  %v683_v5 = vrot.slane %v681_v53, 4  ;;  %v684_v6 = vrot.slane %v618_v0, 5  ;;  %v628_v27 = vld [vmem:[%s2706_s27 + $0x54] sm:$0xe] }
  0x3a   : > { %v678_v60 = vsel %vm2785_vm5, %v676_v54, %v677_v55  ;;  %v675_v63 = vsel %vm2785_vm5, %v2303_v57, %v674_v48  ;;  %v690_v1 = vrot.slane %v688_v59, 4  ;;  %v695_v11 = vrot.slane %v623_v4, 5  ;;  %v627_v29 = vld [vmem:[%s2706_s27 + $0x50] sm:$0x1]  ;;  %v294_v39 = vld [vmem:[%s2706_s27 + $0x18] sm:$0xf] }
  0x3b   : > { %v689_v8 = vsel %vm2785_vm5, %v2305_v3, %v688_v59  ;;  %v685_v13 = vsel %vm2785_vm5, %v683_v5, %v684_v6  ;;  %v698_v18 = vrot.slane %v624_v12, 5  ;;  %v2306_v20 = vrot.slane %v622_v14, 9  ;;  %311 = vst.msk [vmem:[#allocation2 + $0x10] sm:$0xf] %vm306_vm6, %v294_v39  ;;  %v292_v40 = vld [vmem:[%s2706_s27 + $0xc] sm:$0xf] }
  0x3c   : > { %v692_v7 = vsel %vm2785_vm5, %v690_v1, %v691_v2  ;;  %v697_v17 = vrot.slane %v695_v11, 4  ;;  %v709_v22 = vrot.slane %v629_v19, 5  ;;  %v2308_v32 = vrot.slane %v628_v27, 9  ;;  %v290_v41 = vld [vmem:[%s2706_s27] sm:$0xf] }
  0x3d   : > { %568 = vrot.lane.b32.xlu1 %v517_v15, %s2634_s28  ;;  %v2307_v15 = vrot.slane %v625_v9, 9  ;;  %v696_v28 = vsel %vm2785_vm5, %v2306_v20, %v695_v11  ;;  %v705_v34 = vrot.slane %v627_v29, 5  ;;  %309 = vst.msk [vmem:[#allocation2 + $0x8] sm:$0xf] %vm306_vm6, %v292_v40  ;;  %v2313_v42 = vld [vmem:[%s2706_s27 + $0x18] sm:$0xf] }
  0x3e   : > { %566 = vrot.lane.b32.xlu0 %v507_v16, %s2634_s28  ;;  %564 = vrot.lane.b32.xlu2 %v493_v21, %s2634_s28  ;;  %v702_v16 = vrot.slane %v626_v10, 5  ;;  %v699_v23 = vsel %vm2785_vm5, %v697_v17, %v698_v18  ;;  %v711_v30 = vrot.slane %v709_v22, 4  ;;  %307 = vst.msk [vmem:[#allocation2] sm:$0xf] %vm306_vm6, %v290_v41  ;;  %v2312_v43 = vld [vmem:[%s2706_s27 + $0x10] sm:$0xf] }
  0x3f   : > { %v2311_v44 = vld [vmem:[%s2706_s27 + $0xc] sm:$0xf]  ;;  %v291_v46 = vld [vmem:[%s2706_s27 + $0x4] sm:$0xf]  ;;  %v2316_v47 = vld [vmem:[%s2706_s27 + $0x28] sm:$0xf] }
  0x40   : > { %v703_v21 = vsel %vm2785_vm5, %v2307_v15, %v702_v16  ;;  %308 = vst.msk [vmem:[#allocation2 + $0x4] sm:$0xf] %vm306_vm6, %v291_v46  ;;  %v2315_v48 = vld [vmem:[%s2706_s27 + $0x24] sm:$0xf]  ;;  %v2314_v49 = vld [vmem:[%s2706_s27 + $0x1c] sm:$0xf] }
  0x41   : > { %v297_v51 = vld [vmem:[%s2706_s27 + $0x28] sm:$0xf]  ;;  %v296_v52 = vld [vmem:[%s2706_s27 + $0x24] sm:$0xf]  ;;  %v2319_v54 = vld [vmem:[%s2706_s27 + $0x3c] sm:$0xf] }
  0x42   : > { %314 = vst.msk [vmem:[#allocation2 + $0x1c] sm:$0xf] %vm306_vm6, %v297_v51  ;;  %v2318_v55 = vld [vmem:[%s2706_s27 + $0x34] sm:$0xf]  ;;  %v2317_v56 = vld [vmem:[%s2706_s27 + $0x30] sm:$0xf] }
  0x43   : > { %313 = vst.msk [vmem:[#allocation2 + $0x18] sm:$0xf] %vm306_vm6, %v296_v52  ;;  %v2328_v57 = vld [vmem:[%s2706_s27 + $0x10] sm:$0xf]  ;;  %v301_v59 = vld [vmem:[%s2706_s27 + $0x40] sm:$0xf] }
  0x44   : > { %318 = vst.msk [vmem:[#allocation2 + $0x2c] sm:$0xf] %vm306_vm6, %v301_v59  ;;  %v299_v61 = vld [vmem:[%s2706_s27 + $0x34] sm:$0xf]  ;;  %v918_v0 = vshrl.u32 %v2328_v57, 16 }
  0x45   : > { %714 = vrot.lane.b32.xlu1 %v661_v31, %s2635_s29  ;;  %v712_v31 = vrot.slane %v630_v24, 5  ;;  %316 = vst.msk [vmem:[#allocation2 + $0x24] sm:$0xf] %vm306_vm6, %v299_v61  ;;  %v2322_v1 = vld [vmem:[%s2706_s27 + $0x4c] sm:$0xf] }
  0x46   : > { %572 = vrot.lane.b32.xlu0 %v541_v33, %s2634_s28  ;;  %570 = vrot.lane.b32.xlu2 %v531_v36, %s2634_s28  ;;  %v704_v33 = vrot.slane %v702_v16, 4  ;;  %v710_v36 = vsel %vm2785_vm5, %v2308_v32, %v709_v22  ;;  %v2321_v4 = vld [vmem:[%s2706_s27 + $0x48] sm:$0xf]  ;;  %v2320_v5 = vld [vmem:[%s2706_s27 + $0x40] sm:$0xf]  ;;  %s2296_s28 = sshll.u32 %s3533_s16, 5 }
  0x47   : > { %v713_v35 = vsel %vm2785_vm5, %v711_v30, %v712_v31  ;;  %v2329_v6 = vld [vmem:[%s2706_s27 + $0x14] sm:$0x1]  ;;  %v2333_v11 = vld [vmem:[%s2706_s27 + $0x24] sm:$0xf]  ;;  %v2331_v15 = vld [vmem:[%s2706_s27 + $0x1c] sm:$0xf] }
  0x48   : > { %v706_v38 = vsel %vm2785_vm5, %v704_v33, %v705_v34  ;;  %v304_v12 = vld [vmem:[%s2706_s27 + $0x54] sm:$0xf]  ;;  %v924_v14 = vshll.u32 %v2329_v6, 16  ;;  %v303_v17 = vld [vmem:[%s2706_s27 + $0x4c] sm:$0xf]  ;;  %v956_v22 = vshll.u32 %v2333_v11, 16 }
  0x49   : > { %321 = vst.msk [vmem:[#allocation2 + $0x38] sm:$0xf] %vm306_vm6, %v304_v12  ;;  %v2330_v18 = vld [vmem:[%s2706_s27 + $0x18] sm:$0xf]  ;;  %v2325_v24 = vld [vmem:[%s2706_s27 + $0x60] sm:$0xf] }
  0x4a   : > { %v942_v29 = vshrl.u32 %v2331_v15, 16  ;;  %v2324_v30 = vld [vmem:[%s2706_s27 + $0x58] sm:$0xf]  ;;  %320 = vst.msk [vmem:[#allocation2 + $0x34] sm:$0xf] %vm306_vm6, %v303_v17  ;;  %v929_v31 = vshrl.u32 %v2330_v18, 16 }
  0x4b   : > { %v932_v32 = vshll.u32 %v2330_v18, 16  ;;  %v2323_v33 = vld [vmem:[%s2706_s27 + $0x54] sm:$0xf]  ;;  %v2334_v40 = vld [vmem:[%s2706_s27 + $0x28] sm:$0xf] }
  0x4c   : > { %v962_v52 = vshll.u32 %v2334_v40, 16  ;;  %v2335_v18 = vld [vmem:[%s2706_s27 + $0x2c] sm:$0x1] }
  0x4d   : > { %720 = vrot.lane.b32.xlu1 %v671_v45, %s2635_s29  ;;  %v295_v45 = vld [vmem:[%s2706_s27 + $0x1c] sm:$0xf]  ;;  %v934_v46 = vrot.slane %v932_v32, 5 }
  0x4e   : > { %718 = vrot.lane.b32.xlu0 %v668_v37, %s2635_s29  ;;  %716 = vrot.lane.b32.xlu2 %v664_v50, %s2635_s29  ;;  %312 = vst.msk [vmem:[#allocation2 + $0x14] sm:$0xf] %vm306_vm6, %v295_v45  ;;  %v293_v37 = vld [vmem:[%s2706_s27 + $0x10] sm:$0xf] }
  0x4f   : > { %310 = vst.msk [vmem:[#allocation2 + $0xc] sm:$0xf] %vm306_vm6, %v293_v37  ;;  %v298_v50 = vld [vmem:[%s2706_s27 + $0x30] sm:$0xf]  ;;  %v931_v37 = vrot.slane %v929_v31, 4  ;;  %v972_v31 = vshll.u32 %v2335_v18, 16 }
  0x50   : > { %315 = vst.msk [vmem:[#allocation2 + $0x20] sm:$0xf] %vm306_vm6, %v298_v50  ;;  %v2336_v45 = vld [vmem:[%s2706_s27 + $0x30] sm:$0xf] }
  0x51   : > { %v935_v61 = vor.u32 %v934_v46, %v931_v37  ;;  %v974_v46 = vrot.slane %v972_v31, 5 }
  0x55   : > { %726 = vrot.lane.b32.xlu1 %v682_v58, %s2635_s29  ;;  %v2327_v58 = vld [vmem:[%s2706_s27 + $0xc] sm:$0xf] }
  0x56   : > { %724 = vrot.lane.b32.xlu0 %v678_v60, %s2635_s29  ;;  %722 = vrot.lane.b32.xlu2 %v675_v63, %s2635_s29  ;;  %v300_v60 = vld [vmem:[%s2706_s27 + $0x3c] sm:$0xf]  ;;  %v914_v63 = vshll.u32 %v2328_v57, 16  ;;  %v905_v2 = vshrl.u32 %v2327_v58, 16  ;;  %v908_v3 = vshll.u32 %v2327_v58, 16  ;;  %v980_v57 = vshll.u32 %v2336_v45, 16 }
  0x57   : > { %317 = vst.msk [vmem:[#allocation2 + $0x28] sm:$0xf] %vm306_vm6, %v300_v60 }
  0x58   : > { %v907_v9 = vrot.slane %v905_v2, 4  ;;  %v910_v10 = vrot.slane %v908_v3, 5  ;;  %v2338_v2 = vld [vmem:[%s2706_s27 + $0x38] sm:$0x1]  ;;  %v982_v6 = vrot.slane %v980_v57, 5 }
  0x5a   : > { %v911_v27 = vor.u32 %v910_v10, %v907_v9  ;;  %v936_v10 = vrot.slane %v935_v61, 4 }
  0x5c   : > { %v912_v39 = vrot.slane %v911_v27, 4 }
  0x5d   : > { %732 = vrot.lane.b32.xlu1 %v692_v7, %s2635_s29  ;;  %v2917_v7 = vrot.slane %v914_v63, 5  ;;  %v2326_v63 = vld [vmem:[%s2706_s27 + $0x64] sm:$0xf] }
  0x5e   : > { %730 = vrot.lane.b32.xlu0 %v689_v8, %s2635_s29  ;;  %728 = vrot.lane.b32.xlu2 %v685_v13, %s2635_s29  ;;  %v920_v8 = vrot.slane %v918_v0, 4 }
  0x5f   : > { %v917_v58 = vsel %vm2717_vm2, %v912_v39, %v2917_v7 }
  0x60   : > { %v921_v19 = vor.u32 %v920_v8, %v2917_v7 }
  0x62   : > { %v922_v34 = vrot.slane %v921_v19, 4  ;;  %v2339_v19 = vld [vmem:[%s2706_s27 + $0x3c] sm:$0xf] }
  0x63   : > { %v1001_v32 = vshrl.u32 %v2339_v19, 16 }
  0x65   : > { %738 = vrot.lane.b32.xlu1 %v703_v21, %s2635_s29  ;;  %v953_v21 = vshrl.u32 %v2333_v11, 16  ;;  %v2345_v11 = vld [vmem:[%s2706_s27 + $0x54] sm:$0xf] }
  0x66   : > { %736 = vrot.lane.b32.xlu0 %v699_v23, %s2635_s29  ;;  %734 = vrot.lane.b32.xlu2 %v696_v28, %s2635_s29  ;;  %v302_v23 = vld [vmem:[%s2706_s27 + $0x48] sm:$0xf]  ;;  %v938_v28 = vshll.u32 %v2331_v15, 16 }
  0x67   : > { %319 = vst.msk [vmem:[#allocation2 + $0x30] sm:$0xf] %vm306_vm6, %v302_v23  ;;  %v1052_v23 = vshll.u32 %v2345_v11, 16 }
  0x68   : > { %v2940_v41 = vrot.slane %v938_v28, 5 }
  0x69   : > { %v1054_v39 = vrot.slane %v1052_v23, 5 }
  0x6a   : > { %v941_v27 = vsel %vm2717_vm2, %v936_v10, %v2940_v41  ;;  %v2363_v10 = vld [vmem:[%s2706_s27 + $0x3c] sm:$0xe] }
  0x6d   : > { %744 = vrot.lane.b32.xlu1 %v713_v35, %s2635_s29  ;;  %v926_v35 = vrot.slane %v924_v14, 5  ;;  %v2340_v14 = vld [vmem:[%s2706_s27 + $0x40] sm:$0xf] }
  0x6e   : > { %742 = vrot.lane.b32.xlu0 %v710_v36, %s2635_s29  ;;  %740 = vrot.lane.b32.xlu2 %v706_v38, %s2635_s29  ;;  %v955_v36 = vrot.slane %v953_v21, 4  ;;  %v958_v38 = vrot.slane %v956_v22, 5  ;;  %v1049_v22 = vshrl.u32 %v2345_v11, 16  ;;  %v1010_v28 = vshll.u32 %v2340_v14, 16 }
  0x6f   : > { %v927_v50 = vsel %vm2717_vm2, %v922_v34, %v926_v35 }
  0x70   : > { %v959_v51 = vor.u32 %v958_v38, %v955_v36  ;;  %v1051_v38 = vrot.slane %v1049_v22, 4 }
  0x72   : > { %v960_v0 = vrot.slane %v959_v51, 4  ;;  %v1055_v51 = vor.u32 %v1054_v39, %v1051_v38  ;;  %v2414_v38 = vld [vmem:[%s2706_s27 + $0x4c] sm:$0xf] }
  0x75   : > { %819 = vrot.lane.b32.xlu1 %v2313_v42, %s2636_s30  ;;  %v944_v42 = vrot.slane %v942_v29, 4  ;;  %v1014_v29 = vshrl.u32 %v2340_v14, 16 }
  0x76   : > { %817 = vrot.lane.b32.xlu0 %v2312_v43, %s2636_s30  ;;  %815 = vrot.lane.b32.xlu2 %v2311_v44, %s2636_s30  ;;  %v2337_v44 = vld [vmem:[%s2706_s27 + $0x34] sm:$0xf] }
  0x77   : > { %v945_v59 = vor.u32 %v944_v42, %v2940_v41  ;;  %v2346_v41 = vld [vmem:[%s2706_s27 + $0x58] sm:$0xf]  ;;  %v2341_v42 = vld [vmem:[%s2706_s27 + $0x44] sm:$0x1] }
  0x79   : > { %v946_v8 = vrot.slane %v945_v59, 4  ;;  %v1056_v59 = vrot.slane %v1055_v51, 4 }
  0x7d   : > { %825 = vrot.lane.b32.xlu1 %v2316_v47, %s2636_s30 }
  0x7e   : > { %823 = vrot.lane.b32.xlu0 %v2315_v48, %s2636_s30  ;;  %821 = vrot.lane.b32.xlu2 %v2314_v49, %s2636_s30  ;;  %v2332_v48 = vld [vmem:[%s2706_s27 + $0x20] sm:$0x1]  ;;  %v305_v49 = vld [vmem:[%s2706_s27 + $0x58] sm:$0xf] }
  0x7f   : > { %v948_v60 = vshll.u32 %v2332_v48, 16  ;;  %322 = vst.msk [vmem:[#allocation2 + $0x3c] sm:$0xf] %vm306_vm6, %v305_v49 }
  0x80   : > { %v551_v53 = vpop.permute.xlu2 %550 }
  0x81   : > { %595 = vst.msk [vmem:[#allocation2 + $0x10] sm:$0xf] %vm590_vm7, %v551_v53  ;;  %v950_v9 = vrot.slane %v948_v60, 5 }
  0x85   : > { %831 = vrot.lane.b32.xlu1 %v2319_v54, %s2636_s30  ;;  %v986_v54 = vshll.u32 %v2337_v44, 16 }
  0x86   : > { %829 = vrot.lane.b32.xlu0 %v2318_v55, %s2636_s30  ;;  %827 = vrot.lane.b32.xlu2 %v2317_v56, %s2636_s30  ;;  %v990_v55 = vshrl.u32 %v2337_v44, 16  ;;  %v977_v56 = vshrl.u32 %v2336_v45, 16  ;;  %v1016_v44 = vrot.slane %v1014_v29, 4 }
  0x87   : > { %v2961_v3 = vrot.slane %v986_v54, 5 }
  0x88   : > { %v553_v62 = vpop.permute.xlu2 %552 }
  0x89   : > { %596 = vst.msk [vmem:[#allocation2 + $0x14] sm:$0xf] %vm590_vm7, %v553_v62  ;;  %v966_v62 = vshrl.u32 %v2334_v40, 16 }
  0x8b   : > { %v968_v15 = vrot.slane %v966_v62, 4 }
  0x8d   : > { %837 = vrot.lane.b32.xlu1 %v2322_v1, %s2636_s30  ;;  %v964_v1 = vrot.slane %v962_v52, 5  ;;  %v1058_v52 = vshll.u32 %v2346_v41, 16 }
  0x8e   : > { %835 = vrot.lane.b32.xlu0 %v2321_v4, %s2636_s30  ;;  %833 = vrot.lane.b32.xlu2 %v2320_v5, %s2636_s30  ;;  %v992_v4 = vrot.slane %v990_v55, 4  ;;  %v979_v5 = vrot.slane %v977_v56, 4  ;;  %v1020_v55 = vshll.u32 %v2341_v42, 16  ;;  %v1062_v56 = vshrl.u32 %v2346_v41, 16  ;;  %v2393_v41 = vld [vmem:[%s2706_s27 + $0x48] sm:$0xf] }
  0x8f   : > { %v547_v13 = vpop.permute.xlu1 %546  ;;  %v1060_v60 = vrot.slane %v1058_v52, 5  ;;  %v2420_v52 = vld [vmem:[%s2706_s27 + $0x64] sm:$0xf] }
  0x90   : > { %593 = vst.msk [vmem:[#allocation2 + $0x8] sm:$0xf] %vm590_vm7, %v547_v13  ;;  %v543_v16 = vpop.permute.xlu0 %542  ;;  %v559_v20 = vpop.permute.xlu2 %558  ;;  %v996_v13 = vshll.u32 %v2338_v2, 16  ;;  %v983_v21 = vor.u32 %v982_v6, %v979_v5  ;;  %v2347_v5 = vld [vmem:[%s2706_s27 + $0x5c] sm:$0x1] }
  0x91   : > { %591 = vst.msk [vmem:[#allocation2] sm:$0xf] %vm590_vm7, %v543_v16  ;;  %v965_v16 = vsel %vm2717_vm2, %v960_v0, %v964_v1  ;;  %v2364_v0 = vld [vmem:[%s2706_s27 + $0x40] sm:$0xf]  ;;  %v1061_v6 = vsel %vm2717_vm2, %v1056_v59, %v1060_v60 }
  0x92   : > { %599 = vst.msk [vmem:[#allocation2 + $0x20] sm:$0xf] %vm590_vm7, %v559_v20  ;;  %v993_v20 = vor.u32 %v992_v4, %v2961_v3  ;;  %v998_v34 = vrot.slane %v996_v13, 5  ;;  %v984_v36 = vrot.slane %v983_v21, 4  ;;  %v1068_v13 = vshll.u32 %v2347_v5, 16 }
  0x94   : > { %v994_v35 = vrot.slane %v993_v20, 4  ;;  %v1070_v21 = vrot.slane %v1068_v13, 5 }
  0x95   : > { %843 = vrot.lane.b32.xlu1 %v2325_v24, %s2636_s30  ;;  %v951_v24 = vsel %vm2717_vm2, %v946_v8, %v950_v9  ;;  %v2365_v9 = vld [vmem:[%s2706_s27 + $0x44] sm:$0x1] }
  0x96   : > { %841 = vrot.lane.b32.xlu0 %v2324_v30, %s2636_s30  ;;  %839 = vrot.lane.b32.xlu2 %v2323_v33, %s2636_s30  ;;  %v969_v30 = vor.u32 %v968_v15, %v964_v1  ;;  %v1004_v33 = vshll.u32 %v2339_v19, 16  ;;  %v1242_v15 = vrot.slane %v2365_v9, 5  ;;  %v2370_v19 = vld [vmem:[%s2706_s27 + $0x58] sm:$0xf] }
  0x97   : > { %v549_v43 = vpop.permute.xlu1 %548 }
  0x98   : > { %594 = vst.msk [vmem:[#allocation2 + $0xc] sm:$0xf] %vm590_vm7, %v549_v43  ;;  %v545_v47 = vpop.permute.xlu0 %544  ;;  %v565_v53 = vpop.permute.xlu2 %564  ;;  %v1012_v43 = vrot.slane %v1010_v28, 5  ;;  %v970_v37 = vrot.slane %v969_v30, 4  ;;  %v1006_v48 = vrot.slane %v1004_v33, 5 }
  0x99   : > { %592 = vst.msk [vmem:[#allocation2 + $0x4] sm:$0xf] %vm590_vm7, %v545_v47  ;;  %v1003_v47 = vrot.slane %v1001_v32, 4  ;;  %v2371_v28 = vld [vmem:[%s2706_s27 + $0x5c] sm:$0x1] }
  0x9a   : > { %602 = vst.msk [vmem:[#allocation2 + $0x2c] sm:$0xf] %vm590_vm7, %v565_v53  ;;  %v989_v53 = vsel %vm2717_vm2, %v984_v36, %v2961_v3  ;;  %v1017_v54 = vor.u32 %v1016_v44, %v1012_v43  ;;  %v975_v57 = vsel %vm2717_vm2, %v970_v37, %v974_v46  ;;  %v1064_v3 = vrot.slane %v1062_v56, 4  ;;  %v2369_v30 = vld [vmem:[%s2706_s27 + $0x54] sm:$0xe] }
  0x9b   : > { %v1256_v33 = vrot.slane %v2371_v28, 5  ;;  %v2381_v36 = vrot.slane %v2369_v30, 9  ;;  %v1565_v37 = vshrl.u32 %v2414_v38, 16  ;;  %v2415_v56 = vld [vmem:[%s2706_s27 + $0x50] sm:$0x1] }
  0x9c   : > { %v1018_v62 = vrot.slane %v1017_v54, 4 }
  0x9d   : > { %1098 = vrot.lane.b32.xlu1 %v927_v50, %s2637_s5  ;;  %v999_v50 = vsel %vm2717_vm2, %v994_v35, %v998_v34  ;;  %v2419_v34 = vld [vmem:[%s2706_s27 + $0x60] sm:$0xf]  ;;  %v1567_v54 = vrot.slane %v1565_v37, 4 }
  0x9e   : > { %1096 = vrot.lane.b32.xlu0 %v917_v58, %s2637_s5  ;;  %845 = vrot.lane.b32.xlu2 %v2326_v63, %s2636_s30  ;;  %v1007_v58 = vor.u32 %v1006_v48, %v1003_v47  ;;  %v1022_v63 = vrot.slane %v1020_v55, 5  ;;  %v1600_v42 = vshrl.u32 %v2419_v34, 16 }
  0x9f   : > { %v557_v7 = vpop.permute.xlu1 %556 }
  0xa0   : > { %598 = vst.msk [vmem:[#allocation2 + $0x1c] sm:$0xf] %vm590_vm7, %v557_v7  ;;  %v555_v12 = vpop.permute.xlu0 %554  ;;  %v571_v17 = vpop.permute.xlu2 %570  ;;  %v1008_v2 = vrot.slane %v1007_v58, 4  ;;  %v1239_v7 = vrot.slane %v2364_v0, 5  ;;  %v1023_v8 = vsel %vm2717_vm2, %v1018_v62, %v1022_v63  ;;  %v1609_v62 = vshll.u32 %v2420_v52, 16 }
  0xa1   : > { %597 = vst.msk [vmem:[#allocation2 + $0x18] sm:$0xf] %vm590_vm7, %v555_v12  ;;  %v1065_v12 = vor.u32 %v1064_v3, %v1060_v60  ;;  %v2398_v60 = vld [vmem:[%s2706_s27 + $0x64] sm:$0xf]  ;;  %v2397_v63 = vld [vmem:[%s2706_s27 + $0x60] sm:$0xf] }
  0xa2   : > { %605 = vst.msk [vmem:[#allocation2 + $0x38] sm:$0xf] %vm590_vm7, %v571_v17  ;;  %v1013_v11 = vsel %vm2717_vm2, %v1008_v2, %v1012_v43  ;;  %v1241_v14 = vrot.slane %v1239_v7, 4  ;;  %v2379_v17 = vrot.slane %v2363_v10, 9  ;;  %v1603_v43 = vshll.u32 %v2419_v34, 16 }
  0xa3   : > { %v1066_v20 = vrot.slane %v1065_v12, 4  ;;  %v1613_v2 = vshrl.u32 %v2420_v52, 16  ;;  %v2394_v3 = vld [vmem:[%s2706_s27 + $0x4c] sm:$0xf] }
  0xa4   : > { %v1243_v23 = vsel %vm2785_vm5, %v1241_v14, %v1242_v15  ;;  %v2438_v10 = vld [vmem:[%s2706_s27 + $0x4c] sm:$0xf]  ;;  %v2421_v15 = vld [vmem:[%s2706_s27 + $0x68] sm:$0x1] }
  0xa5   : > { %1104 = vrot.lane.b32.xlu1 %v965_v16, %s2637_s5  ;;  %v1071_v29 = vsel %vm2717_vm2, %v1066_v20, %v1070_v21  ;;  %v1615_v13 = vrot.slane %v1613_v2, 4  ;;  %v2437_v20 = vld [vmem:[%s2706_s27 + $0x48] sm:$0xe] }
  0xa6   : > { %1102 = vrot.lane.b32.xlu0 %v951_v24, %s2637_s5  ;;  %1100 = vrot.lane.b32.xlu2 %v941_v27, %s2637_s5  ;;  %v1240_v24 = vsel %vm2785_vm5, %v2379_v17, %v1239_v7  ;;  %v1253_v27 = vrot.slane %v2370_v19, 5  ;;  %v1790_v17 = vrot.slane %v2438_v10, 5  ;;  %v2439_v19 = vld [vmem:[%s2706_s27 + $0x50] sm:$0x1] }
  0xa7   : > { %v563_v40 = vpop.permute.xlu1 %562 }
  0xa8   : > { %601 = vst.msk [vmem:[#allocation2 + $0x28] sm:$0xf] %vm590_vm7, %v563_v40  ;;  %v561_v45 = vpop.permute.xlu0 %560  ;;  %v717_v49 = vpop.permute.xlu2 %716  ;;  %v1255_v32 = vrot.slane %v1253_v27, 4  ;;  %v2413_v40 = vld [vmem:[%s2706_s27 + $0x48] sm:$0xf]  ;;  %v1254_v46 = vsel %vm2785_vm5, %v2381_v36, %v1253_v27  ;;  %v1793_v27 = vrot.slane %v2439_v19, 5 }
  0xa9   : > { %600 = vst.msk [vmem:[#allocation2 + $0x24] sm:$0xf] %vm590_vm7, %v561_v45  ;;  %v1561_v45 = vshll.u32 %v2414_v38, 16  ;;  %v1552_v47 = vshrl.u32 %v2413_v40, 16  ;;  %v1555_v48 = vshll.u32 %v2413_v40, 16 }
  0xaa   : > { %764 = vst.msk [vmem:[#allocation2 + $0x4] sm:$0xf] %vm762_vm8, %v717_v49  ;;  %v1257_v44 = vsel %vm2785_vm5, %v1255_v32, %v1256_v33  ;;  %v1602_v49 = vrot.slane %v1600_v42, 4  ;;  %v2351_v38 = vld [vmem:[%s2706_s27 + $0xc] sm:$0xe] }
  0xab   : > { %v1557_v58 = vrot.slane %v1555_v48, 5  ;;  %v2358_v48 = vld [vmem:[%s2706_s27 + $0x28] sm:$0xf]  ;;  %v2408_v19 = vld [vmem:[%s2706_s27 + $0x34] sm:$0xf] }
  0xad   : > { %1110 = vrot.lane.b32.xlu1 %v999_v50, %s2637_s5  ;;  %v1605_v50 = vrot.slane %v1603_v43, 5  ;;  %v2443_v43 = vld [vmem:[%s2706_s27 + $0x60] sm:$0xe] }
  0xae   : > { %1108 = vrot.lane.b32.xlu0 %v989_v53, %s2637_s5  ;;  %1106 = vrot.lane.b32.xlu2 %v975_v57, %s2637_s5  ;;  %v1563_v53 = vrot.slane %v1561_v45, 5  ;;  %v1554_v57 = vrot.slane %v1552_v47, 4 }
  0xaf   : > { %v569_v61 = vpop.permute.xlu1 %568 }
  0xb0   : > { %604 = vst.msk [vmem:[#allocation2 + $0x34] sm:$0xf] %vm590_vm7, %v569_v61  ;;  %v567_v1 = vpop.permute.xlu0 %566  ;;  %v723_v4 = vpop.permute.xlu2 %722  ;;  %v1606_v61 = vor.u32 %v1605_v50, %v1602_v49  ;;  %v1568_v0 = vor.u32 %v1567_v54, %v1563_v53  ;;  %v2455_v50 = vrot.slane %v2443_v43, 9 }
  0xb1   : > { %603 = vst.msk [vmem:[#allocation2 + $0x30] sm:$0xf] %vm590_vm7, %v567_v1  ;;  %v1571_v1 = vshll.u32 %v2415_v56, 16  ;;  %v2357_v56 = vld [vmem:[%s2706_s27 + $0x24] sm:$0xe] }
  0xb2   : > { %767 = vst.msk [vmem:[#allocation2 + $0x10] sm:$0xf] %vm762_vm8, %v723_v4  ;;  %v1558_v4 = vor.u32 %v1557_v58, %v1554_v57  ;;  %v1607_v5 = vrot.slane %v1606_v61, 4  ;;  %v2353_v58 = vld [vmem:[%s2706_s27 + $0x14] sm:$0x1] }
  0xb3   : > { %v1573_v9 = vrot.slane %v1571_v1, 5  ;;  %v1214_v2 = vrot.slane %v2353_v58, 5  ;;  %v2432_v58 = vld [vmem:[%s2706_s27 + $0x34] sm:$0xf] }
  0xb4   : > { %v1559_v12 = vrot.slane %v1558_v4, 4 }
  0xb5   : > { %1120 = vrot.lane.b32.xlu1 %v1061_v6, %s2637_s5  ;;  %v1611_v6 = vrot.slane %v1609_v62, 5  ;;  %v2377_v62 = vrot.slane %v2357_v56, 9 }
  0xb6   : > { %1114 = vrot.lane.b32.xlu0 %v1023_v8, %s2637_s5  ;;  %1112 = vrot.lane.b32.xlu2 %v1013_v11, %s2637_s5  ;;  %v1569_v8 = vrot.slane %v1568_v0, 4  ;;  %v1564_v21 = vsel %vm2717_vm2, %v1559_v12, %v1563_v53  ;;  %v1225_v53 = vrot.slane %v2358_v48, 5  ;;  %v2426_v48 = vld [vmem:[%s2706_s27 + $0x1c] sm:$0xf] }
  0xb7   : > { %v715_v16 = vpop.permute.xlu1 %714 }
  0xb8   : > { %763 = vst.msk [vmem:[#allocation2] sm:$0xf] %vm762_vm8, %v715_v16  ;;  %v573_v18 = vpop.permute.xlu0 %572  ;;  %v729_v22 = vpop.permute.xlu2 %728  ;;  %v1612_v16 = vsel %vm2717_vm2, %v1607_v5, %v1611_v6 }
  0xb9   : > { %606 = vst.msk [vmem:[#allocation2 + $0x3c] sm:$0xf] %vm590_vm7, %v573_v18  ;;  %v1574_v18 = vsel %vm2717_vm2, %v1569_v8, %v1573_v9  ;;  %v1226_v8 = vsel %vm2785_vm5, %v2377_v62, %v1225_v53 }
  0xba   : > { %770 = vst.msk [vmem:[#allocation2 + $0x1c] sm:$0xf] %vm762_vm8, %v729_v22  ;;  %v1616_v22 = vor.u32 %v1615_v13, %v1611_v6 }
  0xbc   : > { %v1617_v32 = vrot.slane %v1616_v22, 4  ;;  %v2389_v22 = vld [vmem:[%s2706_s27 + $0x30] sm:$0xf] }
  0xbd   : > { %1283 = vrot.lane.b32.xlu1 %v1243_v23, %s2638_s6  ;;  %v1619_v23 = vshll.u32 %v2421_v15, 16  ;;  %v2403_v15 = vld [vmem:[%s2706_s27 + $0x20] sm:$0x1] }
  0xbe   : > { %1281 = vrot.lane.b32.xlu0 %v1240_v24, %s2638_s6  ;;  %1122 = vrot.lane.b32.xlu2 %v1071_v29, %s2637_s5  ;;  %v1792_v24 = vrot.slane %v1790_v17, 4  ;;  %v2453_v29 = vrot.slane %v2437_v20, 9 }
  0xbf   : > { %v721_v31 = vpop.permute.xlu1 %720  ;;  %v1621_v33 = vrot.slane %v1619_v23, 5 }
  0xc0   : > { %766 = vst.msk [vmem:[#allocation2 + $0xc] sm:$0xf] %vm762_vm8, %v721_v31  ;;  %v719_v35 = vpop.permute.xlu0 %718  ;;  %v735_v39 = vpop.permute.xlu2 %734  ;;  %v2444_v31 = vld [vmem:[%s2706_s27 + $0x64] sm:$0xf]  ;;  %v1791_v36 = vsel %vm2785_vm5, %v2453_v29, %v1790_v17  ;;  %v1513_v29 = vshll.u32 %v2408_v19, 16 }
  0xc1   : > { %765 = vst.msk [vmem:[#allocation2 + $0x8] sm:$0xf] %vm762_vm8, %v719_v35  ;;  %v1794_v35 = vsel %vm2785_vm5, %v1792_v24, %v1793_v27  ;;  %v1804_v40 = vrot.slane %v2444_v31, 5  ;;  %v1622_v42 = vsel %vm2717_vm2, %v1617_v32, %v1621_v33  ;;  %v1475_v24 = vshll.u32 %v2403_v15, 16  ;;  %v2386_v27 = vld [vmem:[%s2706_s27 + $0x1c] sm:$0xf] }
  0xc2   : > { %773 = vst.msk [vmem:[#allocation2 + $0x28] sm:$0xf] %vm762_vm8, %v735_v39  ;;  %v2352_v39 = vld [vmem:[%s2706_s27 + $0x10] sm:$0xf]  ;;  %v2385_v31 = vld [vmem:[%s2706_s27 + $0x18] sm:$0xf] }
  0xc3   : > { %v1211_v45 = vrot.slane %v2352_v39, 5  ;;  %v1805_v57 = vsel %vm2785_vm5, %v2455_v50, %v1804_v40  ;;  %v1515_v39 = vrot.slane %v1513_v29, 5 }
  0xc5   : > { %1382 = vrot.lane.b32.xlu1 %v2393_v41, %s2639_s7  ;;  %v2445_v41 = vld [vmem:[%s2706_s27 + $0x68] sm:$0x1]  ;;  %v1213_v1 = vrot.slane %v1211_v45, 4 }
  0xc6   : > { %1291 = vrot.lane.b32.xlu0 %v1257_v44, %s2638_s6  ;;  %1289 = vrot.lane.b32.xlu2 %v1254_v46, %s2638_s6  ;;  %v2375_v44 = vrot.slane %v2351_v38, 9  ;;  %v1806_v46 = vrot.slane %v1804_v40, 4  ;;  %v1807_v47 = vrot.slane %v2445_v41, 5 }
  0xc7   : > { %v727_v51 = vpop.permute.xlu1 %726 }
  0xc8   : > { %769 = vst.msk [vmem:[#allocation2 + $0x18] sm:$0xf] %vm762_vm8, %v727_v51  ;;  %v725_v55 = vpop.permute.xlu0 %724  ;;  %v741_v59 = vpop.permute.xlu2 %740  ;;  %v1212_v52 = vsel %vm2785_vm5, %v2375_v44, %v1211_v45  ;;  %v1808_v54 = vsel %vm2785_vm5, %v1806_v46, %v1807_v47  ;;  %v2425_v47 = vld [vmem:[%s2706_s27 + $0x18] sm:$0xe] }
  0xc9   : > { %768 = vst.msk [vmem:[#allocation2 + $0x14] sm:$0xf] %vm762_vm8, %v725_v55  ;;  %v2359_v55 = vld [vmem:[%s2706_s27 + $0x2c] sm:$0x1] }
  0xca   : > { %776 = vst.msk [vmem:[#allocation2 + $0x34] sm:$0xf] %vm762_vm8, %v741_v59  ;;  %v1227_v59 = vrot.slane %v1225_v53, 4  ;;  %v2449_v53 = vrot.slane %v2425_v47, 9 }
  0xcd   : > { %1392 = vrot.lane.b32.xlu1 %v2398_v60, %s2639_s7  ;;  %v1228_v60 = vrot.slane %v2359_v55, 5 }
  0xce   : > { %1390 = vrot.lane.b32.xlu0 %v2397_v63, %s2639_s7  ;;  %1384 = vrot.lane.b32.xlu2 %v2394_v3, %s2639_s7  ;;  %v2402_v63 = vld [vmem:[%s2706_s27 + $0x1c] sm:$0xf]  ;;  %v2401_v3 = vld [vmem:[%s2706_s27 + $0x18] sm:$0xf] }
  0xcf   : > { %v733_v7 = vpop.permute.xlu1 %732  ;;  %v1229_v5 = vsel %vm2785_vm5, %v1227_v59, %v1228_v60  ;;  %v1465_v6 = vshll.u32 %v2402_v63, 16  ;;  %v1456_v9 = vshrl.u32 %v2401_v3, 16  ;;  %v1459_v10 = vshll.u32 %v2401_v3, 16  ;;  %v2348_v59 = vld [vmem:[%s2706_s27 + $0x60] sm:$0xf] }
  0xd0   : > { %772 = vst.msk [vmem:[#allocation2 + $0x24] sm:$0xf] %vm762_vm8, %v733_v7  ;;  %v731_v11 = vpop.permute.xlu0 %730  ;;  %v816_v14 = vpop.permute.xlu2 %815  ;;  %v1469_v7 = vshrl.u32 %v2402_v63, 16  ;;  %v2343_v63 = vld [vmem:[%s2706_s27 + $0x4c] sm:$0xf]  ;;  %v1776_v3 = vrot.slane %v2432_v58, 5 }
  0xd1   : > { %771 = vst.msk [vmem:[#allocation2 + $0x20] sm:$0xf] %vm762_vm8, %v731_v11  ;;  %v1215_v11 = vsel %vm2785_vm5, %v1213_v1, %v1214_v2  ;;  %v1467_v12 = vrot.slane %v1465_v6, 5  ;;  %v1461_v17 = vrot.slane %v1459_v10, 5  ;;  %v2342_v1 = vld [vmem:[%s2706_s27 + $0x48] sm:$0xf] }
  0xd2   : > { %864 = vst.msk [vmem:[#allocation2] sm:$0xf] %vm863_vm9, %v816_v14  ;;  %v1471_v13 = vrot.slane %v1469_v7, 4  ;;  %v2431_v7 = vld [vmem:[%s2706_s27 + $0x30] sm:$0xe]  ;;  %v1778_v15 = vrot.slane %v1776_v3, 4 }
  0xd4   : > { %v1472_v23 = vor.u32 %v1471_v13, %v1467_v12 }
  0xd5   : > { %1671 = vrot.lane.b32.xlu1 %v1612_v16, %s2640_s8  ;;  %v1458_v16 = vrot.slane %v1456_v9, 4  ;;  %v1038_v9 = vshrl.u32 %v2343_v63, 16 }
  0xd6   : > { %1665 = vrot.lane.b32.xlu0 %v1574_v18, %s2640_s8  ;;  %1663 = vrot.lane.b32.xlu2 %v1564_v21, %s2640_s8  ;;  %v2407_v21 = vld [vmem:[%s2706_s27 + $0x30] sm:$0xf] }
  0xd7   : > { %v739_v28 = vpop.permute.xlu1 %738  ;;  %v1504_v32 = vshrl.u32 %v2407_v21, 16  ;;  %v1507_v33 = vshll.u32 %v2407_v21, 16  ;;  %v2344_v21 = vld [vmem:[%s2706_s27 + $0x50] sm:$0x1] }
  0xd8   : > { %775 = vst.msk [vmem:[#allocation2 + $0x30] sm:$0xf] %vm762_vm8, %v739_v28  ;;  %v737_v30 = vpop.permute.xlu0 %736  ;;  %v822_v34 = vpop.permute.xlu2 %821  ;;  %v1462_v28 = vor.u32 %v1461_v17, %v1458_v16  ;;  %v2451_v16 = vrot.slane %v2431_v7, 9 }
  0xd9   : > { %774 = vst.msk [vmem:[#allocation2 + $0x2c] sm:$0xf] %vm762_vm8, %v737_v30  ;;  %v1517_v30 = vshrl.u32 %v2408_v19, 16  ;;  %v1506_v43 = vrot.slane %v1504_v32, 4  ;;  %v1509_v44 = vrot.slane %v1507_v33, 5 }
  0xda   : > { %867 = vst.msk [vmem:[#allocation2 + $0xc] sm:$0xf] %vm863_vm9, %v822_v34  ;;  %v1473_v34 = vrot.slane %v1472_v23, 4  ;;  %v1463_v38 = vrot.slane %v1462_v28, 4  ;;  %v1040_v23 = vrot.slane %v1038_v9, 4 }
  0xdb   : > { %v1519_v40 = vrot.slane %v1517_v30, 4 }
  0xdc   : > { %v1468_v46 = vsel %vm2717_vm2, %v1463_v38, %v1467_v12  ;;  %v1028_v12 = vshll.u32 %v2342_v1, 16  ;;  %v1044_v38 = vshll.u32 %v2344_v21, 16 }
  0xdd   : > { %1834 = vrot.lane.b32.xlu1 %v1794_v35, %s2641_s9  ;;  %v1477_v35 = vrot.slane %v1475_v24, 5 }
  0xde   : > { %1832 = vrot.lane.b32.xlu0 %v1791_v36, %s2641_s9  ;;  %1673 = vrot.lane.b32.xlu2 %v1622_v42, %s2640_s8  ;;  %v2409_v42 = vld [vmem:[%s2706_s27 + $0x38] sm:$0x1]  ;;  %v1030_v30 = vrot.slane %v1028_v12, 5 }
  0xdf   : > { %v745_v37 = vpop.permute.xlu1 %744  ;;  %v1523_v50 = vshll.u32 %v2409_v42, 16 }
  0xe0   : > { %778 = vst.msk [vmem:[#allocation2 + $0x3c] sm:$0xf] %vm762_vm8, %v745_v37  ;;  %v743_v49 = vpop.permute.xlu0 %742  ;;  %v828_v51 = vpop.permute.xlu2 %827  ;;  %v1478_v37 = vsel %vm2717_vm2, %v1473_v34, %v1477_v35  ;;  %v1777_v35 = vsel %vm2785_vm5, %v2451_v16, %v1776_v3 }
  0xe1   : > { %777 = vst.msk [vmem:[#allocation2 + $0x38] sm:$0xf] %vm762_vm8, %v743_v49  ;;  %v1520_v49 = vor.u32 %v1519_v40, %v1515_v39 }
  0xe2   : > { %870 = vst.msk [vmem:[#allocation2 + $0x18] sm:$0xf] %vm863_vm9, %v828_v51  ;;  %v2390_v51 = vld [vmem:[%s2706_s27 + $0x34] sm:$0xf] }
  0xe3   : > { %v1521_v56 = vrot.slane %v1520_v49, 4 }
  0xe5   : > { %1265 = vrot.lane.b32.xlu1 %v1212_v52, %s2638_s6  ;;  %v1510_v52 = vor.u32 %v1509_v44, %v1506_v43 }
  0xe6   : > { %1842 = vrot.lane.b32.xlu0 %v1808_v54, %s2641_s9  ;;  %1840 = vrot.lane.b32.xlu2 %v1805_v57, %s2641_s9  ;;  %v1762_v54 = vrot.slane %v2426_v48, 5  ;;  %v1525_v57 = vrot.slane %v1523_v50, 5 }
  0xe7   : > { %v820_v61 = vpop.permute.xlu1 %819  ;;  %v1511_v62 = vrot.slane %v1510_v52, 4 }
  0xe8   : > { %866 = vst.msk [vmem:[#allocation2 + $0x8] sm:$0xf] %vm863_vm9, %v820_v61  ;;  %v818_v0 = vpop.permute.xlu0 %817  ;;  %v834_v4 = vpop.permute.xlu2 %833  ;;  %v2433_v61 = vld [vmem:[%s2706_s27 + $0x38] sm:$0x1]  ;;  %v1763_v2 = vsel %vm2785_vm5, %v2449_v53, %v1762_v54  ;;  %v1526_v6 = vsel %vm2717_vm2, %v1521_v56, %v1525_v57  ;;  %v2366_v56 = vld [vmem:[%s2706_s27 + $0x48] sm:$0xe] }
  0xe9   : > { %865 = vst.msk [vmem:[#allocation2 + $0x4] sm:$0xf] %vm863_vm9, %v818_v0  ;;  %v1516_v10 = vsel %vm2717_vm2, %v1511_v62, %v1515_v39  ;;  %v1779_v13 = vrot.slane %v2433_v61, 5 }
  0xea   : > { %873 = vst.msk [vmem:[#allocation2 + $0x24] sm:$0xf] %vm863_vm9, %v834_v4  ;;  %v1073_v4 = vshrl.u32 %v2348_v59, 16 }
  0xeb   : > { %v1780_v32 = vsel %vm2785_vm5, %v1778_v15, %v1779_v13 }
  0xec   : > { %v1075_v17 = vrot.slane %v1073_v4, 4 }
  0xed   : > { %1275 = vrot.lane.b32.xlu1 %v1229_v5, %s2638_s6  ;;  %v1076_v5 = vshll.u32 %v2348_v59, 16 }
  0xee   : > { %1273 = vrot.lane.b32.xlu0 %v1226_v8, %s2638_s6  ;;  %1267 = vrot.lane.b32.xlu2 %v1215_v11, %s2638_s6  ;;  %v1034_v8 = vshll.u32 %v2343_v63, 16  ;;  %v1025_v11 = vshrl.u32 %v2342_v1, 16  ;;  %v2380_v63 = vrot.slane %v2366_v56, 9  ;;  %v2373_v1 = vld [vmem:[%s2706_s27 + $0x64] sm:$0xf]  ;;  %v2526_v56 = vld [vmem:[%s3514_s1 + $0x10] sm:$0xff] }
  0xef   : > { %v826_v14 = vpop.permute.xlu1 %825  ;;  %v1260_v7 = vrot.slane %v2373_v1, 5 }
  0xf0   : > { %869 = vst.msk [vmem:[#allocation2 + $0x14] sm:$0xf] %vm863_vm9, %v826_v14  ;;  %v824_v18 = vpop.permute.xlu0 %823  ;;  %v840_v20 = vpop.permute.xlu2 %839  ;;  %v2427_v14 = vld [vmem:[%s2706_s27 + $0x20] sm:$0x1]  ;;  %v1027_v29 = vrot.slane %v1025_v11, 4 }
  0xf1   : > { %868 = vst.msk [vmem:[#allocation2 + $0x10] sm:$0xf] %vm863_vm9, %v824_v18  ;;  %v1078_v18 = vrot.slane %v1076_v5, 5  ;;  %v1765_v28 = vrot.slane %v2427_v14, 5  ;;  %v1262_v12 = vrot.slane %v1260_v7, 4 }
  0xf2   : > { %876 = vst.msk [vmem:[#allocation2 + $0x30] sm:$0xf] %vm863_vm9, %v840_v20  ;;  %v2349_v20 = vld [vmem:[%s2706_s27 + $0x64] sm:$0xf]  ;;  %v2422_v14 = vld [vmem:[%s2706_s27 + $0x6c] sm:$0xf] }
  0xf3   : > { %v1079_v33 = vor.u32 %v1078_v18, %v1075_v17  ;;  %v1082_v34 = vshll.u32 %v2349_v20, 16  ;;  %v1086_v39 = vshrl.u32 %v2349_v20, 16  ;;  %v2417_v17 = vld [vmem:[%s2706_s27 + $0x58] sm:$0xf]  ;;  %v2395_v20 = vld [vmem:[%s2706_s27 + $0x54] sm:$0xf] }
  0xf4   : > { %v1624_v21 = vshrl.u32 %v2422_v14, 16 }
  0xf5   : > { %1374 = vrot.lane.b32.xlu1 %v2389_v22, %s2639_s7  ;;  %v1036_v22 = vrot.slane %v1034_v8, 5  ;;  %v1080_v42 = vrot.slane %v1079_v33, 4  ;;  %v1084_v43 = vrot.slane %v1082_v34, 5  ;;  %v1088_v49 = vrot.slane %v1086_v39, 4  ;;  %v2374_v8 = vld [vmem:[%s2706_s27 + $0x68] sm:$0x1] }
  0xf6   : > { %1368 = vrot.lane.b32.xlu0 %v2386_v27, %s2639_s7  ;;  %1366 = vrot.lane.b32.xlu2 %v2385_v31, %s2639_s7  ;;  %v1764_v27 = vrot.slane %v1762_v54, 4  ;;  %v1263_v13 = vrot.slane %v2374_v8, 5  ;;  %v1626_v33 = vrot.slane %v1624_v21, 4  ;;  %v2418_v39 = vld [vmem:[%s2706_s27 + $0x5c] sm:$0x1] }
  0xf7   : > { %v832_v36 = vpop.permute.xlu1 %831  ;;  %v1085_v52 = vsel %vm2717_vm2, %v1080_v42, %v1084_v43  ;;  %v1089_v58 = vor.u32 %v1088_v49, %v1084_v43  ;;  %v2442_v8 = vld [vmem:[%s2706_s27 + $0x5c] sm:$0x1] }
  0xf8   : > { %872 = vst.msk [vmem:[#allocation2 + $0x20] sm:$0xf] %vm863_vm9, %v832_v36  ;;  %v830_v41 = vpop.permute.xlu0 %829  ;;  %v846_v45 = vpop.permute.xlu2 %845  ;;  %v1041_v36 = vor.u32 %v1040_v23, %v1036_v22  ;;  %v1766_v40 = vsel %vm2785_vm5, %v1764_v27, %v1765_v28  ;;  %v1264_v23 = vsel %vm2785_vm5, %v1262_v12, %v1263_v13  ;;  %v1589_v27 = vshrl.u32 %v2417_v17, 16  ;;  %v1905_v28 = vld [vmem:[%s3514_s1 + $0x20] sm:$0xf] }
  0xf9   : > { %871 = vst.msk [vmem:[#allocation2 + $0x1c] sm:$0xf] %vm863_vm9, %v830_v41  ;;  %v1031_v41 = vor.u32 %v1030_v30, %v1027_v29  ;;  %v2524_v13 = vld [vmem:[%s3514_s1] sm:$0xff] }
  0xfa   : > { %879 = vst.msk [vmem:[#allocation2 + $0x3c] sm:$0xf] %vm863_vm9, %v846_v45  ;;  %v1042_v45 = vrot.slane %v1041_v36, 4 }
  0xfb   : > { %v1032_v48 = vrot.slane %v1031_v41, 4  ;;  %v1591_v41 = vrot.slane %v1589_v27, 4  ;;  %v2354_v27 = vld [vmem:[%s2706_s27 + $0x18] sm:$0xe] }
  0xfd   : > { %1649 = vrot.lane.b32.xlu1 %v1478_v37, %s2640_s8  ;;  %v1046_v37 = vrot.slane %v1044_v38, 5  ;;  %v1037_v57 = vsel %vm2717_vm2, %v1032_v48, %v1036_v22  ;;  %v1627_v22 = vshll.u32 %v2422_v14, 16  ;;  %v2423_v38 = vld [vmem:[%s2706_s27 + $0x70] sm:$0xf] }
  0xfe   : > { %1647 = vrot.lane.b32.xlu0 %v1468_v46, %s2640_s8  ;;  %1376 = vrot.lane.b32.xlu2 %v2390_v51, %s2639_s7  ;;  %v2367_v46 = vld [vmem:[%s2706_s27 + $0x4c] sm:$0xf]  ;;  %v2350_v51 = vld [vmem:[%s2706_s27 + $0x68] sm:$0x1]  ;;  %v1633_v49 = vshll.u32 %v2423_v38, 16 }
  0xff   : > { %v838_v55 = vpop.permute.xlu1 %837  ;;  %v1246_v53 = vrot.slane %v2367_v46, 5  ;;  %v1047_v54 = vsel %vm2717_vm2, %v1042_v45, %v1046_v37  ;;  %v1092_v59 = vshll.u32 %v2350_v51, 16  ;;  %v1629_v34 = vrot.slane %v1627_v22, 5  ;;  %v2527_v46 = vld [vmem:[%s3514_s1 + $0x18] sm:$0xff] }
 0x100   : > { %875 = vst.msk [vmem:[#allocation2 + $0x2c] sm:$0xf] %vm863_vm9, %v838_v55  ;;  %v836_v60 = vpop.permute.xlu0 %835  ;;  %v1101_v0 = vpop.permute.xlu2 %1100  ;;  %v2368_v55 = vld [vmem:[%s2706_s27 + $0x50] sm:$0x1] }
 0x101   : > { %874 = vst.msk [vmem:[#allocation2 + $0x28] sm:$0xf] %vm863_vm9, %v836_v60  ;;  %v1248_v60 = vrot.slane %v1246_v53, 4  ;;  %v1249_v61 = vrot.slane %v2368_v55, 5  ;;  %v1094_v3 = vrot.slane %v1092_v59, 5  ;;  %v1630_v48 = vor.u32 %v1629_v34, %v1626_v33 }
 0x102   : > { %1147 = vst.msk [vmem:[#allocation2 + $0x8] sm:$0xf] %vm1144_vm10, %v1101_v0  ;;  %v2376_v33 = vrot.slane %v2354_v27, 9 }
 0x103   : > { %v1250_v5 = vsel %vm2785_vm5, %v1248_v60, %v1249_v61 }
 0x105   : > { %1816 = vrot.lane.b32.xlu1 %v1763_v2, %s2641_s9  ;;  %v1090_v2 = vrot.slane %v1089_v58, 4  ;;  %v1635_v58 = vrot.slane %v1633_v49, 5 }
 0x106   : > { %1657 = vrot.lane.b32.xlu0 %v1526_v6, %s2640_s8  ;;  %1655 = vrot.lane.b32.xlu2 %v1516_v10, %s2640_s8  ;;  %v1247_v6 = vsel %vm2785_vm5, %v2380_v63, %v1246_v53  ;;  %v2372_v10 = vld [vmem:[%s2706_s27 + $0x60] sm:$0xe]  ;;  %v1637_v53 = vshrl.u32 %v2423_v38, 16 }
 0x107   : > { %v844_v19 = vpop.permute.xlu1 %843  ;;  %v1095_v9 = vsel %vm2717_vm2, %v1090_v2, %v1094_v3  ;;  %v2382_v16 = vrot.slane %v2372_v10, 9  ;;  %v2424_v3 = vld [vmem:[%s2706_s27 + $0x74] sm:$0x1] }
 0x108   : > { %878 = vst.msk [vmem:[#allocation2 + $0x38] sm:$0xf] %vm863_vm9, %v844_v19  ;;  %v842_v24 = vpop.permute.xlu0 %841  ;;  %v1107_v31 = vpop.permute.xlu2 %1106  ;;  %v2416_v19 = vld [vmem:[%s2706_s27 + $0x54] sm:$0xf]  ;;  %v1639_v1 = vrot.slane %v1637_v53, 4  ;;  %v1643_v12 = vshll.u32 %v2424_v3, 16 }
 0x109   : > { %877 = vst.msk [vmem:[#allocation2 + $0x34] sm:$0xf] %vm863_vm9, %v842_v24  ;;  %v1585_v24 = vshll.u32 %v2417_v17, 16  ;;  %v1261_v29 = vsel %vm2785_vm5, %v2382_v16, %v1260_v7  ;;  %v1576_v30 = vshrl.u32 %v2416_v19, 16  ;;  %v2405_v53 = vld [vmem:[%s2706_s27 + $0x28] sm:$0xf] }
 0x10a   : > { %1150 = vst.msk [vmem:[#allocation2 + $0x14] sm:$0xf] %vm1144_vm10, %v1107_v31  ;;  %v1579_v31 = vshll.u32 %v2416_v19, 16  ;;  %v2447_v19 = vld [vmem:[%s2706_s27 + $0x70] sm:$0xf]  ;;  %v1645_v21 = vrot.slane %v1643_v12, 5 }
 0x10b   : > { %v1578_v43 = vrot.slane %v1576_v30, 4  ;;  %v2448_v30 = vld [vmem:[%s2706_s27 + $0x74] sm:$0x1]  ;;  %v2391_v12 = vld [vmem:[%s2706_s27 + $0x3c] sm:$0xf] }
 0x10c   : > { %v1814_v38 = vrot.slane %v2448_v30, 5 }
 0x10d   : > { %1826 = vrot.lane.b32.xlu1 %v1780_v32, %s2641_s9  ;;  %v1963_v32 = vunpack.c.l.b16 %v1905_v28  ;;  %v2355_v28 = vld [vmem:[%s2706_s27 + $0x1c] sm:$0xf] }
 0x10e   : > { %1824 = vrot.lane.b32.xlu0 %v1777_v35, %s2641_s9  ;;  %1818 = vrot.lane.b32.xlu2 %v1766_v40, %s2641_s9  ;;  %v3224_v40 = vrot.slane %v1585_v24, 5  ;;  %v1218_v34 = vrot.slane %v2355_v28, 5  ;;  %v2412_v28 = vld [vmem:[%s2706_s27 + $0x44] sm:$0x1] }
 0x10f   : > { %v1099_v44 = vpop.permute.xlu1 %1098  ;;  %v1968_v35 = vpack.c.b16 %v1963_v32, %v1963_v32  ;;  %v2446_v32 = vld [vmem:[%s2706_s27 + $0x6c] sm:$0xe] }
 0x110   : > { %1146 = vst.msk [vmem:[#allocation2 + $0x4] sm:$0xf] %vm1144_vm10, %v1099_v44  ;;  %v1097_v47 = vpop.permute.xlu0 %1096  ;;  %v1113_v50 = vpop.permute.xlu2 %1112  ;;  %v1581_v44 = vrot.slane %v1579_v31, 5  ;;  %v1592_v51 = vor.u32 %v1591_v41, %v3224_v40  ;;  %v2456_v41 = vrot.slane %v2446_v32, 9 }
 0x111   : > { %1145 = vst.msk [vmem:[#allocation2] sm:$0xf] %vm1144_vm10, %v1097_v47  ;;  %v2000_v45 = vsel %vm1998_vm11, %v1968_v35, 0  ;;  %v2400_v47 = vld [vmem:[%s2706_s27 + $0x70] sm:$0xf] }
 0x112   : > { %1153 = vst.msk [vmem:[#allocation2 + $0x20] sm:$0xf] %vm1144_vm10, %v1113_v50  ;;  %2529 = vmatpush.bf16.msra.mxu2 %v2000_v45  ;;  %2530 = vmatpush.bf16.msra.mxu3 %v2000_v45  ;;  %v2399_v50 = vld [vmem:[%s2706_s27 + $0x6c] sm:$0xf]  ;;  %v1582_v55 = vor.u32 %v1581_v44, %v1578_v43  ;;  %v1593_v60 = vrot.slane %v1592_v51, 4  ;;  %v1219_v43 = vsel %vm2785_vm5, %v2376_v33, %v1218_v34 }
 0x113   : > { %2005 = vmatpush.bf16.msra.mxu0 %v2000_v45  ;;  %2528 = vmatpush.bf16.msra.mxu1 %v2000_v45 }
 0x115   : > { %1124 = vrot.lane.b32.xlu1 %v1085_v52, %s2637_s5  ;;  %v1595_v52 = vshll.u32 %v2418_v39, 16  ;;  %v2361_v39 = vld [vmem:[%s2706_s27 + $0x34] sm:$0xf] }
 0x116   : > { %1118 = vrot.lane.b32.xlu0 %v1047_v54, %s2637_s5  ;;  %1116 = vrot.lane.b32.xlu2 %v1037_v57, %s2637_s5  ;;  %v2396_v54 = vld [vmem:[%s2706_s27 + $0x58] sm:$0xf]  ;;  %v1631_v57 = vrot.slane %v1630_v48, 4  ;;  %v1232_v44 = vrot.slane %v2361_v39, 5  ;;  %v2356_v48 = vld [vmem:[%s2706_s27 + $0x20] sm:$0x1] }
 0x117   : > { %v1105_v62 = vpop.permute.xlu1 %1104  ;;  %2532 = vmatpush.bf16.msra.mxu2 %v2527_v46  ;;  %2533 = vmatpush.bf16.msra.mxu3 %v2527_v46  ;;  %v1597_v61 = vrot.slane %v1595_v52, 5  ;;  %v2428_v39 = vld [vmem:[%s2706_s27 + $0x24] sm:$0xe] }
 0x118   : > { %1149 = vst.msk [vmem:[#allocation2 + $0x10] sm:$0xf] %vm1144_vm10, %v1105_v62  ;;  %v1103_v0 = vpop.permute.xlu0 %1102  ;;  %v1123_v4 = vpop.permute.xlu2 %1122  ;;  %v2441_v62 = vld [vmem:[%s2706_s27 + $0x58] sm:$0xf]  ;;  %2006 = vmatpush.bf16.msra.mxu0 %v2527_v46  ;;  %2531 = vmatpush.bf16.msra.mxu1 %v2527_v46  ;;  %v2360_v46 = vld [vmem:[%s2706_s27 + $0x30] sm:$0xe] }
 0x119   : > { %1148 = vst.msk [vmem:[#allocation2 + $0xc] sm:$0xf] %vm1144_vm10, %v1103_v0  ;;  %v1583_v0 = vrot.slane %v1582_v55, 4  ;;  %v1598_v7 = vsel %vm2717_vm2, %v1593_v60, %v1597_v61  ;;  %v1234_v49 = vrot.slane %v1232_v44, 4  ;;  %v2378_v52 = vrot.slane %v2360_v46, 9 }
 0x11a   : > { %1158 = vst.msk [vmem:[#allocation2 + $0x34] sm:$0xf] %vm1144_vm10, %v1123_v4  ;;  %v2525_v4 = vld [vmem:[%s3514_s1 + $0x8] sm:$0xff]  ;;  %v1220_v55 = vrot.slane %v1218_v34, 4  ;;  %v1489_v60 = vshll.u32 %v2405_v53, 16  ;;  %v1493_v61 = vshrl.u32 %v2405_v53, 16 }
 0x11b   : > { %2535 = vmatpush.bf16.msra.mxu2 %v2526_v56  ;;  %2536 = vmatpush.bf16.msra.mxu3 %v2526_v56  ;;  %v1588_v10 = vsel %vm2717_vm2, %v1583_v0, %v3224_v40 }
 0x11c   : > { %2007 = vmatpush.bf16.msra.mxu0 %v2526_v56  ;;  %2534 = vmatpush.bf16.msra.mxu1 %v2526_v56  ;;  %v1221_v56 = vrot.slane %v2356_v48, 5  ;;  %v1495_v3 = vrot.slane %v1493_v61, 4 }
 0x11d   : > { %1287 = vrot.lane.b32.xlu1 %v1250_v5, %s2638_s6  ;;  %v1636_v5 = vsel %vm2717_vm2, %v1631_v57, %v1635_v58  ;;  %v2404_v57 = vld [vmem:[%s2706_s27 + $0x24] sm:$0xf] }
 0x11e   : > { %1285 = vrot.lane.b32.xlu0 %v1247_v6, %s2638_s6  ;;  %1126 = vrot.lane.b32.xlu2 %v1095_v9, %s2637_s5  ;;  %v1797_v6 = vrot.slane %v2441_v62, 5  ;;  %v2440_v9 = vld [vmem:[%s2706_s27 + $0x54] sm:$0xe]  ;;  %v1233_v62 = vsel %vm2785_vm5, %v2378_v52, %v1232_v44  ;;  %v1483_v0 = vshll.u32 %v2404_v57, 16 }
 0x11f   : > { %v1111_v11 = vpop.permute.xlu1 %1110  ;;  %2538 = vmatpush.bf16.msra.mxu2 %v2525_v4  ;;  %2539 = vmatpush.bf16.msra.mxu3 %v2525_v4  ;;  %v2454_v17 = vrot.slane %v2440_v9, 9  ;;  %v2411_v9 = vld [vmem:[%s2706_s27 + $0x40] sm:$0xf] }
 0x120   : > { %1152 = vst.msk [vmem:[#allocation2 + $0x1c] sm:$0xf] %vm1144_vm10, %v1111_v11  ;;  %v1109_v15 = vpop.permute.xlu0 %1108  ;;  %v1290_v18 = vpop.permute.xlu2 %1289  ;;  %v1640_v11 = vor.u32 %v1639_v1, %v1635_v58  ;;  %v1799_v14 = vrot.slane %v1797_v6, 4  ;;  %2008 = vmatpush.bf16.msra.mxu0 %v2525_v4  ;;  %2537 = vmatpush.bf16.msra.mxu1 %v2525_v4  ;;  %v1222_v1 = vsel %vm2785_vm5, %v1220_v55, %v1221_v56 }
 0x121   : > { %1151 = vst.msk [vmem:[#allocation2 + $0x18] sm:$0xf] %vm1144_vm10, %v1109_v15  ;;  %v1800_v15 = vrot.slane %v2442_v8, 5  ;;  %v1798_v24 = vsel %vm2785_vm5, %v2454_v17, %v1797_v6  ;;  %v1537_v17 = vshll.u32 %v2411_v9, 16 }
 0x123   : > { %2541 = vmatpush.bf16.msra.mxu2 %v2524_v13  ;;  %2542 = vmatpush.bf16.msra.mxu3 %v2524_v13 }
 0x124   : > { %2009 = vmatpush.bf16.msra.mxu0 %v2524_v13  ;;  %2540 = vmatpush.bf16.msra.mxu1 %v2524_v13 }
 0x125   : > { %1386 = vrot.lane.b32.xlu1 %v2395_v20, %s2639_s7  ;;  %v1641_v20 = vrot.slane %v1640_v11, 4  ;;  %v2410_v11 = vld [vmem:[%s2706_s27 + $0x3c] sm:$0xf] }
 0x126   : > { %1295 = vrot.lane.b32.xlu0 %v1264_v23, %s2638_s6  ;;  %1293 = vrot.lane.b32.xlu2 %v1261_v29, %s2638_s6  ;;  %v1801_v23 = vsel %vm2785_vm5, %v1799_v14, %v1800_v15  ;;  %v1811_v29 = vrot.slane %v2447_v19, 5  ;;  %v2388_v15 = vld [vmem:[%s2706_s27 + $0x28] sm:$0xf]  ;;  %v2387_v19 = vld [vmem:[%s2706_s27 + $0x24] sm:$0xf] }
 0x127   : > { %v1121_v36 = vpop.permute.xlu1 %1120  ;;  %v1646_v31 = vsel %vm2717_vm2, %v1641_v20, %v1645_v21  ;;  %v1528_v20 = vshrl.u32 %v2410_v11, 16  ;;  %v1531_v21 = vshll.u32 %v2410_v11, 16 }
 0x128   : > { %1157 = vst.msk [vmem:[#allocation2 + $0x30] sm:$0xf] %vm1144_vm10, %v1121_v36  ;;  %v1115_v42 = vpop.permute.xlu0 %1114  ;;  %v1385_v37 = vpop.permute.xlu2 %1384  ;;  %v1813_v36 = vrot.slane %v1811_v29, 4 }
 0x129   : > { %1154 = vst.msk [vmem:[#allocation2 + $0x24] sm:$0xf] %vm1144_vm10, %v1115_v42  ;;  %v1530_v33 = vrot.slane %v1528_v20, 4  ;;  %v1533_v34 = vrot.slane %v1531_v21, 5 }
 0x12a   : > { %1326 = vst.msk [vmem:[#allocation2 + $0x30] sm:$0xf] %vm1313_vm12, %v1290_v18  ;;  %v1815_v45 = vsel %vm2785_vm5, %v1813_v36, %v1814_v38 }
 0x12b   : > { %v1534_v44 = vor.u32 %v1533_v34, %v1530_v33 }
 0x12d   : > { %1396 = vrot.lane.b32.xlu1 %v2400_v47, %s2639_s7  ;;  %v1812_v47 = vsel %vm2785_vm5, %v2456_v41, %v1811_v29  ;;  %v1539_v29 = vrot.slane %v1537_v17, 5  ;;  %v1535_v52 = vrot.slane %v1534_v44, 4 }
 0x12e   : > { %1394 = vrot.lane.b32.xlu0 %v2399_v50, %s2639_s7  ;;  %1388 = vrot.lane.b32.xlu2 %v2396_v54, %s2639_s7 }
 0x12f   : > { %v1284_v59 = vpop.permute.xlu1 %1283 }
 0x130   : > { %1323 = vst.msk [vmem:[#allocation2 + $0x24] sm:$0xf] %vm1313_vm12, %v1284_v59  ;;  %v1282_v63 = vpop.permute.xlu0 %1281  ;;  %v1664_v2 = vpop.permute.xlu2 %1663 }
 0x131   : > { %1322 = vst.msk [vmem:[#allocation2 + $0x20] sm:$0xf] %vm1313_vm12, %v1282_v63  ;;  %v1480_v63 = vshrl.u32 %v2404_v57, 16  ;;  %v2436_v57 = vld [vmem:[%s2706_s27 + $0x44] sm:$0x1] }
 0x132   : > { %1424 = vst.msk [vmem:[#allocation2 + $0x24] sm:$0xf] %vm1414_vm13, %v1385_v37  ;;  %v2362_v37 = vld [vmem:[%s2706_s27 + $0x38] sm:$0x1] }
 0x133   : > { %v1235_v50 = vrot.slane %v2362_v37, 5  ;;  %v1482_v6 = vrot.slane %v1480_v63, 4 }
 0x135   : > { %1675 = vrot.lane.b32.xlu1 %v1636_v5, %s2640_s8  ;;  %v1236_v59 = vsel %vm2785_vm5, %v1234_v49, %v1235_v50  ;;  %v2406_v5 = vld [vmem:[%s2706_s27 + $0x2c] sm:$0x1]  ;;  %v2435_v49 = vld [vmem:[%s2706_s27 + $0x40] sm:$0xf] }
 0x136   : > { %1669 = vrot.lane.b32.xlu0 %v1598_v7, %s2640_s8  ;;  %1667 = vrot.lane.b32.xlu2 %v1588_v10, %s2640_s8  ;;  %v1485_v7 = vrot.slane %v1483_v0, 5  ;;  %v1499_v14 = vshll.u32 %v2406_v5, 16  ;;  %v1783_v55 = vrot.slane %v2435_v49, 5 }
 0x137   : > { %v1383_v16 = vpop.permute.xlu1 %1382 }
 0x138   : > { %1423 = vst.msk [vmem:[#allocation2 + $0x20] sm:$0xf] %vm1414_vm13, %v1383_v16  ;;  %v1292_v18 = vpop.permute.xlu0 %1291  ;;  %v1674_v22 = vpop.permute.xlu2 %1673  ;;  %v1486_v16 = vor.u32 %v1485_v7, %v1482_v6  ;;  %v1785_v61 = vrot.slane %v1783_v55, 4 }
 0x139   : > { %1327 = vst.msk [vmem:[#allocation2 + $0x34] sm:$0xf] %vm1313_vm12, %v1292_v18  ;;  %v1541_v18 = vshrl.u32 %v2411_v9, 16 }
 0x13a   : > { %1704 = vst.msk [vmem:[#allocation2 + $0x20] sm:$0xf] %vm1695_vm14, %v1664_v2  ;;  %v1491_v2 = vrot.slane %v1489_v60, 5  ;;  %v1487_v27 = vrot.slane %v1486_v16, 4  ;;  %v2430_v60 = vld [vmem:[%s2706_s27 + $0x2c] sm:$0x1] }
 0x13b   : > { %v1543_v30 = vrot.slane %v1541_v18, 4 }
 0x13c   : > { %v1496_v13 = vor.u32 %v1495_v3, %v1491_v2  ;;  %v1492_v38 = vsel %vm2717_vm2, %v1487_v27, %v1491_v2  ;;  %v1772_v3 = vrot.slane %v2430_v60, 5 }
 0x13d   : > { %1838 = vrot.lane.b32.xlu1 %v1801_v23, %s2641_s9  ;;  %v1501_v23 = vrot.slane %v1499_v14, 5  ;;  %v1544_v41 = vor.u32 %v1543_v30, %v1539_v29 }
 0x13e   : > { %1836 = vrot.lane.b32.xlu0 %v1798_v24, %s2641_s9  ;;  %1677 = vrot.lane.b32.xlu2 %v1646_v31, %s2640_s8 }
 0x13f   : > { %v1393_v35 = vpop.permute.xlu1 %1392 }
 0x140   : > { %1428 = vst.msk [vmem:[#allocation2 + $0x34] sm:$0xf] %vm1414_vm13, %v1393_v35  ;;  %v1391_v40 = vpop.permute.xlu0 %1390  ;;  %v1841_v42 = vpop.permute.xlu2 %1840 }
 0x141   : > { %1427 = vst.msk [vmem:[#allocation2 + $0x30] sm:$0xf] %vm1414_vm13, %v1391_v40  ;;  %v2429_v40 = vld [vmem:[%s2706_s27 + $0x28] sm:$0xf] }
 0x142   : > { %1709 = vst.msk [vmem:[#allocation2 + $0x34] sm:$0xf] %vm1695_vm14, %v1674_v22  ;;  %v1497_v22 = vrot.slane %v1496_v13, 4  ;;  %v1769_v37 = vrot.slane %v2429_v40, 5 }
 0x144   : > { %v1502_v36 = vsel %vm2717_vm2, %v1497_v22, %v1501_v23  ;;  %v1771_v2 = vrot.slane %v1769_v37, 4 }
 0x145   : > { %1269 = vrot.lane.b32.xlu1 %v1219_v43, %s2638_s6  ;;  %v2392_v43 = vld [vmem:[%s2706_s27 + $0x40] sm:$0xf] }
 0x146   : > { %1846 = vrot.lane.b32.xlu0 %v1815_v45, %s2641_s9  ;;  %1844 = vrot.lane.b32.xlu2 %v1812_v47, %s2641_s9  ;;  %v2450_v45 = vrot.slane %v2428_v39, 9  ;;  %v1545_v47 = vrot.slane %v1544_v41, 4  ;;  %v1773_v6 = vsel %vm2785_vm5, %v1771_v2, %v1772_v3 }
 0x147   : > { %v1672_v51 = vpop.permute.xlu1 %1671 }
 0x148   : > { %1708 = vst.msk [vmem:[#allocation2 + $0x30] sm:$0xf] %vm1695_vm14, %v1672_v51  ;;  %v1666_v54 = vpop.permute.xlu0 %1665  ;;  %v1268_v58 = vpop.permute.xlu2 %1267 }
 0x149   : > { %1705 = vst.msk [vmem:[#allocation2 + $0x24] sm:$0xf] %vm1695_vm14, %v1666_v54  ;;  %v1770_v54 = vsel %vm2785_vm5, %v2450_v45, %v1769_v37 }
 0x14a   : > { %1877 = vst.msk [vmem:[#allocation2 + $0x30] sm:$0xf] %vm1864_vm15, %v1841_v42  ;;  %v1547_v42 = vshll.u32 %v2412_v28, 16 }
 0x14b   : > { %1315 = vst.msk [vmem:[#allocation2 + $0x4] sm:$0xf] %vm1313_vm12, %v1268_v58  ;;  %v2434_v58 = vld [vmem:[%s2706_s27 + $0x3c] sm:$0xe]  ;;  %s2295_s27 = sshll.u32 %s2616_s15, 4 }
 0x14c   : > { %v1549_v48 = vrot.slane %v1547_v42, 5  ;;  %v2452_v0 = vrot.slane %v2434_v58, 9  ;;  %p271_p6 = scmp.lt.s32.totalorder %s2295_s27, 31 }
 0x14d   : > { %1279 = vrot.lane.b32.xlu1 %v1236_v59, %s2638_s6  ;;  %v1540_v59 = vsel %vm2717_vm2, %v1535_v52, %v1539_v29  ;;  %v3418_v52 = vld [vmem:[%s3515_s2] ss:$0 sm:$0xff] }
 0x14e   : > { %1277 = vrot.lane.b32.xlu0 %v1233_v62, %s2638_s6  ;;  %1271 = vrot.lane.b32.xlu2 %v1222_v1, %s2638_s6  ;;  %v1550_v56 = vsel %vm2717_vm2, %v1545_v47, %v1549_v48  ;;  %v1786_v62 = vrot.slane %v2436_v57, 5  ;;  %v1784_v5 = vsel %vm2785_vm5, %v2452_v0, %v1783_v55  ;;  %s3535_s27 = smov (!%p271_p6, %s2295_s27), 31 }
 0x14f   : > { %v1835_v4 = vpop.permute.xlu1 %1834  ;;  %s277_s15 = sadd.s32 %s2296_s28, %s3535_s27 }
 0x150   : > { %1874 = vst.msk [vmem:[#allocation2 + $0x24] sm:$0xf] %vm1864_vm15, %v1835_v4  ;;  %v1833_v8 = vpop.permute.xlu0 %1832  ;;  %v1367_v10 = vpop.permute.xlu2 %1366  ;;  %v1787_v4 = vsel %vm2785_vm5, %v1785_v61, %v1786_v62 }
 0x151   : > { %1873 = vst.msk [vmem:[#allocation2 + $0x20] sm:$0xf] %vm1864_vm15, %v1833_v8 }
 0x155   : > { %1378 = vrot.lane.b32.xlu1 %v2391_v12, %s2639_s7 }
 0x156   : > { %1372 = vrot.lane.b32.xlu0 %v2388_v15, %s2639_s7  ;;  %1370 = vrot.lane.b32.xlu2 %v2387_v19, %s2639_s7 }
 0x157   : > { %v1266_v24 = vpop.permute.xlu1 %1265 }
 0x158   : > { %1314 = vst.msk [vmem:[#allocation2] sm:$0xf] %vm1313_vm12, %v1266_v24  ;;  %v1843_v31 = vpop.permute.xlu0 %1842  ;;  %v2520_v32 = vld [vmem:[#allocation2 + $0x20] sm:$0xff]  ;;  %v1377_v35 = vpop.permute.xlu2 %1376 }
 0x159   : > { %1878 = vst.msk [vmem:[#allocation2 + $0x34] sm:$0xf] %vm1864_vm15, %v1843_v31  ;;  %2509 = vmatmul.msk.bf16.vlgmr.msra.gmra.mxu2 %vm1973_vm0, %v2520_v32 }
 0x15a   : > { %1415 = vst.msk [vmem:[#allocation2] sm:$0xf] %vm1414_vm13, %v1367_v10 }
 0x15d   : > { %1653 = vrot.lane.b32.xlu1 %v1502_v36, %s2640_s8 }
 0x15e   : > { %1651 = vrot.lane.b32.xlu0 %v1492_v38, %s2640_s8  ;;  %1380 = vrot.lane.b32.xlu2 %v2392_v43, %s2639_s7  ;;  %s2297_s7 = sshll.u32 %s277_s15, 2 }
 0x15f   : > { %v1276_v46 = vpop.permute.xlu1 %1275 }
 0x160   : > { %1319 = vst.msk [vmem:[#allocation2 + $0x14] sm:$0xf] %vm1313_vm12, %v1276_v46  ;;  %v1274_v50 = vpop.permute.xlu0 %1273  ;;  %v2522_v51 = vld [vmem:[#allocation2 + $0x30] sm:$0xff]  ;;  %v1656_v53 = vpop.permute.xlu2 %1655 }
 0x161   : > { %1318 = vst.msk [vmem:[#allocation2 + $0x10] sm:$0xf] %vm1313_vm12, %v1274_v50  ;;  %2511 = vmatmul.msk.bf16.vlgmr.msra.gmra.mxu3 %vm1973_vm0, %v2522_v51 }
 0x162   : > { %1420 = vst.msk [vmem:[#allocation2 + $0x14] sm:$0xf] %vm1414_vm13, %v1377_v35 }
 0x165   : > { %1820 = vrot.lane.b32.xlu1 %v1770_v54, %s2641_s9 }
 0x166   : > { %1661 = vrot.lane.b32.xlu0 %v1550_v56, %s2640_s8  ;;  %1659 = vrot.lane.b32.xlu2 %v1540_v59, %s2640_s8 }
 0x167   : > { %v1375_v63 = vpop.permute.xlu1 %1374 }
 0x168   : > { %1419 = vst.msk [vmem:[#allocation2 + $0x10] sm:$0xf] %vm1414_vm13, %v1375_v63  ;;  %v1369_v1 = vpop.permute.xlu0 %1368  ;;  %v1819_v25 = vpop.permute.xlu2 %1818 }
 0x169   : > { %1416 = vst.msk [vmem:[#allocation2 + $0x4] sm:$0xf] %vm1414_vm13, %v1369_v1 }
 0x16a   : > { %1700 = vst.msk [vmem:[#allocation2 + $0x10] sm:$0xf] %vm1695_vm14, %v1656_v53  ;;  %v3423_v53 = vld [vmem:[%s3516_s3] ss:$0 sm:$0xff] }
 0x16d   : > { %1830 = vrot.lane.b32.xlu1 %v1787_v4, %s2641_s9 }
 0x16e   : > { %1828 = vrot.lane.b32.xlu0 %v1784_v5, %s2641_s9  ;;  %1822 = vrot.lane.b32.xlu2 %v1773_v6, %s2641_s9  ;;  %s3433_s9 = scalar_lea.vmem %s3517_s4, %s2297_s7 }
 0x16f   : > { %v1650_v7 = vpop.permute.xlu1 %1649 }
 0x170   : > { %1697 = vst.msk [vmem:[#allocation2 + $0x4] sm:$0xf] %vm1695_vm14, %v1650_v7  ;;  %v1648_v8 = vpop.permute.xlu0 %1647  ;;  %v1117_v9 = vpop.permute.xlu2 %1116 }
 0x171   : > { %1696 = vst.msk [vmem:[#allocation2] sm:$0xf] %vm1695_vm14, %v1648_v8 }
 0x172   : > { %1866 = vst.msk [vmem:[#allocation2 + $0x4] sm:$0xf] %vm1864_vm15, %v1819_v25 }
 0x173   : > { %1155 = vst.msk [vmem:[#allocation2 + $0x28] sm:$0xf] %vm1144_vm10, %v1117_v9 }
 0x177   : > { %v1817_v10 = vpop.permute.xlu1 %1816 }
 0x178   : > { %1865 = vst.msk [vmem:[#allocation2] sm:$0xf] %vm1864_vm15, %v1817_v10  ;;  %v1658_v26 = vpop.permute.xlu0 %1657  ;;  %v1127_v11 = vpop.permute.xlu2 %1126 }
 0x179   : > { %1701 = vst.msk [vmem:[#allocation2 + $0x14] sm:$0xf] %vm1695_vm14, %v1658_v26 }
 0x17a   : > { %1160 = vst.msk [vmem:[#allocation2 + $0x3c] sm:$0xf] %vm1144_vm10, %v1127_v11 }
 0x17f   : > { %v1827_v12 = vpop.permute.xlu1 %1826  ;;  %v2516_v13 = vld [vmem:[#allocation2] sm:$0xff] }
 0x180   : > { %1870 = vst.msk [vmem:[#allocation2 + $0x14] sm:$0xf] %vm1864_vm15, %v1827_v12  ;;  %v1825_v14 = vpop.permute.xlu0 %1824  ;;  %2505 = vmatmul.msk.bf16.vlgmr.msra.gmra.mxu0 %vm1973_vm0, %v2516_v13  ;;  %v1294_v15 = vpop.permute.xlu2 %1293 }
 0x181   : > { %1869 = vst.msk [vmem:[#allocation2 + $0x10] sm:$0xf] %vm1864_vm15, %v1825_v14 }
 0x187   : > { %v1125_v16 = vpop.permute.xlu1 %1124 }
 0x188   : > { %1159 = vst.msk [vmem:[#allocation2 + $0x38] sm:$0xf] %vm1144_vm10, %v1125_v16  ;;  %v1119_v17 = vpop.permute.xlu0 %1118  ;;  %v2518_v18 = vld [vmem:[#allocation2 + $0x10] sm:$0xff]  ;;  %v1389_v19 = vpop.permute.xlu2 %1388 }
 0x189   : > { %1156 = vst.msk [vmem:[#allocation2 + $0x2c] sm:$0xf] %vm1144_vm10, %v1119_v17  ;;  %2507 = vmatmul.msk.bf16.vlgmr.msra.gmra.mxu1 %vm1973_vm0, %v2518_v18 }
 0x18a   : > { %1328 = vst.msk [vmem:[#allocation2 + $0x38] sm:$0xf] %vm1313_vm12, %v1294_v15 }
 0x18f   : > { %v1288_v20 = vpop.permute.xlu1 %1287 }
 0x190   : > { %1325 = vst.msk [vmem:[#allocation2 + $0x2c] sm:$0xf] %vm1313_vm12, %v1288_v20  ;;  %v1286_v21 = vpop.permute.xlu0 %1285  ;;  %v1668_v22 = vpop.permute.xlu2 %1667 }
 0x191   : > { %1324 = vst.msk [vmem:[#allocation2 + $0x28] sm:$0xf] %vm1313_vm12, %v1286_v21 }
 0x192   : > { %1426 = vst.msk [vmem:[#allocation2 + $0x2c] sm:$0xf] %vm1414_vm13, %v1389_v19 }
 0x197   : > { %v1387_v23 = vpop.permute.xlu1 %1386 }
 0x198   : > { %1425 = vst.msk [vmem:[#allocation2 + $0x28] sm:$0xf] %vm1414_vm13, %v1387_v23  ;;  %v1296_v24 = vpop.permute.xlu0 %1295  ;;  %v1678_v27 = vpop.permute.xlu2 %1677 }
 0x199   : > { %1329 = vst.msk [vmem:[#allocation2 + $0x3c] sm:$0xf] %vm1313_vm12, %v1296_v24 }
 0x19a   : > { %1706 = vst.msk [vmem:[#allocation2 + $0x28] sm:$0xf] %vm1695_vm14, %v1668_v22 }
 0x19f   : > { %v1397_v28 = vpop.permute.xlu1 %1396 }
 0x1a0   : > { %1430 = vst.msk [vmem:[#allocation2 + $0x3c] sm:$0xf] %vm1414_vm13, %v1397_v28  ;;  %v1395_v29 = vpop.permute.xlu0 %1394  ;;  %v1845_v30 = vpop.permute.xlu2 %1844 }
 0x1a1   : > { %1429 = vst.msk [vmem:[#allocation2 + $0x38] sm:$0xf] %vm1414_vm13, %v1395_v29 }
 0x1a2   : > { %1711 = vst.msk [vmem:[#allocation2 + $0x3c] sm:$0xf] %vm1695_vm14, %v1678_v27 }
 0x1a7   : > { %v1676_v31 = vpop.permute.xlu1 %1675 }
 0x1a8   : > { %1710 = vst.msk [vmem:[#allocation2 + $0x38] sm:$0xf] %vm1695_vm14, %v1676_v31  ;;  %v1670_v32 = vpop.permute.xlu0 %1669  ;;  %v1272_v33 = vpop.permute.xlu2 %1271 }
 0x1a9   : > { %1707 = vst.msk [vmem:[#allocation2 + $0x2c] sm:$0xf] %vm1695_vm14, %v1670_v32 }
 0x1aa   : > { %1879 = vst.msk [vmem:[#allocation2 + $0x38] sm:$0xf] %vm1864_vm15, %v1845_v30 }
 0x1ab   : > { %1317 = vst.msk [vmem:[#allocation2 + $0xc] sm:$0xf] %vm1313_vm12, %v1272_v33 }
 0x1af   : > { %v1839_v34 = vpop.permute.xlu1 %1838 }
 0x1b0   : > { %1876 = vst.msk [vmem:[#allocation2 + $0x2c] sm:$0xf] %vm1864_vm15, %v1839_v34  ;;  %v1837_v35 = vpop.permute.xlu0 %1836  ;;  %v1371_v36 = vpop.permute.xlu2 %1370 }
 0x1b1   : > { %1875 = vst.msk [vmem:[#allocation2 + $0x28] sm:$0xf] %vm1864_vm15, %v1837_v35 }
 0x1b7   : > { %v1270_v38 = vpop.permute.xlu1 %1269 }
 0x1b8   : > { %1316 = vst.msk [vmem:[#allocation2 + $0x8] sm:$0xf] %vm1313_vm12, %v1270_v38  ;;  %v1847_v39 = vpop.permute.xlu0 %1846  ;;  %v2521_v40 = vld [vmem:[#allocation2 + $0x28] sm:$0xff]  ;;  %v1381_v41 = vpop.permute.xlu2 %1380 }
 0x1b9   : > { %1880 = vst.msk [vmem:[#allocation2 + $0x3c] sm:$0xf] %vm1864_vm15, %v1847_v39  ;;  %2510 = vmatmul.msk.bf16.gmra.mxu2 %vm1973_vm0, %v2521_v40 }
 0x1ba   : > { %1417 = vst.msk [vmem:[#allocation2 + $0x8] sm:$0xf] %vm1414_vm13, %v1371_v36 }
 0x1bf   : > { %v1280_v42 = vpop.permute.xlu1 %1279 }
 0x1c0   : > { %1321 = vst.msk [vmem:[#allocation2 + $0x1c] sm:$0xf] %vm1313_vm12, %v1280_v42  ;;  %v1278_v43 = vpop.permute.xlu0 %1277  ;;  %v2523_v44 = vld [vmem:[#allocation2 + $0x38] sm:$0xff]  ;;  %v1660_v45 = vpop.permute.xlu2 %1659 }
 0x1c1   : > { %1320 = vst.msk [vmem:[#allocation2 + $0x18] sm:$0xf] %vm1313_vm12, %v1278_v43  ;;  %2512 = vmatmul.msk.bf16.gmra.mxu3 %vm1973_vm0, %v2523_v44 }
 0x1c2   : > { %1422 = vst.msk [vmem:[#allocation2 + $0x1c] sm:$0xf] %vm1414_vm13, %v1381_v41 }
 0x1c7   : > { %v1379_v37 = vpop.permute.xlu1 %1378 }
 0x1c8   : > { %1421 = vst.msk [vmem:[#allocation2 + $0x18] sm:$0xf] %vm1414_vm13, %v1379_v37  ;;  %v1373_v46 = vpop.permute.xlu0 %1372  ;;  %v1823_v48 = vpop.permute.xlu2 %1822 }
 0x1c9   : > { %1418 = vst.msk [vmem:[#allocation2 + $0xc] sm:$0xf] %vm1414_vm13, %v1373_v46 }
 0x1ca   : > { %1702 = vst.msk [vmem:[#allocation2 + $0x18] sm:$0xf] %vm1695_vm14, %v1660_v45 }
 0x1cf   : > { %v1654_v47 = vpop.permute.xlu1 %1653 }
 0x1d0   : > { %1699 = vst.msk [vmem:[#allocation2 + $0xc] sm:$0xf] %vm1695_vm14, %v1654_v47  ;;  %v1652_v49 = vpop.permute.xlu0 %1651 }
 0x1d1   : > { %1698 = vst.msk [vmem:[#allocation2 + $0x8] sm:$0xf] %vm1695_vm14, %v1652_v49 }
 0x1d2   : > { %1868 = vst.msk [vmem:[#allocation2 + $0xc] sm:$0xf] %vm1864_vm15, %v1823_v48 }
 0x1d7   : > { %v1821_v50 = vpop.permute.xlu1 %1820 }
 0x1d8   : > { %1867 = vst.msk [vmem:[#allocation2 + $0x8] sm:$0xf] %vm1864_vm15, %v1821_v50  ;;  %v1662_v51 = vpop.permute.xlu0 %1661 }
 0x1d9   : > { %1703 = vst.msk [vmem:[#allocation2 + $0x1c] sm:$0xf] %vm1695_vm14, %v1662_v51 }
 0x1dc   : > { %v2031_v54 = vpop.f32.mrf.mxu2 }
 0x1dd   : > { %v2063_v55 = vmul.f32 %v3418_v52, %v2031_v54 }
 0x1df   : > { %v1831_v56 = vpop.permute.xlu1 %1830  ;;  %v2517_v57 = vld [vmem:[#allocation2 + $0x8] sm:$0xff]  ;;  %v2083_v58 = vadd.f32 %v3423_v53, %v2063_v55 }
 0x1e0   : > { %1872 = vst.msk [vmem:[#allocation2 + $0x1c] sm:$0xf] %vm1864_vm15, %v1831_v56  ;;  %v1829_v59 = vpop.permute.xlu0 %1828  ;;  %2506 = vmatmul.msk.bf16.gmra.mxu0 %vm1973_vm0, %v2517_v57 }
 0x1e1   : > { %1871 = vst.msk [vmem:[#allocation2 + $0x18] sm:$0xf] %vm1864_vm15, %v1829_v59  ;;  %v2099_v60 = vmax.f32 %v2083_v58, 0.0 }
 0x1e3   : > { %v2115_v61 = vpack.c.bf16 %v2099_v60, %v2099_v60 }
 0x1e4   : > { %v2033_v62 = vpop.f32.mrf.mxu2  ;;  %v2041_v63 = vpop.f32.mrf.mxu3 }
 0x1e5   : > { %2132 = vst.msk [vmem:[%s3433_s9 + $0x20] sm:$0xf] %vm306_vm6, %v2115_v61  ;;  %v2064_v0 = vmul.f32 %v3418_v52, %v2033_v62  ;;  %v2067_v1 = vmul.f32 %v3418_v52, %v2041_v63 }
 0x1e7   : > { %v2084_v2 = vadd.f32 %v3423_v53, %v2064_v0  ;;  %v2087_v3 = vadd.f32 %v3423_v53, %v2067_v1 }
 0x1e8   : > { %v2519_v25 = vld [vmem:[#allocation2 + $0x18] sm:$0xff] }
 0x1e9   : > { %v2100_v4 = vmax.f32 %v2084_v2, 0.0  ;;  %v2103_v5 = vmax.f32 %v2087_v3, 0.0  ;;  %2508 = vmatmul.msk.bf16.gmra.mxu1 %vm1973_vm0, %v2519_v25 }
 0x1eb   : > { %v2116_v6 = vpack.c.bf16 %v2100_v4, %v2100_v4  ;;  %v2119_v7 = vpack.c.bf16 %v2103_v5, %v2103_v5 }
 0x1ec   : > { %v2043_v8 = vpop.f32.mrf.mxu3 }
 0x1ed   : > { %2133 = vst.msk [vmem:[%s3433_s9 + $0x24] sm:$0xf] %vm306_vm6, %v2116_v6  ;;  %v2068_v9 = vmul.f32 %v3418_v52, %v2043_v8 }
 0x1ee   : > { %2136 = vst.msk [vmem:[%s3433_s9 + $0x30] sm:$0xf] %vm306_vm6, %v2119_v7 }
 0x1ef   : > { %v2088_v10 = vadd.f32 %v3423_v53, %v2068_v9 }
 0x1f1   : > { %v2104_v26 = vmax.f32 %v2088_v10, 0.0 }
 0x1f3   : > { %v2120_v11 = vpack.c.bf16 %v2104_v26, %v2104_v26 }
 0x1f5   : > { %2137 = vst.msk [vmem:[%s3433_s9 + $0x34] sm:$0xf] %vm306_vm6, %v2120_v11 }
 0x1fd   : > { %v2011_v12 = vpop.f32.mrf.mxu0 }
 0x1fe   : > { %v2055_v13 = vmul.f32 %v3418_v52, %v2011_v12 }
 0x200   : > { %v2075_v14 = vadd.f32 %v3423_v53, %v2055_v13 }
 0x202   : > { %v2091_v15 = vmax.f32 %v2075_v14, 0.0 }
 0x204   : > { %v2107_v16 = vpack.c.bf16 %v2091_v15, %v2091_v15 }
 0x205   : > { %v2013_v17 = vpop.f32.mrf.mxu0 }
 0x206   : > { %2124 = vst.msk [vmem:[%s3433_s9] sm:$0xf] %vm306_vm6, %v2107_v16  ;;  %v2056_v18 = vmul.f32 %v3418_v52, %v2013_v17  ;;  %v2021_v19 = vpop.f32.mrf.mxu1 }
 0x207   : > { %v2059_v20 = vmul.f32 %v3418_v52, %v2021_v19 }
 0x208   : > { %v2076_v21 = vadd.f32 %v3423_v53, %v2056_v18 }
 0x209   : > { %v2079_v22 = vadd.f32 %v3423_v53, %v2059_v20 }
 0x20a   : > { %v2092_v23 = vmax.f32 %v2076_v21, 0.0 }
 0x20b   : > { %v2095_v24 = vmax.f32 %v2079_v22, 0.0 }
 0x20c   : > { %v2108_v27 = vpack.c.bf16 %v2092_v23, %v2092_v23 }
 0x20d   : > { %v2111_v28 = vpack.c.bf16 %v2095_v24, %v2095_v24 }
 0x20e   : > { %2125 = vst.msk [vmem:[%s3433_s9 + $0x4] sm:$0xf] %vm306_vm6, %v2108_v27  ;;  %v2023_v29 = vpop.f32.mrf.mxu1 }
 0x20f   : > { %2128 = vst.msk [vmem:[%s3433_s9 + $0x10] sm:$0xf] %vm306_vm6, %v2111_v28  ;;  %v2060_v30 = vmul.f32 %v3418_v52, %v2023_v29 }
 0x211   : > { %v2080_v31 = vadd.f32 %v3423_v53, %v2060_v30 }
 0x213   : > { %v2096_v32 = vmax.f32 %v2080_v31, 0.0 }
 0x215   : > { %v2112_v33 = vpack.c.bf16 %v2096_v32, %v2096_v32 }
 0x217   : > { %2129 = vst.msk [vmem:[%s3433_s9 + $0x14] sm:$0xf] %vm306_vm6, %v2112_v33 }
 0x23c   : > { %v2036_v34 = vpop.f32.mrf.mxu2 }
 0x23d   : > { %v2065_v35 = vmul.f32 %v3418_v52, %v2036_v34 }
 0x23f   : > { %v2085_v36 = vadd.f32 %v3423_v53, %v2065_v35 }
 0x241   : > { %v2101_v38 = vmax.f32 %v2085_v36, 0.0 }
 0x243   : > { %v2117_v39 = vpack.c.bf16 %v2101_v38, %v2101_v38 }
 0x244   : > { %v2038_v40 = vpop.f32.mrf.mxu2  ;;  %v2046_v41 = vpop.f32.mrf.mxu3 }
 0x245   : > { %2134 = vst.msk [vmem:[%s3433_s9 + $0x28] sm:$0xf] %vm306_vm6, %v2117_v39  ;;  %v2066_v42 = vmul.f32 %v3418_v52, %v2038_v40  ;;  %v2069_v43 = vmul.f32 %v3418_v52, %v2046_v41 }
 0x247   : > { %v2086_v44 = vadd.f32 %v3423_v53, %v2066_v42  ;;  %v2089_v45 = vadd.f32 %v3423_v53, %v2069_v43 }
 0x249   : > { %v2102_v37 = vmax.f32 %v2086_v44, 0.0  ;;  %v2105_v46 = vmax.f32 %v2089_v45, 0.0 }
 0x24b   : > { %v2118_v47 = vpack.c.bf16 %v2102_v37, %v2102_v37  ;;  %v2121_v48 = vpack.c.bf16 %v2105_v46, %v2105_v46 }
 0x24c   : > { %v2048_v49 = vpop.f32.mrf.mxu3 }
 0x24d   : > { %2135 = vst.msk [vmem:[%s3433_s9 + $0x2c] sm:$0xf] %vm306_vm6, %v2118_v47  ;;  %v2070_v50 = vmul.f32 %v3418_v52, %v2048_v49 }
 0x24e   : > { %2138 = vst.msk [vmem:[%s3433_s9 + $0x38] sm:$0xf] %vm306_vm6, %v2121_v48 }
 0x24f   : > { %v2090_v51 = vadd.f32 %v3423_v53, %v2070_v50 }
 0x251   : > { %v2106_v54 = vmax.f32 %v2090_v51, 0.0 }
 0x253   : > { %v2122_v55 = vpack.c.bf16 %v2106_v54, %v2106_v54 }
 0x255   : > { %2139 = vst.msk [vmem:[%s3433_s9 + $0x3c] sm:$0xf] %vm306_vm6, %v2122_v55 }
 0x25d   : > { %v2016_v56 = vpop.f32.mrf.mxu0 }
 0x25e   : > { %v2057_v57 = vmul.f32 %v3418_v52, %v2016_v56 }
 0x260   : > { %v2077_v58 = vadd.f32 %v3423_v53, %v2057_v57 }
 0x262   : > { %v2093_v59 = vmax.f32 %v2077_v58, 0.0 }
 0x264   : > { %v2109_v60 = vpack.c.bf16 %v2093_v59, %v2093_v59 }
 0x265   : > { %v2018_v61 = vpop.f32.mrf.mxu0 }
 0x266   : > { %2126 = vst.msk [vmem:[%s3433_s9 + $0x8] sm:$0xf] %vm306_vm6, %v2109_v60  ;;  %v2058_v62 = vmul.f32 %v3418_v52, %v2018_v61  ;;  %v2026_v63 = vpop.f32.mrf.mxu1 }
 0x267   : > { %v2061_v0 = vmul.f32 %v3418_v52, %v2026_v63 }
 0x268   : > { %v2078_v1 = vadd.f32 %v3423_v53, %v2058_v62 }
 0x269   : > { %v2081_v2 = vadd.f32 %v3423_v53, %v2061_v0 }
 0x26a   : > { %v2094_v3 = vmax.f32 %v2078_v1, 0.0 }
 0x26b   : > { %v2097_v25 = vmax.f32 %v2081_v2, 0.0 }
 0x26c   : > { %v2110_v4 = vpack.c.bf16 %v2094_v3, %v2094_v3 }
 0x26d   : > { %v2113_v5 = vpack.c.bf16 %v2097_v25, %v2097_v25 }
 0x26e   : > { %2127 = vst.msk [vmem:[%s3433_s9 + $0xc] sm:$0xf] %vm306_vm6, %v2110_v4  ;;  %v2028_v6 = vpop.f32.mrf.mxu1 }
 0x26f   : > { %2130 = vst.msk [vmem:[%s3433_s9 + $0x18] sm:$0xf] %vm306_vm6, %v2113_v5  ;;  %v2062_v7 = vmul.f32 %v3418_v52, %v2028_v6 }
 0x271   : > { %v2082_v8 = vadd.f32 %v3423_v53, %v2062_v7 }
 0x273   : > { %v2098_v9 = vmax.f32 %v2082_v8, 0.0 }
 0x275   : > { %v2114_v10 = vpack.c.bf16 %v2098_v9, %v2098_v9 }
 0x277   : > { %2131 = vst.msk [vmem:[%s3433_s9 + $0x1c] sm:$0xf] %vm306_vm6, %v2114_v10 }
 0x278 PF: > { %s14_s19 = sadd.s32 1, %s2632_s19   ;;  %s3522_s15 = smov %s2624_s17 }
 0x279   : > { %p11_p7 = scmp.ge.s32.totalorder %s14_s19, 6   ;;  %s3523_s16 = smov %s2628_s18 }
 0x27a   : > { %s3524_s17 = smov %s3527_s20  ;;  %s3525_s18 = smov %s3531_s21 }
 0x27b   :  { %13 = sbr.rel (!%p11_p7) target bundleno = 3 (0x3), region = 82 }

// kernel: vgg_bn_encoder_forward.7
= control target key start
LH: loop header
LB: loop body
LE: loop exit
PB: predicated region body
PF: predicated region fallthrough
CT: control target
= control target key end

     0   :  { %s4074_s0 = inlined_call_operand.vmem [shape: bf16[2,10,10,16], index: 0, kind: input, shape index: {}]   ;;  %s4075_s1 = inlined_call_operand.vmem [shape: bf16[144,16], index: 1, kind: input, shape index: {}]   ;;  %s4076_s2 = inlined_call_operand.vmem [shape: f32[1,16], index: 2, kind: input, shape index: {}]   ;;  %s4077_s3 = inlined_call_operand.vmem [shape: f32[1,16], index: 3, kind: input, shape index: {}]   ;;  %s4078_s4 = inlined_call_operand.hbm [shape: bf16[2,16,16], index: 4, kind: output, shape index: {0}]   ;;  %s4079_s5 = inlined_call_operand.hbm [shape: s32[2,16,16], index: 5, kind: output, shape index: {1}]  }
   0x1   :  { %4082 = sst [smem:[#allocation9_spill]] %s4074_s0 }
   0x2   :  { %11 = vsyncpa [#allocation4], 0 }
   0x3   :  { %13 = vsyncpa [#allocation4 + $0x1], 0 }
   0x4   :  { %14 = vsyncpa [#allocation6], 0 }
   0x5   :  { %16 = vsyncpa [#allocation6 + $0x1], 0  ;;  %s2805_s18 = smov 0   ;;  %s2807_s19 = smov 0  }
   0x6   :  { %s2809_s20 = smov 0   ;;  %s2811_s21 = smov 0  }
   0x7   :  { %s2813_s22 = smov 0   ;;  %s2815_s23 = smov 0  }
   0x8 LB: > { %s2337_s24 = sadd.s32 4294967295, %s2761_s23   ;;  %s2338_s25 = sadd.s32 4294967294, %s2761_s23   ;;  %s2761_s23 = sphi %s2815_s23, %s22_s23   ;;  %s2757_s22 = sphi %s2813_s22, %s4167_s22   ;;  %s2753_s21 = sphi %s2811_s21, %s4166_s21   ;;  %s2749_s20 = sphi %s2809_s20, %s4165_s20   ;;  %s2745_s19 = sphi %s2807_s19, %s4164_s19   ;;  %s2741_s18 = sphi %s2805_s18, %s4163_s18  }
   0x9   : > { %s41_s26 = sadd.s32 1, %s2757_s22  ;;  %s156_s27 = sadd.s32 1, %s2749_s20 }
   0xa   : > { %p43_p0 = scmp.ge.s32.totalorder %s41_s26, 2  ;;  %p166_p1 = scmp.ne.s32.totalorder %s2749_s20, %s2745_s19 }
   0xb   : > { %p167_p2 = scmp.eq.s32.totalorder %s2337_s24, 1  ;;  %p172_p3 = scmp.ne.s32.totalorder %s2745_s19, %s2741_s18 }
   0xc   : > { %s4169_s26 = smov (%p43_p0, %s41_s26), 0  ;;  %p173_p5 = scmp.eq.s32.totalorder %s2338_s25, 1 }
   0xd   : > { %p2845_p4 = por %p167_p2, %p166_p1  ;;  %s149_s29 = ssub.s32 %s2757_s22, %s4169_s26 }
   0xe   : > { %p2344_p6 = scmp.ge.s32.totalorder %s2761_s23, 1  ;;  %p154_p7 = scmp.eq.s32.totalorder %s149_s29, 0 }
   0xf   : > { %p2852_p8 = por %p173_p5, %p172_p3  ;;  %p248_p9 = scmp.lt.s32.totalorder %s2761_s23, 3 }
  0x10   : > { %s2858_s6 = scalar_select %p154_p7, %s2749_s20, %s156_s27  }
  0x11   : > { %p249_p10 = pnand %p2344_p6, %p248_p9 }
  0x12   : > { %p291_p11 = scmp.lt.s32.totalorder (!%p249_p10), %s2753_s21, 1  ;;  %s4085_s0 = sld [smem:[#allocation9_spill]] (!%p249_p10) }
  0x13   : > { %252 = sbr.rel (%p249_p10) target bundleno = 492 (0x1ec), region = 36  ;;  %s2763_s12 = smov (!%p249_p10), 32  }
  0x14   : > { %s2764_s13 = smov (!%p249_p10), 16   ;;  %s2765_s14 = smov (!%p249_p10), 48  }
  0x15   : > { %s2766_s15 = smov (!%p249_p10), 64   ;;  %s2767_s16 = smov (!%p249_p10), 96  }
  0x16   : > { %s2768_s17 = smov (!%p249_p10), 80   ;;  %s2769_s24 = smov (!%p249_p10), 112  }
  0x17   : > { %s3872_s25 = sand.u32 (!%p249_p10), 1, %s2745_s19   ;;  %s2565_s9 = sshll.u32 (!%p249_p10), %s2753_s21, 3 }
  0x18   : > { %s292_s7 = scalar_select %p291_p11, %s2753_s21, 1  ;;  %vm530_vm0 = vcmask 1042432   ;;  %vm531_vm1 = vcmask 1046532   ;;  %vm350_vm3 = vsmask.f32 3328  ;;  %vm4081_vm6 = vcmask 125952  }
  0x19   : > { %vm2867_vm2 = vmor %vm530_vm0, %vm531_vm1  ;;  %vm351_vm4 = vsmask.f32 7440  ;;  %vm489_vm7 = vcmask 257152   ;;  %vm589_vm8 = vcmask 388352   ;;  %vm642_vm9 = vcmask 519552   ;;  %s2345_s27 = sshll.u32 %s3872_s25, 3 }
  0x1a   : > { %s2576_s8 = smul.u32 80, %s292_s7  ;;  %vm2886_vm5 = vmor %vm350_vm3, %vm351_vm4  ;;  %vm803_vm10 = vcmask 650752   ;;  %vm4080_vm11 = vcmask 130048   ;;  %vm900_vm12 = vcmask 781952   ;;  %vm953_vm13 = vcmask 913152   ;;  %s2346_s29 = sshll.u32 %s3872_s25, 4 }
  0x1b   : > { %vm1114_vm14 = vcmask 1044352   ;;  %s3925_s7 = scalar_lea.vmem [#allocation3], %s2345_s27 }
  0x1c   : > { %s2865_s11 = scalar_lea.vmem %s4085_s0, %s2576_s8  ;;  %s3930_s8 = scalar_lea.vmem [#allocation5], %s2346_s29 }
  0x1d   : > { %v506_v1 = vld [vmem:[%s2865_s11 + $0x20] sm:$0xe]  ;;  %v507_v2 = vld [vmem:[%s2865_s11 + $0x24] sm:$0x1]  ;;  %v508_v10 = vld [vmem:[%s2865_s11 + $0x28] sm:$0xe] }
  0x1e   : > { %v342_v3 = vld [vmem:[%s2865_s11 + $0x20] sm:$0xf]  ;;  %v2352_v4 = vrot.slane %v506_v1, 9  ;;  %v551_v5 = vrot.slane %v507_v2, 5  ;;  %v343_v6 = vld [vmem:[%s2865_s11 + $0x24] sm:$0x1] }
  0x1f   : > { %v410_v7 = vshrl.u32 %v342_v3, 16  ;;  %v413_v8 = vshll.u32 %v342_v3, 16  ;;  %v419_v9 = vshll.u32 %v343_v6, 16  ;;  %v509_v11 = vld [vmem:[%s2865_s11 + $0x2c] sm:$0x1]  ;;  %v2353_v16 = vrot.slane %v508_v10, 9 }
  0x20   : > { %v552_v12 = vsel %vm2867_vm2, %v2352_v4, %v551_v5  ;;  %v344_v15 = vld [vmem:[%s2865_s11 + $0x28] sm:$0xf]  ;;  %v345_v17 = vld [vmem:[%s2865_s11 + $0x2c] sm:$0x1]  ;;  %v555_v22 = vrot.slane %v509_v11, 5  ;;  %s2171_s27 = sshll.u32 %s3930_s8, 4  ;;  %s4014_s27 = int_to_ptr.vmem [resolvable:$true] %s2171_s27 }
  0x21   : > { %v412_v13 = vrot.slane %v410_v7, 4  ;;  %v415_v14 = vrot.slane %v413_v8, 5  ;;  %573 = vrot.lane.b32.xlu1 %v552_v12, %s2763_s12  ;;  %v424_v18 = vshrl.u32 %v344_v15, 16  ;;  %v427_v19 = vshll.u32 %v344_v15, 16  ;;  %v2374_v23 = vld [vmem:[%s2865_s11 + $0x30] sm:$0xf] }
  0x22   : > { %v421_v21 = vrot.slane %v419_v9, 5  ;;  %v2375_v24 = vld [vmem:[%s2865_s11 + $0x34] sm:$0x1]  ;;  %v433_v28 = vshll.u32 %v345_v17, 16  ;;  %v738_v29 = vshrl.u32 %v2374_v23, 16  ;;  %v741_v32 = vshll.u32 %v2374_v23, 16 }
  0x23   : > { %v416_v20 = vor.u32 %v415_v14, %v412_v13  ;;  %v426_v26 = vrot.slane %v424_v18, 4  ;;  %v429_v27 = vrot.slane %v427_v19, 5  ;;  %v2372_v30 = vld [vmem:[%s2865_s11 + $0x28] sm:$0xf]  ;;  %v556_v38 = vsel %vm2867_vm2, %v2353_v16, %v555_v22  ;;  %v2373_v47 = vld [vmem:[%s2865_s11 + $0x2c] sm:$0x1] }
  0x24   : > { %v740_v34 = vrot.slane %v738_v29, 4  ;;  %v724_v35 = vshrl.u32 %v2372_v30, 16  ;;  %v727_v36 = vshll.u32 %v2372_v30, 16  ;;  %v743_v39 = vrot.slane %v741_v32, 5  ;;  %v2360_v46 = vld [vmem:[%s2865_s11 + $0x28] sm:$0xf] }
  0x25   : > { %v417_v31 = vrot.slane %v416_v20, 4  ;;  %v430_v33 = vor.u32 %v429_v27, %v426_v26  ;;  %v747_v40 = vshll.u32 %v2375_v24, 16  ;;  %v435_v41 = vrot.slane %v433_v28, 5  ;;  %626 = vrot.lane.b32.xlu2 %v2360_v46, %s2765_s14  ;;  %v336_v50 = vld [vmem:[%s2865_s11 + $0x8] sm:$0xf] }
  0x26   : > { %v744_v43 = vor.u32 %v743_v39, %v740_v34  ;;  %v726_v44 = vrot.slane %v724_v35, 4  ;;  %v729_v45 = vrot.slane %v727_v36, 5  ;;  %v733_v53 = vshll.u32 %v2373_v47, 16  ;;  %v2361_v57 = vld [vmem:[%s2865_s11 + $0x30] sm:$0xf] }
  0x27   : > { %v422_v37 = vsel %vm2886_vm5, %v417_v31, %v421_v21  ;;  %v431_v42 = vrot.slane %v430_v33, 4  ;;  %v749_v49 = vrot.slane %v747_v40, 5  ;;  %v368_v55 = vshrl.u32 %v336_v50, 16  ;;  %v2388_v58 = vld [vmem:[%s2865_s11 + $0x28] sm:$0xe] }
  0x28   : > { %473 = vrot.lane.b32.xlu0 %v422_v37, %s2764_s13  ;;  %v745_v48 = vrot.slane %v744_v43, 4  ;;  %v730_v52 = vor.u32 %v729_v45, %v726_v44  ;;  %v371_v56 = vshll.u32 %v336_v50, 16  ;;  %v2389_v59 = vld [vmem:[%s2865_s11 + $0x2c] sm:$0x1]  ;;  %v735_v61 = vrot.slane %v733_v53, 5 }
  0x29   : > { %575 = vrot.lane.b32.xlu1 %v556_v38, %s2763_s12  ;;  %v436_v51 = vsel %vm2886_vm5, %v431_v42, %v435_v41  ;;  %v334_v62 = vld [vmem:[%s2865_s11] sm:$0xf]  ;;  %v370_v63 = vrot.slane %v368_v55, 4  ;;  %v2400_v2 = vrot.slane %v2388_v58, 9  ;;  %v862_v3 = vrot.slane %v2389_v59, 5 }
  0x2a   : > { %v750_v54 = vsel %vm2886_vm5, %v745_v48, %v749_v49  ;;  %v731_v60 = vrot.slane %v730_v52, 4  ;;  %v373_v1 = vrot.slane %v371_v56, 5  ;;  %v337_v4 = vld [vmem:[%s2865_s11 + $0xc] sm:$0x1]  ;;  %v354_v6 = vshrl.u32 %v334_v62, 16 }
  0x2b   : > { %v357_v7 = vshll.u32 %v334_v62, 16  ;;  %v2390_v8 = vld [vmem:[%s2865_s11 + $0x30] sm:$0xe]  ;;  %v2391_v9 = vld [vmem:[%s2865_s11 + $0x34] sm:$0x1]  ;;  %v377_v12 = vshll.u32 %v337_v4, 16  ;;  %v863_v13 = vsel %vm2867_vm2, %v2400_v2, %v862_v3 }
  0x2c   : > { %v736_v5 = vsel %vm2886_vm5, %v731_v60, %v735_v61  ;;  %v2408_v10 = vld [vmem:[%s2865_s11 + $0x30] sm:$0xf]  ;;  %v374_v11 = vor.u32 %v373_v1, %v370_v63  ;;  %v2401_v14 = vrot.slane %v2390_v8, 9  ;;  %v866_v15 = vrot.slane %v2391_v9, 5  ;;  %v335_v16 = vld [vmem:[%s2865_s11 + $0x4] sm:$0x1] }
  0x2d   : > { %628 = vrot.lane.b32.xlu2 %v2361_v57, %s2765_s14  ;;  %v356_v17 = vrot.slane %v354_v6, 4  ;;  %v359_v18 = vrot.slane %v357_v7, 5  ;;  %v2422_v19 = vld [vmem:[%s2865_s11 + $0x38] sm:$0xf]  ;;  %v379_v21 = vrot.slane %v377_v12, 5  ;;  %v363_v22 = vshll.u32 %v335_v16, 16 }
  0x2e   : > { %v375_v20 = vrot.slane %v374_v11, 4  ;;  %v867_v23 = vsel %vm2867_vm2, %v2401_v14, %v866_v15  ;;  %v1049_v26 = vshrl.u32 %v2422_v19, 16  ;;  %v1052_v27 = vshll.u32 %v2422_v19, 16  ;;  %v2420_v28 = vld [vmem:[%s2865_s11 + $0x30] sm:$0xf] }
  0x2f   : > { %v360_v24 = vor.u32 %v359_v18, %v356_v17  ;;  %v1035_v29 = vshrl.u32 %v2420_v28, 16  ;;  %v1038_v30 = vshll.u32 %v2420_v28, 16  ;;  %v498_v32 = vld [vmem:[%s2865_s11] sm:$0xe]  ;;  %v499_v33 = vld [vmem:[%s2865_s11 + $0x4] sm:$0x1] }
  0x30   : > { %475 = vrot.lane.b32.xlu0 %v436_v51, %s2764_s13  ;;  %v380_v31 = vsel %vm2886_vm5, %v375_v20, %v379_v21  ;;  %v2409_v34 = vld [vmem:[%s2865_s11 + $0x38] sm:$0xf]  ;;  %v365_v35 = vrot.slane %v363_v22, 5  ;;  %v2421_v36 = vld [vmem:[%s2865_s11 + $0x34] sm:$0x1]  ;;  %v1051_v40 = vrot.slane %v1049_v26, 4 }
  0x31   : > { %789 = vrot.lane.b32.xlu1 %v750_v54, %s2766_s15  ;;  %v1037_v37 = vrot.slane %v1035_v29, 4  ;;  %v1040_v38 = vrot.slane %v1038_v30, 5  ;;  %v361_v39 = vrot.slane %v360_v24, 4  ;;  %v1054_v41 = vrot.slane %v1052_v27, 5  ;;  %v2423_v43 = vld [vmem:[%s2865_s11 + $0x3c] sm:$0x1] }
  0x32   : > { %v1044_v42 = vshll.u32 %v2421_v36, 16  ;;  %v2348_v45 = vrot.slane %v498_v32, 9  ;;  %v535_v46 = vrot.slane %v499_v33, 5  ;;  %v1058_v51 = vshll.u32 %v2423_v43, 16  ;;  %v500_v54 = vld [vmem:[%s2865_s11 + $0x8] sm:$0xe] }
  0x33   : > { %v1041_v44 = vor.u32 %v1040_v38, %v1037_v37  ;;  %v366_v49 = vsel %vm2886_vm5, %v361_v39, %v365_v35  ;;  %v1055_v50 = vor.u32 %v1054_v41, %v1051_v40  ;;  %v501_v55 = vld [vmem:[%s2865_s11 + $0xc] sm:$0x1]  ;;  %v2366_v58 = vld [vmem:[%s2865_s11 + $0x10] sm:$0xf]  ;;  %v2349_v59 = vrot.slane %v500_v54, 9 }
  0x34   : > { %v1046_v47 = vrot.slane %v1044_v42, 5  ;;  %v536_v52 = vsel %vm2867_vm2, %v2348_v45, %v535_v46  ;;  %v1060_v57 = vrot.slane %v1058_v51, 5  ;;  %v539_v60 = vrot.slane %v501_v55, 5  ;;  %v2364_v1 = vld [vmem:[%s2865_s11 + $0x8] sm:$0xf] }
  0x35   : > { %884 = vrot.lane.b32.xlu2 %v863_v13, %s2768_s17  ;;  %v1042_v48 = vrot.slane %v1041_v44, 4  ;;  %v1056_v56 = vrot.slane %v1055_v50, 4  ;;  %v682_v62 = vshrl.u32 %v2366_v58, 16  ;;  %v685_v63 = vshll.u32 %v2366_v58, 16  ;;  %v2357_v4 = vld [vmem:[%s2865_s11 + $0x10] sm:$0xf] }
  0x36   : > { %v668_v2 = vshrl.u32 %v2364_v1, 16  ;;  %v671_v3 = vshll.u32 %v2364_v1, 16  ;;  %v540_v6 = vsel %vm2867_vm2, %v2349_v59, %v539_v60  ;;  %v2381_v7 = vld [vmem:[%s2865_s11 + $0xc] sm:$0x1]  ;;  %v2367_v14 = vld [vmem:[%s2865_s11 + $0x14] sm:$0x1] }
  0x37   : > { %v1047_v53 = vsel %vm2886_vm5, %v1042_v48, %v1046_v47  ;;  %v1061_v61 = vsel %vm2886_vm5, %v1056_v56, %v1060_v57  ;;  %v2365_v8 = vld [vmem:[%s2865_s11 + $0xc] sm:$0x1]  ;;  %v684_v11 = vrot.slane %v682_v62, 4  ;;  %v687_v12 = vrot.slane %v685_v63, 5  ;;  %v346_v19 = vld [vmem:[%s2865_s11 + $0x30] sm:$0xf] }
  0x38   : > { %787 = vrot.lane.b32.xlu0 %v736_v5, %s2766_s15  ;;  %v2380_v5 = vld [vmem:[%s2865_s11 + $0x8] sm:$0xe]  ;;  %v670_v9 = vrot.slane %v668_v2, 4  ;;  %v677_v13 = vshll.u32 %v2365_v8, 16  ;;  %v846_v17 = vrot.slane %v2381_v7, 5  ;;  %v438_v26 = vshrl.u32 %v346_v19, 16 }
  0x39   : > { %937 = vrot.lane.b32.xlu1 %v2408_v10, %s2767_s16  ;;  %v673_v10 = vrot.slane %v671_v3, 5  ;;  %v2396_v16 = vrot.slane %v2380_v5, 9  ;;  %v2356_v21 = vld [vmem:[%s2865_s11 + $0x8] sm:$0xf]  ;;  %v688_v22 = vor.u32 %v687_v12, %v684_v11  ;;  %v441_v27 = vshll.u32 %v346_v19, 16 }
  0x3a   : > { %v679_v18 = vrot.slane %v677_v13, 5  ;;  %v2382_v29 = vld [vmem:[%s2865_s11 + $0x10] sm:$0xe]  ;;  %v2383_v30 = vld [vmem:[%s2865_s11 + $0x14] sm:$0x1] }
  0x3b   : > { %v674_v15 = vor.u32 %v673_v10, %v670_v9  ;;  %v847_v24 = vsel %vm2867_vm2, %v2396_v16, %v846_v17  ;;  %v2414_v33 = vld [vmem:[%s2865_s11 + $0x18] sm:$0xf]  ;;  %v443_v35 = vrot.slane %v441_v27, 5  ;;  %v2397_v36 = vrot.slane %v2382_v29, 9  ;;  %v347_v38 = vld [vmem:[%s2865_s11 + $0x34] sm:$0x1] }
  0x3c   : > { %v850_v37 = vrot.slane %v2383_v30, 5  ;;  %v993_v40 = vshrl.u32 %v2414_v33, 16  ;;  %v996_v41 = vshll.u32 %v2414_v33, 16  ;;  %v2412_v42 = vld [vmem:[%s2865_s11 + $0x10] sm:$0xf]  ;;  %v447_v47 = vshll.u32 %v347_v38, 16 }
  0x3d   : > { %939 = vrot.lane.b32.xlu2 %v2409_v34, %s2767_s16  ;;  %v675_v20 = vrot.slane %v674_v15, 4  ;;  %v440_v34 = vrot.slane %v438_v26, 4  ;;  %v979_v43 = vshrl.u32 %v2412_v42, 16  ;;  %v982_v44 = vshll.u32 %v2412_v42, 16  ;;  %v2405_v45 = vld [vmem:[%s2865_s11 + $0x18] sm:$0xf] }
  0x3e   : > { %v851_v48 = vsel %vm2867_vm2, %v2397_v36, %v850_v37  ;;  %v2415_v55 = vld [vmem:[%s2865_s11 + $0x1c] sm:$0x1]  ;;  %v449_v58 = vrot.slane %v447_v47, 5  ;;  %v2376_v60 = vld [vmem:[%s2865_s11 + $0x38] sm:$0xf] }
  0x3f   : > { %v680_v28 = vsel %vm2886_vm5, %v675_v20, %v679_v18  ;;  %v444_v46 = vor.u32 %v443_v35, %v440_v34  ;;  %v981_v50 = vrot.slane %v979_v43, 4  ;;  %v984_v51 = vrot.slane %v982_v44, 5  ;;  %v2404_v62 = vld [vmem:[%s2865_s11 + $0x10] sm:$0xf]  ;;  %v348_v2 = vld [vmem:[%s2865_s11 + $0x38] sm:$0xf] }
  0x40   : > { %886 = vrot.lane.b32.xlu0 %v867_v23, %s2768_s17  ;;  %v691_v23 = vshll.u32 %v2367_v14, 16  ;;  %v1002_v1 = vshll.u32 %v2415_v55, 16  ;;  %v452_v3 = vshrl.u32 %v348_v2, 16  ;;  %v752_v7 = vshrl.u32 %v2376_v60, 16  ;;  %v513_v10 = vld [vmem:[%s2865_s11 + $0x3c] sm:$0x1] }
  0x41   : > { %467 = vrot.lane.b32.xlu1 %v380_v31, %s2764_s13  ;;  %v689_v31 = vrot.slane %v688_v22, 4  ;;  %v985_v56 = vor.u32 %v984_v51, %v981_v50  ;;  %v445_v57 = vrot.slane %v444_v46, 4  ;;  %v755_v8 = vshll.u32 %v2376_v60, 16  ;;  %v349_v11 = vld [vmem:[%s2865_s11 + $0x3c] sm:$0x1] }
  0x42   : > { %v693_v32 = vrot.slane %v691_v23, 5  ;;  %v454_v12 = vrot.slane %v452_v3, 4  ;;  %v1004_v15 = vrot.slane %v1002_v1, 5  ;;  %v461_v16 = vshll.u32 %v349_v11, 16  ;;  %v2377_v23 = vld [vmem:[%s2865_s11 + $0x3c] sm:$0x1] }
  0x43   : > { %v450_v5 = vsel %vm2886_vm5, %v445_v57, %v449_v58  ;;  %v563_v19 = vrot.slane %v513_v10, 5  ;;  %v754_v20 = vrot.slane %v752_v7, 4  ;;  %v510_v27 = vld [vmem:[%s2865_s11 + $0x30] sm:$0xe]  ;;  %v2395_v44 = vld [vmem:[%s2865_s11 + $0x44] sm:$0x1] }
  0x44   : > { %v694_v39 = vsel %vm2886_vm5, %v689_v31, %v693_v32  ;;  %v463_v22 = vrot.slane %v461_v16, 5  ;;  %v761_v31 = vshll.u32 %v2377_v23, 16  ;;  %v2354_v33 = vrot.slane %v510_v27, 9  ;;  %v338_v37 = vld [vmem:[%s2865_s11 + $0x10] sm:$0xf] }
  0x45   : > { %1098 = vrot.lane.b32.xlu2 %v1047_v53, %s2769_s24  ;;  %v998_v53 = vrot.slane %v996_v41, 5  ;;  %v385_v46 = vshll.u32 %v338_v37, 16  ;;  %v2362_v47 = vld [vmem:[%s2865_s11 + $0x38] sm:$0xf]  ;;  %v2379_v50 = vld [vmem:[%s2865_s11 + $0x44] sm:$0x1] }
  0x46   : > { %v763_v36 = vrot.slane %v761_v31, 5  ;;  %v339_v55 = vld [vmem:[%s2865_s11 + $0x14] sm:$0x1]  ;;  %v2392_v1 = vld [vmem:[%s2865_s11 + $0x38] sm:$0xe] }
  0x47   : > { %v387_v57 = vrot.slane %v385_v46, 5  ;;  %v391_v3 = vshll.u32 %v339_v55, 16  ;;  %v322_v10 = vld [vmem:[%s2865_s11 + $0x28] sm:$0xf]  ;;  %v2424_v11 = vld [vmem:[%s2865_s11 + $0x40] sm:$0xf] }
  0x48   : > { %465 = vrot.lane.b32.xlu0 %v366_v49, %s2764_s13  ;;  %v2413_v49 = vld [vmem:[%s2865_s11 + $0x14] sm:$0x1]  ;;  %331 = vst.msk [vmem:[#allocation2 + $0x28] sm:$0xf] %vm4081_vm6, %v322_v10  ;;  %v2427_v16 = vld [vmem:[%s2865_s11 + $0x4c] sm:$0x1] }
  0x49   : > { %565 = vrot.lane.b32.xlu1 %v536_v52, %s2763_s12  ;;  %v995_v52 = vrot.slane %v993_v40, 4  ;;  %v988_v54 = vshll.u32 %v2413_v49, 16  ;;  %v2394_v40 = vld [vmem:[%s2865_s11 + $0x40] sm:$0xe]  ;;  %v1086_v27 = vshll.u32 %v2427_v16, 16 }
  0x4a   : > { %v321_v49 = vld [vmem:[%s2865_s11 + $0x20] sm:$0xf]  ;;  %v2425_v31 = vld [vmem:[%s2865_s11 + $0x44] sm:$0x1]  ;;  %v505_v10 = vld [vmem:[%s2865_s11 + $0x1c] sm:$0x1] }
  0x4b   : > { %v990_v59 = vrot.slane %v988_v54, 5  ;;  %v999_v63 = vor.u32 %v998_v53, %v995_v52  ;;  %v2403_v52 = vrot.slane %v2394_v40, 9  ;;  %v874_v53 = vrot.slane %v2395_v44, 5  ;;  %330 = vst.msk [vmem:[#allocation2 + $0x20] sm:$0xf] %vm4081_vm6, %v321_v49  ;;  %v2563_v40 = vld [vmem:[%s4075_s1 + $0x38] sm:$0xff] }
  0x4c   : > { %v775_v54 = vshll.u32 %v2379_v50, 16  ;;  %2567 = vmatpush.bf16.msra.mxu2 %v2563_v40  ;;  %1332 = vmatpush.bf16.msra.mxu0 %v2563_v40  ;;  %v2428_v25 = vld [vmem:[%s2865_s11 + $0x10] sm:$0xe] }
  0x4d   : > { %567 = vrot.lane.b32.xlu2 %v540_v6, %s2763_s12  ;;  %v512_v6 = vld [vmem:[%s2865_s11 + $0x38] sm:$0xe]  ;;  %v1000_v14 = vrot.slane %v999_v63, 4  ;;  %v875_v63 = vsel %vm2867_vm2, %v2403_v52, %v874_v53  ;;  %v2562_v53 = vld [vmem:[%s4075_s1 + $0x30] sm:$0xff] }
  0x4e   : > { %v2355_v17 = vrot.slane %v512_v6, 9  ;;  %v777_v60 = vrot.slane %v775_v54, 5  ;;  %v2433_v54 = vld [vmem:[%s2865_s11 + $0x24] sm:$0x1] }
  0x4f   : > { %v1005_v26 = vsel %vm2886_vm5, %v1000_v14, %v1004_v15 }
  0x50   : > { %1100 = vrot.lane.b32.xlu0 %v1061_v61, %s2769_s24  ;;  %v986_v61 = vrot.slane %v985_v56, 4  ;;  %v564_v29 = vsel %vm2867_vm2, %v2355_v17, %v563_v19  ;;  %v1063_v19 = vshrl.u32 %v2424_v11, 16  ;;  %2568 = vmatpush.bf16.msra.mxu2 %v2562_v53 }
  0x51   : > { %620 = vrot.lane.b32.xlu1 %v2357_v4, %s2765_s14  ;;  %v455_v4 = vshll.u32 %v348_v2, 16  ;;  %v2393_v2 = vld [vmem:[%s2865_s11 + $0x3c] sm:$0x1]  ;;  %1333 = vmatpush.bf16.msra.mxu0 %v2562_v53 }
  0x52   : > { %v991_v9 = vsel %vm2886_vm5, %v986_v61, %v990_v59  ;;  %v2426_v59 = vld [vmem:[%s2865_s11 + $0x48] sm:$0xf]  ;;  %v2363_v61 = vld [vmem:[%s2865_s11 + $0x40] sm:$0xf] }
  0x53   : > { %v457_v13 = vrot.slane %v455_v4, 5  ;;  %v1080_v6 = vshll.u32 %v2426_v59, 16 }
  0x55   : > { %779 = vrot.lane.b32.xlu2 %v680_v28, %s2766_s15  ;;  %v458_v18 = vor.u32 %v457_v13, %v454_v12  ;;  %v511_v28 = vld [vmem:[%s2865_s11 + $0x34] sm:$0x1]  ;;  %v393_v13 = vrot.slane %v391_v3, 5  ;;  %v1082_v15 = vrot.slane %v1080_v6, 5 }
  0x56   : > { %v559_v34 = vrot.slane %v511_v28, 5  ;;  %v2410_v28 = vld [vmem:[%s2865_s11 + $0x40] sm:$0xf] }
  0x58   : > { %618 = vrot.lane.b32.xlu0 %v2356_v21, %s2765_s14  ;;  %v757_v21 = vrot.slane %v755_v8, 5  ;;  %v560_v38 = vsel %vm2867_vm2, %v2354_v33, %v559_v34  ;;  %v2402_v8 = vrot.slane %v2392_v1, 9  ;;  %v341_v34 = vld [vmem:[%s2865_s11 + $0x1c] sm:$0x1]  ;;  %v502_v1 = vld [vmem:[%s2865_s11 + $0x10] sm:$0xe] }
  0x59   : > { %876 = vrot.lane.b32.xlu1 %v847_v24, %s2768_s17  ;;  %v459_v24 = vrot.slane %v458_v18, 4 }
  0x5a   : > { %v758_v30 = vor.u32 %v757_v21, %v754_v20  ;;  %v1066_v20 = vshll.u32 %v2424_v11, 16  ;;  %v340_v21 = vld [vmem:[%s2865_s11 + $0x18] sm:$0xf] }
  0x5b   : > { %v464_v32 = vsel %vm2886_vm5, %v459_v24, %v463_v22  ;;  %v396_v22 = vshrl.u32 %v340_v21, 16  ;;  %v399_v23 = vshll.u32 %v340_v21, 16 }
  0x5c   : > { %v759_v35 = vrot.slane %v758_v30, 4  ;;  %v1068_v33 = vrot.slane %v1066_v20, 5 }
  0x5d   : > { %878 = vrot.lane.b32.xlu2 %v851_v48, %s2768_s17  ;;  %v401_v30 = vrot.slane %v399_v23, 5  ;;  %v547_v23 = vrot.slane %v505_v10, 5 }
  0x5e   : > { %v764_v43 = vsel %vm2886_vm5, %v759_v35, %v763_v36  ;;  %v405_v36 = vshll.u32 %v341_v34, 16 }
  0x60   : > { %781 = vrot.lane.b32.xlu0 %v694_v39, %s2766_s15  ;;  %v2378_v39 = vld [vmem:[%s2865_s11 + $0x40] sm:$0xf]  ;;  %v407_v44 = vrot.slane %v405_v36, 5  ;;  %v2559_v36 = vld [vmem:[%s4075_s1 + $0x18] sm:$0xff] }
  0x61   : > { %931 = vrot.lane.b32.xlu1 %v2405_v45, %s2767_s16  ;;  %v766_v41 = vshrl.u32 %v2378_v39, 16  ;;  %v769_v42 = vshll.u32 %v2378_v39, 16  ;;  %v382_v45 = vshrl.u32 %v338_v37, 16  ;;  %v2370_v39 = vld [vmem:[%s2865_s11 + $0x20] sm:$0xf] }
  0x63   : > { %v768_v48 = vrot.slane %v766_v41, 4  ;;  %v771_v51 = vrot.slane %v769_v42, 5  ;;  %v384_v56 = vrot.slane %v382_v45, 4  ;;  %v1072_v41 = vshll.u32 %v2425_v31, 16  ;;  %v2411_v45 = vld [vmem:[%s2865_s11 + $0x48] sm:$0xf] }
  0x65   : > { %1090 = vrot.lane.b32.xlu2 %v991_v9, %s2769_s24  ;;  %v772_v58 = vor.u32 %v771_v51, %v768_v48  ;;  %v388_v4 = vor.u32 %v387_v57, %v384_v56  ;;  %v870_v9 = vrot.slane %v2393_v2, 5  ;;  %v713_v48 = vshll.u32 %v2370_v39, 16  ;;  %v2432_v51 = vld [vmem:[%s2865_s11 + $0x20] sm:$0xe]  ;;  %v3074_v56 = vld [vmem:[%s2865_s11 + $0x18] sm:$0xe] }
  0x66   : > { %v1074_v52 = vrot.slane %v1072_v41, 5  ;;  %v2368_v57 = vld [vmem:[%s2865_s11 + $0x18] sm:$0xf]  ;;  %v503_v2 = vld [vmem:[%s2865_s11 + $0x14] sm:$0x1] }
  0x67   : > { %v389_v12 = vrot.slane %v388_v4, 4  ;;  %v871_v18 = vsel %vm2867_vm2, %v2402_v8, %v870_v9  ;;  %v543_v6 = vrot.slane %v503_v2, 5  ;;  %v2435_v8 = vld [vmem:[%s2865_s11 + $0x2c] sm:$0x1]  ;;  %v696_v11 = vshrl.u32 %v2368_v57, 16 }
  0x68   : > { %929 = vrot.lane.b32.xlu0 %v2404_v62, %s2767_s16  ;;  %v773_v62 = vrot.slane %v772_v58, 4  ;;  %v2446_v58 = vrot.slane %v2432_v51, 9  ;;  %v2557_v2 = vld [vmem:[%s4075_s1 + $0x8] sm:$0xff] }
  0x69   : > { %477 = vrot.lane.b32.xlu1 %v450_v5, %s2764_s13  ;;  %v1077_v5 = vshrl.u32 %v2426_v59, 16  ;;  %v394_v24 = vsel %vm2886_vm5, %v389_v12, %v393_v13  ;;  %v2371_v59 = vld [vmem:[%s2865_s11 + $0x24] sm:$0x1]  ;;  %v699_v12 = vshll.u32 %v2368_v57, 16 }
  0x6a   : > { %v778_v7 = vsel %vm2886_vm5, %v773_v62, %v777_v60  ;;  %v1165_v62 = vrot.slane %v2433_v54, 5 }
  0x6b   : > { %v1079_v14 = vrot.slane %v1077_v5, 4  ;;  %v2350_v5 = vrot.slane %v502_v1, 9 }
  0x6c   : > { %v1166_v13 = vsel %vm2867_vm2, %v2446_v58, %v1165_v62 }
  0x6d   : > { %479 = vrot.lane.b32.xlu2 %v464_v32, %s2764_s13  ;;  %v1065_v32 = vrot.slane %v1063_v19, 4  ;;  %1197 = vst.msk [vmem:[#allocation2 + $0x14] sm:$0xf] %vm4081_vm6, %v1166_v13  ;;  %v2369_v19 = vld [vmem:[%s2865_s11 + $0x1c] sm:$0x1]  ;;  %v544_v20 = vsel %vm2867_vm2, %v2350_v5, %v543_v6 }
  0x6f   : > { %v1069_v46 = vor.u32 %v1068_v33, %v1065_v32  ;;  %v2418_v32 = vld [vmem:[%s2865_s11 + $0x28] sm:$0xf] }
  0x70   : > { %1092 = vrot.lane.b32.xlu0 %v1005_v26, %s2769_s24  ;;  %v1083_v26 = vor.u32 %v1082_v15, %v1079_v14  ;;  %v2358_v14 = vld [vmem:[%s2865_s11 + $0x18] sm:$0xf]  ;;  %v2351_v15 = vrot.slane %v3074_v56, 9 }
  0x71   : > { %579 = vrot.lane.b32.xlu1 %v564_v29, %s2763_s12  ;;  %v398_v29 = vrot.slane %v396_v22, 4  ;;  %v1070_v55 = vrot.slane %v1069_v46, 4  ;;  %v1169_v22 = vrot.slane %v2435_v8, 5  ;;  %v2359_v46 = vld [vmem:[%s2865_s11 + $0x20] sm:$0xf] }
  0x72   : > { %v1084_v37 = vrot.slane %v1083_v26, 4  ;;  %v2564_v26 = vld [vmem:[%s4075_s1 + $0x40] sm:$0xff]  ;;  %v548_v40 = vsel %vm2867_vm2, %v2351_v15, %v547_v23  ;;  %v2385_v8 = vld [vmem:[%s2865_s11 + $0x1c] sm:$0x1] }
  0x73   : > { %v402_v35 = vor.u32 %v401_v30, %v398_v29  ;;  %v1075_v9 = vsel %vm2886_vm5, %v1070_v55, %v1074_v52  ;;  %v701_v29 = vrot.slane %v699_v12, 5  ;;  %v317_v30 = vld [vmem:[%s2865_s11] sm:$0xf]  ;;  %2575 = vmatpush.bf16.msra.mxu3 %v2564_v26  ;;  %1368 = vmatpush.bf16.msra.mxu1 %v2564_v26  ;;  %v2439_v52 = vld [vmem:[%s2865_s11 + $0x3c] sm:$0x1]  ;;  %v854_v13 = vrot.slane %v2385_v8, 5 }
  0x74   : > { %326 = vst.msk [vmem:[#allocation2] sm:$0xf] %vm4081_vm6, %v317_v30  ;;  %v1177_v57 = vrot.slane %v2439_v52, 5  ;;  %v2550_v62 = vld [vmem:[#allocation2 + $0x14] sm:$0xf] }
  0x75   : > { %630 = vrot.lane.b32.xlu2 %v2362_v47, %s2765_s14  ;;  %v710_v47 = vshrl.u32 %v2370_v39, 16  ;;  %v2387_v15 = vld [vmem:[%s2865_s11 + $0x24] sm:$0x1]  ;;  %v2431_v52 = vld [vmem:[%s2865_s11 + $0x1c] sm:$0x1] }
  0x76   : > { %v858_v23 = vrot.slane %v2387_v15, 5 }
  0x77   : > { %v712_v60 = vrot.slane %v710_v47, 4  ;;  %v2558_v47 = vld [vmem:[%s4075_s1 + $0x10] sm:$0xff] }
  0x78   : > { %577 = vrot.lane.b32.xlu0 %v560_v38, %s2763_s12  ;;  %v1088_v38 = vrot.slane %v1086_v27, 5  ;;  %v318_v27 = vld [vmem:[%s2865_s11 + $0x8] sm:$0xf] }
  0x79   : > { %791 = vrot.lane.b32.xlu1 %v764_v43, %s2766_s15  ;;  %v403_v43 = vrot.slane %v402_v35, 4  ;;  %327 = vst.msk [vmem:[#allocation2 + $0x8] sm:$0xf] %vm4081_vm6, %v318_v27 }
  0x7a   : > { %v1089_v49 = vsel %vm2886_vm5, %v1084_v37, %v1088_v38  ;;  %v705_v38 = vshll.u32 %v2369_v19, 16 }
  0x7b   : > { %v408_v50 = vsel %vm2886_vm5, %v403_v43, %v407_v44  ;;  %v1021_v43 = vshrl.u32 %v2418_v32, 16  ;;  %v3128_v44 = vld [vmem:[%s2865_s11 + $0x20] sm:$0xf] }
  0x7c   : > { %v707_v51 = vrot.slane %v705_v38, 5  ;;  %v1010_v6 = vshll.u32 %v3128_v44, 16 }
  0x7d   : > { %793 = vrot.lane.b32.xlu2 %v778_v7, %s2766_s15  ;;  %v2434_v7 = vld [vmem:[%s2865_s11 + $0x28] sm:$0xe] }
  0x7e   : > { %v2447_v21 = vrot.slane %v2434_v7, 9  ;;  %v1012_v26 = vrot.slane %v1010_v6, 5 }
  0x7f   : > { %v3043_v17 = vpop.permute.xlu2 %626 }
  0x80   : > { %632 = vrot.lane.b32.xlu0 %v2363_v61, %s2765_s14  ;;  %v715_v61 = vrot.slane %v713_v48, 5  ;;  %v1170_v35 = vsel %vm2867_vm2, %v2447_v21, %v1169_v22 }
  0x81   : > { %890 = vrot.lane.b32.xlu1 %v875_v63, %s2768_s17  ;;  %v2561_v63 = vld [vmem:[%s4075_s1 + $0x28] sm:$0xff]  ;;  %1198 = vst.msk [vmem:[#allocation2 + $0x1c] sm:$0xf] %vm4081_vm6, %v1170_v35 }
  0x82   : > { %v716_v16 = vor.u32 %v715_v61, %v712_v60  ;;  %2569 = vmatpush.bf16.msra.mxu2 %v2561_v63  ;;  %1334 = vmatpush.bf16.msra.mxu0 %v2561_v63  ;;  %v1023_v60 = vrot.slane %v1021_v43, 4  ;;  %v1007_v61 = vshrl.u32 %v3128_v44, 16  ;;  %v2386_v63 = vld [vmem:[%s2865_s11 + $0x20] sm:$0xe] }
  0x83   : > { %v2399_v22 = vrot.slane %v2386_v63, 9 }
  0x84   : > { %v717_v33 = vrot.slane %v716_v16, 4 }
  0x85   : > { %941 = vrot.lane.b32.xlu2 %v2410_v28, %s2767_s16  ;;  %v698_v28 = vrot.slane %v696_v11, 4 }
  0x87   : > { %v3060_v42 = vpop.permute.xlu2 %628  ;;  %v702_v41 = vor.u32 %v701_v29, %v698_v28  ;;  %v2417_v28 = vld [vmem:[%s2865_s11 + $0x24] sm:$0x1] }
  0x88   : > { %888 = vrot.lane.b32.xlu0 %v871_v18, %s2768_s17  ;;  %v719_v18 = vshll.u32 %v2371_v59, 16  ;;  %v2419_v59 = vld [vmem:[%s2865_s11 + $0x2c] sm:$0x1]  ;;  %v2464_v12 = vld [vmem:[#allocation2 + $0x18] sm:$0xf0]  ;;  %v1016_v35 = vshll.u32 %v2417_v28, 16 }
  0x89   : > { %469 = vrot.lane.b32.xlu1 %v394_v24, %s2764_s13  ;;  %v2560_v24 = vld [vmem:[%s4075_s1 + $0x20] sm:$0xff]  ;;  %v703_v55 = vrot.slane %v702_v41, 4  ;;  %v2467_v16 = vor.u32 %v2550_v62, %v2464_v12 }
  0x8a   : > { %v721_v34 = vrot.slane %v719_v18, 5  ;;  %2570 = vmatpush.bf16.msra.mxu2 %v2560_v24  ;;  %1335 = vmatpush.bf16.msra.mxu0 %v2560_v24  ;;  %v2406_v18 = vld [vmem:[%s2865_s11 + $0x20] sm:$0xf]  ;;  %v1009_v24 = vrot.slane %v1007_v61, 4 }
  0x8b   : > { %v708_v11 = vsel %vm2886_vm5, %v703_v55, %v707_v51  ;;  %2521 = vmatmul.msk.bf16.vlgmr.msra.gmra.mxu3 %vm4080_vm11, %v2467_v16  ;;  %v2430_v51 = vld [vmem:[%s2865_s11 + $0x18] sm:$0xe]  ;;  %v319_v16 = vld [vmem:[%s2865_s11 + $0x10] sm:$0xf] }
  0x8c   : > { %v722_v48 = vsel %vm2886_vm5, %v717_v33, %v721_v34  ;;  %v859_v33 = vsel %vm2867_vm2, %v2399_v22, %v858_v23  ;;  %v1013_v34 = vor.u32 %v1012_v26, %v1009_v24  ;;  %v2445_v55 = vrot.slane %v2430_v51, 9  ;;  %328 = vst.msk [vmem:[#allocation2 + $0x10] sm:$0xf] %vm4081_vm6, %v319_v16  ;;  %v2441_v22 = vld [vmem:[%s2865_s11 + $0x44] sm:$0x1] }
  0x8d   : > { %471 = vrot.lane.b32.xlu2 %v408_v50, %s2764_s13  ;;  %v2437_v50 = vld [vmem:[%s2865_s11 + $0x34] sm:$0x1]  ;;  %v2442_v23 = vld [vmem:[%s2865_s11 + $0x48] sm:$0xe]  ;;  %v2443_v26 = vld [vmem:[%s2865_s11 + $0x4c] sm:$0x1]  ;;  %s2150_s13 = scalar_lea.hbm %s4078_s4, %s2565_s9 }
  0x8e   : > { %2571 = vmatpush.bf16.msra.mxu2 %v2559_v36  ;;  %v1173_v54 = vrot.slane %v2437_v50, 5  ;;  %1336 = vmatpush.bf16.msra.mxu0 %v2559_v36  ;;  %v1014_v38 = vrot.slane %v1013_v34, 4  ;;  %v323_v50 = vld [vmem:[%s2865_s11 + $0x30] sm:$0xf]  ;;  %v1181_v28 = vrot.slane %v2441_v22, 5  ;;  %s2131_s9 = scalar_lea.sflag [#allocation4], %s3872_s25 }
  0x8f   : > { %v3085_v4 = vpop.permute.xlu2 %884  ;;  %332 = vst.msk [vmem:[#allocation2 + $0x30] sm:$0xf] %vm4081_vm6, %v323_v50  ;;  %v2771_v16 = vmov 842150450  }
  0x90   : > { %943 = vrot.lane.b32.xlu0 %v2411_v45, %s2767_s16  ;;  %v1024_v45 = vshll.u32 %v2418_v32, 16 }
  0x91   : > { %1104 = vrot.lane.b32.xlu1 %v1089_v49, %s2769_s24  ;;  %v2436_v49 = vld [vmem:[%s2865_s11 + $0x30] sm:$0xe] }
  0x92   : > { %v2448_v53 = vrot.slane %v2436_v49, 9  ;;  %v1026_v1 = vrot.slane %v1024_v45, 5  ;;  %2572 = vmatpush.bf16.msra.mxu2 %v2558_v47  ;;  %1337 = vmatpush.bf16.msra.mxu0 %v2558_v47 }
  0x93   : > { %v574_v3 = vpop.permute.xlu1 %573 }
  0x94   : > { %v1174_v10 = vsel %vm2867_vm2, %v2448_v53, %v1173_v54  ;;  %v1027_v19 = vor.u32 %v1026_v1, %v1023_v60  ;;  %v2444_v53 = vrot.slane %v2428_v25, 9 }
  0x95   : > { %569 = vrot.lane.b32.xlu2 %v544_v20, %s2763_s12  ;;  %v1030_v20 = vshll.u32 %v2419_v59, 16  ;;  %1199 = vst.msk [vmem:[#allocation2 + $0x24] sm:$0xf] %vm4081_vm6, %v1174_v10 }
  0x96   : > { %2573 = vmatpush.bf16.msra.mxu2 %v2557_v2  ;;  %1338 = vmatpush.bf16.msra.mxu0 %v2557_v2  ;;  %v1028_v29 = vrot.slane %v1027_v19, 4  ;;  %v320_v19 = vld [vmem:[%s2865_s11 + $0x18] sm:$0xf] }
  0x97   : > { %v3121_v39 = vpop.permute.xlu2 %939  ;;  %v1032_v30 = vrot.slane %v1030_v20, 5  ;;  %329 = vst.msk [vmem:[#allocation2 + $0x18] sm:$0xf] %vm4081_vm6, %v320_v19 }
  0x98   : > { %1102 = vrot.lane.b32.xlu0 %v1075_v9, %s2769_s24 }
  0x99   : > { %622 = vrot.lane.b32.xlu1 %v2358_v14, %s2765_s14  ;;  %v1033_v36 = vsel %vm2886_vm5, %v1028_v29, %v1032_v30  ;;  %v2451_v29 = vrot.slane %v2442_v23, 9  ;;  %v1185_v30 = vrot.slane %v2443_v26, 5 }
  0x9a   : > { %v474_v31 = vpop.permute.xlu0 %473 }
  0x9b   : > { %494 = vst.msk [vmem:[#allocation2 + $0x20] sm:$0xf] %vm489_vm7, %v474_v31  ;;  %v576_v37 = vpop.permute.xlu1 %575 }
  0x9c   : > { %594 = vst.msk [vmem:[#allocation2 + $0x20] sm:$0xf] %vm589_vm8, %v574_v3  ;;  %v2384_v3 = vld [vmem:[%s2865_s11 + $0x18] sm:$0xe] }
  0x9d   : > { %647 = vst.msk [vmem:[#allocation2 + $0x20] sm:$0xf] %vm642_vm9, %v3043_v17  ;;  %v2438_v17 = vld [vmem:[%s2865_s11 + $0x38] sm:$0xe]  ;;  %624 = vrot.lane.b32.xlu2 %v2359_v46, %s2765_s14  ;;  %v2398_v9 = vrot.slane %v2384_v3, 9 }
  0x9e   : > { %v2449_v56 = vrot.slane %v2438_v17, 9  ;;  %v2429_v17 = vld [vmem:[%s2865_s11 + $0x14] sm:$0x1] }
  0x9f   : > { %v1099_v7 = vpop.permute.xlu2 %1098  ;;  %v855_v21 = vsel %vm2867_vm2, %v2398_v9, %v854_v13  ;;  %v1157_v54 = vrot.slane %v2429_v17, 5 }
  0xa0   : > { %571 = vrot.lane.b32.xlu0 %v548_v40, %s2763_s12  ;;  %v1178_v14 = vsel %vm2867_vm2, %v2449_v56, %v1177_v57  ;;  %v2552_v40 = vld [vmem:[#allocation2 + $0x24] sm:$0xf]  ;;  %v1161_v56 = vrot.slane %v2431_v52, 5  ;;  %s2566_s12 = sshll.u32 %s2753_s21, 4  ;;  %s2671_s21 = scalar_lea.hbm %s4078_s4, 16 }
  0xa1   : > { %785 = vrot.lane.b32.xlu1 %v722_v48, %s2766_s15  ;;  %1200 = vst.msk [vmem:[#allocation2 + $0x2c] sm:$0xf] %vm4081_vm6, %v1178_v14  ;;  %v1158_v59 = vsel %vm2867_vm2, %v2444_v53, %v1157_v54 }
  0xa2   : > { %v476_v58 = vpop.permute.xlu0 %475  ;;  %v1162_v62 = vsel %vm2867_vm2, %v2445_v55, %v1161_v56  ;;  %1195 = vst.msk [vmem:[#allocation2 + $0x4] sm:$0xf] %vm4081_vm6, %v1158_v59 }
  0xa3   : > { %495 = vst.msk [vmem:[#allocation2 + $0x28] sm:$0xf] %vm489_vm7, %v476_v58  ;;  %v790_v5 = vpop.permute.xlu1 %789  ;;  %v324_v58 = vld [vmem:[%s2865_s11 + $0x38] sm:$0xf] }
  0xa4   : > { %595 = vst.msk [vmem:[#allocation2 + $0x28] sm:$0xf] %vm589_vm8, %v576_v37  ;;  %v2407_v37 = vld [vmem:[%s2865_s11 + $0x28] sm:$0xf] }
  0xa5   : > { %648 = vst.msk [vmem:[#allocation2 + $0x28] sm:$0xf] %vm642_vm9, %v3060_v42  ;;  %v2556_v42 = vld [vmem:[%s4075_s1] sm:$0xff]  ;;  %880 = vrot.lane.b32.xlu2 %v855_v21, %s2768_s17 }
  0xa6   : > { %809 = vst.msk [vmem:[#allocation2 + $0x28] sm:$0xf] %vm803_vm10, %v790_v5  ;;  %2574 = vmatpush.bf16.msra.mxu2 %v2556_v42  ;;  %1339 = vmatpush.bf16.msra.mxu0 %v2556_v42  ;;  %v2440_v42 = vld [vmem:[%s2865_s11 + $0x40] sm:$0xe] }
  0xa7   : > { %v568_v32 = vpop.permute.xlu2 %567  ;;  %333 = vst.msk [vmem:[#allocation2 + $0x38] sm:$0xf] %vm4081_vm6, %v324_v58 }
  0xa8   : > { %783 = vrot.lane.b32.xlu0 %v708_v11, %s2766_s15  ;;  %v2472_v41 = vld [vmem:[#allocation2 + $0x28] sm:$0xf0]  ;;  %1196 = vst.msk [vmem:[#allocation2 + $0xc] sm:$0xf] %vm4081_vm6, %v1162_v62 }
  0xa9   : > { %933 = vrot.lane.b32.xlu1 %v2406_v18, %s2767_s16  ;;  %v2475_v45 = vor.u32 %v2552_v40, %v2472_v41 }
  0xaa   : > { %v788_v27 = vpop.permute.xlu0 %787 }
  0xab   : > { %808 = vst.msk [vmem:[#allocation2 + $0x20] sm:$0xf] %vm803_vm10, %v788_v27  ;;  %v938_v31 = vpop.permute.xlu1 %937  ;;  %2522 = vmatmul.msk.bf16.gmra.mxu3 %vm4080_vm11, %v2475_v45  ;;  %v2450_v27 = vrot.slane %v2440_v42, 9 }
  0xac   : > { %905 = vst.msk [vmem:[#allocation2 + $0x20] sm:$0xf] %vm900_vm12, %v3085_v4  ;;  %v1018_v4 = vrot.slane %v1016_v35, 5 }
  0xad   : > { %958 = vst.msk [vmem:[#allocation2 + $0x20] sm:$0xf] %vm953_vm13, %v938_v31  ;;  %935 = vrot.lane.b32.xlu2 %v2407_v37, %s2767_s16  ;;  %v1186_v37 = vsel %vm2867_vm2, %v2451_v29, %v1185_v30  ;;  %s3983_s16 = scalar_lea.hbm %s4079_s5, %s2566_s12 }
  0xae   : > { %1119 = vst.msk [vmem:[#allocation2 + $0x20] sm:$0xf] %vm1114_vm14, %v1099_v7  ;;  %v1019_v47 = vsel %vm2886_vm5, %v1014_v38, %v1018_v4  ;;  %v2548_v7 = vld [vmem:[#allocation2 + $0x4] sm:$0xf]  ;;  %s2173_s29 = sshll.u32 %s3983_s16, 4  ;;  %s4016_s29 = int_to_ptr.hbm [resolvable:$true] %s2173_s29 }
  0xaf   : > { %v780_v46 = vpop.permute.xlu2 %779  ;;  %v2456_v8 = vld [vmem:[#allocation2 + $0x8] sm:$0xf0]  ;;  %1202 = vst.msk [vmem:[#allocation2 + $0x3c] sm:$0xf] %vm4081_vm6, %v1186_v37 }
  0xb0   : > { %882 = vrot.lane.b32.xlu0 %v859_v33, %s2768_s17  ;;  %v2459_v9 = vor.u32 %v2548_v7, %v2456_v8  ;;  %v3278_v7 = vld [vmem:[%s4076_s2] ss:$0 sm:$0xff]  ;;  %s2151_s17 = sshll.u32 %s3925_s7, 4  ;;  %s4003_s17 = int_to_ptr.vmem [resolvable:$true] %s2151_s17 }
  0xb1   : > { %1096 = vrot.lane.b32.xlu1 %v1033_v36, %s2769_s24  ;;  %v1182_v36 = vsel %vm2867_vm2, %v2450_v27, %v1181_v28 }
  0xb2   : > { %v887_v43 = vpop.permute.xlu0 %886  ;;  %2520 = vmatmul.msk.bf16.vlgmr.msra.gmra.mxu1 %vm4080_vm11, %v2459_v9  ;;  %1201 = vst.msk [vmem:[#allocation2 + $0x34] sm:$0xf] %vm4081_vm6, %v1182_v36 }
  0xb3   : > { %906 = vst.msk [vmem:[#allocation2 + $0x28] sm:$0xf] %vm900_vm12, %v887_v43  ;;  %v468_v44 = vpop.permute.xlu1 %467 }
  0xb4   : > { %959 = vst.msk [vmem:[#allocation2 + $0x28] sm:$0xf] %vm953_vm13, %v3121_v39 }
  0xb5   : > { %491 = vst.msk [vmem:[#allocation2 + $0x8] sm:$0xf] %vm489_vm7, %v468_v44  ;;  %v2470_v63 = vld [vmem:[#allocation2 + $0x20] sm:$0xf] }
  0xb6   : > { %591 = vst.msk [vmem:[#allocation2 + $0x8] sm:$0xf] %vm589_vm8, %v568_v32  ;;  %v2480_v41 = vld [vmem:[#allocation2 + $0x38] sm:$0xf0] }
  0xb7   : > { %v879_v49 = vpop.permute.xlu2 %878 }
  0xb8   : > { %1094 = vrot.lane.b32.xlu0 %v1019_v47, %s2769_s24  ;;  %s2153_s24 = sshll.u32 %s2150_s13, 4  ;;  %s4005_s24 = int_to_ptr.hbm [resolvable:$true] %s2153_s24 }
  0xb9   : > { %v2554_v40 = vld [vmem:[#allocation2 + $0x34] sm:$0xf]  ;;  %s2665_s12 = sshra.s32 %s4005_s24, 4  ;;  %s2666_s12 = int_to_ptr.hbm [resolvable:$true] %s2665_s12 }
  0xba   : > { %v466_v48 = vpop.permute.xlu0 %465  ;;  %v2483_v43 = vor.u32 %v2554_v40, %v2480_v41  ;;  %s2667_s10 = scalar_lea.hbm %s2666_s12, 8  ;;  %p2672_p1 = scmp.lt.s32.totalorder %s2666_s12, %s4078_s4 }
  0xbb   : > { %490 = vst.msk [vmem:[#allocation2] sm:$0xf] %vm489_vm7, %v466_v48  ;;  %v566_v39 = vpop.permute.xlu1 %565  ;;  %p2668_p12 = scmp.ne.s32.totalorder %s2666_s12, %s2667_s10  ;;  %p2673_p2 = scmp.lt.s32.totalorder %s2671_s21, %s2667_s10 }
  0xbc   : > { %590 = vst.msk [vmem:[#allocation2] sm:$0xf] %vm589_vm8, %v566_v39  ;;  %2523 = vmatmul.msk.bf16.gmra.mxu3 %vm4080_vm11, %v2483_v43 }
  0xbd   : > { %p2669_p13 = pnand %p2668_p12, %p2845_p4  ;;  %p2674_p3 = por %p2673_p2, %p2672_p1 }
  0xbf   : > { %v1091_v61 = vpop.permute.xlu2 %1090  ;;  %p2670_p0 = pneg %p2669_p13 }
  0xc1   : > { %p2675_p5 = pnand %p2674_p3, %p2670_p0 }
  0xc2   : > { %v1101_v57 = vpop.permute.xlu0 %1100 }
  0xc3   : > { %1120 = vst.msk [vmem:[#allocation2 + $0x28] sm:$0xf] %vm1114_vm14, %v1101_v57  ;;  %v621_v60 = vpop.permute.xlu1 %620 }
  0xc4   : > { %644 = vst.msk [vmem:[#allocation2 + $0x8] sm:$0xf] %vm642_vm9, %v621_v60 }
  0xc7   : > { %v480_v6 = vpop.permute.xlu2 %479 }
  0xc8   : > { %497 = vst.msk [vmem:[#allocation2 + $0x38] sm:$0xf] %vm489_vm7, %v480_v6 }
  0xca   : > { %v619_v1 = vpop.permute.xlu0 %618  ;;  %v2553_v2 = vld [vmem:[#allocation2 + $0x24] sm:$0xf0] }
  0xcb   : > { %643 = vst.msk [vmem:[#allocation2] sm:$0xf] %vm642_vm9, %v619_v1  ;;  %v2471_v3 = vor.u32 %v2553_v2, %v2470_v63  ;;  %v877_v5 = vpop.permute.xlu1 %876 }
  0xcc   : > { %804 = vst.msk [vmem:[#allocation2] sm:$0xf] %vm803_vm10, %v780_v46 }
  0xcd   : > { %1350 = vmatmul.bf16.vlgmr.msra.gmra.mxu2 %v2471_v3  ;;  %901 = vst.msk [vmem:[#allocation2] sm:$0xf] %vm900_vm12, %v877_v5  ;;  %v1478_v5 = vlaneseq }
  0xcf   : > { %v631_v12 = vpop.permute.xlu2 %630  ;;  %v1479_v8 = vshrl.u32 %v1478_v5, 7 }
  0xd2   : > { %v782_v10 = vpop.permute.xlu0 %781 }
  0xd3   : > { %805 = vst.msk [vmem:[#allocation2 + $0x8] sm:$0xf] %vm803_vm10, %v782_v10  ;;  %v932_v11 = vpop.permute.xlu1 %931  ;;  %v3284_v10 = vld [vmem:[%s4077_s3] ss:$0 sm:$0xff] }
  0xd4   : > { %902 = vst.msk [vmem:[#allocation2 + $0x8] sm:$0xf] %vm900_vm12, %v879_v49 }
  0xd5   : > { %955 = vst.msk [vmem:[#allocation2 + $0x8] sm:$0xf] %vm953_vm13, %v932_v11  ;;  %v3286_v11 = vmul.u32 2, %v1479_v8 }
  0xd7   : > { %v794_v15 = vpop.permute.xlu2 %793 }
  0xda   : > { %v930_v13 = vpop.permute.xlu0 %929 }
  0xdb   : > { %954 = vst.msk [vmem:[#allocation2] sm:$0xf] %vm953_vm13, %v930_v13  ;;  %v478_v14 = vpop.permute.xlu1 %477  ;;  %v1496_v13 = vadd.s32 32, %v3286_v11 }
  0xdc   : > { %1115 = vst.msk [vmem:[#allocation2] sm:$0xf] %vm1114_vm14, %v1091_v61 }
  0xdd   : > { %496 = vst.msk [vmem:[#allocation2 + $0x30] sm:$0xf] %vm489_vm7, %v478_v14  ;;  %v2770_v14 = vmov 269488144   ;;  %v1760_v30 = vadd.s32 8, %v1496_v13 }
  0xdf   : > { %v942_v21 = vpop.permute.xlu2 %941 }
  0xe2   : > { %v1093_v18 = vpop.permute.xlu0 %1092 }
  0xe3   : > { %1116 = vst.msk [vmem:[#allocation2 + $0x8] sm:$0xf] %vm1114_vm14, %v1093_v18  ;;  %v580_v20 = vpop.permute.xlu1 %579  ;;  %v2454_v24 = vld [vmem:[#allocation2] sm:$0xf]  ;;  %v1571_v18 = vunpack.c.l.s4 %v2771_v16 }
  0xe4   : > { %597 = vst.msk [vmem:[#allocation2 + $0x38] sm:$0xf] %vm589_vm8, %v580_v20  ;;  %v1564_v20 = vadd.s32 1, %v1496_v13 }
  0xe5   : > { %v3292_v42 = vunpack.c.0.s8 %v1571_v18 }
  0xe7   : > { %v472_v35 = vpop.permute.xlu2 %471  ;;  %v3298_v28 = vperm.slane %v1564_v20, %v3292_v42 }
  0xe8   : > { %493 = vst.msk [vmem:[#allocation2 + $0x18] sm:$0xf] %vm489_vm7, %v472_v35  ;;  %v1932_v35 = vadd.s32 9, %v1496_v13 }
  0xe9   : > { %v1603_v41 = vrot.slane %v3298_v28, 7 }
  0xea   : > { %v578_v31 = vpop.permute.xlu0 %577  ;;  %v2549_v32 = vld [vmem:[#allocation2 + $0x4] sm:$0xf0] }
  0xeb   : > { %596 = vst.msk [vmem:[#allocation2 + $0x30] sm:$0xf] %vm589_vm8, %v578_v31  ;;  %v2455_v33 = vor.u32 %v2549_v32, %v2454_v24  ;;  %v792_v34 = vpop.permute.xlu1 %791 }
  0xec   : > { %649 = vst.msk [vmem:[#allocation2 + $0x30] sm:$0xf] %vm642_vm9, %v631_v12 }
  0xed   : > { %1340 = vmatmul.bf16.vlgmr.msra.gmra.mxu0 %v2455_v33  ;;  %810 = vst.msk [vmem:[#allocation2 + $0x30] sm:$0xf] %vm803_vm10, %v792_v34 }
  0xef   : > { %v570_v0 = vpop.permute.xlu2 %569 }
  0xf2   : > { %v633_v38 = vpop.permute.xlu0 %632 }
  0xf3   : > { %650 = vst.msk [vmem:[#allocation2 + $0x38] sm:$0xf] %vm642_vm9, %v633_v38  ;;  %v891_v4 = vpop.permute.xlu1 %890  ;;  %v3308_v38 = vperm.slane %v1496_v13, %v3292_v42 }
  0xf4   : > { %811 = vst.msk [vmem:[#allocation2 + $0x38] sm:$0xf] %vm803_vm10, %v794_v15  ;;  %v1567_v15 = vunpack.c.l.s4 %v2770_v14 }
  0xf5   : > { %908 = vst.msk [vmem:[#allocation2 + $0x38] sm:$0xf] %vm900_vm12, %v891_v4  ;;  %v1562_v4 = vadd.s32 1, %v3286_v11 }
  0xf7   : > { %v625_v49 = vpop.permute.xlu2 %624 }
  0xfa   : > { %v889_v44 = vpop.permute.xlu0 %888 }
  0xfb   : > { %907 = vst.msk [vmem:[#allocation2 + $0x30] sm:$0xf] %vm900_vm12, %v889_v44  ;;  %v470_v45 = vpop.permute.xlu1 %469 }
  0xfc   : > { %960 = vst.msk [vmem:[#allocation2 + $0x30] sm:$0xf] %vm953_vm13, %v942_v21  ;;  %v3290_v21 = vunpack.c.0.s8 %v1567_v15 }
  0xfd   : > { %492 = vst.msk [vmem:[#allocation2 + $0x10] sm:$0xf] %vm489_vm7, %v470_v45 }
  0xfe   : > { %592 = vst.msk [vmem:[#allocation2 + $0x10] sm:$0xf] %vm589_vm8, %v570_v0  ;;  %v3295_v27 = vperm.slane %v1564_v20, %v3290_v21  ;;  %v3301_v29 = vperm.slane %v1496_v13, %v3290_v21  ;;  %v3315_v44 = vperm.slane %v1760_v30, %v3290_v21 }
  0xff   : > { %v881_v53 = vpop.permute.xlu2 %880 }
 0x100   : > { %v1602_v40 = vrot.slane %v3295_v27, 7  ;;  %v1642_v43 = vrot.slane %v3301_v29, 7 }
 0x102   : > { %v944_v46 = vpop.permute.xlu0 %943 }
 0x103   : > { %961 = vst.msk [vmem:[#allocation2 + $0x38] sm:$0xf] %vm953_vm13, %v944_v46  ;;  %v1105_v47 = vpop.permute.xlu1 %1104 }
 0x104   : > { %1122 = vst.msk [vmem:[#allocation2 + $0x38] sm:$0xf] %vm1114_vm14, %v1105_v47 }
 0x107   : > { %v936_v56 = vpop.permute.xlu2 %935 }
 0x10a   : > { %v1103_v48 = vpop.permute.xlu0 %1102 }
 0x10b   : > { %1121 = vst.msk [vmem:[#allocation2 + $0x30] sm:$0xf] %vm1114_vm14, %v1103_v48  ;;  %v623_v39 = vpop.permute.xlu1 %622  ;;  %v2555_v50 = vld [vmem:[#allocation2 + $0x34] sm:$0xf0] }
 0x10c   : > { %645 = vst.msk [vmem:[#allocation2 + $0x10] sm:$0xf] %vm642_vm9, %v623_v39 }
 0x10e   : > { %v3271_v63 = vpop.f32.mrf.mxu3 }
 0x112   : > { %v572_v25 = vpop.permute.xlu0 %571  ;;  %v2478_v17 = vld [vmem:[#allocation2 + $0x30] sm:$0xf] }
 0x113   : > { %593 = vst.msk [vmem:[#allocation2 + $0x18] sm:$0xf] %vm589_vm8, %v572_v25  ;;  %v2479_v51 = vor.u32 %v2555_v50, %v2478_v17  ;;  %v786_v52 = vpop.permute.xlu1 %785  ;;  %v3328_v50 = vperm.slane %v1932_v35, %v3290_v21  ;;  %v1643_v17 = vrot.slane %v3308_v38, 7 }
 0x114   : > { %646 = vst.msk [vmem:[#allocation2 + $0x18] sm:$0xf] %vm642_vm9, %v625_v49  ;;  %v3325_v49 = vperm.slane %v1760_v30, %v3292_v42 }
 0x115   : > { %1355 = vmatmul.bf16.gmra.mxu2 %v2479_v51  ;;  %807 = vst.msk [vmem:[#allocation2 + $0x18] sm:$0xf] %vm803_vm10, %v786_v52  ;;  %v3332_v51 = vperm.slane %v1562_v4, %v3290_v21  ;;  %v3335_v52 = vperm.slane %v1562_v4, %v3292_v42 }
 0x116   : > { %v3273_v1 = vpop.f32.mrf.mxu3 }
 0x117   : > { %v1598_v8 = vrot.slane %v3332_v51, 7 }
 0x11a   : > { %v784_v54 = vpop.permute.xlu0 %783 }
 0x11b   : > { %806 = vst.msk [vmem:[#allocation2 + $0x10] sm:$0xf] %vm803_vm10, %v784_v54  ;;  %v934_v55 = vpop.permute.xlu1 %933 }
 0x11c   : > { %903 = vst.msk [vmem:[#allocation2 + $0x10] sm:$0xf] %vm900_vm12, %v881_v53  ;;  %v3338_v53 = vperm.slane %v1932_v35, %v3292_v42 }
 0x11d   : > { %956 = vst.msk [vmem:[#allocation2 + $0x10] sm:$0xf] %vm953_vm13, %v934_v55 }
 0x122   : > { %v883_v57 = vpop.permute.xlu0 %882 }
 0x123   : > { %904 = vst.msk [vmem:[#allocation2 + $0x18] sm:$0xf] %vm900_vm12, %v883_v57  ;;  %v1097_v58 = vpop.permute.xlu1 %1096  ;;  %v3349_v57 = vperm.slane %v3286_v11, %v3292_v42 }
 0x124   : > { %957 = vst.msk [vmem:[#allocation2 + $0x18] sm:$0xf] %vm953_vm13, %v936_v56  ;;  %v3345_v56 = vperm.slane %v3286_v11, %v3290_v21 }
 0x125   : > { %1118 = vst.msk [vmem:[#allocation2 + $0x18] sm:$0xf] %vm1114_vm14, %v1097_v58 }
 0x126   : > { %v1638_v16 = vrot.slane %v3345_v56, 7 }
 0x12a   : > { %v1095_v59 = vpop.permute.xlu0 %1094 }
 0x12b   : > { %1117 = vst.msk [vmem:[#allocation2 + $0x10] sm:$0xf] %vm1114_vm14, %v1095_v59 }
 0x12c   : > { %v2551_v60 = vld [vmem:[#allocation2 + $0x14] sm:$0xf0] }
 0x12e   : > { %v1380_v2 = vpop.f32.mrf.mxu3 }
 0x12f   : > { %v1370_v36 = vpop.f32.mrf.mxu1 }
 0x132   : > { %v2462_v61 = vld [vmem:[#allocation2 + $0x10] sm:$0xf] }
 0x133   : > { %v2463_v62 = vor.u32 %v2551_v60, %v2462_v61 }
 0x135   : > { %1345 = vmatmul.bf16.gmra.mxu0 %v2463_v62  ;;  %v1798_v62 = vrot.slane %v3315_v44, 1 }
 0x136   : > { %v1382_v24 = vpop.f32.mrf.mxu3 }
 0x137   : > { %v1372_v18 = vpop.f32.mrf.mxu1 }
 0x150   : > { %v1351_v3 = vpop.f32.mrf.mxu2 }
 0x151   : > { %v1381_v6 = vadd.f32 %v1380_v2, %v1351_v3  ;;  %v1970_v2 = vrot.slane %v3328_v50, 7 }
 0x153   : > { %v1398_v9 = vmul.f32 %v3278_v7, %v1381_v6 }
 0x155   : > { %v1410_v12 = vadd.f32 %v3284_v10, %v1398_v9 }
 0x157   : > { %v1418_v19 = vmax.f32 %v1410_v12, 0.0 }
 0x158   : > { %v1353_v23 = vpop.f32.mrf.mxu2 }
 0x159   : > { %v1442_v22 = vrot.slane %v1418_v19, 2  ;;  %v1506_v26 = vrot.slane %v1418_v19, 7  ;;  %v1443_v31 = vrot.slane %v1418_v19, 4  ;;  %v1444_v32 = vrot.slane %v1418_v19, 6 }
 0x15a   : > { %v1383_v34 = vadd.f32 %v1382_v24, %v1353_v23  ;;  %v1639_v23 = vrot.slane %v3349_v57, 7 }
 0x15b   : > { %v1507_v33 = vrot.slane %v1442_v22, 7  ;;  %vm3303_vm15 = vcmp.gt.f32.partialorder %v1418_v19, %v1506_v26  ;;  %v1508_v0 = vrot.slane %v1443_v31, 7  ;;  %v1509_v45 = vrot.slane %v1444_v32, 7 }
 0x15c   : > { %v1399_v47 = vmul.f32 %v3278_v7, %v1383_v34  ;;  %v1554_v39 = vsel %vm3303_vm15, %v1418_v19, %v1506_v26  ;;  %v1654_v19 = vsel %vm3303_vm15, %v1602_v40, %v1642_v43 }
 0x15d   : > { %vm3317_vm0 = vcmp.gt.f32.partialorder %v1442_v22, %v1507_v33  ;;  %vm3351_vm1 = vcmp.gt.f32.partialorder %v1443_v31, %v1508_v0  ;;  %vm3355_vm2 = vcmp.gt.f32.partialorder %v1444_v32, %v1509_v45  ;;  %v1694_v60 = vrot.slane %v1554_v39, 7 }
 0x15e   : > { %v1555_v54 = vsel %vm3317_vm0, %v1442_v22, %v1507_v33  ;;  %v1411_v61 = vadd.f32 %v3284_v10, %v1399_v47  ;;  %v1556_v13 = vsel %vm3351_vm1, %v1443_v31, %v1508_v0  ;;  %v1557_v14 = vsel %vm3355_vm2, %v1444_v32, %v1509_v45 }
 0x15f   : > { %v1696_v6 = vrot.slane %v1555_v54, 7  ;;  %v1695_v20 = vrot.slane %v1694_v60, 2  ;;  %v1698_v32 = vrot.slane %v1556_v13, 7  ;;  %v1700_v35 = vrot.slane %v1557_v14, 7 }
 0x160   : > { %v3374_v22 = vmax.f32 %v1411_v61, 0.0 }
 0x161   : > { %v3377_v34 = vrot.slane %v1696_v6, 2  ;;  %v3411_v6 = vrot.slane %v1700_v35, 2 }
 0x162   : > { %v3384_v40 = vrot.slane %v3374_v22, 2  ;;  %vm1734_vm4 = vcmp.gt.f32.partialorder %v3374_v22, %v1695_v20  ;;  %v3405_v60 = vrot.slane %v3374_v22, 4  ;;  %v3414_v13 = vrot.slane %v3374_v22, 6 }
 0x163   : > { %v1750_v14 = vsel %vm1734_vm4, %v3374_v22, %v1695_v20 }
 0x164   : > { %vm1735_vm9 = vcmp.gt.f32.partialorder %v3384_v40, %v3377_v34  ;;  %vm1737_vm12 = vcmp.gt.f32.partialorder %v3414_v13, %v3411_v6 }
 0x16a   : > { %v1341_v48 = vpop.f32.mrf.mxu0 }
 0x16b   : > { %v1371_v25 = vadd.f32 %v1370_v36, %v1341_v48 }
 0x16d   : > { %v1394_v55 = vmul.f32 %v3278_v7, %v1371_v25 }
 0x16f   : > { %v1406_v3 = vadd.f32 %v3284_v10, %v1394_v55  ;;  %v3402_v55 = vrot.slane %v1698_v32, 2  ;;  %v3458_v32 = vadd.s32 9, %v3286_v11 }
 0x171   : > { %v1414_v15 = vmax.f32 %v1406_v3, 0.0  ;;  %vm1736_vm10 = vcmp.gt.f32.partialorder %v3405_v60, %v3402_v55 }
 0x172   : > { %v1343_v24 = vpop.f32.mrf.mxu0  ;;  %v1752_v35 = vsel %vm1736_vm10, %v3405_v60, %v3402_v55 }
 0x173   : > { %v1430_v26 = vrot.slane %v1414_v15, 2  ;;  %v1431_v30 = vrot.slane %v1414_v15, 4  ;;  %v1432_v33 = vrot.slane %v1414_v15, 6  ;;  %v1498_v31 = vrot.slane %v1414_v15, 7 }
 0x174   : > { %v1373_v36 = vadd.f32 %v1372_v18, %v1343_v24  ;;  %v1655_v18 = vsel %vm3317_vm0, %v3295_v27, %v3301_v29  ;;  %v3429_v24 = vsel %vm3351_vm1, %v1603_v41, %v1643_v17  ;;  %v2532_v29 = vrot.slane %v1654_v19, 9 }
 0x175   : > { %v1499_v4 = vrot.slane %v1430_v26, 7  ;;  %v1500_v0 = vrot.slane %v1431_v30, 7  ;;  %v1501_v45 = vrot.slane %v1432_v33, 7  ;;  %vm3379_vm3 = vcmp.gt.f32.partialorder %v1414_v15, %v1498_v31 }
 0x176   : > { %v1546_v43 = vsel %vm3379_vm3, %v1414_v15, %v1498_v31  ;;  %v1395_v47 = vmul.f32 %v3278_v7, %v1373_v36  ;;  %v1657_v31 = vsel %vm3355_vm2, %v3298_v28, %v3308_v38  ;;  %v1874_v41 = vrot.slane %v1750_v14, 7 }
 0x177   : > { %vm3390_vm5 = vcmp.gt.f32.partialorder %v1430_v26, %v1499_v4  ;;  %vm3394_vm7 = vcmp.gt.f32.partialorder %v1431_v30, %v1500_v0  ;;  %vm3398_vm8 = vcmp.gt.f32.partialorder %v1432_v33, %v1501_v45  ;;  %v1678_v54 = vrot.slane %v1546_v43, 7 }
 0x178   : > { %v1547_v61 = vsel %vm3390_vm5, %v1430_v26, %v1499_v4  ;;  %v1548_v3 = vsel %vm3394_vm7, %v1431_v30, %v1500_v0  ;;  %v1549_v15 = vsel %vm3398_vm8, %v1432_v33, %v1501_v45  ;;  %v1407_v27 = vadd.f32 %v3284_v10, %v1395_v47 }
 0x179   : > { %v1680_v26 = vrot.slane %v1547_v61, 7  ;;  %v1682_v30 = vrot.slane %v1548_v3, 7  ;;  %v3437_v33 = vrot.slane %v1678_v54, 2  ;;  %v1684_v46 = vrot.slane %v1549_v15, 7 }
 0x17a   : > { %v3446_v58 = vmax.f32 %v1407_v27, 0.0  ;;  %v1758_v28 = vadd.s32 8, %v3286_v11  ;;  %v1751_v38 = vsel %vm1735_vm9, %v3384_v40, %v3377_v34  ;;  %v1842_v59 = vsel %vm1734_vm4, %v3315_v44, %v2532_v29 }
 0x17b   : > { %v3444_v17 = vrot.slane %v1682_v30, 2  ;;  %v1681_v19 = vrot.slane %v1680_v26, 2  ;;  %vm3474_vm14 = vcmp.gt.f32.partialorder %v3374_v22, %v1874_v41  ;;  %v3478_v0 = vrot.slane %v1684_v46, 2 }
 0x17c   : > { %v3466_v36 = vrot.slane %v3446_v58, 2  ;;  %v3469_v4 = vrot.slane %v3446_v58, 4  ;;  %vm1726_vm13 = vcmp.gt.f32.partialorder %v3446_v58, %v3437_v33  ;;  %v3481_v45 = vrot.slane %v3446_v58, 6 }
 0x17d   : > { %v1753_v43 = vsel %vm1737_vm12, %v3414_v13, %v3411_v6  ;;  %v1875_v47 = vrot.slane %v1751_v38, 7  ;;  %v1742_v54 = vsel %vm1726_vm13, %v3446_v58, %v3437_v33  ;;  %v1765_v61 = vperm.slane %v1758_v28, %v3290_v21 }
 0x17e   : > { %vm1728_vm15 = vcmp.gt.f32.partialorder %v3469_v4, %v3444_v17  ;;  %v1982_v3 = vrot.slane %v1842_v59, 7  ;;  %vm1727_vm0 = vcmp.gt.f32.partialorder %v3466_v36, %v1681_v19  ;;  %v3499_v14 = vperm.slane %v3458_v32, %v3290_v21 }
 0x17f   : > { %v1876_v15 = vrot.slane %v1752_v35, 7  ;;  %v2533_v26 = vrot.slane %v1655_v18, 9  ;;  %v2534_v30 = vrot.slane %v3429_v24, 9  ;;  %v1922_v27 = vsel %vm3474_vm14, %v3374_v22, %v1874_v41 }
 0x180   : > { %v1877_v29 = vrot.slane %v1753_v43, 7  ;;  %vm1729_vm1 = vcmp.gt.f32.partialorder %v3481_v45, %v3478_v0  ;;  %v1744_v46 = vsel %vm1728_vm15, %v3469_v4, %v3444_v17  ;;  %v3513_v38 = vperm.slane %v1758_v28, %v3292_v42 }
 0x181   : > { %v1866_v18 = vrot.slane %v1742_v54, 7  ;;  %v2535_v59 = vrot.slane %v1657_v31, 9  ;;  %v1743_v24 = vsel %vm1727_vm0, %v3466_v36, %v1681_v19  ;;  %v1794_v22 = vrot.slane %v1765_v61, 1 }
 0x182   : > { %vm3519_vm2 = vcmp.gt.f32.partialorder %v3384_v40, %v1875_v47  ;;  %v3527_v35 = vsel %vm3474_vm14, %v1970_v2, %v1982_v3  ;;  %v2014_v28 = vpack.c.bf16 %v1922_v27, %v1922_v27  ;;  %v1966_v43 = vrot.slane %v3499_v14, 7 }
 0x183   : > { %vm3531_vm4 = vcmp.gt.f32.partialorder %v3405_v60, %v1876_v15  ;;  %v1647_v54 = vsel %vm3390_vm5, %v3332_v51, %v3345_v56  ;;  %v1745_v2 = vsel %vm1729_vm1, %v3481_v45, %v3478_v0  ;;  %v1868_v20 = vrot.slane %v1744_v46, 7 }
 0x184   : > { %vm3545_vm14 = vcmp.gt.f32.partialorder %v3414_v13, %v1877_v29  ;;  %v1867_v27 = vrot.slane %v1743_v24, 7  ;;  %vm3550_vm11 = vcmp.gt.f32.partialorder %v3446_v58, %v1866_v18  ;;  %v1923_v48 = vsel %vm3519_vm2, %v3384_v40, %v1875_v47 }
 0x185   : > { %v1795_v5 = vrot.slane %v3513_v38, 1  ;;  %v1646_v46 = vsel %vm3379_vm3, %v1598_v8, %v1638_v16  ;;  %v1924_v24 = vsel %vm3531_vm4, %v3405_v60, %v1876_v15  ;;  %v3573_v47 = vsel %vm1735_vm9, %v1798_v62, %v2533_v26 }
 0x186   : > { %v4116_v56 = vrot.slane %v3335_v52, 7  ;;  %v2525_v37 = vrot.slane %v1647_v54, 9  ;;  %v1869_v8 = vrot.slane %v1745_v2, 7  ;;  %v1925_v16 = vsel %vm3545_vm14, %v3414_v13, %v1877_v29 }
 0x187   : > { %vm2055_vm3 = vcmask 1041409   ;;  %v2046_v44 = vunpack.c.l.b16 %v2014_v28  ;;  %v1914_v62 = vsel %vm3550_vm11, %v3446_v58, %v1866_v18  ;;  %vm3588_vm5 = vcmp.gt.f32.partialorder %v3469_v4, %v1868_v20 }
 0x188   : > { %v1648_v51 = vsel %vm3394_vm7, %v4116_v56, %v1639_v23  ;;  %v2015_v40 = vpack.c.bf16 %v1923_v48, %v1923_v48  ;;  %v2524_v39 = vrot.slane %v1646_v46, 9  ;;  %vm3593_vm7 = vcmp.gt.f32.partialorder %v3466_v36, %v1867_v27 }
 0x189   : > { %v2016_v15 = vpack.c.bf16 %v1924_v24, %v1924_v24  ;;  %v1835_v26 = vsel %vm1727_vm0, %v1794_v22, %v2525_v37  ;;  %v2526_v29 = vrot.slane %v1648_v51, 9  ;;  %v2017_v28 = vpack.c.bf16 %v1925_v16, %v1925_v16  ;;  %v1385_v16 = vpop.f32.mrf.mxu3 }
 0x18a   : > { %vm2058_vm9 = vcmask 1042434   ;;  %v1844_v18 = vsel %vm1736_vm10, %v3325_v49, %v2534_v30  ;;  %v1941_v54 = vperm.slane %v3458_v32, %v3292_v42  ;;  %v1834_v2 = vsel %vm1726_vm13, %v1765_v61, %v2524_v39 }
 0x18b   : > { %v2006_v48 = vpack.c.bf16 %v1914_v62, %v1914_v62  ;;  %vm3609_vm6 = vcmp.gt.f32.partialorder %v3481_v45, %v1869_v8  ;;  %v1916_v22 = vsel %vm3588_vm5, %v3469_v4, %v1868_v20  ;;  %v1649_v55 = vsel %vm3398_vm8, %v3335_v52, %v3349_v57 }
 0x18c   : > { %v1915_v60 = vsel %vm3593_vm7, %v3466_v36, %v1867_v27  ;;  %v1836_v33 = vsel %vm1728_vm15, %v3513_v38, %v2526_v29  ;;  %v1975_v58 = vrot.slane %v1835_v26, 7  ;;  %v2075_v32 = vrot.slane %v2046_v44, 1 }
 0x18d   : > { %v2047_v61 = vunpack.c.l.b16 %v2015_v40  ;;  %v2048_v30 = vunpack.c.l.b16 %v2016_v15  ;;  %v4123_v20 = vrot.slane %v3325_v49, 1  ;;  %v1974_v52 = vrot.slane %v1834_v2, 7 }
 0x18e   : > { %v1917_v57 = vsel %vm3609_vm6, %v3481_v45, %v1869_v8  ;;  %v2008_v36 = vpack.c.bf16 %v1916_v22, %v1916_v22  ;;  %vm2061_vm8 = vcmask 1043459   ;;  %v1967_v27 = vrot.slane %v1941_v54, 7 }
 0x18f   : > { %v1845_v25 = vsel %vm1737_vm12, %v4123_v20, %v2535_v59  ;;  %v2527_v17 = vrot.slane %v1649_v55, 9  ;;  %v2038_v4 = vunpack.c.l.b16 %v2006_v48  ;;  %v2007_v38 = vpack.c.bf16 %v1915_v60, %v1915_v60 }
 0x190   : > { %v1976_v46 = vrot.slane %v1836_v33, 7  ;;  %v1497_v24 = vadd.s32 48, %v3286_v11  ;;  %v2049_v56 = vunpack.c.l.b16 %v2017_v28  ;;  %v1983_v49 = vrot.slane %v3573_v47, 7 }
 0x191   : > { %v1991_v6 = vsel %vm3593_vm7, %v3499_v14, %v1975_v58  ;;  %v2009_v13 = vpack.c.bf16 %v1917_v57, %v1917_v57  ;;  %v2077_v59 = vrot.slane %v2048_v30, 7  ;;  %v1837_v51 = vsel %vm1729_vm1, %v1795_v5, %v2527_v17 }
 0x192   : > { %v1984_v37 = vrot.slane %v1844_v18, 7  ;;  %v1990_v8 = vsel %vm3550_vm11, %v1966_v43, %v1974_v52  ;;  %v2040_v44 = vunpack.c.l.b16 %v2008_v36  ;;  %v2076_v62 = vsel %vm2055_vm3, %v2047_v61, %v2075_v32 }
 0x193   : > { %v1985_v40 = vrot.slane %v1845_v25, 7  ;;  %v2054_v47 = vrot.slane %v2038_v4, 1  ;;  %v2039_v39 = vunpack.c.l.b16 %v2007_v38  ;;  %v1992_v14 = vsel %vm3588_vm5, %v1967_v27, %v1976_v46  ;;  %v1387_v46 = vpop.f32.mrf.mxu3 }
 0x194   : > { %v2097_v23 = vperm.slane %v1991_v6, 1  ;;  %v1565_v15 = vadd.s32 1, %v1497_v24  ;;  %vm2064_vm10 = vcmask 1044484   ;;  %v2079_v26 = vrot.slane %v2049_v56, 6 }
 0x195   : > { %v1977_v0 = vrot.slane %v1837_v51, 7  ;;  %v2096_v5 = vperm.slane %v1990_v8, 1  ;;  %v2041_v29 = vunpack.c.l.b16 %v2009_v13  ;;  %v2078_v12 = vsel %vm2058_vm9, %v2077_v59, %v2076_v62 }
 0x196   : > { %v3652_v43 = vsel %vm3519_vm2, %v3328_v50, %v1983_v49  ;;  %v2057_v18 = vrot.slane %v2040_v44, 7  ;;  %v4124_v34 = vrot.slane %v3338_v53, 7  ;;  %v2098_v48 = vperm.slane %v1992_v14, 1 }
 0x197   : > { %v3661_v22 = vperm.slane %v1497_v24, %v3290_v21  ;;  %v2056_v55 = vsel %vm2055_vm3, %v2039_v39, %v2054_v47  ;;  %v3667_v41 = vsel %vm3545_vm14, %v3338_v53, %v1985_v40  ;;  %v2112_v50 = vsel %vm2058_vm9, %v2097_v23, %v2096_v5 }
 0x198   : > { %v1356_v45 = vpop.f32.mrf.mxu2  ;;  %v3658_v2 = vsel %vm3531_vm4, %v4124_v34, %v1984_v37  ;;  %v3672_v33 = vperm.slane %v1565_v15, %v3290_v21  ;;  %v3675_v31 = vperm.slane %v1565_v15, %v3292_v42  ;;  %v1993_v58 = vsel %vm3609_vm6, %v1941_v54, %v1977_v0 }
 0x199   : > { %v1386_v28 = vadd.f32 %v1385_v16, %v1356_v45  ;;  %v3680_v32 = vperm.slane %v1497_v24, %v3292_v42  ;;  %v2060_v61 = vrot.slane %v2041_v29, 6  ;;  %v3683_v53 = vsel %vm2061_vm8, %v2079_v26, %v2078_v12 }
 0x19a   : > { %v2059_v20 = vsel %vm2058_vm9, %v2057_v18, %v2056_v55  ;;  %v2113_v52 = vsel %vm2061_vm8, %v2098_v48, %v2112_v50  ;;  %v3691_v19 = vadd.s32 16, %v3286_v11  ;;  %v1761_v54 = vadd.s32 8, %v1497_v24 }
 0x19b   : > { %v1400_v60 = vmul.f32 %v3278_v7, %v1386_v28  ;;  %v2099_v57 = vperm.slane %v1993_v58, 1  ;;  %v1604_v17 = vrot.slane %v3672_v33, 7  ;;  %v1605_v4 = vrot.slane %v3675_v31, 7 }
 0x19c   : > { %v1644_v38 = vrot.slane %v3661_v22, 7  ;;  %v1645_v56 = vrot.slane %v3680_v32, 7  ;;  %v3699_v6 = vsel %vm2061_vm8, %v2060_v61, %v2059_v20  ;;  %v1933_v11 = vadd.s32 9, %v1497_v24 }
 0x19d   : > { %v1412_v30 = vadd.f32 %v3284_v10, %v1400_v60  ;;  %v3702_v13 = vsel %vm2064_vm10, %v2099_v57, %v2113_v52  ;;  %v1563_v44 = vadd.s32 1, %v3691_v19  ;;  %v3706_v62 = vperm.slane %v1761_v54, %v3290_v21 }
 0x19e   : > { %v3709_v40 = vperm.slane %v1761_v54, %v3292_v42  ;;  %v3719_v26 = vperm.slane %v1933_v11, %v3290_v21  ;;  %v3722_v0 = vperm.slane %v1933_v11, %v3292_v42  ;;  %v3752_v20 = vperm.slane %v3691_v19, %v3290_v21 }
 0x19f   : > { %v1420_v27 = vmax.f32 %v1412_v30, 0.0  ;;  %v3743_v48 = vperm.slane %v1563_v44, %v3290_v21  ;;  %v1800_v60 = vrot.slane %v3706_v62, 1  ;;  %v3748_v30 = vperm.slane %v1563_v44, %v3292_v42 }
 0x1a0   : > { %v1358_v49 = vpop.f32.mrf.mxu2  ;;  %v1801_v58 = vrot.slane %v3709_v40, 1  ;;  %v3756_v52 = vperm.slane %v3691_v19, %v3292_v42 }
 0x1a1   : > { %v1448_v59 = vrot.slane %v1420_v27, 2  ;;  %v1449_v51 = vrot.slane %v1420_v27, 4  ;;  %v1450_v37 = vrot.slane %v1420_v27, 6  ;;  %v1510_v8 = vrot.slane %v1420_v27, 7 }
 0x1a2   : > { %v1388_v16 = vadd.f32 %v1387_v46, %v1358_v49  ;;  %v1972_v46 = vrot.slane %v3719_v26, 7  ;;  %v1601_v44 = vrot.slane %v3748_v30, 7 }
 0x1a3   : > { %v1511_v47 = vrot.slane %v1448_v59, 7  ;;  %v1512_v39 = vrot.slane %v1449_v51, 7  ;;  %v1513_v14 = vrot.slane %v1450_v37, 7  ;;  %vm3711_vm6 = vcmp.gt.f32.partialorder %v1420_v27, %v1510_v8 }
 0x1a4   : > { %v1558_v23 = vsel %vm3711_vm6, %v1420_v27, %v1510_v8  ;;  %v1401_v15 = vmul.f32 %v3278_v7, %v1388_v16  ;;  %v3760_v54 = vsel %vm3711_vm6, %v1604_v17, %v1644_v38  ;;  %vm2067_vm6 = vcmask 1045509  }
 0x1a5   : > { %vm3724_vm11 = vcmp.gt.f32.partialorder %v1448_v59, %v1511_v47  ;;  %vm3728_vm12 = vcmp.gt.f32.partialorder %v1449_v51, %v1512_v39  ;;  %vm3732_vm13 = vcmp.gt.f32.partialorder %v1450_v37, %v1513_v14  ;;  %v1702_v12 = vrot.slane %v1558_v23, 7 }
 0x1a6   : > { %v1559_v28 = vsel %vm3724_vm11, %v1448_v59, %v1511_v47  ;;  %v1560_v18 = vsel %vm3728_vm12, %v1449_v51, %v1512_v39  ;;  %v1561_v34 = vsel %vm3732_vm13, %v1450_v37, %v1513_v14  ;;  %v1413_v27 = vadd.f32 %v3284_v10, %v1401_v15 }
 0x1a7   : > { %v1704_v55 = vrot.slane %v1559_v28, 7  ;;  %v1706_v50 = vrot.slane %v1560_v18, 7  ;;  %v1708_v61 = vrot.slane %v1561_v34, 7  ;;  %v3762_v57 = vrot.slane %v1702_v12, 2 }
 0x1a8   : > { %v1659_v49 = vsel %vm3724_vm11, %v3672_v33, %v3661_v22  ;;  %v3772_v11 = vsel %vm3728_vm12, %v1605_v4, %v1645_v56  ;;  %v1600_v59 = vrot.slane %v3743_v48, 7  ;;  %v1421_v8 = vmax.f32 %v1413_v27, 0.0 }
 0x1a9   : > { %v1705_v38 = vrot.slane %v1704_v55, 2  ;;  %v1707_v51 = vrot.slane %v1706_v50, 2  ;;  %v1709_v37 = vrot.slane %v1708_v61, 2  ;;  %v2536_v16 = vrot.slane %v3760_v54, 9 }
 0x1aa   : > { %v1640_v47 = vrot.slane %v3752_v20, 7  ;;  %v1641_v22 = vrot.slane %v3756_v52, 7  ;;  %v1451_v33 = vrot.slane %v1421_v8, 2  ;;  %v1452_v39 = vrot.slane %v1421_v8, 4 }
 0x1ab   : > { %v1453_v4 = vrot.slane %v1421_v8, 6  ;;  %vm1738_vm15 = vcmp.gt.f32.partialorder %v1421_v8, %v3762_v57  ;;  %v2537_v56 = vrot.slane %v1659_v49, 9  ;;  %v2538_v14 = vrot.slane %v3772_v11, 9 }
 0x1ac   : > { %v1754_v24 = vsel %vm1738_vm15, %v1421_v8, %v3762_v57  ;;  %v1759_v23 = vadd.s32 8, %v3691_v19  ;;  %vm1739_vm0 = vcmp.gt.f32.partialorder %v1451_v33, %v1705_v38  ;;  %vm1740_vm1 = vcmp.gt.f32.partialorder %v1452_v39, %v1707_v51 }
 0x1ad   : > { %v1878_v15 = vrot.slane %v1754_v24, 7  ;;  %vm1741_vm2 = vcmp.gt.f32.partialorder %v1453_v4, %v1709_v37  ;;  %v1755_v5 = vsel %vm1739_vm0, %v1451_v33, %v1705_v38  ;;  %v1756_v45 = vsel %vm1740_vm1, %v1452_v39, %v1707_v51 }
 0x1ae   : > { %v1757_v12 = vsel %vm1741_vm2, %v1453_v4, %v1709_v37  ;;  %v1931_v28 = vadd.s32 9, %v3691_v19  ;;  %v1879_v34 = vrot.slane %v1755_v5, 7  ;;  %v1880_v55 = vrot.slane %v1756_v45, 7 }
 0x1af   : > { %vm3790_vm4 = vcmp.gt.f32.partialorder %v1421_v8, %v1878_v15  ;;  %v1881_v50 = vrot.slane %v1757_v12, 7  ;;  %v3795_v54 = vperm.slane %v1759_v23, %v3292_v42  ;;  %v1661_v49 = vsel %vm3732_vm13, %v3675_v31, %v3680_v32 }
 0x1b0   : > { %v1926_v27 = vsel %vm3790_vm4, %v1421_v8, %v1878_v15  ;;  %v3804_v19 = vperm.slane %v1759_v23, %v3290_v21  ;;  %vm3807_vm14 = vcmp.gt.f32.partialorder %v1451_v33, %v1879_v34  ;;  %vm3811_vm5 = vcmp.gt.f32.partialorder %v1452_v39, %v1880_v55 }
 0x1b1   : > { %vm3815_vm7 = vcmp.gt.f32.partialorder %v1453_v4, %v1881_v50  ;;  %v1927_v31 = vsel %vm3807_vm14, %v1451_v33, %v1879_v34  ;;  %v1928_v32 = vsel %vm3811_vm5, %v1452_v39, %v1880_v55  ;;  %v2018_v29 = vpack.c.bf16 %v1926_v27, %v1926_v27 }
 0x1b2   : > { %v1346_v61 = vpop.f32.mrf.mxu0  ;;  %v3827_v45 = vperm.slane %v1931_v28, %v3292_v42  ;;  %v2019_v12 = vpack.c.bf16 %v1927_v31, %v1927_v31  ;;  %vm2070_vm11 = vcmask 1046534   ;;  %v2539_v3 = vrot.slane %v1661_v49, 9 }
 0x1b3   : > { %v1376_v11 = vadd.f32 %v3271_v63, %v1346_v61  ;;  %v1929_v63 = vsel %vm3815_vm7, %v1453_v4, %v1881_v50  ;;  %v2020_v61 = vpack.c.bf16 %v1928_v32, %v1928_v32  ;;  %v2050_v25 = vunpack.c.l.b16 %v2018_v29 }
 0x1b4   : > { %v2021_v36 = vpack.c.bf16 %v1929_v63, %v1929_v63  ;;  %v3830_v34 = vperm.slane %v1931_v28, %v3290_v21  ;;  %v1797_v9 = vrot.slane %v3795_v54, 1  ;;  %v2051_v50 = vunpack.c.l.b16 %v2019_v12 }
 0x1b5   : > { %v1396_v23 = vmul.f32 %v3278_v7, %v1376_v11  ;;  %v1796_v27 = vrot.slane %v3804_v19, 1  ;;  %v2052_v11 = vunpack.c.l.b16 %v2020_v61  ;;  %v2081_v17 = vrot.slane %v2050_v25, 5 }
 0x1b6   : > { %v1846_v42 = vsel %vm1738_vm15, %v3706_v62, %v2536_v16  ;;  %v1847_v49 = vsel %vm1739_vm0, %v1800_v60, %v2537_v56  ;;  %vm2073_vm12 = vcmask 1047559   ;;  %v1848_v21 = vsel %vm1740_vm1, %v3709_v40, %v2538_v14 }
 0x1b7   : > { %v1408_v55 = vadd.f32 %v3284_v10, %v1396_v23  ;;  %v1849_v28 = vsel %vm1741_vm2, %v1801_v58, %v2539_v3  ;;  %v1969_v32 = vrot.slane %v3827_v45, 7  ;;  %v2053_v63 = vunpack.c.l.b16 %v2021_v36 }
 0x1b8   : > { %v2082_v57 = vsel %vm2064_vm10, %v2081_v17, %v3683_v53  ;;  %v2083_v8 = vrot.slane %v2051_v50, 4  ;;  %v1968_v62 = vrot.slane %v3830_v34, 7  ;;  %v2085_v39 = vrot.slane %v2052_v11, 3 }
 0x1b9   : > { %v1416_v31 = vmax.f32 %v1408_v55, 0.0  ;;  %v1986_v40 = vrot.slane %v1846_v42, 7  ;;  %v1987_v3 = vrot.slane %v1847_v49, 7  ;;  %vm2128_vm15 = vcmask 122880  }
 0x1ba   : > { %v1348_v25 = vpop.f32.mrf.mxu0  ;;  %v2084_v56 = vsel %vm2067_vm6, %v2083_v8, %v2082_v57  ;;  %v1989_v50 = vrot.slane %v1849_v28, 7  ;;  %v1988_v49 = vrot.slane %v1848_v21, 7 }
 0x1bb   : > { %v1436_v60 = vrot.slane %v1416_v31, 2  ;;  %v1437_v38 = vrot.slane %v1416_v31, 4  ;;  %v1438_v16 = vrot.slane %v1416_v31, 6  ;;  %v1502_v33 = vrot.slane %v1416_v31, 7 }
 0x1bc   : > { %v1378_v51 = vadd.f32 %v3273_v1, %v1348_v25  ;;  %v2087_v1 = vrot.slane %v2053_v63, 2  ;;  %v2086_v42 = vsel %vm2070_vm11, %v2085_v39, %v2084_v56  ;;  %v3898_v21 = vsel %vm3807_vm14, %v3719_v26, %v1987_v3 }
 0x1bd   : > { %v1503_v58 = vrot.slane %v1436_v60, 7  ;;  %v1504_v37 = vrot.slane %v1437_v38, 7  ;;  %v1505_v4 = vrot.slane %v1438_v16, 7  ;;  %vm3851_vm13 = vcmp.gt.f32.partialorder %v1416_v31, %v1502_v33 }
 0x1be   : > { %v1550_v53 = vsel %vm3851_vm13, %v1416_v31, %v1502_v33  ;;  %v1397_v17 = vmul.f32 %v3278_v7, %v1378_v51  ;;  %v3886_v31 = vsel %vm3790_vm4, %v1972_v46, %v1986_v40  ;;  %v1650_v25 = vsel %vm3851_vm13, %v1600_v59, %v1640_v47 }
 0x1bf   : > { %vm3859_vm0 = vcmp.gt.f32.partialorder %v1436_v60, %v1503_v58  ;;  %vm3863_vm1 = vcmp.gt.f32.partialorder %v1437_v38, %v1504_v37  ;;  %vm3867_vm2 = vcmp.gt.f32.partialorder %v1438_v16, %v1505_v4  ;;  %v1686_v12 = vrot.slane %v1550_v53, 7 }
 0x1c0   : > { %v1551_v7 = vsel %vm3859_vm0, %v1436_v60, %v1503_v58  ;;  %v1552_v61 = vsel %vm3863_vm1, %v1437_v38, %v1504_v37  ;;  %v1553_v55 = vsel %vm3867_vm2, %v1438_v16, %v1505_v4  ;;  %v1651_v46 = vsel %vm3859_vm0, %v3743_v48, %v3752_v20 }
 0x1c1   : > { %v1688_v11 = vrot.slane %v1551_v7, 7  ;;  %v1690_v63 = vrot.slane %v1552_v61, 7  ;;  %v1692_v28 = vrot.slane %v1553_v55, 7  ;;  %v1652_v59 = vsel %vm3863_vm1, %v1601_v44, %v1641_v22 }
 0x1c2   : > { %v1687_v47 = vrot.slane %v1686_v12, 2  ;;  %v1409_v18 = vadd.f32 %v3284_v10, %v1397_v17  ;;  %v1653_v26 = vsel %vm3867_vm2, %v3748_v30, %v3756_v52  ;;  %v2088_v57 = vsel %vm2073_vm12, %v2087_v1, %v2086_v42 }
 0x1c3   : > { %v1689_v24 = vrot.slane %v1688_v11, 2  ;;  %v2005_v48 = vsel %vm3815_vm7, %v3722_v0, %v1989_v50  ;;  %v1691_v20 = vrot.slane %v1690_v63, 2  ;;  %v1693_v8 = vrot.slane %v1692_v28, 2 }
 0x1c4   : > { %v1417_v60 = vmax.f32 %v1409_v18, 0.0  ;;  %v2090_v38 = vpack.c.b16 %v2088_v57, %v2088_v57  ;;  %v2528_v44 = vrot.slane %v1650_v25, 9  ;;  %v2529_v22 = vrot.slane %v1651_v46, 9 }
 0x1c5   : > { %v4149_v10 = vrot.slane %v3722_v0, 7  ;;  %v2111_v30 = vperm.slane %v2005_v48, 1  ;;  %vm4150_vm14 = vcmask 125952   ;;  %v2530_v15 = vrot.slane %v1652_v59, 9 }
 0x1c6   : > { %v1439_v52 = vrot.slane %v1417_v60, 2  ;;  %v1440_v33 = vrot.slane %v1417_v60, 4  ;;  %v1441_v51 = vrot.slane %v1417_v60, 6  ;;  %vm1730_vm4 = vcmp.gt.f32.partialorder %v1417_v60, %v1687_v47  ;;  %2095 = vst.msk [vmem:[%s3925_s7 + $0x4] sm:$0xf] %vm4150_vm14, %v2090_v38 }
 0x1c7   : > { %v3923_v16 = vsel %vm3811_vm5, %v4149_v10, %v1988_v49  ;;  %v2531_v39 = vrot.slane %v1653_v26, 9  ;;  %v1746_v40 = vsel %vm1730_vm4, %v1417_v60, %v1687_v47  ;;  %v1838_v3 = vsel %vm1730_vm4, %v3804_v19, %v2528_v44  ;;  %2129 = vst.msk [vmem:[%s3930_s8 + $0xf] sm:$0x1] %vm2128_vm15, %v2111_v30 }
 0x1c8   : > { %v1870_v0 = vrot.slane %v1746_v40, 7  ;;  %vm1731_vm5 = vcmp.gt.f32.partialorder %v1439_v52, %v1689_v24  ;;  %vm1732_vm7 = vcmp.gt.f32.partialorder %v1440_v33, %v1691_v20  ;;  %vm1733_vm13 = vcmp.gt.f32.partialorder %v1441_v51, %v1693_v8 }
 0x1c9   : > { %v1747_v5 = vsel %vm1731_vm5, %v1439_v52, %v1689_v24  ;;  %v1748_v58 = vsel %vm1732_vm7, %v1440_v33, %v1691_v20  ;;  %v1749_v37 = vsel %vm1733_vm13, %v1441_v51, %v1693_v8  ;;  %v1841_v4 = vsel %vm1733_vm13, %v1797_v9, %v2531_v39 }
 0x1ca   : > { %vm3936_vm0 = vcmp.gt.f32.partialorder %v1417_v60, %v1870_v0  ;;  %v1871_v53 = vrot.slane %v1747_v5, 7  ;;  %v1872_v17 = vrot.slane %v1748_v58, 7  ;;  %v1873_v56 = vrot.slane %v1749_v37, 7 }
 0x1cb   : > { %v1918_v1 = vsel %vm3936_vm0, %v1417_v60, %v1870_v0  ;;  %v1981_v14 = vrot.slane %v1841_v4, 7  ;;  %v1839_v29 = vsel %vm1731_vm5, %v1796_v27, %v2529_v22  ;;  %v1840_v23 = vsel %vm1732_vm7, %v3795_v54, %v2530_v15 }
 0x1cc   : > { %vm3945_vm15 = vcmp.gt.f32.partialorder %v1439_v52, %v1871_v53  ;;  %vm3949_vm1 = vcmp.gt.f32.partialorder %v1440_v33, %v1872_v17  ;;  %vm1905_vm2 = vcmp.gt.f32.partialorder %v1441_v51, %v1873_v56  ;;  %v2010_v7 = vpack.c.bf16 %v1918_v1, %v1918_v1 }
 0x1cd   : > { %v1919_v61 = vsel %vm3945_vm15, %v1439_v52, %v1871_v53  ;;  %v1920_v19 = vsel %vm3949_vm1, %v1440_v33, %v1872_v17  ;;  %v1921_v27 = vsel %vm1905_vm2, %v1441_v51, %v1873_v56  ;;  %v1997_v54 = vsel %vm1905_vm2, %v3827_v45, %v1981_v14 }
 0x1ce   : > { %v2011_v55 = vpack.c.bf16 %v1919_v61, %v1919_v61  ;;  %v2012_v50 = vpack.c.bf16 %v1920_v19, %v1920_v19  ;;  %v2013_v11 = vpack.c.bf16 %v1921_v27, %v1921_v27  ;;  %v2042_v42 = vunpack.c.l.b16 %v2010_v7 }
 0x1cf   : > { %v2103_v49 = vperm.slane %v1997_v54, 1  ;;  %v1978_v25 = vrot.slane %v1838_v3, 7  ;;  %v1979_v63 = vrot.slane %v1839_v29, 7  ;;  %v1980_v28 = vrot.slane %v1840_v23, 7 }
 0x1d0   : > { %v2043_v46 = vunpack.c.l.b16 %v2011_v55  ;;  %v2044_v59 = vunpack.c.l.b16 %v2012_v50  ;;  %v2045_v47 = vunpack.c.l.b16 %v2013_v11  ;;  %v2063_v18 = vrot.slane %v2042_v42, 5 }
 0x1d1   : > { %v1994_v26 = vsel %vm3936_vm0, %v1968_v62, %v1978_v25  ;;  %v1995_v24 = vsel %vm3945_vm15, %v3830_v34, %v1979_v63  ;;  %v1996_v57 = vsel %vm3949_vm1, %v1969_v32, %v1980_v28  ;;  %v4157_v48 = vperm.slane %v3527_v35, 1 }
 0x1d2   : > { %v2065_v8 = vsel %vm2064_vm10, %v2063_v18, %v3699_v6  ;;  %v2066_v60 = vrot.slane %v2043_v46, 4  ;;  %v2069_v38 = vrot.slane %v2044_v59, 3  ;;  %v2108_v62 = vperm.slane %v3886_v31, 1 }
 0x1d3   : > { %v2118_v20 = vsel %vm2055_vm3, %v4157_v48, %v2103_v49  ;;  %v2100_v45 = vperm.slane %v1994_v26, 1  ;;  %v2101_v35 = vperm.slane %v1995_v24, 1  ;;  %v2102_v34 = vperm.slane %v1996_v57, 1 }
 0x1d4   : > { %v4158_v32 = vperm.slane %v3652_v43, 1  ;;  %v2068_v44 = vsel %vm2067_vm6, %v2066_v60, %v2065_v8  ;;  %v2072_v22 = vrot.slane %v2045_v47, 2  ;;  %v2109_v31 = vperm.slane %v3898_v21, 1 }
 0x1d5   : > { %v4159_v10 = vperm.slane %v3658_v2, 1  ;;  %v2071_v52 = vsel %vm2070_vm11, %v2069_v38, %v2068_v44  ;;  %v2115_v33 = vsel %vm2067_vm6, %v2100_v45, %v3702_v13  ;;  %v4160_v51 = vperm.slane %v3667_v41, 1 }
 0x1d6   : > { %v2119_v6 = vsel %vm2058_vm9, %v4158_v32, %v2118_v20  ;;  %vm2125_vm3 = vcmask 130049   ;;  %v2074_v21 = vsel %vm2073_vm12, %v2072_v22, %v2071_v52  ;;  %v2110_v2 = vperm.slane %v3923_v16, 1  ;;  %vm4161_vm9 = vmmov %vm4150_vm14 }
 0x1d7   : > { %v2120_v30 = vsel %vm2061_vm8, %v4159_v10, %v2119_v6  ;;  %v2116_v13 = vsel %vm2070_vm11, %v2101_v35, %v2115_v33  ;;  %v2089_v15 = vpack.c.b16 %v2074_v21, %v2074_v21 }
 0x1d8   : > { %v2121_v43 = vsel %vm2064_vm10, %v4160_v51, %v2120_v30  ;;  %v2117_v39 = vsel %vm2073_vm12, %v2102_v34, %v2116_v13 }
 0x1d9   : > { %v2122_v41 = vsel %vm2067_vm6, %v2108_v62, %v2121_v43  ;;  %2126 = vst.msk [vmem:[%s3930_s8 - $0x1] sm:$0xfe] %vm2125_vm3, %v2117_v39 }
 0x1da   : > { %v2123_v40 = vsel %vm2070_vm11, %v2109_v31, %v2122_v41  ;;  %2094 = vst.msk [vmem:[%s3925_s7] sm:$0xf] %vm4161_vm9, %v2089_v15 }
 0x1db   : > { %v2124_v3 = vsel %vm2073_vm12, %v2110_v2, %v2123_v40 }
 0x1dc   : > { %2678 = shalt.err (!%p2675_p5)
}
 0x1dd   : > { %s2772_s7 = smov 4   ;;  %vm4162_vm8 = vcmask 130048   ;;  %s2136_s14 = scalar_lea.sflag [#allocation6], %s3872_s25 }
 0x1de   : > { %2577 = dma.vmem_to_hbm [thread:$0]  (%p2845_p4), %s4003_s17, 128, %s4005_s24, %s2131_s9, %s2766_s15, %s2766_s15, %s2772_s7  }
 0x1df   : > { %2127 = vst.msk [vmem:[%s3930_s8 + $0x7] sm:$0xff] %vm4162_vm8, %v2124_v3  ;;  %s2693_s12 = sshra.s32 %s4016_s29, 4  ;;  %s2699_s11 = scalar_lea.hbm %s4079_s5, 32  ;;  %s2694_s12 = int_to_ptr.hbm [resolvable:$true] %s2693_s12 }
 0x1e0   : > { %s2695_s10 = scalar_lea.hbm %s2694_s12, 16  ;;  %p2700_p10 = scmp.lt.s32.totalorder %s2694_s12, %s4079_s5 }
 0x1e1   : > { %p2696_p6 = scmp.ne.s32.totalorder %s2694_s12, %s2695_s10  ;;  %p2701_p11 = scmp.lt.s32.totalorder %s2699_s11, %s2695_s10 }
 0x1e3   : > { %p2697_p7 = pnand %p2696_p6, %p2845_p4  ;;  %p2702_p12 = por %p2701_p11, %p2700_p10 }
 0x1e5   : > { %p2698_p9 = pneg %p2697_p7 }
 0x1e7   : > { %p2703_p13 = pnand %p2702_p12, %p2698_p9 }
 0x1e9   : > { %2706 = shalt.err (!%p2703_p13)
}
 0x1ea   : > { %s2773_s15 = smov 128   ;;  %s2774_s25 = smov 8  }
 0x1eb   : > { %2578 = dma.vmem_to_hbm [thread:$0]  (%p2845_p4), %s4014_s27, 256, %s4016_s29, %s2136_s14, %s2773_s15, %s2773_s15, %s2774_s25  }
 0x1ec PF: > { %p2588_p0 = scmp.ge.s32.totalorder %s2761_s23, 2  ;;  %s2188_s8 = sand.u32 1, %s2741_s18  }
 0x1ed   : > { %s2189_s0 = scalar_lea.sflag [#allocation4], %s2188_s8 }
 0x1ee   : > { %p2582_p1 = pnand %p2588_p0, %p2852_p8 }
 0x1f0   : > { %p2583_p2 = pneg %p2582_p1 }
 0x1f2   : > { %2732 = dma.done.wait (%p2583_p2), %s2189_s0, 128  }
 0x1f3   : > { %2734 = vsyncadd (%p2583_p2), %s2189_s0, 4294967168  ;;  %s2199_s17 = scalar_lea.sflag [#allocation6], %s2188_s8 }
 0x1f4   : > { %2736 = dma.done.wait (%p2583_p2), %s2199_s17, 256  }
 0x1f5   : > { %2738 = vsyncadd (%p2583_p2), %s2199_s17, 4294967040  ;;  %s22_s23 = sadd.s32 1, %s2761_s23   ;;  %s4163_s18 = smov %s2745_s19 }
 0x1f6   : > { %p19_p3 = scmp.ge.s32.totalorder %s22_s23, 4   ;;  %s4164_s19 = smov %s2749_s20 }
 0x1f7   : > { %s4165_s20 = smov %s2858_s6  ;;  %s4166_s21 = smov %s2757_s22 }
 0x1f8   : > { %s4167_s22 = smov %s4169_s26  ;;  %21 = sbr.rel (!%p19_p3) target bundleno = 8 (0x8), region = 104 }
 0x1fd   :  { %2205 = vsyncpa [#allocation4], 1 }
 0x1fe   :  { %2207 = vsyncpa [#allocation4 + $0x1], 1 }
 0x1ff   :  { %2208 = vsyncpa [#allocation6], 1 }
 0x200   :  { %2210 = vsyncpa [#allocation6 + $0x1], 1 }

// kernel: vgg_bn_encoder_forward.5
= control target key start
LH: loop header
LB: loop body
LE: loop exit
PB: predicated region body
PF: predicated region fallthrough
CT: control target
= control target key end

     0   :  { %s4179_s18 = smov 0   ;;  %s4181_s19 = smov 0   ;;  %s6168_s0 = inlined_call_operand.vmem [shape: bf16[2,18,18,8], index: 0, kind: input, shape index: {}]   ;;  %s6169_s1 = inlined_call_operand.vmem [shape: bf16[72,8], index: 1, kind: input, shape index: {}]   ;;  %s6170_s2 = inlined_call_operand.vmem [shape: f32[1,8], index: 2, kind: input, shape index: {}]   ;;  %s6171_s3 = inlined_call_operand.vmem [shape: f32[1,8], index: 3, kind: input, shape index: {}]   ;;  %s6172_s4 = inlined_call_operand.vmem [shape: bf16[2,64,8], index: 4, kind: output, shape index: {0}]   ;;  %s6173_s5 = inlined_call_operand.vmem [shape: s32[2,64,8], index: 5, kind: output, shape index: {1}]  }
   0x1   :  { %s4183_s20 = smov 0   ;;  %s4185_s21 = smov 0  }
   0x2   :  { %s4187_s22 = smov 0  }
   0x3 LB: > { %s31_s23 = sadd.s32 1, %s4127_s20  ;;  %s35_s24 = sadd.s32 1, %s4131_s21  ;;  %s4135_s22 = sphi %s4187_s22, %s16_s22   ;;  %s4131_s21 = sphi %s4185_s21, %s6409_s21   ;;  %s4127_s20 = sphi %s4183_s20, %s6408_s20   ;;  %s4123_s19 = sphi %s4181_s19, %s6407_s19   ;;  %s4119_s18 = sphi %s4179_s18, %s6406_s18  }
   0x4   : > { %p33_p0 = scmp.ge.s32.totalorder %s31_s23, 2  ;;  %p3754_p1 = scmp.ge.s32.totalorder %s4135_s22, 1 }
   0x5   : > { %p242_p2 = scmp.lt.s32.totalorder %s4135_s22, 5 }
   0x6   : > { %s6411_s23 = smov (%p33_p0, %s31_s23), 0  ;;  %s6413_s24 = smov (!%p33_p0, %s35_s24), %s4131_s21 }
   0x7   : > { %p243_p3 = pnand %p3754_p1, %p242_p2  ;;  %p37_p4 = scmp.ge.s32.totalorder %s6413_s24, 2 }
   0x9   : > { %s6415_s24 = smov (%p37_p4, %s6413_s24), 0  ;;  %246 = sbr.rel (%p243_p3) target bundleno = 715 (0x2cb), region = 36 }
   0xe   : > { %p299_p5 = scmp.lt.s32.totalorder %s4123_s19, 1  ;;  %s4012_s25 = smul.u32 96, %s4119_s18  ;;  %vm406_vm0 = vsmask.f32 3328  ;;  %vm407_vm1 = vsmask.f32 7440 }
   0xf   : > { %vm4229_vm2 = vmor %vm406_vm0, %vm407_vm1  ;;  %s4137_s6 = smov 8   ;;  %vm714_vm3 = vcmask 1042432   ;;  %vm715_vm4 = vcmask 1046532   ;;  %s4138_s7 = smov 16   ;;  %vm6206_vm6 = vcmask 60416   ;;  %vm649_vm7 = vcmask 126016  }
  0x10   : > { %s6417_s19 = smov (!%p299_p5, %s4123_s19), 1  ;;  %vm4297_vm5 = vmor %vm714_vm3, %vm715_vm4  ;;  %s4139_s8 = smov 24   ;;  %vm821_vm8 = vcmask 191616   ;;  %vm922_vm9 = vcmask 257216   ;;  %vm1203_vm10 = vcmask 322816   ;;  %vm2057_vm11 = vcmask 1043456  }
  0x11   : > { %s4040_s26 = smul.u32 216, %s6417_s19  ;;  %s4140_s9 = smov 32   ;;  %vm1372_vm12 = vcmask 388416   ;;  %vm1473_vm13 = vcmask 454016   ;;  %vm1754_vm14 = vcmask 519616   ;;  %vm1923_vm15 = vcmask 585216  }
  0x12   : > { %s4141_s10 = smov 40   ;;  %s4142_s11 = smov 48   ;;  %vm2032_vm0 = vcmask 588800  }
  0x13   : > { %s303_s29 = scalar_lea.vmem %s6168_s0, %s4040_s26  ;;  %s4143_s12 = smov 56  }
  0x14   : > { %s4218_s30 = scalar_lea.vmem %s303_s29, %s4012_s25  ;;  %s4144_s13 = smov 64  }
  0x15   : > { %v385_v0 = vld [vmem:[%s4218_s30 + $0xc] sm:$0xf]  ;;  %v386_v1 = vld [vmem:[%s4218_s30 + $0x10] sm:$0xf]  ;;  %v382_v2 = vld [vmem:[%s4218_s30] sm:$0xf] }
  0x16   : > { %v434_v3 = vshrl.u32 %v385_v0, 16  ;;  %v437_v4 = vshll.u32 %v385_v0, 16  ;;  %v443_v5 = vshll.u32 %v386_v1, 16  ;;  %v447_v6 = vshrl.u32 %v386_v1, 16  ;;  %v383_v7 = vld [vmem:[%s4218_s30 + $0x4] sm:$0xf] }
  0x17   : > { %v410_v8 = vshrl.u32 %v382_v2, 16  ;;  %v413_v9 = vshll.u32 %v382_v2, 16  ;;  %v419_v10 = vshll.u32 %v383_v7, 16  ;;  %v423_v11 = vshrl.u32 %v383_v7, 16  ;;  %v387_v12 = vld [vmem:[%s4218_s30 + $0x14] sm:$0x1] }
  0x18   : > { %v436_v13 = vrot.slane %v434_v3, 4  ;;  %v439_v14 = vrot.slane %v437_v4, 5  ;;  %v445_v15 = vrot.slane %v443_v5, 5  ;;  %v449_v16 = vrot.slane %v447_v6, 4  ;;  %v384_v17 = vld [vmem:[%s4218_s30 + $0x8] sm:$0x1] }
  0x19   : > { %v412_v18 = vrot.slane %v410_v8, 4  ;;  %v415_v19 = vrot.slane %v413_v9, 5  ;;  %v425_v20 = vrot.slane %v423_v11, 4  ;;  %v392_v21 = vld [vmem:[%s4218_s30 + $0x28] sm:$0xf]  ;;  %v421_v23 = vrot.slane %v419_v10, 5 }
  0x1a   : > { %v440_v22 = vor.u32 %v439_v14, %v436_v13  ;;  %v450_v24 = vor.u32 %v449_v16, %v445_v15  ;;  %v453_v27 = vshll.u32 %v387_v12, 16  ;;  %v491_v28 = vshll.u32 %v392_v21, 16  ;;  %v391_v30 = vld [vmem:[%s4218_s30 + $0x24] sm:$0xf]  ;;  %v388_v35 = vld [vmem:[%s4218_s30 + $0x18] sm:$0xf] }
  0x1b   : > { %v416_v26 = vor.u32 %v415_v19, %v412_v18  ;;  %v495_v29 = vshrl.u32 %v392_v21, 16  ;;  %v426_v32 = vor.u32 %v425_v20, %v421_v23  ;;  %v429_v33 = vshll.u32 %v384_v17, 16  ;;  %v389_v40 = vld [vmem:[%s4218_s30 + $0x1c] sm:$0xf]  ;;  %v393_v44 = vld [vmem:[%s4218_s30 + $0x2c] sm:$0x1] }
  0x1c   : > { %v441_v31 = vrot.slane %v440_v22, 4  ;;  %v4237_v37 = vrot.slane %v491_v28, 5  ;;  %v482_v39 = vshrl.u32 %v391_v30, 16  ;;  %v451_v42 = vrot.slane %v450_v24, 4  ;;  %v397_v50 = vld [vmem:[%s4218_s30 + $0x3c] sm:$0xf] }
  0x1d   : > { %v417_v34 = vrot.slane %v416_v26, 4  ;;  %v497_v38 = vrot.slane %v495_v29, 4  ;;  %v455_v43 = vrot.slane %v453_v27, 5  ;;  %v485_v45 = vshll.u32 %v391_v30, 16  ;;  %v395_v59 = vld [vmem:[%s4218_s30 + $0x34] sm:$0xf] }
  0x1e   : > { %v446_v36 = vsel %vm4229_vm2, %v441_v31, %v445_v15  ;;  %v427_v46 = vrot.slane %v426_v32, 4  ;;  %v431_v47 = vrot.slane %v429_v33, 5  ;;  %v458_v48 = vshrl.u32 %v388_v35, 16  ;;  %v390_v6 = vld [vmem:[%s4218_s30 + $0x20] sm:$0x1]  ;;  %s3757_s14 = sshll.u32 %s6417_s19, 3 }
  0x1f   : > { %605 = vrot.lane.b32.xlu1 %v446_v36, %s4137_s6  ;;  %v422_v41 = vsel %vm4229_vm2, %v417_v34, %v421_v23  ;;  %v461_v49 = vshll.u32 %v388_v35, 16  ;;  %v484_v51 = vrot.slane %v482_v39, 4  ;;  %v487_v52 = vrot.slane %v485_v45, 5  ;;  %v398_v10 = vld [vmem:[%s4218_s30 + $0x40] sm:$0xf] }
  0x20   : > { %601 = vrot.lane.b32.xlu0 %v422_v41, %s4137_s6  ;;  %v467_v53 = vshll.u32 %v389_v40, 16  ;;  %v471_v54 = vshrl.u32 %v389_v40, 16  ;;  %v498_v55 = vor.u32 %v497_v38, %v4237_v37  ;;  %v501_v56 = vshll.u32 %v393_v44, 16  ;;  %v396_v15 = vld [vmem:[%s4218_s30 + $0x38] sm:$0x1] }
  0x21   : > { %v460_v57 = vrot.slane %v458_v48, 4  ;;  %v463_v58 = vrot.slane %v461_v49, 5  ;;  %v530_v61 = vshrl.u32 %v397_v50, 16  ;;  %v533_v62 = vshll.u32 %v397_v50, 16  ;;  %v401_v20 = vld [vmem:[%s4218_s30 + $0x4c] sm:$0xf] }
  0x22   : > { %v473_v60 = vrot.slane %v471_v54, 4  ;;  %v456_v63 = vsel %vm4229_vm2, %v451_v42, %v455_v43  ;;  %v469_v1 = vrot.slane %v467_v53, 5  ;;  %v432_v2 = vsel %vm4229_vm2, %v427_v46, %v431_v47  ;;  %v394_v21 = vld [vmem:[%s4218_s30 + $0x30] sm:$0xf]  ;;  %v400_v26 = vld [vmem:[%s4218_s30 + $0x48] sm:$0xf] }
  0x23   : > { %v464_v0 = vor.u32 %v463_v58, %v460_v57  ;;  %v488_v3 = vor.u32 %v487_v52, %v484_v51  ;;  %v515_v4 = vshll.u32 %v395_v59, 16  ;;  %v519_v5 = vshrl.u32 %v395_v59, 16  ;;  %v402_v48 = vld [vmem:[%s4218_s30 + $0x50] sm:$0x1]  ;;  %v404_v53 = vld [vmem:[%s4218_s30 + $0x58] sm:$0xf] }
  0x24   : > { %v499_v7 = vrot.slane %v498_v55, 4  ;;  %v503_v8 = vrot.slane %v501_v56, 5  ;;  %v532_v11 = vrot.slane %v530_v61, 4  ;;  %v535_v12 = vrot.slane %v533_v62, 5  ;;  %v399_v55 = vld [vmem:[%s4218_s30 + $0x44] sm:$0x1] }
  0x25   : > { %v465_v9 = vrot.slane %v464_v0, 4  ;;  %v474_v13 = vor.u32 %v473_v60, %v469_v1  ;;  %v517_v16 = vrot.slane %v515_v4, 5  ;;  %v521_v17 = vrot.slane %v519_v5, 4  ;;  %v403_v56 = vld [vmem:[%s4218_s30 + $0x54] sm:$0xf] }
  0x26   : > { %v477_v18 = vshll.u32 %v390_v6, 16  ;;  %v489_v19 = vrot.slane %v488_v3, 4  ;;  %v504_v22 = vsel %vm4229_vm2, %v499_v7, %v503_v8  ;;  %v536_v27 = vor.u32 %v535_v12, %v532_v11 }
  0x27   : > { %607 = vrot.lane.b32.xlu1 %v456_v63, %s4137_s6  ;;  %v470_v14 = vsel %vm4229_vm2, %v465_v9, %v469_v1  ;;  %v475_v23 = vrot.slane %v474_v13, 4  ;;  %v539_v28 = vshll.u32 %v398_v10, 16  ;;  %v543_v29 = vshrl.u32 %v398_v10, 16  ;;  %v405_v10 = vld [vmem:[%s4218_s30 + $0x5c] sm:$0x1] }
  0x28   : > { %603 = vrot.lane.b32.xlu0 %v432_v2, %s4137_s6  ;;  %609 = vrot.lane.b32.xlu2 %v470_v14, %s4137_s6  ;;  %v479_v24 = vrot.slane %v477_v18, 5  ;;  %v525_v30 = vshll.u32 %v396_v15, 16  ;;  %v522_v31 = vor.u32 %v521_v17, %v517_v16  ;;  %v563_v32 = vshll.u32 %v401_v20, 16  ;;  %v666_v17 = vld [vmem:[%s4218_s30] sm:$0xe] }
  0x29   : > { %v567_v33 = vshrl.u32 %v401_v20, 16  ;;  %v506_v34 = vshrl.u32 %v394_v21, 16  ;;  %v494_v35 = vsel %vm4229_vm2, %v489_v19, %v4237_v37  ;;  %v554_v36 = vshrl.u32 %v400_v26, 16  ;;  %v667_v18 = vld [vmem:[%s4218_s30 + $0x4] sm:$0xf] }
  0x2a   : > { %v557_v38 = vshll.u32 %v400_v26, 16  ;;  %v509_v39 = vshll.u32 %v394_v21, 16  ;;  %v480_v40 = vsel %vm4229_vm2, %v475_v23, %v479_v24  ;;  %v537_v42 = vrot.slane %v536_v27, 4 }
  0x2b   : > { %v508_v41 = vrot.slane %v506_v34, 4  ;;  %v541_v43 = vrot.slane %v539_v28, 5  ;;  %v523_v45 = vrot.slane %v522_v31, 4  ;;  %v527_v37 = vrot.slane %v525_v30, 5  ;;  %v671_v34 = vld [vmem:[%s4218_s30 + $0x14] sm:$0x1] }
  0x2c   : > { %v511_v44 = vrot.slane %v509_v39, 5  ;;  %v565_v46 = vrot.slane %v563_v32, 5  ;;  %v569_v47 = vrot.slane %v567_v33, 4  ;;  %v556_v49 = vrot.slane %v554_v36, 4 }
  0x2d   : > { %v559_v50 = vrot.slane %v557_v38, 5  ;;  %v545_v52 = vrot.slane %v543_v29, 4  ;;  %v542_v57 = vsel %vm4229_vm2, %v537_v42, %v541_v43  ;;  %v528_v58 = vsel %vm4229_vm2, %v523_v45, %v527_v37  ;;  %v670_v29 = vld [vmem:[%s4218_s30 + $0x10] sm:$0xf]  ;;  %v668_v38 = vld [vmem:[%s4218_s30 + $0x8] sm:$0x1] }
  0x2e   : > { %v512_v51 = vor.u32 %v511_v44, %v508_v41  ;;  %v570_v59 = vor.u32 %v569_v47, %v565_v46  ;;  %v573_v60 = vshll.u32 %v402_v48, 16  ;;  %v587_v62 = vshll.u32 %v404_v53, 16  ;;  %v673_v42 = vld [vmem:[%s4218_s30 + $0x1c] sm:$0xf]  ;;  %v676_v47 = vld [vmem:[%s4218_s30 + $0x28] sm:$0xf] }
  0x2f   : > { %615 = vrot.lane.b32.xlu1 %v504_v22, %s4137_s6  ;;  %v560_v61 = vor.u32 %v559_v50, %v556_v49  ;;  %v591_v63 = vshrl.u32 %v404_v53, 16  ;;  %v546_v0 = vor.u32 %v545_v52, %v541_v43  ;;  %v549_v2 = vshll.u32 %v399_v55, 16  ;;  %v674_v49 = vld [vmem:[%s4218_s30 + $0x20] sm:$0x1] }
  0x30   : > { %613 = vrot.lane.b32.xlu0 %v494_v35, %s4137_s6  ;;  %611 = vrot.lane.b32.xlu2 %v480_v40, %s4137_s6  ;;  %v513_v54 = vrot.slane %v512_v51, 4  ;;  %v578_v3 = vshrl.u32 %v403_v56, 16  ;;  %v581_v4 = vshll.u32 %v403_v56, 16  ;;  %v571_v5 = vrot.slane %v570_v59, 4  ;;  %v669_v35 = vld [vmem:[%s4218_s30 + $0xc] sm:$0xe] }
  0x31   : > { %v575_v6 = vrot.slane %v573_v60, 5  ;;  %v561_v7 = vrot.slane %v560_v61, 4  ;;  %v589_v8 = vrot.slane %v587_v62, 5  ;;  %v593_v9 = vrot.slane %v591_v63, 4  ;;  %v672_v51 = vld [vmem:[%s4218_s30 + $0x18] sm:$0xe] }
  0x32   : > { %v518_v1 = vsel %vm4229_vm2, %v513_v54, %v517_v16  ;;  %v547_v11 = vrot.slane %v546_v0, 4  ;;  %v551_v12 = vrot.slane %v549_v2, 5  ;;  %v580_v13 = vrot.slane %v578_v3, 4  ;;  %v679_v56 = vld [vmem:[%s4218_s30 + $0x34] sm:$0xf] }
  0x33   : > { %v583_v14 = vrot.slane %v581_v4, 5  ;;  %v576_v15 = vsel %vm4229_vm2, %v571_v5, %v575_v6  ;;  %v566_v16 = vsel %vm4229_vm2, %v561_v7, %v565_v46  ;;  %v594_v19 = vor.u32 %v593_v9, %v589_v8  ;;  %v675_v46 = vld [vmem:[%s4218_s30 + $0x24] sm:$0xe]  ;;  %v680_v61 = vld [vmem:[%s4218_s30 + $0x38] sm:$0x1] }
  0x34   : > { %v597_v20 = vshll.u32 %v405_v10, 16  ;;  %v552_v21 = vsel %vm4229_vm2, %v547_v11, %v551_v12  ;;  %v3765_v23 = vrot.slane %v666_v17, 9  ;;  %v719_v24 = vrot.slane %v667_v18, 5  ;;  %v678_v62 = vld [vmem:[%s4218_s30 + $0x30] sm:$0xe] }
  0x35   : > { %v584_v22 = vor.u32 %v583_v14, %v580_v13  ;;  %v595_v27 = vrot.slane %v594_v19, 4  ;;  %v726_v32 = vrot.slane %v670_v29, 5  ;;  %v729_v40 = vrot.slane %v671_v34, 5  ;;  %v677_v0 = vld [vmem:[%s4218_s30 + $0x2c] sm:$0x1] }
  0x36   : > { %v599_v28 = vrot.slane %v597_v20, 5  ;;  %v720_v31 = vsel %vm4297_vm5, %v3765_v23, %v719_v24  ;;  %v3766_v41 = vrot.slane %v669_v35, 9  ;;  %v721_v43 = vrot.slane %v719_v24, 4  ;;  %v682_v4 = vld [vmem:[%s4218_s30 + $0x40] sm:$0xf] }
  0x37   : > { %621 = vrot.lane.b32.xlu1 %v542_v57, %s4137_s6  ;;  %v585_v30 = vrot.slane %v584_v22, 4  ;;  %v728_v39 = vrot.slane %v726_v32, 4  ;;  %v722_v44 = vrot.slane %v668_v38, 5  ;;  %v733_v48 = vrot.slane %v673_v42, 5  ;;  %v684_v9 = vld [vmem:[%s4218_s30 + $0x48] sm:$0xe] }
  0x38   : > { %619 = vrot.lane.b32.xlu0 %v528_v58, %s4137_s6  ;;  %617 = vrot.lane.b32.xlu2 %v518_v1, %s4137_s6  ;;  %v600_v33 = vsel %vm4229_vm2, %v595_v27, %v599_v28  ;;  %v727_v37 = vsel %vm4297_vm5, %v3766_v41, %v726_v32  ;;  %v3768_v52 = vrot.slane %v675_v46, 9  ;;  %v740_v53 = vrot.slane %v676_v47, 5  ;;  %v685_v10 = vld [vmem:[%s4218_s30 + $0x4c] sm:$0xf]  ;;  %v683_v12 = vld [vmem:[%s4218_s30 + $0x44] sm:$0x1] }
  0x39   : > { %v590_v36 = vsel %vm4229_vm2, %v585_v30, %v589_v8  ;;  %v730_v45 = vsel %vm4297_vm5, %v728_v39, %v729_v40  ;;  %v723_v50 = vsel %vm4297_vm5, %v721_v43, %v722_v44  ;;  %v735_v54 = vrot.slane %v733_v48, 4  ;;  %v681_v14 = vld [vmem:[%s4218_s30 + $0x3c] sm:$0xe]  ;;  %v688_v19 = vld [vmem:[%s4218_s30 + $0x58] sm:$0xf] }
  0x3a   : > { %v736_v55 = vrot.slane %v674_v49, 5  ;;  %v3767_v57 = vrot.slane %v672_v51, 9  ;;  %v741_v58 = vsel %vm4297_vm5, %v3768_v52, %v740_v53  ;;  %v747_v59 = vrot.slane %v679_v56, 5  ;;  %v689_v24 = vld [vmem:[%s4218_s30 + $0x5c] sm:$0x1] }
  0x3b   : > { %v750_v2 = vrot.slane %v680_v61, 5  ;;  %v3769_v3 = vrot.slane %v678_v62, 9  ;;  %v742_v5 = vrot.slane %v740_v53, 4  ;;  %v743_v6 = vrot.slane %v677_v0, 5  ;;  %v687_v27 = vld [vmem:[%s4218_s30 + $0x54] sm:$0xe] }
  0x3c   : > { %v737_v60 = vsel %vm4297_vm5, %v735_v54, %v736_v55  ;;  %v734_v63 = vsel %vm4297_vm5, %v3767_v57, %v733_v48  ;;  %v749_v1 = vrot.slane %v747_v59, 4  ;;  %v754_v11 = vrot.slane %v682_v4, 5  ;;  %v686_v29 = vld [vmem:[%s4218_s30 + $0x50] sm:$0x1]  ;;  %v353_v39 = vld [vmem:[%s4218_s30 + $0x18] sm:$0xf] }
  0x3d   : > { %v748_v8 = vsel %vm4297_vm5, %v3769_v3, %v747_v59  ;;  %v744_v13 = vsel %vm4297_vm5, %v742_v5, %v743_v6  ;;  %v757_v18 = vrot.slane %v683_v12, 5  ;;  %v3770_v20 = vrot.slane %v681_v14, 9  ;;  %370 = vst.msk [vmem:[#allocation2 + $0x10] sm:$0xf] %vm6206_vm6, %v353_v39  ;;  %v351_v40 = vld [vmem:[%s4218_s30 + $0xc] sm:$0xf] }
  0x3e   : > { %v751_v7 = vsel %vm4297_vm5, %v749_v1, %v750_v2  ;;  %v756_v17 = vrot.slane %v754_v11, 4  ;;  %v768_v22 = vrot.slane %v688_v19, 5  ;;  %v3772_v32 = vrot.slane %v687_v27, 9  ;;  %v349_v41 = vld [vmem:[%s4218_s30] sm:$0xf] }
  0x3f   : > { %627 = vrot.lane.b32.xlu1 %v576_v15, %s4137_s6  ;;  %v3771_v15 = vrot.slane %v684_v9, 9  ;;  %v755_v28 = vsel %vm4297_vm5, %v3770_v20, %v754_v11  ;;  %v764_v34 = vrot.slane %v686_v29, 5  ;;  %368 = vst.msk [vmem:[#allocation2 + $0x8] sm:$0xf] %vm6206_vm6, %v351_v40  ;;  %v3777_v42 = vld [vmem:[%s4218_s30 + $0x18] sm:$0xf] }
  0x40   : > { %625 = vrot.lane.b32.xlu0 %v566_v16, %s4137_s6  ;;  %623 = vrot.lane.b32.xlu2 %v552_v21, %s4137_s6  ;;  %v761_v16 = vrot.slane %v685_v10, 5  ;;  %v758_v23 = vsel %vm4297_vm5, %v756_v17, %v757_v18  ;;  %v770_v30 = vrot.slane %v768_v22, 4  ;;  %366 = vst.msk [vmem:[#allocation2] sm:$0xf] %vm6206_vm6, %v349_v41  ;;  %v3776_v43 = vld [vmem:[%s4218_s30 + $0x10] sm:$0xf] }
  0x41   : > { %v3775_v44 = vld [vmem:[%s4218_s30 + $0xc] sm:$0xf]  ;;  %v350_v46 = vld [vmem:[%s4218_s30 + $0x4] sm:$0xf]  ;;  %v3780_v47 = vld [vmem:[%s4218_s30 + $0x28] sm:$0xf] }
  0x42   : > { %v762_v21 = vsel %vm4297_vm5, %v3771_v15, %v761_v16  ;;  %367 = vst.msk [vmem:[#allocation2 + $0x4] sm:$0xf] %vm6206_vm6, %v350_v46  ;;  %v3779_v48 = vld [vmem:[%s4218_s30 + $0x24] sm:$0xf]  ;;  %v3778_v49 = vld [vmem:[%s4218_s30 + $0x1c] sm:$0xf] }
  0x43   : > { %v356_v51 = vld [vmem:[%s4218_s30 + $0x28] sm:$0xf]  ;;  %v355_v52 = vld [vmem:[%s4218_s30 + $0x24] sm:$0xf]  ;;  %v3783_v54 = vld [vmem:[%s4218_s30 + $0x3c] sm:$0xf] }
  0x44   : > { %373 = vst.msk [vmem:[#allocation2 + $0x1c] sm:$0xf] %vm6206_vm6, %v356_v51  ;;  %v3782_v55 = vld [vmem:[%s4218_s30 + $0x34] sm:$0xf]  ;;  %v3781_v56 = vld [vmem:[%s4218_s30 + $0x30] sm:$0xf] }
  0x45   : > { %372 = vst.msk [vmem:[#allocation2 + $0x18] sm:$0xf] %vm6206_vm6, %v355_v52  ;;  %v3792_v57 = vld [vmem:[%s4218_s30 + $0x10] sm:$0xf]  ;;  %v360_v59 = vld [vmem:[%s4218_s30 + $0x40] sm:$0xf] }
  0x46   : > { %377 = vst.msk [vmem:[#allocation2 + $0x2c] sm:$0xf] %vm6206_vm6, %v360_v59  ;;  %v358_v61 = vld [vmem:[%s4218_s30 + $0x34] sm:$0xf]  ;;  %v3786_v62 = vld [vmem:[%s4218_s30 + $0x4c] sm:$0xf] }
  0x47   : > { %773 = vrot.lane.b32.xlu1 %v720_v31, %s4138_s7  ;;  %v771_v31 = vrot.slane %v689_v24, 5  ;;  %375 = vst.msk [vmem:[#allocation2 + $0x24] sm:$0xf] %vm6206_vm6, %v358_v61  ;;  %v973_v0 = vshll.u32 %v3792_v57, 16  ;;  %v977_v1 = vshrl.u32 %v3792_v57, 16 }
  0x48   : > { %631 = vrot.lane.b32.xlu0 %v600_v33, %s4137_s6  ;;  %629 = vrot.lane.b32.xlu2 %v590_v36, %s4137_s6  ;;  %v763_v33 = vrot.slane %v761_v16, 4  ;;  %v769_v36 = vsel %vm4297_vm5, %v3772_v32, %v768_v22  ;;  %v3785_v4 = vld [vmem:[%s4218_s30 + $0x48] sm:$0xf]  ;;  %v3784_v5 = vld [vmem:[%s4218_s30 + $0x40] sm:$0xf] }
  0x49   : > { %v772_v35 = vsel %vm4297_vm5, %v770_v30, %v771_v31  ;;  %v3793_v6 = vld [vmem:[%s4218_s30 + $0x14] sm:$0x1]  ;;  %v3804_v16 = vld [vmem:[%s4218_s30 + $0x40] sm:$0xf]  ;;  %v362_v17 = vld [vmem:[%s4218_s30 + $0x4c] sm:$0xf] }
  0x4a   : > { %v765_v38 = vsel %vm4297_vm5, %v763_v33, %v764_v34  ;;  %v363_v11 = vld [vmem:[%s4218_s30 + $0x54] sm:$0xf]  ;;  %v361_v19 = vld [vmem:[%s4218_s30 + $0x48] sm:$0xf]  ;;  %v3803_v20 = vld [vmem:[%s4218_s30 + $0x3c] sm:$0xf] }
  0x4b   : > { %v3809_v14 = vld [vmem:[%s4218_s30 + $0x54] sm:$0xf]  ;;  %380 = vst.msk [vmem:[#allocation2 + $0x38] sm:$0xf] %vm6206_vm6, %v363_v11  ;;  %v1069_v29 = vshll.u32 %v3804_v16, 16  ;;  %v1073_v30 = vshrl.u32 %v3804_v16, 16 }
  0x4c   : > { %v1108_v24 = vshrl.u32 %v3809_v14, 16  ;;  %v1111_v27 = vshll.u32 %v3809_v14, 16  ;;  %379 = vst.msk [vmem:[#allocation2 + $0x34] sm:$0xf] %vm6206_vm6, %v362_v17  ;;  %v3787_v31 = vld [vmem:[%s4218_s30 + $0x54] sm:$0xf] }
  0x4d   : > { %378 = vst.msk [vmem:[#allocation2 + $0x30] sm:$0xf] %vm6206_vm6, %v361_v19  ;;  %v1060_v32 = vshrl.u32 %v3803_v20, 16  ;;  %v1063_v33 = vshll.u32 %v3803_v20, 16  ;;  %v3810_v41 = vld [vmem:[%s4218_s30 + $0x58] sm:$0xf] }
  0x4e   : > { %v1113_v39 = vrot.slane %v1111_v27, 5  ;;  %v1117_v51 = vshll.u32 %v3810_v41, 16  ;;  %v3835_v27 = vld [vmem:[%s4218_s30 + $0x5c] sm:$0x1] }
  0x4f   : > { %779 = vrot.lane.b32.xlu1 %v730_v45, %s4138_s7  ;;  %v354_v45 = vld [vmem:[%s4218_s30 + $0x1c] sm:$0xf]  ;;  %v1065_v46 = vrot.slane %v1063_v33, 5  ;;  %v3883_v33 = vld [vmem:[%s4218_s30 + $0x60] sm:$0xf] }
  0x50   : > { %777 = vrot.lane.b32.xlu0 %v727_v37, %s4138_s7  ;;  %775 = vrot.lane.b32.xlu2 %v723_v50, %s4138_s7  ;;  %371 = vst.msk [vmem:[#allocation2 + $0x14] sm:$0xf] %vm6206_vm6, %v354_v45  ;;  %v352_v37 = vld [vmem:[%s4218_s30 + $0x10] sm:$0xf]  ;;  %v1119_v59 = vrot.slane %v1117_v51, 5 }
  0x51   : > { %369 = vst.msk [vmem:[#allocation2 + $0xc] sm:$0xf] %vm6206_vm6, %v352_v37  ;;  %v357_v50 = vld [vmem:[%s4218_s30 + $0x30] sm:$0xf]  ;;  %v1062_v37 = vrot.slane %v1060_v32, 4  ;;  %v1315_v32 = vrot.slane %v3835_v27, 5 }
  0x52   : > { %374 = vst.msk [vmem:[#allocation2 + $0x20] sm:$0xf] %vm6206_vm6, %v357_v50  ;;  %v3884_v51 = vld [vmem:[%s4218_s30 + $0x64] sm:$0xf] }
  0x53   : > { %v1066_v57 = vor.u32 %v1065_v46, %v1062_v37 }
  0x57   : > { %785 = vrot.lane.b32.xlu1 %v741_v58, %s4138_s7  ;;  %v3791_v58 = vld [vmem:[%s4218_s30 + $0xc] sm:$0xf] }
  0x58   : > { %783 = vrot.lane.b32.xlu0 %v737_v60, %s4138_s7  ;;  %781 = vrot.lane.b32.xlu2 %v734_v63, %s4138_s7  ;;  %v359_v60 = vld [vmem:[%s4218_s30 + $0x3c] sm:$0xf]  ;;  %v964_v2 = vshrl.u32 %v3791_v58, 16  ;;  %v967_v3 = vshll.u32 %v3791_v58, 16 }
  0x59   : > { %376 = vst.msk [vmem:[#allocation2 + $0x28] sm:$0xf] %vm6206_vm6, %v359_v60 }
  0x5a   : > { %v966_v9 = vrot.slane %v964_v2, 4  ;;  %v969_v10 = vrot.slane %v967_v3, 5 }
  0x5f   : > { %791 = vrot.lane.b32.xlu1 %v751_v7, %s4138_s7  ;;  %v4430_v7 = vrot.slane %v973_v0, 5 }
  0x60   : > { %789 = vrot.lane.b32.xlu0 %v748_v8, %s4138_s7  ;;  %787 = vrot.lane.b32.xlu2 %v744_v13, %s4138_s7  ;;  %v979_v8 = vrot.slane %v977_v1, 4  ;;  %v983_v13 = vshll.u32 %v3793_v6, 16  ;;  %v1067_v1 = vrot.slane %v1066_v57, 4 }
  0x62   : > { %v980_v22 = vor.u32 %v979_v8, %v4430_v7  ;;  %v985_v34 = vrot.slane %v983_v13, 5  ;;  %v3829_v8 = vld [vmem:[%s4218_s30 + $0x44] sm:$0x1] }
  0x63   : > { %v1301_v14 = vrot.slane %v3829_v8, 5 }
  0x67   : > { %797 = vrot.lane.b32.xlu1 %v762_v21, %s4138_s7  ;;  %v3789_v21 = vld [vmem:[%s4218_s30 + $0x60] sm:$0xf] }
  0x68   : > { %795 = vrot.lane.b32.xlu0 %v758_v23, %s4138_s7  ;;  %793 = vrot.lane.b32.xlu2 %v755_v28, %s4138_s7  ;;  %v970_v23 = vor.u32 %v969_v10, %v966_v9  ;;  %v3788_v28 = vld [vmem:[%s4218_s30 + $0x58] sm:$0xf]  ;;  %v3827_v9 = vld [vmem:[%s4218_s30 + $0x3c] sm:$0xe] }
  0x69   : > { %v3843_v16 = vrot.slane %v3827_v9, 9  ;;  %v3902_v9 = vld [vmem:[%s4218_s30 + $0x4c] sm:$0xf] }
  0x6f   : > { %803 = vrot.lane.b32.xlu1 %v772_v35, %s4138_s7  ;;  %v981_v35 = vrot.slane %v980_v22, 4 }
  0x70   : > { %801 = vrot.lane.b32.xlu0 %v769_v36, %s4138_s7  ;;  %799 = vrot.lane.b32.xlu2 %v765_v38, %s4138_s7  ;;  %v971_v36 = vrot.slane %v970_v23, 4  ;;  %v1110_v38 = vrot.slane %v1108_v24, 4 }
  0x72   : > { %v1114_v50 = vor.u32 %v1113_v39, %v1110_v38  ;;  %v976_v52 = vsel %vm4229_vm2, %v971_v36, %v4430_v7  ;;  %v3878_v36 = vld [vmem:[%s4218_s30 + $0x4c] sm:$0xf]  ;;  %v3877_v39 = vld [vmem:[%s4218_s30 + $0x48] sm:$0xf] }
  0x73   : > { %v1611_v46 = vshrl.u32 %v3877_v39, 16 }
  0x74   : > { %v1115_v58 = vrot.slane %v1114_v50, 4 }
  0x77   : > { %878 = vrot.lane.b32.xlu1 %v3777_v42, %s4139_s8  ;;  %v3805_v42 = vld [vmem:[%s4218_s30 + $0x44] sm:$0x1] }
  0x78   : > { %876 = vrot.lane.b32.xlu0 %v3776_v43, %s4139_s8  ;;  %874 = vrot.lane.b32.xlu2 %v3775_v44, %s4139_s8  ;;  %v1071_v43 = vrot.slane %v1069_v29, 5  ;;  %v1075_v44 = vrot.slane %v1073_v30, 4  ;;  %v3833_v29 = vld [vmem:[%s4218_s30 + $0x54] sm:$0xe] }
  0x7a   : > { %v1072_v10 = vsel %vm4229_vm2, %v1067_v1, %v1071_v43  ;;  %v1672_v1 = vshrl.u32 %v3884_v51, 16 }
  0x7f   : > { %884 = vrot.lane.b32.xlu1 %v3780_v47, %s4139_s8  ;;  %v364_v47 = vld [vmem:[%s4218_s30 + $0x58] sm:$0xf] }
  0x80   : > { %882 = vrot.lane.b32.xlu0 %v3779_v48, %s4139_s8  ;;  %880 = vrot.lane.b32.xlu2 %v3778_v49, %s4139_s8  ;;  %v986_v49 = vsel %vm4229_vm2, %v981_v35, %v985_v34  ;;  %381 = vst.msk [vmem:[#allocation2 + $0x3c] sm:$0xf] %vm6206_vm6, %v364_v47  ;;  %v3845_v35 = vrot.slane %v3833_v29, 9  ;;  %v1614_v47 = vshll.u32 %v3877_v39, 16 }
  0x82   : > { %v610_v53 = vpop.permute.xlu2 %609  ;;  %v1616_v57 = vrot.slane %v1614_v47, 5 }
  0x83   : > { %654 = vst.msk [vmem:[#allocation2 + $0x10] sm:$0xf] %vm649_vm7, %v610_v53  ;;  %v1076_v53 = vor.u32 %v1075_v44, %v1071_v43  ;;  %v1620_v44 = vshll.u32 %v3878_v36, 16 }
  0x85   : > { %v1077_v61 = vrot.slane %v1076_v53, 4 }
  0x87   : > { %890 = vrot.lane.b32.xlu1 %v3783_v54, %s4139_s8  ;;  %v1079_v54 = vshll.u32 %v3805_v42, 16  ;;  %v1662_v42 = vshll.u32 %v3883_v33, 16 }
  0x88   : > { %888 = vrot.lane.b32.xlu0 %v3782_v55, %s4139_s8  ;;  %886 = vrot.lane.b32.xlu2 %v3781_v56, %s4139_s8  ;;  %v1121_v55 = vshrl.u32 %v3810_v41, 16  ;;  %v3790_v56 = vld [vmem:[%s4218_s30 + $0x64] sm:$0xf]  ;;  %v1659_v41 = vshrl.u32 %v3883_v33, 16 }
  0x8a   : > { %v612_v63 = vpop.permute.xlu2 %611  ;;  %v1123_v2 = vrot.slane %v1121_v55, 4  ;;  %v3879_v55 = vld [vmem:[%s4218_s30 + $0x50] sm:$0x1] }
  0x8b   : > { %655 = vst.msk [vmem:[#allocation2 + $0x14] sm:$0xf] %vm649_vm7, %v612_v63  ;;  %v3828_v63 = vld [vmem:[%s4218_s30 + $0x40] sm:$0xf] }
  0x8c   : > { %v1298_v6 = vrot.slane %v3828_v63, 5  ;;  %v1124_v11 = vor.u32 %v1123_v2, %v1119_v59  ;;  %v3858_v2 = vld [vmem:[%s4218_s30 + $0x4c] sm:$0xf] }
  0x8e   : > { %v1300_v13 = vrot.slane %v1298_v6, 4  ;;  %v1125_v19 = vrot.slane %v1124_v11, 4  ;;  %v1299_v23 = vsel %vm4297_vm5, %v3843_v16, %v1298_v6 }
  0x8f   : > { %896 = vrot.lane.b32.xlu1 %v3786_v62, %s4139_s8  ;;  %v1081_v62 = vrot.slane %v1079_v54, 5 }
  0x90   : > { %894 = vrot.lane.b32.xlu0 %v3785_v4, %s4139_s8  ;;  %892 = vrot.lane.b32.xlu2 %v3784_v5, %s4139_s8  ;;  %v3811_v4 = vld [vmem:[%s4218_s30 + $0x5c] sm:$0x1]  ;;  %v1120_v5 = vsel %vm4229_vm2, %v1115_v58, %v1119_v59  ;;  %v1302_v22 = vsel %vm4297_vm5, %v1300_v13, %v1301_v14  ;;  %v3862_v59 = vld [vmem:[%s4218_s30 + $0x64] sm:$0xf]  ;;  %v1674_v13 = vrot.slane %v1672_v1, 4 }
  0x91   : > { %v606_v12 = vpop.permute.xlu1 %605  ;;  %v1082_v7 = vsel %vm4229_vm2, %v1077_v61, %v1081_v62  ;;  %v1668_v61 = vshll.u32 %v3884_v51, 16  ;;  %v3861_v62 = vld [vmem:[%s4218_s30 + $0x60] sm:$0xf] }
  0x92   : > { %652 = vst.msk [vmem:[#allocation2 + $0x8] sm:$0xf] %vm649_vm7, %v606_v12  ;;  %v602_v15 = vpop.permute.xlu0 %601  ;;  %v618_v18 = vpop.permute.xlu2 %617  ;;  %v1127_v12 = vshll.u32 %v3811_v4, 16 }
  0x93   : > { %650 = vst.msk [vmem:[#allocation2] sm:$0xf] %vm649_vm7, %v602_v15 }
  0x94   : > { %658 = vst.msk [vmem:[#allocation2 + $0x20] sm:$0xf] %vm649_vm7, %v618_v18  ;;  %v3834_v18 = vld [vmem:[%s4218_s30 + $0x58] sm:$0xf]  ;;  %v1129_v20 = vrot.slane %v1127_v12, 5 }
  0x95   : > { %v1312_v24 = vrot.slane %v3834_v18, 5 }
  0x97   : > { %902 = vrot.lane.b32.xlu1 %v3789_v21, %s4139_s8  ;;  %v1313_v37 = vsel %vm4297_vm5, %v3845_v35, %v1312_v24 }
  0x98   : > { %900 = vrot.lane.b32.xlu0 %v3788_v28, %s4139_s8  ;;  %898 = vrot.lane.b32.xlu2 %v3787_v31, %s4139_s8  ;;  %v1130_v28 = vsel %vm4229_vm2, %v1125_v19, %v1129_v20  ;;  %v1314_v31 = vrot.slane %v1312_v24, 4 }
  0x99   : > { %v608_v40 = vpop.permute.xlu1 %607 }
  0x9a   : > { %653 = vst.msk [vmem:[#allocation2 + $0xc] sm:$0xf] %vm649_vm7, %v608_v40  ;;  %v604_v45 = vpop.permute.xlu0 %603  ;;  %v624_v48 = vpop.permute.xlu2 %623  ;;  %v3857_v40 = vld [vmem:[%s4218_s30 + $0x48] sm:$0xf]  ;;  %v1316_v43 = vsel %vm4297_vm5, %v1314_v31, %v1315_v32 }
  0x9b   : > { %651 = vst.msk [vmem:[#allocation2 + $0x4] sm:$0xf] %vm649_vm7, %v604_v45  ;;  %v1624_v45 = vshrl.u32 %v3878_v36, 16  ;;  %v3908_v36 = vld [vmem:[%s4218_s30 + $0x64] sm:$0xf] }
  0x9c   : > { %661 = vst.msk [vmem:[#allocation2 + $0x2c] sm:$0xf] %vm649_vm7, %v624_v48  ;;  %v1661_v48 = vrot.slane %v1659_v41, 4 }
  0x9d   : > { %v1626_v53 = vrot.slane %v1624_v45, 4  ;;  %v1863_v45 = vrot.slane %v3908_v36, 5 }
  0x9f   : > { %1157 = vrot.lane.b32.xlu1 %v986_v49, %s4140_s9  ;;  %v1664_v49 = vrot.slane %v1662_v42, 5 }
  0xa0   : > { %1155 = vrot.lane.b32.xlu0 %v976_v52, %s4140_s9  ;;  %904 = vrot.lane.b32.xlu2 %v3790_v56, %s4139_s8  ;;  %v1622_v52 = vrot.slane %v1620_v44, 5  ;;  %v1613_v56 = vrot.slane %v1611_v46, 4  ;;  %v3909_v46 = vld [vmem:[%s4218_s30 + $0x68] sm:$0x1] }
  0xa1   : > { %v616_v60 = vpop.permute.xlu1 %615 }
  0xa2   : > { %657 = vst.msk [vmem:[#allocation2 + $0x1c] sm:$0xf] %vm649_vm7, %v616_v60  ;;  %v614_v0 = vpop.permute.xlu0 %613  ;;  %v630_v3 = vpop.permute.xlu2 %629  ;;  %v1665_v60 = vor.u32 %v1664_v49, %v1661_v48  ;;  %v1627_v63 = vor.u32 %v1626_v53, %v1622_v52  ;;  %v3907_v48 = vld [vmem:[%s4218_s30 + $0x60] sm:$0xe]  ;;  %v1866_v53 = vrot.slane %v3909_v46, 5 }
  0xa3   : > { %656 = vst.msk [vmem:[#allocation2 + $0x18] sm:$0xf] %vm649_vm7, %v614_v0  ;;  %v1630_v0 = vshll.u32 %v3879_v55, 16  ;;  %v3867_v46 = vld [vmem:[%s4218_s30 + $0x20] sm:$0x1] }
  0xa4   : > { %664 = vst.msk [vmem:[#allocation2 + $0x38] sm:$0xf] %vm649_vm7, %v630_v3  ;;  %v1617_v3 = vor.u32 %v1616_v57, %v1613_v56  ;;  %v1666_v4 = vrot.slane %v1665_v60, 4  ;;  %v3919_v56 = vrot.slane %v3907_v48, 9 }
  0xa5   : > { %v1632_v8 = vrot.slane %v1630_v0, 5  ;;  %v3815_v0 = vld [vmem:[%s4218_s30 + $0xc] sm:$0xe] }
  0xa6   : > { %v1618_v12 = vrot.slane %v1617_v3, 4  ;;  %v1864_v1 = vsel %vm4297_vm5, %v3919_v56, %v1863_v45 }
  0xa7   : > { %1179 = vrot.lane.b32.xlu1 %v1120_v5, %s4140_s9  ;;  %v1670_v5 = vrot.slane %v1668_v61, 5 }
  0xa8   : > { %1173 = vrot.lane.b32.xlu0 %v1082_v7, %s4140_s9  ;;  %1171 = vrot.lane.b32.xlu2 %v1072_v10, %s4140_s9  ;;  %v1628_v7 = vrot.slane %v1627_v63, 4  ;;  %v3797_v10 = vld [vmem:[%s4218_s30 + $0x24] sm:$0xf]  ;;  %v3817_v63 = vld [vmem:[%s4218_s30 + $0x14] sm:$0x1] }
  0xa9   : > { %v622_v15 = vpop.permute.xlu1 %621  ;;  %v1671_v16 = vsel %vm4229_vm2, %v1666_v4, %v1670_v5  ;;  %v1012_v18 = vshrl.u32 %v3797_v10, 16  ;;  %v1015_v19 = vshll.u32 %v3797_v10, 16  ;;  %v1675_v24 = vor.u32 %v1674_v13, %v1670_v5 }
  0xaa   : > { %660 = vst.msk [vmem:[#allocation2 + $0x28] sm:$0xf] %vm649_vm7, %v622_v15  ;;  %v620_v17 = vpop.permute.xlu0 %619  ;;  %v776_v21 = vpop.permute.xlu2 %775  ;;  %v3885_v15 = vld [vmem:[%s4218_s30 + $0x68] sm:$0x1]  ;;  %v1633_v20 = vsel %vm4229_vm2, %v1628_v7, %v1632_v8  ;;  %v1273_v5 = vrot.slane %v3817_v63, 5  ;;  %v3839_v7 = vrot.slane %v3815_v0, 9 }
  0xab   : > { %659 = vst.msk [vmem:[#allocation2 + $0x24] sm:$0xf] %vm649_vm7, %v620_v17  ;;  %v1849_v17 = vrot.slane %v3902_v9, 5  ;;  %v1678_v27 = vshll.u32 %v3885_v15, 16  ;;  %v1017_v31 = vrot.slane %v1015_v19, 5 }
  0xac   : > { %823 = vst.msk [vmem:[#allocation2 + $0x4] sm:$0xf] %vm821_vm8, %v776_v21  ;;  %v3903_v21 = vld [vmem:[%s4218_s30 + $0x50] sm:$0x1]  ;;  %v3822_v9 = vld [vmem:[%s4218_s30 + $0x28] sm:$0xf] }
  0xad   : > { %v1852_v29 = vrot.slane %v3903_v21, 5  ;;  %v1680_v39 = vrot.slane %v1678_v27, 5  ;;  %v1284_v15 = vrot.slane %v3822_v9, 5  ;;  %v3866_v27 = vld [vmem:[%s4218_s30 + $0x1c] sm:$0xf] }
  0xae   : > { %v3891_v9 = vld [vmem:[%s4218_s30 + $0x20] sm:$0x1] }
  0xaf   : > { %1342 = vrot.lane.b32.xlu1 %v1302_v22, %s4141_s10  ;;  %v3901_v22 = vld [vmem:[%s4218_s30 + $0x48] sm:$0xe] }
  0xb0   : > { %1340 = vrot.lane.b32.xlu0 %v1299_v23, %s4141_s10  ;;  %1181 = vrot.lane.b32.xlu2 %v1130_v28, %s4140_s9  ;;  %v1623_v23 = vsel %vm4229_vm2, %v1618_v12, %v1622_v52  ;;  %v1851_v28 = vrot.slane %v1849_v17, 4  ;;  %v3917_v33 = vrot.slane %v3901_v22, 9  ;;  %v1865_v52 = vrot.slane %v1863_v45, 4  ;;  %v3871_v22 = vld [vmem:[%s4218_s30 + $0x30] sm:$0xf] }
  0xb1   : > { %v628_v30 = vpop.permute.xlu1 %627 }
  0xb2   : > { %663 = vst.msk [vmem:[#allocation2 + $0x34] sm:$0xf] %vm649_vm7, %v628_v30  ;;  %v626_v34 = vpop.permute.xlu0 %625  ;;  %v782_v38 = vpop.permute.xlu2 %781  ;;  %v1014_v30 = vrot.slane %v1012_v18, 4  ;;  %v1853_v41 = vsel %vm4297_vm5, %v1851_v28, %v1852_v29  ;;  %v1850_v44 = vsel %vm4297_vm5, %v3917_v33, %v1849_v17  ;;  %v3821_v18 = vld [vmem:[%s4218_s30 + $0x24] sm:$0xe] }
  0xb3   : > { %662 = vst.msk [vmem:[#allocation2 + $0x30] sm:$0xf] %vm649_vm7, %v626_v34  ;;  %v3798_v34 = vld [vmem:[%s4218_s30 + $0x28] sm:$0xf]  ;;  %v3865_v29 = vld [vmem:[%s4218_s30 + $0x18] sm:$0xf] }
  0xb4   : > { %826 = vst.msk [vmem:[#allocation2 + $0x10] sm:$0xf] %vm821_vm8, %v782_v38  ;;  %v1676_v38 = vrot.slane %v1675_v24, 4  ;;  %v1018_v42 = vor.u32 %v1017_v31, %v1014_v30  ;;  %v3841_v24 = vrot.slane %v3821_v18, 9  ;;  %v3849_v30 = vld [vmem:[%s4218_s30 + $0x18] sm:$0xf] }
  0xb5   : > { %v1563_v31 = vshrl.u32 %v3871_v22, 16  ;;  %v1824_v18 = vrot.slane %v3891_v9, 5 }
  0xb6   : > { %v1681_v47 = vsel %vm4229_vm2, %v1676_v38, %v1680_v39  ;;  %v1019_v49 = vrot.slane %v1018_v42, 4  ;;  %v1285_v36 = vsel %vm4297_vm5, %v3841_v24, %v1284_v15  ;;  %v1515_v38 = vshrl.u32 %v3865_v29, 16  ;;  %v3896_v24 = vld [vmem:[%s4218_s30 + $0x34] sm:$0xf] }
  0xb7   : > { %1441 = vrot.lane.b32.xlu1 %v3857_v40, %s4142_s11  ;;  %v1518_v39 = vshll.u32 %v3865_v29, 16 }
  0xb8   : > { %1350 = vrot.lane.b32.xlu0 %v1316_v43, %s4141_s10  ;;  %1348 = vrot.lane.b32.xlu2 %v1313_v37, %s4141_s10  ;;  %v1021_v43 = vshll.u32 %v3798_v34, 16  ;;  %v1025_v37 = vshrl.u32 %v3798_v34, 16  ;;  %v1524_v34 = vshll.u32 %v3866_v27, 16 }
  0xb9   : > { %v774_v50 = vpop.permute.xlu1 %773  ;;  %v1520_v48 = vrot.slane %v1518_v39, 5 }
  0xba   : > { %822 = vst.msk [vmem:[#allocation2] sm:$0xf] %vm821_vm8, %v774_v50  ;;  %v632_v54 = vpop.permute.xlu0 %631  ;;  %v788_v58 = vpop.permute.xlu2 %787  ;;  %v1023_v50 = vrot.slane %v1021_v43, 5  ;;  %v1027_v57 = vrot.slane %v1025_v37, 4  ;;  %v3872_v43 = vld [vmem:[%s4218_s30 + $0x34] sm:$0xf] }
  0xbb   : > { %665 = vst.msk [vmem:[#allocation2 + $0x3c] sm:$0xf] %vm649_vm7, %v632_v54  ;;  %v3816_v54 = vld [vmem:[%s4218_s30 + $0x10] sm:$0xf]  ;;  %v1576_v56 = vshrl.u32 %v3872_v43, 16 }
  0xbc   : > { %829 = vst.msk [vmem:[#allocation2 + $0x1c] sm:$0xf] %vm821_vm8, %v788_v58  ;;  %v1024_v60 = vsel %vm4229_vm2, %v1019_v49, %v1023_v50  ;;  %v1270_v61 = vrot.slane %v3816_v54, 5 }
  0xbe   : > { %v1272_v4 = vrot.slane %v1270_v61, 4 }
  0xbf   : > { %1451 = vrot.lane.b32.xlu1 %v3862_v59, %s4142_s11  ;;  %v3799_v59 = vld [vmem:[%s4218_s30 + $0x2c] sm:$0x1] }
  0xc0   : > { %1449 = vrot.lane.b32.xlu0 %v3861_v62, %s4142_s11  ;;  %1443 = vrot.lane.b32.xlu2 %v3858_v2, %s4142_s11  ;;  %v1867_v62 = vsel %vm4297_vm5, %v1865_v52, %v1866_v53  ;;  %v1028_v2 = vor.u32 %v1027_v57, %v1023_v50  ;;  %v1031_v3 = vshll.u32 %v3799_v59, 16  ;;  %v1274_v13 = vsel %vm4297_vm5, %v1272_v4, %v1273_v5  ;;  %v3854_v50 = vld [vmem:[%s4218_s30 + $0x34] sm:$0xf]  ;;  %v3853_v53 = vld [vmem:[%s4218_s30 + $0x30] sm:$0xf] }
  0xc1   : > { %v780_v6 = vpop.permute.xlu1 %779  ;;  %v1572_v52 = vshll.u32 %v3872_v43, 16  ;;  %v3850_v57 = vld [vmem:[%s4218_s30 + $0x1c] sm:$0xf]  ;;  %v1578_v4 = vrot.slane %v1576_v56, 4 }
  0xc2   : > { %825 = vst.msk [vmem:[#allocation2 + $0xc] sm:$0xf] %vm821_vm8, %v780_v6  ;;  %v778_v11 = vpop.permute.xlu0 %777  ;;  %v794_v14 = vpop.permute.xlu2 %793  ;;  %v1029_v10 = vrot.slane %v1028_v2, 4 }
  0xc3   : > { %824 = vst.msk [vmem:[#allocation2 + $0x8] sm:$0xf] %vm821_vm8, %v778_v11  ;;  %v1033_v11 = vrot.slane %v1031_v3, 5 }
  0xc4   : > { %832 = vst.msk [vmem:[#allocation2 + $0x28] sm:$0xf] %vm821_vm8, %v794_v14  ;;  %v1271_v14 = vsel %vm4297_vm5, %v3839_v7, %v1270_v61  ;;  %v3890_v61 = vld [vmem:[%s4218_s30 + $0x1c] sm:$0xf]  ;;  %v3873_v7 = vld [vmem:[%s4218_s30 + $0x38] sm:$0x1] }
  0xc5   : > { %v1034_v17 = vsel %vm4229_vm2, %v1029_v10, %v1033_v11  ;;  %v1821_v5 = vrot.slane %v3890_v61, 5 }
  0xc7   : > { %1730 = vrot.lane.b32.xlu1 %v1671_v16, %s4143_s12  ;;  %v3823_v16 = vld [vmem:[%s4218_s30 + $0x2c] sm:$0x1] }
  0xc8   : > { %1724 = vrot.lane.b32.xlu0 %v1633_v20, %s4143_s12  ;;  %1722 = vrot.lane.b32.xlu2 %v1623_v23, %s4143_s12  ;;  %v1286_v20 = vrot.slane %v1284_v15, 4  ;;  %v1287_v21 = vrot.slane %v3823_v16, 5  ;;  %v1582_v16 = vshll.u32 %v3873_v7, 16 }
  0xc9   : > { %v786_v32 = vpop.permute.xlu1 %785 }
  0xca   : > { %828 = vst.msk [vmem:[#allocation2 + $0x18] sm:$0xf] %vm821_vm8, %v786_v32  ;;  %v784_v35 = vpop.permute.xlu0 %783  ;;  %v800_v40 = vpop.permute.xlu2 %799  ;;  %v1566_v32 = vshll.u32 %v3871_v22, 16  ;;  %v1288_v33 = vsel %vm4297_vm5, %v1286_v20, %v1287_v21 }
  0xcb   : > { %827 = vst.msk [vmem:[#allocation2 + $0x14] sm:$0xf] %vm821_vm8, %v784_v35  ;;  %v1528_v35 = vshrl.u32 %v3866_v27, 16  ;;  %v3813_v27 = vld [vmem:[%s4218_s30 + $0x64] sm:$0xf] }
  0xcc   : > { %835 = vst.msk [vmem:[#allocation2 + $0x34] sm:$0xf] %vm821_vm8, %v800_v40  ;;  %v1565_v40 = vrot.slane %v1563_v31, 4  ;;  %v3812_v31 = vld [vmem:[%s4218_s30 + $0x60] sm:$0xf] }
  0xcd   : > { %v1530_v45 = vrot.slane %v1528_v35, 4 }
  0xcf   : > { %1893 = vrot.lane.b32.xlu1 %v1853_v41, %s4144_s13  ;;  %v1568_v41 = vrot.slane %v1566_v32, 5 }
  0xd0   : > { %1891 = vrot.lane.b32.xlu0 %v1850_v44, %s4144_s13  ;;  %1732 = vrot.lane.b32.xlu2 %v1681_v47, %s4143_s12  ;;  %v1526_v44 = vrot.slane %v1524_v34, 5  ;;  %v1517_v47 = vrot.slane %v1515_v38, 4  ;;  %v1145_v38 = vshrl.u32 %v3813_v27, 16 }
  0xd1   : > { %v792_v51 = vpop.permute.xlu1 %791 }
  0xd2   : > { %831 = vst.msk [vmem:[#allocation2 + $0x24] sm:$0xf] %vm821_vm8, %v792_v51  ;;  %v790_v55 = vpop.permute.xlu0 %789  ;;  %v875_v58 = vpop.permute.xlu2 %874  ;;  %v1569_v51 = vor.u32 %v1568_v41, %v1565_v40  ;;  %v1531_v54 = vor.u32 %v1530_v45, %v1526_v44  ;;  %v1835_v40 = vrot.slane %v3896_v24, 5  ;;  %v1132_v41 = vshrl.u32 %v3812_v31, 16 }
  0xd3   : > { %830 = vst.msk [vmem:[#allocation2 + $0x20] sm:$0xf] %vm821_vm8, %v790_v55  ;;  %v1534_v55 = vshll.u32 %v3867_v46, 16 }
  0xd4   : > { %923 = vst.msk [vmem:[#allocation2] sm:$0xf] %vm922_vm9, %v875_v58  ;;  %v1521_v58 = vor.u32 %v1520_v48, %v1517_v47  ;;  %v1570_v59 = vrot.slane %v1569_v51, 4  ;;  %v1532_v63 = vrot.slane %v1531_v54, 4  ;;  %v1837_v51 = vrot.slane %v1835_v40, 4 }
  0xd5   : > { %v1536_v0 = vrot.slane %v1534_v55, 5  ;;  %v1134_v54 = vrot.slane %v1132_v41, 4  ;;  %v3838_v41 = vld [vmem:[%s4218_s30 + $0x68] sm:$0x1] }
  0xd6   : > { %v1522_v3 = vrot.slane %v1521_v58, 4 }
  0xd7   : > { %1163 = vrot.lane.b32.xlu1 %v1024_v60, %s4140_s9  ;;  %v1574_v60 = vrot.slane %v1572_v52, 5 }
  0xd8   : > { %1901 = vrot.lane.b32.xlu0 %v1867_v62, %s4144_s13  ;;  %1899 = vrot.lane.b32.xlu2 %v1864_v1, %s4144_s13  ;;  %v3806_v1 = vld [vmem:[%s4218_s30 + $0x48] sm:$0xf] }
  0xd9   : > { %v798_v6 = vpop.permute.xlu1 %797  ;;  %v1084_v10 = vshrl.u32 %v3806_v1, 16  ;;  %v1087_v11 = vshll.u32 %v3806_v1, 16  ;;  %v1579_v15 = vor.u32 %v1578_v4, %v1574_v60 }
  0xda   : > { %834 = vst.msk [vmem:[#allocation2 + $0x30] sm:$0xf] %vm821_vm8, %v798_v6  ;;  %v796_v8 = vpop.permute.xlu0 %795  ;;  %v881_v12 = vpop.permute.xlu2 %880 }
  0xdb   : > { %833 = vst.msk [vmem:[#allocation2 + $0x2c] sm:$0xf] %vm821_vm8, %v796_v8  ;;  %v1575_v8 = vsel %vm4229_vm2, %v1570_v59, %v1574_v60  ;;  %v1086_v20 = vrot.slane %v1084_v10, 4  ;;  %v1089_v21 = vrot.slane %v1087_v11, 5  ;;  %v1580_v29 = vrot.slane %v1579_v15, 4 }
  0xdc   : > { %926 = vst.msk [vmem:[#allocation2 + $0xc] sm:$0xf] %vm922_vm9, %v881_v12  ;;  %v1537_v12 = vsel %vm4229_vm2, %v1532_v63, %v1536_v0  ;;  %v3808_v60 = vld [vmem:[%s4218_s30 + $0x50] sm:$0x1]  ;;  %v3831_v10 = vld [vmem:[%s4218_s30 + $0x4c] sm:$0xf] }
  0xdd   : > { %v1090_v34 = vor.u32 %v1089_v21, %v1086_v20  ;;  %v1103_v4 = vshll.u32 %v3808_v60, 16  ;;  %v3830_v21 = vld [vmem:[%s4218_s30 + $0x48] sm:$0xe] }
  0xdf   : > { %1326 = vrot.lane.b32.xlu1 %v1274_v13, %s4141_s10  ;;  %v3889_v13 = vld [vmem:[%s4218_s30 + $0x18] sm:$0xe]  ;;  %v1091_v46 = vrot.slane %v1090_v34, 4 }
  0xe0   : > { %1324 = vrot.lane.b32.xlu0 %v1271_v14, %s4141_s10  ;;  %1165 = vrot.lane.b32.xlu2 %v1034_v17, %s4140_s9  ;;  %v1527_v14 = vsel %vm4229_vm2, %v1522_v3, %v1526_v44  ;;  %v1823_v17 = vrot.slane %v1821_v5, 4  ;;  %v3897_v44 = vld [vmem:[%s4218_s30 + $0x38] sm:$0x1] }
  0xe1   : > { %v804_v19 = vpop.permute.xlu1 %803  ;;  %v1838_v52 = vrot.slane %v3897_v44, 5 }
  0xe2   : > { %837 = vst.msk [vmem:[#allocation2 + $0x3c] sm:$0xf] %vm821_vm8, %v804_v19  ;;  %v802_v23 = vpop.permute.xlu0 %801  ;;  %v887_v28 = vpop.permute.xlu2 %886  ;;  %v3913_v19 = vrot.slane %v3889_v13, 9  ;;  %v1825_v32 = vsel %vm4297_vm5, %v1823_v17, %v1824_v18  ;;  %v3837_v17 = vld [vmem:[%s4218_s30 + $0x64] sm:$0xf]  ;;  %v1305_v18 = vrot.slane %v3831_v10, 5 }
  0xe3   : > { %836 = vst.msk [vmem:[#allocation2 + $0x38] sm:$0xf] %vm821_vm8, %v802_v23  ;;  %v3807_v23 = vld [vmem:[%s4218_s30 + $0x4c] sm:$0xf]  ;;  %v1839_v0 = vsel %vm4297_vm5, %v1837_v51, %v1838_v52  ;;  %v3860_v52 = vld [vmem:[%s4218_s30 + $0x58] sm:$0xf] }
  0xe4   : > { %929 = vst.msk [vmem:[#allocation2 + $0x18] sm:$0xf] %vm922_vm9, %v887_v28  ;;  %v1093_v35 = vshll.u32 %v3807_v23, 16  ;;  %v1822_v39 = vsel %vm4297_vm5, %v3913_v19, %v1821_v5  ;;  %v1097_v43 = vshrl.u32 %v3807_v23, 16  ;;  %v3832_v19 = vld [vmem:[%s4218_s30 + $0x50] sm:$0x1] }
  0xe5   : > { %v1319_v23 = vrot.slane %v3837_v17, 5  ;;  %v3864_v17 = vld [vmem:[%s4218_s30 + $0x70] sm:$0xf] }
  0xe6   : > { %v1095_v47 = vrot.slane %v1093_v35, 5  ;;  %v1099_v58 = vrot.slane %v1097_v43, 4 }
  0xe7   : > { %1425 = vrot.lane.b32.xlu1 %v3849_v30, %s4142_s11  ;;  %v1584_v30 = vrot.slane %v1582_v16, 5  ;;  %v3836_v16 = vld [vmem:[%s4218_s30 + $0x60] sm:$0xe] }
  0xe8   : > { %1334 = vrot.lane.b32.xlu0 %v1288_v33, %s4141_s10  ;;  %1332 = vrot.lane.b32.xlu2 %v1285_v36, %s4141_s10  ;;  %v1141_v36 = vshll.u32 %v3813_v27, 16  ;;  %v1096_v61 = vsel %vm4229_vm2, %v1091_v46, %v1095_v47  ;;  %v1100_v3 = vor.u32 %v1099_v58, %v1095_v47  ;;  %v1307_v27 = vrot.slane %v1305_v18, 4  ;;  %v3887_v46 = vld [vmem:[%s4218_s30 + $0x70] sm:$0xf]  ;;  %v3886_v47 = vld [vmem:[%s4218_s30 + $0x6c] sm:$0xf] }
  0xe9   : > { %v879_v42 = vpop.permute.xlu1 %878  ;;  %v1585_v45 = vsel %vm4229_vm2, %v1580_v29, %v1584_v30  ;;  %v3880_v29 = vld [vmem:[%s4218_s30 + $0x54] sm:$0xf]  ;;  %v1696_v58 = vshrl.u32 %v3887_v46, 16  ;;  %v1683_v60 = vshrl.u32 %v3886_v47, 16 }
  0xea   : > { %925 = vst.msk [vmem:[#allocation2 + $0x8] sm:$0xf] %vm922_vm9, %v879_v42  ;;  %v877_v37 = vpop.permute.xlu0 %876  ;;  %v893_v49 = vpop.permute.xlu2 %892  ;;  %v1135_v42 = vshll.u32 %v3812_v31, 16  ;;  %v1143_v48 = vrot.slane %v1141_v36, 5  ;;  %v1101_v11 = vrot.slane %v1100_v3, 4  ;;  %v3844_v31 = vrot.slane %v3830_v21, 9 }
  0xeb   : > { %924 = vst.msk [vmem:[#allocation2 + $0x4] sm:$0xf] %vm922_vm9, %v877_v37  ;;  %v3895_v37 = vld [vmem:[%s4218_s30 + $0x30] sm:$0xe]  ;;  %v1635_v34 = vshrl.u32 %v3880_v29, 16  ;;  %v1638_v35 = vshll.u32 %v3880_v29, 16 }
  0xec   : > { %932 = vst.msk [vmem:[#allocation2 + $0x24] sm:$0xf] %vm922_vm9, %v893_v49  ;;  %v1147_v49 = vrot.slane %v1145_v38, 4  ;;  %v1137_v55 = vrot.slane %v1135_v42, 5  ;;  %v1964_v38 = vld [vmem:[%s6169_s1 + $0x20] sm:$0xf] }
  0xed   : > { %v1637_v42 = vrot.slane %v1635_v34, 4  ;;  %v1640_v43 = vrot.slane %v1638_v35, 5  ;;  %v3905_v29 = vld [vmem:[%s4218_s30 + $0x58] sm:$0xf] }
  0xee   : > { %v1138_v1 = vor.u32 %v1137_v55, %v1134_v54  ;;  %v4024_v54 = vld [vmem:[%s6169_s1 + $0x18] sm:$0xff] }
  0xef   : > { %1435 = vrot.lane.b32.xlu1 %v3854_v50, %s4142_s11  ;;  %v1641_v55 = vor.u32 %v1640_v43, %v1637_v42  ;;  %v3794_v34 = vld [vmem:[%s4218_s30 + $0x18] sm:$0xf]  ;;  %v3911_v42 = vld [vmem:[%s4218_s30 + $0x70] sm:$0xf]  ;;  %v1856_v43 = vrot.slane %v3905_v29, 5 }
  0xf0   : > { %1433 = vrot.lane.b32.xlu0 %v3853_v53, %s4142_s11  ;;  %1427 = vrot.lane.b32.xlu2 %v3850_v57, %s4142_s11  ;;  %v3814_v53 = vld [vmem:[%s4218_s30 + $0x68] sm:$0x1]  ;;  %v3915_v57 = vrot.slane %v3895_v37, 9  ;;  %v3881_v37 = vld [vmem:[%s4218_s30 + $0x58] sm:$0xf] }
  0xf1   : > { %v885_v62 = vpop.permute.xlu1 %884  ;;  %v1151_v63 = vshll.u32 %v3814_v53, 16  ;;  %v3819_v29 = vld [vmem:[%s4218_s30 + $0x1c] sm:$0xf] }
  0xf2   : > { %928 = vst.msk [vmem:[#allocation2 + $0x14] sm:$0xf] %vm922_vm9, %v885_v62  ;;  %v883_v2 = vpop.permute.xlu0 %882  ;;  %v899_v6 = vpop.permute.xlu2 %898  ;;  %v1148_v62 = vor.u32 %v1147_v49, %v1143_v48  ;;  %v1321_v49 = vrot.slane %v1319_v23, 4 }
  0xf3   : > { %927 = vst.msk [vmem:[#allocation2 + $0x10] sm:$0xf] %vm922_vm9, %v883_v2  ;;  %v1836_v2 = vsel %vm4297_vm5, %v3915_v57, %v1835_v40  ;;  %v2022_v40 = vunpack.c.l.b16 %v1964_v38  ;;  %v1692_v57 = vshll.u32 %v3887_v46, 16  ;;  %v3910_v38 = vld [vmem:[%s4218_s30 + $0x6c] sm:$0xe] }
  0xf4   : > { %935 = vst.msk [vmem:[#allocation2 + $0x30] sm:$0xf] %vm922_vm9, %v899_v6  ;;  %v1149_v5 = vrot.slane %v1148_v62, 4  ;;  %v1153_v6 = vrot.slane %v1151_v63, 5  ;;  %v1648_v62 = vshrl.u32 %v3881_v37, 16 }
  0xf5   : > { %v2027_v44 = vpack.c.b16 %v2022_v40, %v2022_v40  ;;  %v4713_v3 = vrot.slane %v1692_v57, 5 }
  0xf6   : > { %v1650_v10 = vrot.slane %v1648_v62, 4  ;;  %v3800_v62 = vld [vmem:[%s4218_s30 + $0x30] sm:$0xf] }
  0xf7   : > { %1714 = vrot.lane.b32.xlu1 %v1575_v8, %s4143_s12  ;;  %v1139_v8 = vrot.slane %v1138_v1, 4  ;;  %v2059_v51 = vsel %vm2057_vm11, %v2027_v44, 0  ;;  %v1642_v1 = vrot.slane %v1641_v55, 4  ;;  %v988_v44 = vshrl.u32 %v3794_v34, 16  ;;  %v3796_v55 = vld [vmem:[%s4218_s30 + $0x20] sm:$0x1] }
  0xf8   : > { %1708 = vrot.lane.b32.xlu0 %v1537_v12, %s4143_s12  ;;  %1706 = vrot.lane.b32.xlu2 %v1527_v14, %s4143_s12  ;;  %v1105_v12 = vrot.slane %v1103_v4, 5  ;;  %v1154_v14 = vsel %vm4229_vm2, %v1149_v5, %v1153_v6  ;;  %v1698_v4 = vrot.slane %v1696_v58, 4  ;;  %v3888_v6 = vld [vmem:[%s4218_s30 + $0x74] sm:$0x1] }
  0xf9   : > { %v891_v22 = vpop.permute.xlu1 %890  ;;  %v1144_v15 = vsel %vm4229_vm2, %v1139_v8, %v1143_v48  ;;  %4026 = vmatpush.bf16.msra.mxu2 %v2059_v51  ;;  %4027 = vmatpush.bf16.msra.mxu3 %v2059_v51 }
  0xfa   : > { %931 = vst.msk [vmem:[#allocation2 + $0x20] sm:$0xf] %vm922_vm9, %v891_v22  ;;  %v889_v28 = vpop.permute.xlu0 %888  ;;  %v905_v33 = vpop.permute.xlu2 %904  ;;  %v1106_v20 = vsel %vm4229_vm2, %v1101_v11, %v1105_v12  ;;  %v3846_v22 = vrot.slane %v3836_v16, 9  ;;  %2064 = vmatpush.bf16.msra.mxu0 %v2059_v51  ;;  %4025 = vmatpush.bf16.msra.mxu1 %v2059_v51  ;;  %v3882_v12 = vld [vmem:[%s4218_s30 + $0x5c] sm:$0x1]  ;;  %v1702_v16 = vshll.u32 %v3888_v6, 16 }
  0xfb   : > { %930 = vst.msk [vmem:[#allocation2 + $0x1c] sm:$0xf] %vm922_vm9, %v889_v28  ;;  %v1308_v28 = vrot.slane %v3832_v19, 5  ;;  %v3863_v19 = vld [vmem:[%s4218_s30 + $0x6c] sm:$0xf]  ;;  %v1654_v21 = vshll.u32 %v3882_v12, 16 }
  0xfc   : > { %938 = vst.msk [vmem:[#allocation2 + $0x3c] sm:$0xf] %vm922_vm9, %v905_v33  ;;  %v1320_v33 = vsel %vm4297_vm5, %v3846_v22, %v1319_v23  ;;  %v4021_v22 = vld [vmem:[%s6169_s1] sm:$0xff] }
  0xfd   : > { %v1309_v36 = vsel %vm4297_vm5, %v1307_v27, %v1308_v28  ;;  %4029 = vmatpush.bf16.msra.mxu2 %v4024_v54  ;;  %4030 = vmatpush.bf16.msra.mxu3 %v4024_v54 }
  0xfe   : > { %2065 = vmatpush.bf16.msra.mxu0 %v4024_v54  ;;  %4028 = vmatpush.bf16.msra.mxu1 %v4024_v54 }
  0xff   : > { %1877 = vrot.lane.b32.xlu1 %v1825_v32, %s4144_s13 }
 0x100   : > { %1875 = vrot.lane.b32.xlu0 %v1822_v39, %s4144_s13  ;;  %1716 = vrot.lane.b32.xlu2 %v1585_v45, %s4143_s12  ;;  %v1306_v39 = vsel %vm4297_vm5, %v3844_v31, %v1305_v18 }
 0x101   : > { %v897_v50 = vpop.permute.xlu1 %896 }
 0x102   : > { %934 = vst.msk [vmem:[#allocation2 + $0x2c] sm:$0xf] %vm922_vm9, %v897_v50  ;;  %v895_v56 = vpop.permute.xlu0 %894  ;;  %v1172_v59 = vpop.permute.xlu2 %1171  ;;  %v1322_v50 = vrot.slane %v3838_v41, 5 }
 0x103   : > { %933 = vst.msk [vmem:[#allocation2 + $0x28] sm:$0xf] %vm922_vm9, %v895_v56  ;;  %v1644_v56 = vshll.u32 %v3881_v37, 16  ;;  %v3906_v37 = vld [vmem:[%s4218_s30 + $0x5c] sm:$0x1] }
 0x104   : > { %1212 = vst.msk [vmem:[#allocation2 + $0x20] sm:$0xf] %vm1203_vm10, %v1172_v59  ;;  %v3859_v59 = vld [vmem:[%s4218_s30 + $0x54] sm:$0xf]  ;;  %v1323_v63 = vsel %vm4297_vm5, %v1321_v49, %v1322_v50  ;;  %v1870_v49 = vrot.slane %v3911_v42, 5  ;;  %v1859_v54 = vrot.slane %v3906_v37, 5 }
 0x105   : > { %v3826_v37 = vld [vmem:[%s4218_s30 + $0x38] sm:$0x1] }
 0x107   : > { %1175 = vrot.lane.b32.xlu1 %v1096_v61, %s4140_s9  ;;  %v1686_v61 = vshll.u32 %v3886_v47, 16  ;;  %v3904_v47 = vld [vmem:[%s4218_s30 + $0x54] sm:$0xe] }
 0x108   : > { %1885 = vrot.lane.b32.xlu0 %v1839_v0, %s4144_s13  ;;  %1883 = vrot.lane.b32.xlu2 %v1836_v2, %s4144_s13  ;;  %v4023_v0 = vld [vmem:[%s6169_s1 + $0x10] sm:$0xff]  ;;  %v1646_v2 = vrot.slane %v1644_v56, 5  ;;  %v990_v56 = vrot.slane %v988_v44, 4 }
 0x109   : > { %v903_v7 = vpop.permute.xlu1 %902  ;;  %v1688_v8 = vrot.slane %v1686_v61, 5  ;;  %4032 = vmatpush.bf16.msra.mxu2 %v4023_v0  ;;  %4033 = vmatpush.bf16.msra.mxu3 %v4023_v0 }
 0x10a   : > { %937 = vst.msk [vmem:[#allocation2 + $0x38] sm:$0xf] %vm922_vm9, %v903_v7  ;;  %v901_v9 = vpop.permute.xlu0 %900  ;;  %v1182_v13 = vpop.permute.xlu2 %1181  ;;  %v1685_v7 = vrot.slane %v1683_v60, 4  ;;  %2066 = vmatpush.bf16.msra.mxu0 %v4023_v0  ;;  %4031 = vmatpush.bf16.msra.mxu1 %v4023_v0  ;;  %v3801_v60 = vld [vmem:[%s4218_s30 + $0x34] sm:$0xf] }
 0x10b   : > { %936 = vst.msk [vmem:[#allocation2 + $0x34] sm:$0xf] %vm922_vm9, %v901_v9 }
 0x10c   : > { %1217 = vst.msk [vmem:[#allocation2 + $0x34] sm:$0xf] %vm1203_vm10, %v1182_v13  ;;  %v4022_v13 = vld [vmem:[%s6169_s1 + $0x8] sm:$0xff]  ;;  %v1689_v18 = vor.u32 %v1688_v8, %v1685_v7  ;;  %v1036_v7 = vshrl.u32 %v3800_v62, 16  ;;  %v1039_v8 = vshll.u32 %v3800_v62, 16 }
 0x10d   : > { %4035 = vmatpush.bf16.msra.mxu2 %v4022_v13  ;;  %4036 = vmatpush.bf16.msra.mxu3 %v4022_v13 }
 0x10e   : > { %v1690_v28 = vrot.slane %v1689_v18, 4  ;;  %2067 = vmatpush.bf16.msra.mxu0 %v4022_v13  ;;  %4034 = vmatpush.bf16.msra.mxu1 %v4022_v13  ;;  %v1872_v18 = vrot.slane %v1870_v49, 4 }
 0x10f   : > { %1185 = vrot.lane.b32.xlu1 %v1154_v14, %s4140_s9  ;;  %v1647_v14 = vsel %vm4229_vm2, %v1642_v1, %v1646_v2  ;;  %v1007_v1 = vshll.u32 %v3796_v55, 16 }
 0x110   : > { %1183 = vrot.lane.b32.xlu0 %v1144_v15, %s4140_s9  ;;  %1177 = vrot.lane.b32.xlu2 %v1106_v20, %s4140_s9  ;;  %v1699_v15 = vor.u32 %v1698_v4, %v4713_v3  ;;  %v1651_v20 = vor.u32 %v1650_v10, %v1646_v2  ;;  %v1695_v41 = vsel %vm4229_vm2, %v1690_v28, %v4713_v3  ;;  %v1045_v4 = vshll.u32 %v3801_v60, 16  ;;  %v3818_v28 = vld [vmem:[%s4218_s30 + $0x18] sm:$0xe] }
 0x111   : > { %v1158_v24 = vpop.permute.xlu1 %1157  ;;  %4038 = vmatpush.bf16.msra.mxu2 %v4021_v22  ;;  %4039 = vmatpush.bf16.msra.mxu3 %v4021_v22 }
 0x112   : > { %1205 = vst.msk [vmem:[#allocation2 + $0x4] sm:$0xf] %vm1203_vm10, %v1158_v24  ;;  %v1156_v30 = vpop.permute.xlu0 %1155  ;;  %v1349_v32 = vpop.permute.xlu2 %1348  ;;  %v1700_v23 = vrot.slane %v1699_v15, 4  ;;  %v1704_v24 = vrot.slane %v1702_v16, 5  ;;  %2068 = vmatpush.bf16.msra.mxu0 %v4021_v22  ;;  %4037 = vmatpush.bf16.msra.mxu1 %v4021_v22  ;;  %v1047_v15 = vrot.slane %v1045_v4, 5 }
 0x113   : > { %1204 = vst.msk [vmem:[#allocation2] sm:$0xf] %vm1203_vm10, %v1156_v30  ;;  %v3795_v30 = vld [vmem:[%s4218_s30 + $0x1c] sm:$0xf] }
 0x114   : > { %v1001_v40 = vshrl.u32 %v3795_v30, 16 }
 0x116   : > { %v1003_v51 = vrot.slane %v1001_v40, 4 }
 0x117   : > { %1352 = vrot.lane.b32.xlu1 %v1320_v33, %s4141_s10  ;;  %v1656_v33 = vrot.slane %v1654_v21, 5  ;;  %v1041_v21 = vrot.slane %v1039_v8, 5 }
 0x118   : > { %1346 = vrot.lane.b32.xlu0 %v1309_v36, %s4141_s10  ;;  %1344 = vrot.lane.b32.xlu2 %v1306_v39, %s4141_s10  ;;  %v1705_v36 = vsel %vm4229_vm2, %v1700_v23, %v1704_v24  ;;  %v997_v39 = vshll.u32 %v3795_v30, 16 }
 0x119   : > { %v1180_v45 = vpop.permute.xlu1 %1179 }
 0x11a   : > { %1216 = vst.msk [vmem:[#allocation2 + $0x30] sm:$0xf] %vm1203_vm10, %v1180_v45  ;;  %v1174_v48 = vpop.permute.xlu0 %1173  ;;  %v1444_v53 = vpop.permute.xlu2 %1443  ;;  %v991_v45 = vshll.u32 %v3794_v34, 16  ;;  %v999_v50 = vrot.slane %v997_v39, 5  ;;  %v1277_v34 = vrot.slane %v3819_v29, 5 }
 0x11b   : > { %1213 = vst.msk [vmem:[#allocation2 + $0x24] sm:$0xf] %vm1203_vm10, %v1174_v48  ;;  %v3920_v48 = vrot.slane %v3910_v38, 9  ;;  %v3825_v39 = vld [vmem:[%s4218_s30 + $0x34] sm:$0xf] }
 0x11c   : > { %1385 = vst.msk [vmem:[#allocation2 + $0x30] sm:$0xf] %vm1372_vm12, %v1349_v32  ;;  %v1652_v32 = vrot.slane %v1651_v20, 4  ;;  %v993_v57 = vrot.slane %v991_v45, 5  ;;  %v1004_v0 = vor.u32 %v1003_v51, %v999_v50  ;;  %v1038_v20 = vrot.slane %v1036_v7, 4 }
 0x11d   : > { %v1291_v44 = vrot.slane %v3825_v39, 5 }
 0x11e   : > { %v1657_v46 = vsel %vm4229_vm2, %v1652_v32, %v1656_v33  ;;  %v994_v3 = vor.u32 %v993_v57, %v990_v56  ;;  %v1005_v10 = vrot.slane %v1004_v0, 4  ;;  %v1042_v32 = vor.u32 %v1041_v21, %v1038_v20  ;;  %v3851_v21 = vld [vmem:[%s4218_s30 + $0x24] sm:$0xf] }
 0x11f   : > { %1447 = vrot.lane.b32.xlu1 %v3860_v52, %s4142_s11  ;;  %v3840_v33 = vrot.slane %v3818_v28, 9  ;;  %v1279_v57 = vrot.slane %v1277_v34, 4 }
 0x120   : > { %1445 = vrot.lane.b32.xlu0 %v3859_v59, %s4142_s11  ;;  %1354 = vrot.lane.b32.xlu2 %v1323_v63, %s4141_s10  ;;  %v3918_v59 = vrot.slane %v3904_v47, 9  ;;  %v1871_v63 = vsel %vm4297_vm5, %v3920_v48, %v1870_v49  ;;  %v995_v13 = vrot.slane %v994_v3, 4  ;;  %v3820_v48 = vld [vmem:[%s4218_s30 + $0x20] sm:$0x1]  ;;  %v1293_v49 = vrot.slane %v1291_v44, 4 }
 0x121   : > { %v1343_v5 = vpop.permute.xlu1 %1342 }
 0x122   : > { %1382 = vst.msk [vmem:[#allocation2 + $0x24] sm:$0xf] %vm1372_vm12, %v1343_v5  ;;  %v1341_v9 = vpop.permute.xlu0 %1340  ;;  %v1723_v11 = vpop.permute.xlu2 %1722  ;;  %v1049_v5 = vshrl.u32 %v3801_v60, 16  ;;  %v1857_v6 = vsel %vm4297_vm5, %v3918_v59, %v1856_v43 }
 0x123   : > { %1381 = vst.msk [vmem:[#allocation2 + $0x20] sm:$0xf] %vm1372_vm12, %v1341_v9  ;;  %v3912_v9 = vld [vmem:[%s4218_s30 + $0x74] sm:$0x1] }
 0x124   : > { %1483 = vst.msk [vmem:[#allocation2 + $0x24] sm:$0xf] %vm1473_vm13, %v1444_v53  ;;  %v1858_v53 = vrot.slane %v1856_v43, 4  ;;  %v1051_v16 = vrot.slane %v1049_v5, 4  ;;  %v1278_v43 = vsel %vm4297_vm5, %v3840_v33, %v1277_v34  ;;  %v3876_v33 = vld [vmem:[%s4218_s30 + $0x44] sm:$0x1] }
 0x126   : > { %v1860_v2 = vsel %vm4297_vm5, %v1858_v53, %v1859_v54  ;;  %v1052_v30 = vor.u32 %v1051_v16, %v1047_v15  ;;  %v3869_v53 = vld [vmem:[%s4218_s30 + $0x28] sm:$0xf]  ;;  %v3868_v54 = vld [vmem:[%s4218_s30 + $0x24] sm:$0xf] }
 0x127   : > { %1726 = vrot.lane.b32.xlu1 %v1647_v14, %s4143_s12  ;;  %v3802_v14 = vld [vmem:[%s4218_s30 + $0x38] sm:$0x1]  ;;  %v1552_v62 = vshrl.u32 %v3869_v53, 16  ;;  %v1539_v0 = vshrl.u32 %v3868_v54, 16 }
 0x128   : > { %1455 = vrot.lane.b32.xlu0 %v3864_v17, %s4142_s11  ;;  %1453 = vrot.lane.b32.xlu2 %v3863_v19, %s4142_s11  ;;  %v1873_v19 = vrot.slane %v3912_v9, 5  ;;  %v1055_v24 = vshll.u32 %v3802_v14, 16  ;;  %v3855_v14 = vld [vmem:[%s4218_s30 + $0x3c] sm:$0xf] }
 0x129   : > { %v1442_v27 = vpop.permute.xlu1 %1441  ;;  %v1554_v4 = vrot.slane %v1552_v62, 4  ;;  %v1541_v7 = vrot.slane %v1539_v0, 4 }
 0x12a   : > { %1482 = vst.msk [vmem:[#allocation2 + $0x20] sm:$0xf] %vm1473_vm13, %v1442_v27  ;;  %v1351_v31 = vpop.permute.xlu0 %1350  ;;  %v1733_v35 = vpop.permute.xlu2 %1732  ;;  %v1000_v27 = vsel %vm4229_vm2, %v995_v13, %v999_v50  ;;  %v1057_v38 = vrot.slane %v1055_v24, 5  ;;  %v1294_v50 = vrot.slane %v3826_v37, 5  ;;  %v3874_v13 = vld [vmem:[%s4218_s30 + $0x3c] sm:$0xf] }
 0x12b   : > { %1386 = vst.msk [vmem:[#allocation2 + $0x34] sm:$0xf] %vm1372_vm12, %v1351_v31  ;;  %v1874_v31 = vsel %vm4297_vm5, %v1872_v18, %v1873_v19 }
 0x12c   : > { %1763 = vst.msk [vmem:[#allocation2 + $0x20] sm:$0xf] %vm1754_vm14, %v1723_v11  ;;  %v1009_v11 = vrot.slane %v1007_v1, 5  ;;  %v1295_v60 = vsel %vm4297_vm5, %v1293_v49, %v1294_v50  ;;  %v1542_v1 = vshll.u32 %v3868_v54, 16  ;;  %v3899_v50 = vld [vmem:[%s4218_s30 + $0x40] sm:$0xf] }
 0x12e   : > { %v1010_v23 = vsel %vm4229_vm2, %v1005_v10, %v1009_v11  ;;  %v1544_v8 = vrot.slane %v1542_v1, 5  ;;  %v3875_v11 = vld [vmem:[%s4218_s30 + $0x40] sm:$0xf] }
 0x12f   : > { %1736 = vrot.lane.b32.xlu1 %v1705_v36, %s4143_s12  ;;  %v1053_v36 = vrot.slane %v1052_v30, 4  ;;  %v1596_v19 = vshll.u32 %v3875_v11, 16  ;;  %v1600_v20 = vshrl.u32 %v3875_v11, 16 }
 0x130   : > { %1734 = vrot.lane.b32.xlu0 %v1695_v41, %s4143_s12  ;;  %1728 = vrot.lane.b32.xlu2 %v1657_v46, %s4143_s12  ;;  %v1043_v41 = vrot.slane %v1042_v32, 4  ;;  %v3824_v46 = vld [vmem:[%s4218_s30 + $0x30] sm:$0xe]  ;;  %v1545_v18 = vor.u32 %v1544_v8, %v1541_v7 }
 0x131   : > { %v1452_v52 = vpop.permute.xlu1 %1451  ;;  %v1058_v45 = vsel %vm4229_vm2, %v1053_v36, %v1057_v38  ;;  %v1598_v30 = vrot.slane %v1596_v19, 5 }
 0x132   : > { %1487 = vst.msk [vmem:[#allocation2 + $0x34] sm:$0xf] %vm1473_vm13, %v1452_v52  ;;  %v1450_v58 = vpop.permute.xlu0 %1449  ;;  %v1900_v61 = vpop.permute.xlu2 %1899  ;;  %v1048_v47 = vsel %vm4229_vm2, %v1043_v41, %v1047_v15  ;;  %v3842_v52 = vrot.slane %v3824_v46, 9  ;;  %v1546_v29 = vrot.slane %v1545_v18, 4  ;;  %v3893_v41 = vld [vmem:[%s4218_s30 + $0x28] sm:$0xf] }
 0x133   : > { %1486 = vst.msk [vmem:[#allocation2 + $0x30] sm:$0xf] %vm1473_vm13, %v1450_v58  ;;  %v1280_v58 = vrot.slane %v3820_v48, 5  ;;  %v1828_v46 = vrot.slane %v3893_v41, 5 }
 0x134   : > { %1768 = vst.msk [vmem:[#allocation2 + $0x34] sm:$0xf] %vm1754_vm14, %v1733_v35 }
 0x137   : > { %1903 = vrot.lane.b32.xlu1 %v1871_v63, %s4144_s13  ;;  %v1292_v63 = vsel %vm4297_vm5, %v3842_v52, %v1291_v44  ;;  %v3856_v44 = vld [vmem:[%s4218_s30 + $0x40] sm:$0xf] }
 0x138   : > { %1897 = vrot.lane.b32.xlu0 %v1860_v2, %s4144_s13  ;;  %1895 = vrot.lane.b32.xlu2 %v1857_v6, %s4144_s13  ;;  %v1281_v2 = vsel %vm4297_vm5, %v1279_v57, %v1280_v58  ;;  %v3870_v6 = vld [vmem:[%s4218_s30 + $0x2c] sm:$0x1]  ;;  %v3900_v57 = vld [vmem:[%s4218_s30 + $0x44] sm:$0x1] }
 0x139   : > { %v1731_v12 = vpop.permute.xlu1 %1730  ;;  %v1558_v16 = vshll.u32 %v3870_v6, 16  ;;  %v3898_v58 = vld [vmem:[%s4218_s30 + $0x3c] sm:$0xe]  ;;  %v1845_v62 = vrot.slane %v3900_v57, 5  ;;  %v4146_v57 = vmov 842150450  }
 0x13a   : > { %1767 = vst.msk [vmem:[#allocation2 + $0x30] sm:$0xf] %vm1754_vm14, %v1731_v12  ;;  %v1725_v17 = vpop.permute.xlu0 %1724  ;;  %v1166_v22 = vpop.permute.xlu2 %1165  ;;  %v3916_v0 = vrot.slane %v3898_v58, 9  ;;  %v2435_v58 = vunpack.c.l.s4 %v4146_v57 }
 0x13b   : > { %1764 = vst.msk [vmem:[#allocation2 + $0x24] sm:$0xf] %vm1754_vm14, %v1725_v17  ;;  %v3852_v17 = vld [vmem:[%s4218_s30 + $0x28] sm:$0xf] }
 0x13c   : > { %1936 = vst.msk [vmem:[#allocation2 + $0x30] sm:$0xf] %vm1923_vm15, %v1900_v61  ;;  %v1548_v61 = vshll.u32 %v3869_v53, 16 }
 0x13d   : > { %1209 = vst.msk [vmem:[#allocation2 + $0x14] sm:$0xf] %vm1203_vm10, %v1166_v22  ;;  %v1587_v22 = vshrl.u32 %v3874_v13, 16 }
 0x13e   : > { %v1550_v3 = vrot.slane %v1548_v61, 5 }
 0x13f   : > { %1161 = vrot.lane.b32.xlu1 %v1010_v23, %s4140_s9  ;;  %v1590_v23 = vshll.u32 %v3874_v13, 16  ;;  %v1589_v34 = vrot.slane %v1587_v22, 4 }
 0x140   : > { %1159 = vrot.lane.b32.xlu0 %v1000_v27, %s4140_s9  ;;  %1905 = vrot.lane.b32.xlu2 %v1874_v31, %s4144_s13  ;;  %v1555_v15 = vor.u32 %v1554_v4, %v1550_v3  ;;  %v1560_v27 = vrot.slane %v1558_v16, 5  ;;  %v1602_v31 = vrot.slane %v1600_v20, 4  ;;  %v1551_v39 = vsel %vm4229_vm2, %v1546_v29, %v1550_v3 }
 0x141   : > { %v1894_v35 = vpop.permute.xlu1 %1893 }
 0x142   : > { %1933 = vst.msk [vmem:[#allocation2 + $0x24] sm:$0xf] %vm1923_vm15, %v1894_v35  ;;  %v1892_v40 = vpop.permute.xlu0 %1891  ;;  %v1333_v42 = vpop.permute.xlu2 %1332  ;;  %v1556_v24 = vrot.slane %v1555_v15, 4  ;;  %v1592_v35 = vrot.slane %v1590_v23, 5 }
 0x143   : > { %1932 = vst.msk [vmem:[#allocation2 + $0x20] sm:$0xf] %vm1923_vm15, %v1892_v40  ;;  %v3892_v40 = vld [vmem:[%s4218_s30 + $0x24] sm:$0xe] }
 0x144   : > { %v1561_v38 = vsel %vm4229_vm2, %v1556_v24, %v1560_v27  ;;  %v3914_v37 = vrot.slane %v3892_v40, 9 }
 0x146   : > { %v1829_v54 = vsel %vm4297_vm5, %v3914_v37, %v1828_v46 }
 0x147   : > { %1328 = vrot.lane.b32.xlu1 %v1278_v43, %s4141_s10  ;;  %v1606_v43 = vshll.u32 %v3876_v33, 16 }
 0x148   : > { %1169 = vrot.lane.b32.xlu0 %v1058_v45, %s4140_s9  ;;  %1167 = vrot.lane.b32.xlu2 %v1048_v47, %s4140_s9  ;;  %v1593_v45 = vor.u32 %v1592_v35, %v1589_v34 }
 0x149   : > { %v1164_v51 = vpop.permute.xlu1 %1163  ;;  %v1608_v49 = vrot.slane %v1606_v43, 5 }
 0x14a   : > { %1208 = vst.msk [vmem:[#allocation2 + $0x10] sm:$0xf] %vm1203_vm10, %v1164_v51  ;;  %v1902_v55 = vpop.permute.xlu0 %1901  ;;  %v4017_v56 = vld [vmem:[#allocation2 + $0x20] sm:$0xff]  ;;  %v1428_v59 = vpop.permute.xlu2 %1427  ;;  %v1594_v52 = vrot.slane %v1593_v45, 4 }
 0x14b   : > { %1937 = vst.msk [vmem:[#allocation2 + $0x34] sm:$0xf] %vm1923_vm15, %v1902_v55  ;;  %3973 = vmatmul.msk.bf16.vlgmr.msra.gmra.mxu2 %vm2032_vm0, %v4017_v56  ;;  %v1842_v55 = vrot.slane %v3899_v50, 5 }
 0x14c   : > { %1377 = vst.msk [vmem:[#allocation2 + $0x10] sm:$0xf] %vm1372_vm12, %v1333_v42  ;;  %v1603_v42 = vor.u32 %v1602_v31, %v1598_v30 }
 0x14d   : > { %v1844_v61 = vrot.slane %v1842_v55, 4 }
 0x14e   : > { %v1604_v48 = vrot.slane %v1603_v42, 4 }
 0x14f   : > { %1338 = vrot.lane.b32.xlu1 %v1295_v60, %s4141_s10  ;;  %v3894_v60 = vld [vmem:[%s4218_s30 + $0x2c] sm:$0x1]  ;;  %v1846_v4 = vsel %vm4297_vm5, %v1844_v61, %v1845_v62  ;;  %s4904_s30 = sshll.u32 %s4119_s18, 2  ;;  %v4935_v62 = vld [vmem:[%s6171_s3] ss:$0 sm:$0xff] }
 0x150   : > { %1336 = vrot.lane.b32.xlu0 %v1292_v63, %s4141_s10  ;;  %1330 = vrot.lane.b32.xlu2 %v1281_v2, %s4141_s10  ;;  %v1609_v56 = vsel %vm4229_vm2, %v1604_v48, %v1608_v49  ;;  %v1830_v2 = vrot.slane %v1828_v46, 4  ;;  %v1831_v3 = vrot.slane %v3894_v60, 5  ;;  %v4908_v42 = vstv %s4904_s30  ;;  %p317_p6 = scmp.lt.s32.totalorder %s4904_s30, 7 }
 0x151   : > { %v1327_v5 = vpop.permute.xlu1 %1326  ;;  %v2283_v45 = vadd.s32 2, %v4908_v42 }
 0x152   : > { %1374 = vst.msk [vmem:[#allocation2 + $0x4] sm:$0xf] %vm1372_vm12, %v1327_v5  ;;  %v1325_v9 = vpop.permute.xlu0 %1324  ;;  %v4019_v10 = vld [vmem:[#allocation2 + $0x30] sm:$0xff]  ;;  %v1707_v12 = vpop.permute.xlu2 %1706  ;;  %v1843_v5 = vsel %vm4297_vm5, %v3916_v0, %v1842_v55  ;;  %v1832_v6 = vsel %vm4297_vm5, %v1830_v2, %v1831_v3  ;;  %v4937_v0 = vunpack.c.0.s8 %v2435_v58  ;;  %s6419_s30 = smov (!%p317_p6, %s4904_s30), 7 }
 0x153   : > { %1373 = vst.msk [vmem:[#allocation2] sm:$0xf] %vm1372_vm12, %v1325_v9  ;;  %3975 = vmatmul.msk.bf16.vlgmr.msra.gmra.mxu3 %vm2032_vm0, %v4019_v10  ;;  %s5858_s19 = sadd.s32 %s3757_s14, %s6419_s30 }
 0x154   : > { %1475 = vst.msk [vmem:[#allocation2 + $0x4] sm:$0xf] %vm1473_vm13, %v1428_v59  ;;  %v1599_v59 = vsel %vm4229_vm2, %v1594_v52, %v1598_v30  ;;  %s3758_s15 = sshll.u32 %s5858_s19, 2  ;;  %s3761_s26 = sshll.u32 %s5858_s19, 3 }
 0x155   : > { %s5876_s25 = scalar_lea.vmem %s6172_s4, %s3758_s15  ;;  %s5915_s29 = scalar_lea.vmem %s6173_s5, %s3761_s26 }
 0x157   : > { %1437 = vrot.lane.b32.xlu1 %v3855_v14, %s4142_s11 }
 0x158   : > { %1431 = vrot.lane.b32.xlu0 %v3852_v17, %s4142_s11  ;;  %1429 = vrot.lane.b32.xlu2 %v3851_v21, %s4142_s11 }
 0x159   : > { %v1426_v28 = vpop.permute.xlu1 %1425 }
 0x15a   : > { %1474 = vst.msk [vmem:[#allocation2] sm:$0xf] %vm1473_vm13, %v1426_v28  ;;  %v1335_v32 = vpop.permute.xlu0 %1334  ;;  %v1717_v36 = vpop.permute.xlu2 %1716 }
 0x15b   : > { %1378 = vst.msk [vmem:[#allocation2 + $0x14] sm:$0xf] %vm1372_vm12, %v1335_v32 }
 0x15c   : > { %1755 = vst.msk [vmem:[#allocation2] sm:$0xf] %vm1754_vm14, %v1707_v12 }
 0x15f   : > { %1712 = vrot.lane.b32.xlu1 %v1561_v38, %s4143_s12 }
 0x160   : > { %1710 = vrot.lane.b32.xlu0 %v1551_v39, %s4143_s12  ;;  %1439 = vrot.lane.b32.xlu2 %v3856_v44, %s4142_s11  ;;  %v2278_v44 = vlaneseq }
 0x161   : > { %v1436_v47 = vpop.permute.xlu1 %1435 }
 0x162   : > { %1479 = vst.msk [vmem:[#allocation2 + $0x14] sm:$0xf] %vm1473_vm13, %v1436_v47  ;;  %v1434_v51 = vpop.permute.xlu0 %1433  ;;  %v1884_v53 = vpop.permute.xlu2 %1883  ;;  %v2279_v46 = vshrl.u32 %v2278_v44, 7  ;;  %v2287_v47 = vmul.u32 2, %v2283_v45 }
 0x163   : > { %1478 = vst.msk [vmem:[#allocation2 + $0x10] sm:$0xf] %vm1473_vm13, %v1434_v51 }
 0x164   : > { %1760 = vst.msk [vmem:[#allocation2 + $0x14] sm:$0xf] %vm1754_vm14, %v1717_v36  ;;  %v2291_v49 = vmul.u32 16, %v2287_v47  ;;  %v4916_v50 = vmul.u32 2, %v2279_v46 }
 0x167   : > { %1879 = vrot.lane.b32.xlu1 %v1829_v54, %s4144_s13  ;;  %v4145_v54 = vmov 269488144  }
 0x168   : > { %1720 = vrot.lane.b32.xlu0 %v1609_v56, %s4143_s12  ;;  %1718 = vrot.lane.b32.xlu2 %v1599_v59, %s4143_s12  ;;  %v2431_v55 = vunpack.c.l.s4 %v4145_v54  ;;  %v4926_v59 = vld [vmem:[%s6170_s2] ss:$0 sm:$0xff] }
 0x169   : > { %v1715_v63 = vpop.permute.xlu1 %1714 }
 0x16a   : > { %1759 = vst.msk [vmem:[#allocation2 + $0x10] sm:$0xf] %vm1754_vm14, %v1715_v63  ;;  %v1709_v1 = vpop.permute.xlu0 %1708  ;;  %v1178_v25 = vpop.permute.xlu2 %1177  ;;  %v4930_v61 = vunpack.c.0.s8 %v2431_v55 }
 0x16b   : > { %1756 = vst.msk [vmem:[#allocation2 + $0x4] sm:$0xf] %vm1754_vm14, %v1709_v1 }
 0x16c   : > { %1928 = vst.msk [vmem:[#allocation2 + $0x10] sm:$0xf] %vm1923_vm15, %v1884_v53  ;;  %v4919_v53 = vadd.s32 %v4916_v50, %v2291_v49 }
 0x16d   : > { %1215 = vst.msk [vmem:[#allocation2 + $0x2c] sm:$0xf] %vm1203_vm10, %v1178_v25 }
 0x16e   : > { %v2428_v60 = vadd.s32 1, %v4919_v53  ;;  %v4945_v3 = vperm.slane %v4919_v53, %v4930_v61 }
 0x16f   : > { %1889 = vrot.lane.b32.xlu1 %v1846_v4, %s4144_s13 }
 0x170   : > { %1887 = vrot.lane.b32.xlu0 %v1843_v5, %s4144_s13  ;;  %1881 = vrot.lane.b32.xlu2 %v1832_v6, %s4144_s13  ;;  %v4941_v2 = vperm.slane %v2428_v60, %v4930_v61 }
 0x171   : > { %v1878_v7 = vpop.permute.xlu1 %1877 }
 0x172   : > { %1925 = vst.msk [vmem:[#allocation2 + $0x4] sm:$0xf] %vm1923_vm15, %v1878_v7  ;;  %v1876_v8 = vpop.permute.xlu0 %1875  ;;  %v1345_v9 = vpop.permute.xlu2 %1344  ;;  %v4950_v7 = vperm.slane %v2428_v60, %v4937_v0 }
 0x173   : > { %1924 = vst.msk [vmem:[#allocation2] sm:$0xf] %vm1923_vm15, %v1876_v8  ;;  %v4954_v8 = vperm.slane %v4919_v53, %v4937_v0 }
 0x179   : > { %v1176_v10 = vpop.permute.xlu1 %1175 }
 0x17a   : > { %1214 = vst.msk [vmem:[#allocation2 + $0x28] sm:$0xf] %vm1203_vm10, %v1176_v10  ;;  %v1886_v11 = vpop.permute.xlu0 %1885  ;;  %v4013_v12 = vld [vmem:[#allocation2] sm:$0xff]  ;;  %v1355_v26 = vpop.permute.xlu2 %1354  ;;  %v2502_v10 = vrot.slane %v4941_v2, 7 }
 0x17b   : > { %1929 = vst.msk [vmem:[#allocation2 + $0x14] sm:$0xf] %vm1923_vm15, %v1886_v11  ;;  %3969 = vmatmul.msk.bf16.vlgmr.msra.gmra.mxu0 %vm2032_vm0, %v4013_v12  ;;  %v2582_v11 = vrot.slane %v4945_v3, 7  ;;  %v4147_v12 = vmov 1414812756  }
 0x17c   : > { %1383 = vst.msk [vmem:[#allocation2 + $0x28] sm:$0xf] %vm1372_vm12, %v1345_v9 }
 0x181   : > { %v1186_v13 = vpop.permute.xlu1 %1185 }
 0x182   : > { %1219 = vst.msk [vmem:[#allocation2 + $0x3c] sm:$0xf] %vm1203_vm10, %v1186_v13  ;;  %v1184_v14 = vpop.permute.xlu0 %1183  ;;  %v4015_v15 = vld [vmem:[#allocation2 + $0x10] sm:$0xff]  ;;  %v1454_v16 = vpop.permute.xlu2 %1453 }
 0x183   : > { %1218 = vst.msk [vmem:[#allocation2 + $0x38] sm:$0xf] %vm1203_vm10, %v1184_v14  ;;  %3971 = vmatmul.msk.bf16.vlgmr.msra.gmra.mxu1 %vm2032_vm0, %v4015_v15 }
 0x184   : > { %1388 = vst.msk [vmem:[#allocation2 + $0x3c] sm:$0xf] %vm1372_vm12, %v1355_v26  ;;  %v2439_v26 = vunpack.c.l.s4 %v4147_v12 }
 0x189   : > { %v1353_v17 = vpop.permute.xlu1 %1352 }
 0x18a   : > { %1387 = vst.msk [vmem:[#allocation2 + $0x38] sm:$0xf] %vm1372_vm12, %v1353_v17  ;;  %v1347_v18 = vpop.permute.xlu0 %1346  ;;  %v1729_v19 = vpop.permute.xlu2 %1728  ;;  %v2503_v17 = vrot.slane %v4950_v7, 7 }
 0x18b   : > { %1384 = vst.msk [vmem:[#allocation2 + $0x2c] sm:$0xf] %vm1372_vm12, %v1347_v18  ;;  %v2583_v18 = vrot.slane %v4954_v8, 7 }
 0x18c   : > { %1488 = vst.msk [vmem:[#allocation2 + $0x38] sm:$0xf] %vm1473_vm13, %v1454_v16 }
 0x191   : > { %v1448_v20 = vpop.permute.xlu1 %1447 }
 0x192   : > { %1485 = vst.msk [vmem:[#allocation2 + $0x2c] sm:$0xf] %vm1473_vm13, %v1448_v20  ;;  %v1446_v21 = vpop.permute.xlu0 %1445  ;;  %v1896_v22 = vpop.permute.xlu2 %1895  ;;  %v4148_v20 = vmov 1987475062  }
 0x193   : > { %1484 = vst.msk [vmem:[#allocation2 + $0x28] sm:$0xf] %vm1473_vm13, %v1446_v21  ;;  %v2443_v21 = vunpack.c.l.s4 %v4148_v20 }
 0x194   : > { %1766 = vst.msk [vmem:[#allocation2 + $0x2c] sm:$0xf] %vm1754_vm14, %v1729_v19 }
 0x199   : > { %v1727_v23 = vpop.permute.xlu1 %1726 }
 0x19a   : > { %1765 = vst.msk [vmem:[#allocation2 + $0x28] sm:$0xf] %vm1754_vm14, %v1727_v23  ;;  %v1456_v24 = vpop.permute.xlu0 %1455  ;;  %v1906_v27 = vpop.permute.xlu2 %1905 }
 0x19b   : > { %1489 = vst.msk [vmem:[#allocation2 + $0x3c] sm:$0xf] %vm1473_vm13, %v1456_v24 }
 0x19c   : > { %1934 = vst.msk [vmem:[#allocation2 + $0x28] sm:$0xf] %vm1923_vm15, %v1896_v22  ;;  %v2284_v22 = vadd.s32 3, %v4908_v42 }
 0x1a1   : > { %v1737_v28 = vpop.permute.xlu1 %1736 }
 0x1a2   : > { %1770 = vst.msk [vmem:[#allocation2 + $0x3c] sm:$0xf] %vm1754_vm14, %v1737_v28  ;;  %v1735_v29 = vpop.permute.xlu0 %1734  ;;  %v1168_v30 = vpop.permute.xlu2 %1167 }
 0x1a3   : > { %1769 = vst.msk [vmem:[#allocation2 + $0x38] sm:$0xf] %vm1754_vm14, %v1735_v29 }
 0x1a4   : > { %1939 = vst.msk [vmem:[#allocation2 + $0x3c] sm:$0xf] %vm1923_vm15, %v1906_v27 }
 0x1a5   : > { %1210 = vst.msk [vmem:[#allocation2 + $0x18] sm:$0xf] %vm1203_vm10, %v1168_v30  ;;  %v4989_v30 = vunpack.c.0.s8 %v2439_v26 }
 0x1a7   : > { %v5030_v44 = vperm.slane %v2428_v60, %v4989_v30  ;;  %v5034_v45 = vperm.slane %v4919_v53, %v4989_v30 }
 0x1a9   : > { %v1904_v31 = vpop.permute.xlu1 %1903 }
 0x1aa   : > { %1938 = vst.msk [vmem:[#allocation2 + $0x38] sm:$0xf] %vm1923_vm15, %v1904_v31  ;;  %v1898_v32 = vpop.permute.xlu0 %1897  ;;  %v1331_v33 = vpop.permute.xlu2 %1330 }
 0x1ab   : > { %1935 = vst.msk [vmem:[#allocation2 + $0x2c] sm:$0xf] %vm1923_vm15, %v1898_v32 }
 0x1b1   : > { %v1162_v34 = vpop.permute.xlu1 %1161  ;;  %v4020_v35 = vld [vmem:[#allocation2 + $0x38] sm:$0xff] }
 0x1b2   : > { %1207 = vst.msk [vmem:[#allocation2 + $0xc] sm:$0xf] %vm1203_vm10, %v1162_v34  ;;  %v1160_v36 = vpop.permute.xlu0 %1159  ;;  %v4018_v38 = vld [vmem:[#allocation2 + $0x28] sm:$0xff]  ;;  %3976 = vmatmul.msk.bf16.gmra.mxu3 %vm2032_vm0, %v4020_v35  ;;  %v1430_v39 = vpop.permute.xlu2 %1429 }
 0x1b3   : > { %1206 = vst.msk [vmem:[#allocation2 + $0x8] sm:$0xf] %vm1203_vm10, %v1160_v36  ;;  %3974 = vmatmul.msk.bf16.gmra.mxu2 %vm2032_vm0, %v4018_v38 }
 0x1b4   : > { %1376 = vst.msk [vmem:[#allocation2 + $0xc] sm:$0xf] %vm1372_vm12, %v1331_v33 }
 0x1b9   : > { %v1329_v40 = vpop.permute.xlu1 %1328 }
 0x1ba   : > { %1375 = vst.msk [vmem:[#allocation2 + $0x8] sm:$0xf] %vm1372_vm12, %v1329_v40  ;;  %v1170_v41 = vpop.permute.xlu0 %1169  ;;  %v1440_v43 = vpop.permute.xlu2 %1439  ;;  %v2288_v40 = vmul.u32 2, %v2284_v22 }
 0x1bb   : > { %1211 = vst.msk [vmem:[#allocation2 + $0x1c] sm:$0xf] %vm1203_vm10, %v1170_v41 }
 0x1bc   : > { %1476 = vst.msk [vmem:[#allocation2 + $0x8] sm:$0xf] %vm1473_vm13, %v1430_v39  ;;  %v5018_v39 = vunpack.c.0.s8 %v2443_v21  ;;  %v2292_v47 = vmul.u32 16, %v2288_v40 }
 0x1be   : > { %v5038_v46 = vperm.slane %v2428_v60, %v5018_v39  ;;  %v5042_v49 = vperm.slane %v4919_v53, %v5018_v39 }
 0x1c1   : > { %v1339_v37 = vpop.permute.xlu1 %1338 }
 0x1c2   : > { %1380 = vst.msk [vmem:[#allocation2 + $0x1c] sm:$0xf] %vm1372_vm12, %v1339_v37  ;;  %v1337_v48 = vpop.permute.xlu0 %1336  ;;  %v1719_v51 = vpop.permute.xlu2 %1718 }
 0x1c3   : > { %1379 = vst.msk [vmem:[#allocation2 + $0x18] sm:$0xf] %vm1372_vm12, %v1337_v48 }
 0x1c4   : > { %1481 = vst.msk [vmem:[#allocation2 + $0x1c] sm:$0xf] %vm1473_vm13, %v1440_v43 }
 0x1c9   : > { %v1438_v52 = vpop.permute.xlu1 %1437 }
 0x1ca   : > { %1480 = vst.msk [vmem:[#allocation2 + $0x18] sm:$0xf] %vm1473_vm13, %v1438_v52  ;;  %v1432_v56 = vpop.permute.xlu0 %1431  ;;  %v1882_v4 = vpop.permute.xlu2 %1881  ;;  %v2584_v52 = vrot.slane %v5034_v45, 7 }
 0x1cb   : > { %1477 = vst.msk [vmem:[#allocation2 + $0xc] sm:$0xf] %vm1473_vm13, %v1432_v56 }
 0x1cc   : > { %1761 = vst.msk [vmem:[#allocation2 + $0x18] sm:$0xf] %vm1754_vm14, %v1719_v51  ;;  %v2504_v51 = vrot.slane %v5030_v44, 7 }
 0x1ce   : > { %v2090_v63 = vpop.f32.mrf.mxu2 }
 0x1cf   : > { %v2122_v1 = vmul.f32 %v4926_v59, %v2090_v63  ;;  %v2505_v63 = vrot.slane %v5038_v46, 7 }
 0x1d1   : > { %v1713_v25 = vpop.permute.xlu1 %1712  ;;  %v2142_v5 = vadd.f32 %v4935_v62, %v2122_v1 }
 0x1d2   : > { %1758 = vst.msk [vmem:[#allocation2 + $0xc] sm:$0xf] %vm1754_vm14, %v1713_v25  ;;  %v1711_v6 = vpop.permute.xlu0 %1710  ;;  %v5051_v25 = vadd.s32 %v4916_v50, %v2292_v47 }
 0x1d3   : > { %1757 = vst.msk [vmem:[#allocation2 + $0x8] sm:$0xf] %vm1754_vm14, %v1711_v6  ;;  %v4957_v9 = vmax.f32 %v2142_v5, 0.0 }
 0x1d4   : > { %1927 = vst.msk [vmem:[#allocation2 + $0xc] sm:$0xf] %vm1923_vm15, %v1882_v4 }
 0x1d5   : > { %v4963_v13 = vrot.slane %v4957_v9, 2  ;;  %v4966_v14 = vrot.slane %v4957_v9, 4  ;;  %v4969_v15 = vrot.slane %v4957_v9, 6  ;;  %v2314_v16 = vrot.slane %v4957_v9, 7 }
 0x1d6   : > { %v2092_v19 = vpop.f32.mrf.mxu2  ;;  %v2100_v1 = vpop.f32.mrf.mxu3 }
 0x1d7   : > { %v2315_v23 = vrot.slane %v4963_v13, 7  ;;  %v2316_v24 = vrot.slane %v4966_v14, 7  ;;  %v2317_v27 = vrot.slane %v4969_v15, 7  ;;  %vm4981_vm1 = vcmp.gt.f32.partialorder %v4957_v9, %v2314_v16 }
 0x1d8   : > { %v4987_v29 = vsel %vm4981_vm1, %v2502_v10, %v2582_v11  ;;  %v2123_v35 = vmul.f32 %v4926_v59, %v2092_v19  ;;  %v2585_v10 = vrot.slane %v5042_v49, 7  ;;  %v2429_v19 = vadd.s32 1, %v5051_v25 }
 0x1d9   : > { %v1880_v31 = vpop.permute.xlu1 %1879  ;;  %vm4994_vm2 = vcmp.gt.f32.partialorder %v4963_v13, %v2315_v23  ;;  %vm5001_vm3 = vcmp.gt.f32.partialorder %v4966_v14, %v2316_v24  ;;  %vm5008_vm4 = vcmp.gt.f32.partialorder %v4969_v15, %v2317_v27  ;;  %v2126_v20 = vmul.f32 %v4926_v59, %v2100_v1 }
 0x1da   : > { %1926 = vst.msk [vmem:[#allocation2 + $0x8] sm:$0xf] %vm1923_vm15, %v1880_v31  ;;  %v1721_v36 = vpop.permute.xlu0 %1720  ;;  %v2607_v38 = vsel %vm4994_vm2, %v4941_v2, %v4945_v3  ;;  %v5023_v41 = vsel %vm5001_vm3, %v2503_v17, %v2583_v18  ;;  %v2609_v43 = vsel %vm5008_vm4, %v4950_v7, %v4954_v8  ;;  %v2143_v37 = vadd.f32 %v4935_v62, %v2123_v35 }
 0x1db   : > { %1762 = vst.msk [vmem:[#allocation2 + $0x1c] sm:$0xf] %vm1754_vm14, %v1721_v36  ;;  %v5085_v22 = vperm.slane %v2429_v19, %v4930_v61  ;;  %v2146_v31 = vadd.f32 %v4935_v62, %v2126_v20  ;;  %v5091_v35 = vperm.slane %v5051_v25, %v4930_v61  ;;  %v2410_v40 = vsel %vm4981_vm1, %v4957_v9, %v2314_v16 }
 0x1dc   : > { %v2159_v48 = vmax.f32 %v2143_v37, 0.0  ;;  %v5099_v47 = vperm.slane %v2429_v19, %v4937_v0  ;;  %v5117_v16 = vperm.slane %v5051_v25, %v4989_v30 }
 0x1dd   : > { %v2506_v28 = vrot.slane %v5085_v22, 7  ;;  %v2586_v1 = vrot.slane %v5091_v35, 7 }
 0x1de   : > { %v2209_v56 = vrot.slane %v2159_v48, 2  ;;  %v5046_v57 = vrot.slane %v2159_v48, 4  ;;  %v2318_v58 = vrot.slane %v2159_v48, 7  ;;  %v2102_v36 = vpop.f32.mrf.mxu3  ;;  %v2211_v37 = vrot.slane %v2159_v48, 6 }
 0x1df   : > { %v2127_v9 = vmul.f32 %v4926_v59, %v2102_v36  ;;  %v5133_v36 = vperm.slane %v2429_v19, %v5018_v39 }
 0x1e0   : > { %v2319_v4 = vrot.slane %v2209_v56, 7  ;;  %v2320_v5 = vrot.slane %v5046_v57, 7  ;;  %vm5056_vm5 = vcmp.gt.f32.partialorder %v2159_v48, %v2318_v58 }
 0x1e1   : > { %v1890_v54 = vpop.permute.xlu1 %1889  ;;  %v4014_v55 = vld [vmem:[#allocation2 + $0x8] sm:$0xff]  ;;  %v5063_v11 = vsel %vm5056_vm5, %v2504_v51, %v2584_v52  ;;  %v5103_v51 = vperm.slane %v5051_v25, %v4937_v0  ;;  %v5106_v52 = vperm.slane %v2429_v19, %v4989_v30 }
 0x1e2   : > { %1931 = vst.msk [vmem:[#allocation2 + $0x1c] sm:$0xf] %vm1923_vm15, %v1890_v54  ;;  %v1888_v60 = vpop.permute.xlu0 %1887  ;;  %3970 = vmatmul.msk.bf16.gmra.mxu0 %vm2032_vm0, %v4014_v55  ;;  %vm5065_vm7 = vcmp.gt.f32.partialorder %v2209_v56, %v2319_v4  ;;  %vm5070_vm8 = vcmp.gt.f32.partialorder %v5046_v57, %v2320_v5  ;;  %v2411_v54 = vsel %vm4994_vm2, %v4963_v13, %v2315_v23  ;;  %v2321_v23 = vrot.slane %v2211_v37, 7 }
 0x1e3   : > { %1930 = vst.msk [vmem:[#allocation2 + $0x18] sm:$0xf] %vm1923_vm15, %v1888_v60  ;;  %v2611_v17 = vsel %vm5065_vm7, %v5030_v44, %v5034_v45  ;;  %v5080_v18 = vsel %vm5070_vm8, %v2505_v63, %v2585_v10  ;;  %v2412_v55 = vsel %vm5001_vm3, %v4966_v14, %v2316_v24  ;;  %v2686_v60 = vrot.slane %v2410_v40, 7 }
 0x1e4   : > { %6221 = vst [vmem:[#allocation3_spill] sm:$0xff] %v5063_v11  ;;  %v2162_v63 = vmax.f32 %v2146_v31, 0.0  ;;  %v2413_v13 = vsel %vm5008_vm4, %v4969_v15, %v2317_v27  ;;  %v5138_v24 = vperm.slane %v5051_v25, %v5018_v39  ;;  %v2690_v33 = vrot.slane %v2412_v55, 7 }
 0x1e5   : > { %6226 = vst [vmem:[#allocation4_spill] sm:$0xff] %v5080_v18  ;;  %v2414_v31 = vsel %vm5056_vm5, %v2159_v48, %v2318_v58  ;;  %v2147_v15 = vadd.f32 %v4935_v62, %v2127_v9  ;;  %v2588_v27 = vrot.slane %v5117_v16, 7  ;;  %v5144_v40 = vrot.slane %v2686_v60, 2 }
 0x1e6   : > { %v2218_v10 = vrot.slane %v2162_v63, 2  ;;  %vm5147_vm9 = vcmp.gt.f32.partialorder %v2211_v37, %v2321_v23  ;;  %v2415_v55 = vsel %vm5065_vm7, %v2209_v56, %v2319_v4  ;;  %v2219_v20 = vrot.slane %v2162_v63, 4 }
 0x1e7   : > { %v2220_v6 = vrot.slane %v2162_v63, 6  ;;  %v5160_v58 = vrot.slane %v2607_v38, 9  ;;  %v2694_v60 = vrot.slane %v2414_v31, 7  ;;  %v5170_v56 = vrot.slane %v2609_v43, 9 }
 0x1e8   : > { %v2416_v32 = vsel %vm5070_vm8, %v5046_v57, %v2320_v5  ;;  %v2163_v4 = vmax.f32 %v2147_v15, 0.0  ;;  %v2417_v2 = vsel %vm5147_vm9, %v2211_v37, %v2321_v23  ;;  %v2696_v3 = vrot.slane %v2415_v55, 7 }
 0x1e9   : > { %v2322_v38 = vrot.slane %v2162_v63, 7  ;;  %v2324_v31 = vrot.slane %v2219_v20, 7  ;;  %v2325_v34 = vrot.slane %v2220_v6, 7  ;;  %v2613_v8 = vsel %vm5147_vm9, %v5038_v46, %v5042_v49 }
 0x1ea   : > { %v4016_v21 = vld [vmem:[#allocation2 + $0x18] sm:$0xff]  ;;  %v5184_v43 = vrot.slane %v2694_v60, 2  ;;  %v2698_v57 = vrot.slane %v2416_v32, 7  ;;  %v2700_v26 = vrot.slane %v2417_v2, 7  ;;  %v5193_v23 = vrot.slane %v2611_v17, 9 }
 0x1eb   : > { %3972 = vmatmul.msk.bf16.gmra.mxu1 %vm2032_vm0, %v4016_v21  ;;  %v2688_v21 = vrot.slane %v2411_v54, 7  ;;  %v2692_v54 = vrot.slane %v2413_v13, 7  ;;  %v5163_v13 = vrot.slane %v2690_v33, 2  ;;  %v2221_v15 = vrot.slane %v2163_v4, 2 }
 0x1ec   : > { %6229 = vst [vmem:[#allocation5_spill] sm:$0xff] %v5184_v43  ;;  %vm5198_vm10 = vcmp.gt.f32.partialorder %v2162_v63, %v2322_v38  ;;  %vm5206_vm12 = vcmp.gt.f32.partialorder %v2219_v20, %v2324_v31  ;;  %vm5210_vm13 = vcmp.gt.f32.partialorder %v2220_v6, %v2325_v34  ;;  %v2222_v45 = vrot.slane %v2163_v4, 4 }
 0x1ed   : > { %v5153_v48 = vrot.slane %v2688_v21, 2  ;;  %v2323_v21 = vrot.slane %v2218_v10, 7  ;;  %v5177_v33 = vrot.slane %v2692_v54, 2  ;;  %6230 = vst [vmem:[#allocation6_spill] sm:$0xff] %v5193_v23  ;;  %v5195_v54 = vrot.slane %v2696_v3, 2 }
 0x1ee   : > { %v2285_v17 = vmul.u32 2, %v4908_v42  ;;  %v5215_v55 = vrot.slane %v2613_v8, 9  ;;  %v2223_v60 = vrot.slane %v2163_v4, 6  ;;  %v2326_v32 = vrot.slane %v2163_v4, 7 }
 0x1ef   : > { %6231 = vst [vmem:[#allocation7_spill] sm:$0xff] %v5195_v54  ;;  %vm5202_vm11 = vcmp.gt.f32.partialorder %v2218_v10, %v2323_v21  ;;  %v5218_v3 = vrot.slane %v2698_v57, 2  ;;  %v5220_v46 = vrot.slane %v2700_v26, 2  ;;  %v2418_v37 = vsel %vm5198_vm10, %v2162_v63, %v2322_v38 }
 0x1f0   : > { %6240 = vst [vmem:[#allocation8_spill] sm:$0xff] %v5215_v55  ;;  %v2327_v19 = vrot.slane %v2221_v15, 7  ;;  %v2419_v9 = vsel %vm5202_vm11, %v2218_v10, %v2323_v21  ;;  %v2420_v5 = vsel %vm5206_vm12, %v2219_v20, %v2324_v31  ;;  %v2421_v8 = vsel %vm5210_vm13, %v2220_v6, %v2325_v34 }
 0x1f1   : > { %6241 = vst [vmem:[#allocation9_spill] sm:$0xff] %v5218_v3  ;;  %v2615_v63 = vsel %vm5202_vm11, %v5085_v22, %v5091_v35  ;;  %v2328_v10 = vrot.slane %v2222_v45, 7  ;;  %v2289_v38 = vmul.u32 16, %v2285_v17  ;;  %v2282_v20 = vadd.s32 1, %v4908_v42 }
 0x1f2   : > { %6242 = vst [vmem:[#allocation10_spill] sm:$0xff] %v5220_v46  ;;  %v6243_v21 = vrot.slane %v5103_v51, 7  ;;  %v6244_v6 = vrot.slane %v5099_v47, 7  ;;  %v2329_v34 = vrot.slane %v2223_v60, 7  ;;  %vm5251_vm14 = vcmp.gt.f32.partialorder %v2163_v4, %v2326_v32 }
 0x1f3   : > { %v2617_v42 = vsel %vm5210_vm13, %v5099_v47, %v5103_v51  ;;  %v2702_v22 = vrot.slane %v2418_v37, 7  ;;  %v2704_v35 = vrot.slane %v2419_v9, 7  ;;  %vm5260_vm15 = vcmp.gt.f32.partialorder %v2221_v15, %v2327_v19 }
 0x1f4   : > { %v5249_v31 = vsel %vm5206_vm12, %v6244_v6, %v6243_v21  ;;  %v2706_v49 = vrot.slane %v2420_v5, 7  ;;  %v2708_v14 = vrot.slane %v2421_v8, 7  ;;  %v5265_v17 = vrot.slane %v2615_v63, 9 }
 0x1f5   : > { %6245 = vst [vmem:[#allocation11_spill] sm:$0xff] %v5249_v31  ;;  %vm5267_vm0 = vcmp.gt.f32.partialorder %v2222_v45, %v2328_v10  ;;  %v2422_v47 = vsel %vm5251_vm14, %v2163_v4, %v2326_v32  ;;  %v5274_v51 = vadd.s32 %v4916_v50, %v2289_v38  ;;  %v2286_v9 = vmul.u32 2, %v2282_v20 }
 0x1f6   : > { %6250 = vst [vmem:[#allocation12_spill] sm:$0xff] %v5265_v17  ;;  %vm5276_vm1 = vcmp.gt.f32.partialorder %v2223_v60, %v2329_v34  ;;  %v2423_v5 = vsel %vm5260_vm15, %v2221_v15, %v2327_v19  ;;  %v5283_v63 = vrot.slane %v2702_v22, 2  ;;  %v5285_v21 = vrot.slane %v2704_v35, 2 }
 0x1f7   : > { %6253 = vst [vmem:[#allocation13_spill] sm:$0xff] %v5274_v51  ;;  %v5288_v32 = vrot.slane %v2617_v42, 9  ;;  %v5290_v38 = vrot.slane %v2706_v49, 2  ;;  %v5292_v20 = vrot.slane %v2708_v14, 2  ;;  %v2424_v6 = vsel %vm5267_vm0, %v2222_v45, %v2328_v10 }
 0x1f8   : > { %v2070_v7 = vpop.f32.mrf.mxu0  ;;  %v2710_v12 = vrot.slane %v2422_v47, 7  ;;  %v2425_v19 = vsel %vm5276_vm1, %v2223_v60, %v2329_v34  ;;  %v6257_v15 = vrot.slane %v5106_v52, 7  ;;  %v2712_v42 = vrot.slane %v2423_v5, 7 }
 0x1f9   : > { %v2114_v2 = vmul.f32 %v4926_v59, %v2070_v7  ;;  %v5236_v7 = vsel %vm5198_vm10, %v2506_v28, %v2586_v1  ;;  %6256 = vst [vmem:[#allocation14_spill] sm:$0xff] %v5288_v32  ;;  %v2290_v22 = vmul.u32 16, %v2286_v9  ;;  %v2619_v35 = vsel %vm5260_vm15, %v5106_v52, %v5117_v16 }
 0x1fa   : > { %v2426_v10 = vadd.s32 1, %v5274_v51  ;;  %v6259_v34 = vrot.slane %v5138_v24, 7  ;;  %v2621_v28 = vsel %vm5276_vm1, %v5133_v36, %v5138_v24  ;;  %v2714_v57 = vrot.slane %v2424_v6, 7 }
 0x1fb   : > { %v2134_v1 = vadd.f32 %v4935_v62, %v2114_v2  ;;  %v5326_v52 = vperm.slane %v5274_v51, %v4930_v61  ;;  %v5328_v16 = vrot.slane %v2710_v12, 2  ;;  %v2716_v49 = vrot.slane %v2425_v19, 7 }
 0x1fc   : > { %v5330_v5 = vrot.slane %v2712_v42, 2  ;;  %v2433_v37 = vperm.slane %v2426_v10, %v4930_v61  ;;  %v5339_v12 = vrot.slane %v2621_v28, 9  ;;  %v2437_v19 = vperm.slane %v2426_v10, %v4937_v0 }
 0x1fd   : > { %v2150_v44 = vmax.f32 %v2134_v1, 0.0  ;;  %v5304_v1 = vsel %vm5251_vm14, %v6257_v15, %v2588_v27  ;;  %6262 = vst [vmem:[#allocation17_spill] sm:$0xff] %v5328_v16  ;;  %v2574_v28 = vrot.slane %v5326_v52, 7  ;;  %v5356_v4 = vperm.slane %v2426_v10, %v5018_v39 }
 0x1fe   : > { %6258 = vst [vmem:[#allocation15_spill] sm:$0xff] %v5304_v1  ;;  %v2495_v1 = vrot.slane %v2437_v19, 7  ;;  %v5390_v32 = vadd.s32 %v4916_v50, %v2290_v22 }
 0x1ff   : > { %v2182_v45 = vrot.slane %v2150_v44, 2  ;;  %v2183_v14 = vrot.slane %v2150_v44, 4  ;;  %v2298_v47 = vrot.slane %v2150_v44, 7  ;;  %6263 = vst [vmem:[#allocation18_spill] sm:$0xff] %v5330_v5  ;;  %v2184_v15 = vrot.slane %v2150_v44, 6 }
 0x200   : > { %v2072_v26 = vpop.f32.mrf.mxu0  ;;  %v2080_v9 = vpop.f32.mrf.mxu1  ;;  %6266 = vst [vmem:[#allocation21_spill] sm:$0xff] %v5339_v12  ;;  %v2494_v12 = vrot.slane %v2433_v37, 7 }
 0x201   : > { %v2115_v8 = vmul.f32 %v4926_v59, %v2072_v26  ;;  %v6260_v26 = vrot.slane %v5133_v36, 7  ;;  %v2299_v24 = vrot.slane %v2182_v45, 7  ;;  %v2118_v42 = vmul.f32 %v4926_v59, %v2080_v9  ;;  %6276 = vst [vmem:[#allocation23_spill] sm:$0xff] %v5390_v32 }
 0x202   : > { %vm5343_vm2 = vcmp.gt.f32.partialorder %v2150_v44, %v2298_v47  ;;  %v5350_v36 = vperm.slane %v2426_v10, %v4989_v30 }
 0x203   : > { %v2135_v60 = vadd.f32 %v4935_v62, %v2115_v8  ;;  %v5318_v27 = vsel %vm5267_vm0, %v6260_v26, %v6259_v34  ;;  %v5333_v8 = vrot.slane %v2619_v35, 9  ;;  %v5337_v34 = vrot.slane %v2714_v57, 2 }
 0x204   : > { %6261 = vst [vmem:[#allocation16_spill] sm:$0xff] %v5318_v27  ;;  %v2300_v26 = vrot.slane %v2183_v14, 7  ;;  %v2517_v35 = vperm.slane %v5274_v51, %v4937_v0  ;;  %v2301_v57 = vrot.slane %v2184_v15, 7  ;;  %vm5358_vm3 = vcmp.gt.f32.partialorder %v2182_v45, %v2299_v24 }
 0x205   : > { %6264 = vst [vmem:[#allocation19_spill] sm:$0xff] %v5333_v8  ;;  %v2151_v6 = vmax.f32 %v2135_v60, 0.0  ;;  %v5352_v60 = vrot.slane %v2716_v49, 2  ;;  %v5364_v8 = vperm.slane %v5274_v51, %v4989_v30  ;;  %v2394_v49 = vsel %vm5343_vm2, %v2150_v44, %v2298_v47 }
 0x206   : > { %6265 = vst [vmem:[#allocation20_spill] sm:$0xff] %v5337_v34  ;;  %v2138_v10 = vadd.f32 %v4935_v62, %v2118_v42  ;;  %vm5373_vm4 = vcmp.gt.f32.partialorder %v2183_v14, %v2300_v26  ;;  %v2575_v5 = vrot.slane %v2517_v35, 7  ;;  %v2496_v55 = vrot.slane %v5350_v36, 7 }
 0x207   : > { %6269 = vst [vmem:[#allocation22_spill] sm:$0xff] %v5352_v60  ;;  %v2185_v27 = vrot.slane %v2151_v6, 2  ;;  %v5370_v60 = vperm.slane %v5274_v51, %v5018_v39  ;;  %v2186_v16 = vrot.slane %v2151_v6, 4  ;;  %vm5378_vm5 = vcmp.gt.f32.partialorder %v2184_v15, %v2301_v57 }
 0x208   : > { %v2395_v44 = vsel %vm5358_vm3, %v2182_v45, %v2299_v24  ;;  %v2187_v47 = vrot.slane %v2151_v6, 6  ;;  %v2497_v51 = vrot.slane %v5356_v4, 7  ;;  %v2654_v23 = vrot.slane %v2394_v49, 7 }
 0x209   : > { %v2302_v42 = vrot.slane %v2151_v6, 7  ;;  %v2303_v46 = vrot.slane %v2185_v27, 7  ;;  %v2576_v3 = vrot.slane %v5364_v8, 7  ;;  %v2396_v54 = vsel %vm5373_vm4, %v2183_v14, %v2300_v26  ;;  %v2082_v26 = vpop.f32.mrf.mxu1 }
 0x20a   : > { %v2577_v11 = vrot.slane %v5370_v60, 7  ;;  %v2154_v43 = vmax.f32 %v2138_v10, 0.0  ;;  %v2397_v45 = vsel %vm5378_vm5, %v2184_v15, %v2301_v57  ;;  %v5396_v24 = vsel %vm5343_vm2, %v2494_v12, %v2574_v28 }
 0x20b   : > { %v2656_v49 = vrot.slane %v2395_v44, 7  ;;  %v2304_v31 = vrot.slane %v2186_v16, 7  ;;  %v2591_v17 = vsel %vm5358_vm3, %v2433_v37, %v5326_v52  ;;  %v5403_v14 = vsel %vm5373_vm4, %v2495_v1, %v2575_v5 }
 0x20c   : > { %v2593_v50 = vsel %vm5378_vm5, %v2437_v19, %v2517_v35  ;;  %v2305_v22 = vrot.slane %v2187_v47, 7  ;;  %v5407_v15 = vrot.slane %v2654_v23, 2  ;;  %v2658_v2 = vrot.slane %v2396_v54, 7 }
 0x20d   : > { %vm5409_vm7 = vcmp.gt.f32.partialorder %v2151_v6, %v2302_v42  ;;  %vm5413_vm8 = vcmp.gt.f32.partialorder %v2185_v27, %v2303_v46  ;;  %v2660_v52 = vrot.slane %v2397_v45, 7  ;;  %v2194_v5 = vrot.slane %v2154_v43, 2 }
 0x20e   : > { %v2195_v37 = vrot.slane %v2154_v43, 4  ;;  %v5418_v18 = vrot.slane %v2656_v49, 2  ;;  %v5420_v34 = vrot.slane %v2591_v17, 9  ;;  %vm5422_vm9 = vcmp.gt.f32.partialorder %v2186_v16, %v2304_v31 }
 0x20f   : > { %v2119_v54 = vmul.f32 %v4926_v59, %v2082_v26  ;;  %vm5427_vm10 = vcmp.gt.f32.partialorder %v2187_v47, %v2305_v22  ;;  %v2398_v35 = vsel %vm5409_vm7, %v2151_v6, %v2302_v42  ;;  %v2399_v28 = vsel %vm5413_vm8, %v2185_v27, %v2303_v46 }
 0x210   : > { %6281 = vst [vmem:[#allocation24_spill] sm:$0xff] %v5420_v34  ;;  %v2196_v9 = vrot.slane %v2154_v43, 6  ;;  %v5435_v10 = vrot.slane %v2658_v2, 2  ;;  %v5438_v44 = vrot.slane %v2593_v50, 9  ;;  %v2306_v45 = vrot.slane %v2154_v43, 7 }
 0x211   : > { %v2400_v49 = vsel %vm5422_vm9, %v2186_v16, %v2304_v31  ;;  %v2307_v26 = vrot.slane %v2194_v5, 7  ;;  %v2308_v1 = vrot.slane %v2195_v37, 7  ;;  %v2139_v34 = vadd.f32 %v4935_v62, %v2119_v54 }
 0x212   : > { %v2401_v6 = vsel %vm5427_vm10, %v2187_v47, %v2305_v22  ;;  %v5447_v46 = vsel %vm5409_vm7, %v2496_v55, %v2576_v3  ;;  %v2662_v27 = vrot.slane %v2398_v35, 7  ;;  %v2664_v42 = vrot.slane %v2399_v28, 7 }
 0x213   : > { %6286 = vst [vmem:[#allocation25_spill] sm:$0xff] %v5447_v46  ;;  %v5449_v2 = vrot.slane %v2660_v52, 2  ;;  %v2595_v31 = vsel %vm5413_vm8, %v5350_v36, %v5364_v8  ;;  %v5457_v16 = vsel %vm5422_vm9, %v2497_v51, %v2577_v11  ;;  %v2309_v50 = vrot.slane %v2196_v9, 7 }
 0x214   : > { %6287 = vst [vmem:[#allocation26_spill] sm:$0xff] %v5457_v16  ;;  %v2597_v55 = vsel %vm5427_vm10, %v5356_v4, %v5370_v60  ;;  %v2666_v3 = vrot.slane %v2400_v49, 7  ;;  %vm5463_vm11 = vcmp.gt.f32.partialorder %v2154_v43, %v2306_v45  ;;  %v2427_v22 = vadd.s32 1, %v5390_v32 }
 0x215   : > { %v2668_v12 = vrot.slane %v2401_v6, 7  ;;  %vm5469_vm12 = vcmp.gt.f32.partialorder %v2194_v5, %v2307_v26  ;;  %v2155_v11 = vmax.f32 %v2139_v34, 0.0  ;;  %v5473_v51 = vrot.slane %v2662_v27, 2 }
 0x216   : > { %v5475_v57 = vrot.slane %v2664_v42, 2  ;;  %v5477_v4 = vrot.slane %v2595_v31, 9  ;;  %vm5479_vm13 = vcmp.gt.f32.partialorder %v2195_v37, %v2308_v1  ;;  %vm5484_vm14 = vcmp.gt.f32.partialorder %v2196_v9, %v2309_v50 }
 0x217   : > { %6292 = vst [vmem:[#allocation27_spill] sm:$0xff] %v5473_v51  ;;  %v2402_v54 = vsel %vm5463_vm11, %v2154_v43, %v2306_v45  ;;  %v2529_v34 = vperm.slane %v5390_v32, %v4930_v61  ;;  %v2403_v19 = vsel %vm5469_vm12, %v2194_v5, %v2307_v26  ;;  %v2449_v35 = vperm.slane %v2427_v22, %v4930_v61 }
 0x218   : > { %6293 = vst [vmem:[#allocation28_spill] sm:$0xff] %v5475_v57  ;;  %v2453_v28 = vperm.slane %v2427_v22, %v4937_v0  ;;  %v2533_v49 = vperm.slane %v5390_v32, %v4937_v0  ;;  %v5498_v6 = vrot.slane %v2666_v3, 2  ;;  %v5500_v27 = vrot.slane %v2597_v55, 9 }
 0x219   : > { %6294 = vst [vmem:[#allocation29_spill] sm:$0xff] %v5477_v4  ;;  %v2404_v43 = vsel %vm5479_vm13, %v2195_v37, %v2308_v1  ;;  %v2197_v45 = vrot.slane %v2155_v11, 2  ;;  %v5504_v42 = vrot.slane %v2668_v12, 2  ;;  %v2405_v5 = vsel %vm5484_vm14, %v2196_v9, %v2309_v50 }
 0x21a   : > { %6299 = vst [vmem:[#allocation30_spill] sm:$0xff] %v5498_v6  ;;  %v2198_v26 = vrot.slane %v2155_v11, 4  ;;  %v2199_v31 = vrot.slane %v2155_v11, 6  ;;  %v2578_v52 = vrot.slane %v2529_v34, 7  ;;  %v2670_v8 = vrot.slane %v2402_v54, 7 }
 0x21b   : > { %6300 = vst [vmem:[#allocation31_spill] sm:$0xff] %v5500_v27  ;;  %v2672_v17 = vrot.slane %v2403_v19, 7  ;;  %v2310_v16 = vrot.slane %v2155_v11, 7  ;;  %v2498_v4 = vrot.slane %v2449_v35, 7  ;;  %v2499_v3 = vrot.slane %v2453_v28, 7 }
 0x21c   : > { %6301 = vst [vmem:[#allocation32_spill] sm:$0xff] %v5504_v42  ;;  %v2579_v46 = vrot.slane %v2533_v49, 7  ;;  %v2674_v55 = vrot.slane %v2404_v43, 7  ;;  %v2311_v27 = vrot.slane %v2197_v45, 7  ;;  %v2457_v6 = vperm.slane %v2427_v22, %v4989_v30 }
 0x21d   : > { %v2537_v1 = vperm.slane %v5390_v32, %v4989_v30  ;;  %v5512_v37 = vadd.s32 16, %v4919_v53  ;;  %v2599_v9 = vsel %vm5469_vm12, %v2449_v35, %v2529_v34  ;;  %v2601_v50 = vsel %vm5484_vm14, %v2453_v28, %v2533_v49 }
 0x21e   : > { %v2312_v12 = vrot.slane %v2198_v26, 7  ;;  %v2313_v54 = vrot.slane %v2199_v31, 7  ;;  %v5518_v19 = vrot.slane %v2670_v8, 2  ;;  %vm5520_vm15 = vcmp.gt.f32.partialorder %v2155_v11, %v2310_v16 }
 0x21f   : > { %v2461_v42 = vperm.slane %v2427_v22, %v5018_v39  ;;  %v2541_v57 = vperm.slane %v5390_v32, %v5018_v39  ;;  %v5529_v36 = vsel %vm5463_vm11, %v2498_v4, %v2578_v52  ;;  %v5533_v23 = vsel %vm5479_vm13, %v2499_v3, %v2579_v46 }
 0x220   : > { %6302 = vst [vmem:[#allocation33_spill] sm:$0xff] %v5518_v19  ;;  %v5535_v34 = vrot.slane %v2672_v17, 2  ;;  %v2676_v8 = vrot.slane %v2405_v5, 7  ;;  %vm5537_vm0 = vcmp.gt.f32.partialorder %v2197_v45, %v2311_v27  ;;  %v2500_v28 = vrot.slane %v2457_v6, 7 }
 0x221   : > { %6305 = vst [vmem:[#allocation34_spill] sm:$0xff] %v5533_v23  ;;  %v2580_v22 = vrot.slane %v2537_v1, 7  ;;  %v5543_v49 = vperm.slane %v5512_v37, %v4930_v61  ;;  %vm5545_vm1 = vcmp.gt.f32.partialorder %v2198_v26, %v2312_v12  ;;  %vm5549_vm2 = vcmp.gt.f32.partialorder %v2199_v31, %v2313_v54 }
 0x222   : > { %6306 = vst [vmem:[#allocation35_spill] sm:$0xff] %v5535_v34  ;;  %v2406_v17 = vsel %vm5520_vm15, %v2155_v11, %v2310_v16  ;;  %v5557_v4 = vperm.slane %v5512_v37, %v4937_v0  ;;  %v5559_v60 = vrot.slane %v2674_v55, 2  ;;  %v5561_v52 = vrot.slane %v2599_v9, 9 }
 0x223   : > { %v2501_v5 = vrot.slane %v2461_v42, 7  ;;  %v2581_v3 = vrot.slane %v2541_v57, 7  ;;  %v2407_v32 = vsel %vm5537_vm0, %v2197_v45, %v2311_v27  ;;  %v5568_v51 = vadd.s32 17, %v4919_v53 }
 0x224   : > { %6313 = vst [vmem:[#allocation36_spill] sm:$0xff] %v5561_v52  ;;  %v5570_v16 = vrot.slane %v2601_v50, 9  ;;  %v2408_v11 = vsel %vm5545_vm1, %v2198_v26, %v2312_v12  ;;  %v2409_v55 = vsel %vm5549_vm2, %v2199_v31, %v2313_v54  ;;  %v2678_v9 = vrot.slane %v2406_v17, 7 }
 0x225   : > { %v5576_v52 = vrot.slane %v2676_v8, 2  ;;  %v5580_v19 = vsel %vm5520_vm15, %v2500_v28, %v2580_v22  ;;  %v2890_v27 = vrot.slane %v5543_v49, 1  ;;  %v2891_v53 = vrot.slane %v5557_v4, 1 }
 0x226   : > { %6314 = vst [vmem:[#allocation37_spill] sm:$0xff] %v5570_v16  ;;  %v2603_v45 = vsel %vm5537_vm0, %v2457_v6, %v2537_v1  ;;  %v5588_v26 = vsel %vm5545_vm1, %v2501_v5, %v2581_v3  ;;  %v2605_v31 = vsel %vm5549_vm2, %v2461_v42, %v2541_v57  ;;  %v2680_v50 = vrot.slane %v2407_v32, 7 }
 0x227   : > { %6315 = vst [vmem:[#allocation38_spill] sm:$0xff] %v5580_v19  ;;  %v2682_v54 = vrot.slane %v2408_v11, 7  ;;  %v2684_v43 = vrot.slane %v2409_v55, 7  ;;  %v3193_v28 = vperm.slane %v5568_v51, %v4930_v61  ;;  %v5595_v17 = vrot.slane %v2678_v9, 2 }
 0x228   : > { %6316 = vst [vmem:[#allocation39_spill] sm:$0xff] %v5588_v26  ;;  %v3197_v1 = vperm.slane %v5568_v51, %v4937_v0  ;;  %v5601_v35 = vadd.s32 16, %v5051_v25  ;;  %v5604_v57 = vrot.slane %v2603_v45, 9  ;;  %v5608_v47 = vadd.s32 17, %v5051_v25 }
 0x229   : > { %6317 = vst [vmem:[#allocation40_spill] sm:$0xff] %v5595_v17  ;;  %v5610_v46 = vrot.slane %v2680_v50, 2  ;;  %v5613_v3 = vrot.slane %v2605_v31, 9  ;;  %v5616_v55 = vrot.slane %v2682_v54, 2  ;;  %v5618_v9 = vrot.slane %v2684_v43, 2 }
 0x22a   : > { %6318 = vst [vmem:[#allocation41_spill] sm:$0xff] %v5604_v57  ;;  %v5624_v25 = vperm.slane %v5601_v35, %v4930_v61  ;;  %v5628_v50 = vperm.slane %v5601_v35, %v4937_v0  ;;  %v5638_v54 = vperm.slane %v5608_v47, %v4930_v61  ;;  %v5642_v43 = vperm.slane %v5608_v47, %v4937_v0 }
 0x22b   : > { %6319 = vst [vmem:[#allocation42_spill] sm:$0xff] %v5610_v46  ;;  %v6323_v32 = vrot.slane %v4987_v29, 9  ;;  %vm3399_vm14 = vcmask 1041409   ;;  %vm3402_vm1 = vcmask 1042434  }
 0x22c   : > { %6320 = vst [vmem:[#allocation43_spill] sm:$0xff] %v5613_v3 }
 0x22d   : > { %6321 = vst [vmem:[#allocation44_spill] sm:$0xff] %v5616_v55 }
 0x22e   : > { %6322 = vst [vmem:[#allocation45_spill] sm:$0xff] %v5618_v9 }
 0x235   : > { %v2105_v12 = vpop.f32.mrf.mxu3 }
 0x236   : > { %v2095_v8 = vpop.f32.mrf.mxu2  ;;  %v2128_v22 = vmul.f32 %v4926_v59, %v2105_v12  ;;  %v3230_v12 = vrot.slane %v3193_v28, 7 }
 0x237   : > { %v2124_v6 = vmul.f32 %v4926_v59, %v2095_v8 }
 0x238   : > { %v2148_v42 = vadd.f32 %v4935_v62, %v2128_v22  ;;  %v3231_v22 = vrot.slane %v3197_v1, 7 }
 0x239   : > { %v2144_v11 = vadd.f32 %v4935_v62, %v2124_v6 }
 0x23a   : > { %v5620_v45 = vmax.f32 %v2148_v42, 0.0 }
 0x23b   : > { %v2160_v8 = vmax.f32 %v2144_v11, 0.0 }
 0x23c   : > { %v5631_v31 = vrot.slane %v5620_v45, 2  ;;  %v5634_v62 = vrot.slane %v5620_v45, 4  ;;  %v5650_v3 = vrot.slane %v5620_v45, 6  ;;  %vm2774_vm4 = vcmp.gt.f32.partialorder %v5620_v45, %v5283_v63 }
 0x23d   : > { %v2212_v6 = vrot.slane %v2160_v8, 2  ;;  %v2213_v42 = vrot.slane %v2160_v8, 4  ;;  %v2214_v11 = vrot.slane %v2160_v8, 6  ;;  %vm2766_vm3 = vcmp.gt.f32.partialorder %v2160_v8, %v5144_v40 }
 0x23e   : > { %v2798_v5 = vsel %vm2766_vm3, %v2160_v8, %v5144_v40  ;;  %v2978_v34 = vsel %vm2766_vm3, %v5543_v49, %v6323_v32  ;;  %v6324_v32 = vrot.slane %v5023_v41, 9  ;;  %vm2775_vm13 = vcmp.gt.f32.partialorder %v5631_v31, %v5285_v21 }
 0x23f   : > { %vm2767_vm5 = vcmp.gt.f32.partialorder %v2212_v6, %v5153_v48  ;;  %vm2768_vm7 = vcmp.gt.f32.partialorder %v2213_v42, %v5163_v13  ;;  %vm2769_vm8 = vcmp.gt.f32.partialorder %v2214_v11, %v5177_v33  ;;  %v3042_v26 = vrot.slane %v2798_v5, 7 }
 0x240   : > { %v2799_v57 = vsel %vm2767_vm5, %v2212_v6, %v5153_v48  ;;  %v2800_v40 = vsel %vm2768_vm7, %v2213_v42, %v5163_v13  ;;  %v2801_v29 = vsel %vm2769_vm8, %v2214_v11, %v5177_v33  ;;  %v2979_v49 = vsel %vm2767_vm5, %v2890_v27, %v5160_v58 }
 0x241   : > { %v2980_v19 = vsel %vm2768_vm7, %v5557_v4, %v6324_v32  ;;  %v2981_v9 = vsel %vm2769_vm8, %v2891_v53, %v5170_v56  ;;  %v3043_v55 = vrot.slane %v2799_v57, 7  ;;  %v3044_v46 = vrot.slane %v2800_v40, 7  ;;  %v6326_v40 = vld [vmem:[#allocation12_spill] sm:$0xff] }
 0x242   : > { %v3045_v17 = vrot.slane %v2801_v29, 7  ;;  %vm3106_vm9 = vcmp.gt.f32.partialorder %v2160_v8, %v3042_v26  ;;  %v3254_v16 = vrot.slane %v2978_v34, 7  ;;  %v3255_v5 = vrot.slane %v2979_v49, 7  ;;  %v6327_v49 = vld [vmem:[#allocation11_spill] sm:$0xff] }
 0x243   : > { %vm3107_vm10 = vcmp.gt.f32.partialorder %v2212_v6, %v3043_v55  ;;  %vm3108_vm11 = vcmp.gt.f32.partialorder %v2213_v42, %v3044_v46  ;;  %v3138_v48 = vsel %vm3106_vm9, %v2160_v8, %v3042_v26  ;;  %v3256_v13 = vrot.slane %v2980_v19, 7 }
 0x244   : > { %vm3109_vm12 = vcmp.gt.f32.partialorder %v2214_v11, %v3045_v17  ;;  %v3139_v33 = vsel %vm3107_vm10, %v2212_v6, %v3043_v55  ;;  %v3140_v23 = vsel %vm3108_vm11, %v2213_v42, %v3044_v46  ;;  %v3257_v58 = vrot.slane %v2981_v9, 7 }
 0x245   : > { %v3141_v27 = vsel %vm3109_vm12, %v2214_v11, %v3045_v17  ;;  %v5665_v41 = vsel %vm3106_vm9, %v3230_v12, %v3254_v16  ;;  %v5667_v4 = vsel %vm3107_vm10, %v3193_v28, %v3255_v5  ;;  %v5669_v56 = vsel %vm3108_vm11, %v3231_v22, %v3256_v13 }
 0x246   : > { %v5671_v53 = vsel %vm3109_vm12, %v3197_v1, %v3257_v58  ;;  %v3318_v57 = vpack.c.bf16 %v3138_v48, %v3138_v48  ;;  %v3319_v34 = vpack.c.bf16 %v3139_v33, %v3139_v33  ;;  %v3320_v26 = vpack.c.bf16 %v3140_v23, %v3140_v23  ;;  %v6329_v58 = vld [vmem:[#allocation14_spill] sm:$0xff] }
 0x247   : > { %vm2776_vm15 = vcmp.gt.f32.partialorder %v5634_v62, %v5290_v38  ;;  %v2894_v19 = vrot.slane %v5624_v25, 1  ;;  %v3321_v16 = vpack.c.bf16 %v3141_v27, %v3141_v27  ;;  %v2895_v28 = vrot.slane %v5628_v50, 1 }
 0x248   : > { %v3382_v17 = vunpack.c.l.b16 %v3318_v57  ;;  %v3234_v46 = vrot.slane %v5638_v54, 7  ;;  %vm2777_vm0 = vcmp.gt.f32.partialorder %v5650_v3, %v5292_v20  ;;  %v2806_v23 = vsel %vm2774_vm4, %v5620_v45, %v5283_v63 }
 0x249   : > { %v2807_v1 = vsel %vm2775_vm13, %v5631_v31, %v5285_v21  ;;  %v3235_v55 = vrot.slane %v5642_v43, 7  ;;  %v3383_v9 = vunpack.c.l.b16 %v3319_v34  ;;  %v2808_v12 = vsel %vm2776_vm15, %v5634_v62, %v5290_v38 }
 0x24a   : > { %v2809_v8 = vsel %vm2777_vm0, %v5650_v3, %v5292_v20  ;;  %v5705_v22 = vperm.slane %v5512_v37, %v4989_v30  ;;  %v3384_v6 = vunpack.c.l.b16 %v3320_v26  ;;  %v6325_v42 = vrot.slane %v5236_v7, 9 }
 0x24b   : > { %v2987_v29 = vsel %vm2775_vm13, %v2894_v19, %v6326_v40  ;;  %v6328_v32 = vrot.slane %v6327_v49, 9  ;;  %v5723_v48 = vunpack.c.l.b16 %v3321_v16  ;;  %v3433_v7 = vrot.slane %v3382_v17, 1 }
 0x24c   : > { %v2986_v11 = vsel %vm2774_vm4, %v5624_v25, %v6325_v42  ;;  %v3050_v13 = vrot.slane %v2806_v23, 7  ;;  %v3051_v33 = vrot.slane %v2807_v1, 7  ;;  %v2989_v63 = vsel %vm2777_vm0, %v2895_v28, %v6329_v58 }
 0x24d   : > { %v2988_v5 = vsel %vm2776_vm15, %v5628_v50, %v6328_v32  ;;  %v3052_v25 = vrot.slane %v2808_v12, 7  ;;  %v3053_v21 = vrot.slane %v2809_v8, 7  ;;  %v3262_v27 = vrot.slane %v2986_v11, 7  ;;  %v2097_v11 = vpop.f32.mrf.mxu2 }
 0x24e   : > { %vm5730_vm2 = vcmp.gt.f32.partialorder %v5620_v45, %v3050_v13  ;;  %vm5735_vm3 = vcmp.gt.f32.partialorder %v5631_v31, %v3051_v33  ;;  %v3263_v50 = vrot.slane %v2987_v29, 7  ;;  %v3264_v34 = vrot.slane %v2988_v5, 7 }
 0x24f   : > { %vm5740_vm4 = vcmp.gt.f32.partialorder %v5634_v62, %v3052_v25  ;;  %vm5745_vm5 = vcmp.gt.f32.partialorder %v5650_v3, %v3053_v21  ;;  %v3146_v19 = vsel %vm5730_vm2, %v5620_v45, %v3050_v13  ;;  %v3147_v16 = vsel %vm5735_vm3, %v5631_v31, %v3051_v33 }
 0x250   : > { %v3148_v17 = vsel %vm5740_vm4, %v5634_v62, %v3052_v25  ;;  %v3149_v28 = vsel %vm5745_vm5, %v5650_v3, %v3053_v21  ;;  %v3265_v23 = vrot.slane %v2989_v63, 7  ;;  %v2865_v1 = vperm.slane %v5512_v37, %v5018_v39  ;;  %v2107_v25 = vpop.f32.mrf.mxu3 }
 0x251   : > { %v3435_v12 = vrot.slane %v3384_v6, 7  ;;  %v3437_v8 = vrot.slane %v5723_v48, 6  ;;  %v3326_v45 = vpack.c.bf16 %v3146_v19, %v3146_v19  ;;  %v3327_v42 = vpack.c.bf16 %v3147_v16, %v3147_v16 }
 0x252   : > { %v3434_v31 = vsel %vm3399_vm14, %v3383_v9, %v3433_v7  ;;  %v5767_v40 = vsel %vm5730_vm2, %v3234_v46, %v3262_v27  ;;  %v3328_v62 = vpack.c.bf16 %v3148_v17, %v3148_v17  ;;  %v3329_v29 = vpack.c.bf16 %v3149_v28, %v3149_v28 }
 0x253   : > { %v5772_v3 = vsel %vm5735_vm3, %v5638_v54, %v3263_v50  ;;  %v5776_v37 = vsel %vm5740_vm4, %v3235_v55, %v3264_v34  ;;  %v3390_v6 = vunpack.c.l.b16 %v3326_v45  ;;  %v3391_v49 = vunpack.c.l.b16 %v3327_v42  ;;  %v6338_v45 = vld [vmem:[#allocation5_spill] sm:$0xff] }
 0x254   : > { %v5781_v9 = vsel %vm5745_vm5, %v5642_v43, %v3265_v23  ;;  %v3392_v46 = vunpack.c.l.b16 %v3328_v62  ;;  %v5783_v32 = vunpack.c.l.b16 %v3329_v29  ;;  %v2125_v5 = vmul.f32 %v4926_v59, %v2097_v11  ;;  %v5796_v43 = vld [vmem:[%s6171_s3] ss:$0 sm:$0xff] }
 0x255   : > { %v5787_v7 = vsel %vm3402_vm1, %v3435_v12, %v3434_v31  ;;  %v3447_v54 = vrot.slane %v3390_v6, 1  ;;  %v3201_v55 = vperm.slane %v5568_v51, %v4989_v30  ;;  %v3205_v59 = vperm.slane %v5568_v51, %v5018_v39  ;;  %v5812_v51 = vld [vmem:[%s6170_s2] ss:$0 sm:$0xff] }
 0x256   : > { %v3449_v33 = vrot.slane %v3392_v46, 7  ;;  %v2145_v63 = vadd.f32 %v5796_v43, %v2125_v5  ;;  %v2892_v38 = vrot.slane %v5705_v22, 1  ;;  %v2893_v26 = vrot.slane %v2865_v1, 1  ;;  %v6339_v11 = vld [vmem:[#allocation3_spill] sm:$0xff]  ;;  %v6342_v46 = vld [vmem:[#allocation9_spill] sm:$0xff]  ;;  %v6343_v5 = vld [vmem:[#allocation10_spill] sm:$0xff] }
 0x257   : > { %v3448_v21 = vsel %vm3399_vm14, %v3391_v49, %v3447_v54  ;;  %v3232_v20 = vrot.slane %v3201_v55, 7  ;;  %v3233_v16 = vrot.slane %v3205_v59, 7  ;;  %vm3405_vm7 = vcmask 1043459   ;;  %v6341_v49 = vld [vmem:[#allocation7_spill] sm:$0xff] }
 0x258   : > { %v2161_v34 = vmax.f32 %v2145_v63, 0.0  ;;  %v5807_v19 = vsel %vm3402_vm1, %v3449_v33, %v3448_v21  ;;  %v2129_v17 = vmul.f32 %v5812_v51, %v2107_v25  ;;  %v6340_v31 = vrot.slane %v6339_v11, 9  ;;  %v6344_v25 = vld [vmem:[#allocation6_spill] sm:$0xff] }
 0x259   : > { %v5823_v6 = vperm.slane %v5601_v35, %v4989_v30  ;;  %vm3408_vm12 = vcmask 1044484   ;;  %vm3411_vm15 = vcmask 1045509   ;;  %vm3414_vm4 = vcmask 1046534  }
 0x25a   : > { %v2215_v28 = vrot.slane %v2161_v34, 2  ;;  %v2216_v23 = vrot.slane %v2161_v34, 4  ;;  %v2217_v12 = vrot.slane %v2161_v34, 6  ;;  %vm2770_vm8 = vcmp.gt.f32.partialorder %v2161_v34, %v6338_v45 }
 0x25b   : > { %v2802_v42 = vsel %vm2770_vm8, %v2161_v34, %v6338_v45  ;;  %v2982_v62 = vsel %vm2770_vm8, %v5705_v22, %v6340_v31  ;;  %v2149_v29 = vadd.f32 %v5796_v43, %v2129_v17  ;;  %v6345_v17 = vld [vmem:[#allocation4_spill] sm:$0xff]  ;;  %vm3417_vm5 = vcmask 1047559  }
 0x25c   : > { %vm2771_vm9 = vcmp.gt.f32.partialorder %v2215_v28, %v6341_v49  ;;  %vm2772_vm10 = vcmp.gt.f32.partialorder %v2216_v23, %v6342_v46  ;;  %vm2773_vm11 = vcmp.gt.f32.partialorder %v2217_v12, %v6343_v5  ;;  %v3046_v54 = vrot.slane %v2802_v42, 7  ;;  %v6347_v31 = vld [vmem:[#allocation8_spill] sm:$0xff] }
 0x25d   : > { %v2803_v33 = vsel %vm2771_vm9, %v2215_v28, %v6341_v49  ;;  %v2804_v63 = vsel %vm2772_vm10, %v2216_v23, %v6342_v46  ;;  %v2805_v22 = vsel %vm2773_vm11, %v2217_v12, %v6343_v5  ;;  %v2983_v21 = vsel %vm2771_vm9, %v2892_v38, %v6344_v25 }
 0x25e   : > { %v6346_v45 = vrot.slane %v6345_v17, 9  ;;  %v2985_v57 = vsel %vm2773_vm11, %v2893_v26, %v6347_v31  ;;  %v3047_v27 = vrot.slane %v2803_v33, 7  ;;  %v3048_v58 = vrot.slane %v2804_v63, 7 }
 0x25f   : > { %v3049_v50 = vrot.slane %v2805_v22, 7  ;;  %vm3110_vm13 = vcmp.gt.f32.partialorder %v2161_v34, %v3046_v54  ;;  %v3258_v13 = vrot.slane %v2982_v62, 7  ;;  %v3259_v42 = vrot.slane %v2983_v21, 7 }
 0x260   : > { %v2984_v11 = vsel %vm2772_vm10, %v2865_v1, %v6346_v45  ;;  %vm3111_vm0 = vcmp.gt.f32.partialorder %v2215_v28, %v3047_v27  ;;  %vm3112_vm2 = vcmp.gt.f32.partialorder %v2216_v23, %v3048_v58  ;;  %v3142_v49 = vsel %vm3110_vm13, %v2161_v34, %v3046_v54 }
 0x261   : > { %v3260_v38 = vrot.slane %v2984_v11, 7  ;;  %vm3113_vm3 = vcmp.gt.f32.partialorder %v2217_v12, %v3049_v50  ;;  %v3143_v46 = vsel %vm3111_vm0, %v2215_v28, %v3047_v27  ;;  %v3144_v1 = vsel %vm3112_vm2, %v2216_v23, %v3048_v58  ;;  %v6349_v11 = vld [vmem:[#allocation17_spill] sm:$0xff] }
 0x262   : > { %v3261_v26 = vrot.slane %v2985_v57, 7  ;;  %v3145_v5 = vsel %vm3113_vm3, %v2217_v12, %v3049_v50  ;;  %v5836_v33 = vsel %vm3110_vm13, %v3232_v20, %v3258_v13  ;;  %v5838_v63 = vsel %vm3111_vm0, %v3201_v55, %v3259_v42 }
 0x263   : > { %v5840_v62 = vsel %vm3112_vm2, %v3233_v16, %v3260_v38  ;;  %v3322_v25 = vpack.c.bf16 %v3142_v49, %v3142_v49  ;;  %v3323_v21 = vpack.c.bf16 %v3143_v46, %v3143_v46  ;;  %v3324_v17 = vpack.c.bf16 %v3144_v1, %v3144_v1  ;;  %v6350_v49 = vld [vmem:[#allocation18_spill] sm:$0xff]  ;;  %v6351_v38 = vld [vmem:[#allocation20_spill] sm:$0xff] }
 0x264   : > { %v3293_v22 = vsel %vm3113_vm3, %v3205_v59, %v3261_v26  ;;  %v3325_v34 = vpack.c.bf16 %v3145_v5, %v3145_v5  ;;  %v3438_v58 = vsel %vm3405_vm7, %v3437_v8, %v5787_v7  ;;  %v2165_v59 = vmax.f32 %v2149_v29, 0.0  ;;  %v6352_v46 = vld [vmem:[#allocation22_spill] sm:$0xff] }
 0x265   : > { %v3386_v13 = vunpack.c.l.b16 %v3322_v25  ;;  %v3387_v55 = vunpack.c.l.b16 %v3323_v21  ;;  %v3388_v27 = vunpack.c.l.b16 %v3324_v17  ;;  %v3497_v57 = vperm.slane %v3293_v22, 1  ;;  %v6353_v17 = vld [vmem:[#allocation15_spill] sm:$0xff] }
 0x266   : > { %v3389_v50 = vunpack.c.l.b16 %v3325_v34  ;;  %v2881_v20 = vperm.slane %v5601_v35, %v5018_v39  ;;  %v2896_v16 = vrot.slane %v5823_v6, 1  ;;  %v6348_v54 = vperm.slane %v5767_v40, 1 }
 0x267   : > { %v3439_v28 = vrot.slane %v3386_v13, 5  ;;  %v3441_v23 = vrot.slane %v3387_v55, 4  ;;  %v3443_v12 = vrot.slane %v3388_v27, 3  ;;  %v2227_v7 = vrot.slane %v2165_v59, 2  ;;  %v6355_v13 = vld [vmem:[#allocation19_spill] sm:$0xff] }
 0x268   : > { %v5856_v48 = vsel %vm3399_vm14, %v6348_v54, %v3497_v57  ;;  %v3445_v8 = vrot.slane %v3389_v50, 2  ;;  %v2228_v45 = vrot.slane %v2165_v59, 4  ;;  %v2229_v29 = vrot.slane %v2165_v59, 6  ;;  %v6356_v57 = vld [vmem:[#allocation16_spill] sm:$0xff] }
 0x269   : > { %v3440_v35 = vsel %vm3408_vm12, %v3439_v28, %v3438_v58  ;;  %vm2778_vm8 = vcmp.gt.f32.partialorder %v2165_v59, %v6349_v11  ;;  %v2897_v31 = vrot.slane %v2881_v20, 1  ;;  %v3217_v42 = vperm.slane %v5608_v47, %v4989_v30 }
 0x26a   : > { %v3442_v40 = vsel %vm3411_vm15, %v3441_v23, %v3440_v35  ;;  %vm2779_vm9 = vcmp.gt.f32.partialorder %v2227_v7, %v6350_v49  ;;  %vm2780_vm10 = vcmp.gt.f32.partialorder %v2228_v45, %v6351_v38  ;;  %vm2781_vm11 = vcmp.gt.f32.partialorder %v2229_v29, %v6352_v46  ;;  %v6358_v23 = vld [vmem:[#allocation21_spill] sm:$0xff]  ;;  %v2075_v35 = vpop.f32.mrf.mxu0 }
 0x26b   : > { %v3444_v1 = vsel %vm3414_vm4, %v3443_v12, %v3442_v40  ;;  %v2810_v26 = vsel %vm2778_vm8, %v2165_v59, %v6349_v11  ;;  %v2811_v5 = vsel %vm2779_vm9, %v2227_v7, %v6350_v49  ;;  %v2812_v22 = vsel %vm2780_vm10, %v2228_v45, %v6351_v38 }
 0x26c   : > { %v3446_v25 = vsel %vm3417_vm5, %v3445_v8, %v3444_v1  ;;  %v2813_v21 = vsel %vm2781_vm11, %v2229_v29, %v6352_v46  ;;  %v6354_v34 = vrot.slane %v6353_v17, 9  ;;  %v2991_v55 = vsel %vm2779_vm9, %v2896_v16, %v6355_v13 }
 0x26d   : > { %v3463_v27 = vpack.c.b16 %v3446_v25, %v3446_v25  ;;  %v6357_v50 = vrot.slane %v6356_v57, 9  ;;  %v2993_v12 = vsel %vm2781_vm11, %v2897_v31, %v6358_v23  ;;  %v3054_v54 = vrot.slane %v2810_v26, 7 }
 0x26e   : > { %v2990_v58 = vsel %vm2778_vm8, %v5823_v6, %v6354_v34  ;;  %v3055_v11 = vrot.slane %v2811_v5, 7  ;;  %v3056_v40 = vrot.slane %v2812_v22, 7  ;;  %v3057_v49 = vrot.slane %v2813_v21, 7 }
 0x26f   : > { %v2992_v28 = vsel %vm2780_vm10, %v2881_v20, %v6357_v50  ;;  %v3221_v8 = vperm.slane %v5608_v47, %v5018_v39  ;;  %3472 = vst.msk [vmem:[%s5876_s25 + $0x8] sm:$0xf] %vm6206_vm6, %v3463_v27  ;;  %vm3118_vm13 = vcmp.gt.f32.partialorder %v2165_v59, %v3054_v54  ;;  %v3236_v6 = vrot.slane %v3217_v42, 7 }
 0x270   : > { %v3266_v16 = vrot.slane %v2990_v58, 7  ;;  %v3267_v38 = vrot.slane %v2991_v55, 7  ;;  %vm3119_vm0 = vcmp.gt.f32.partialorder %v2227_v7, %v3055_v11  ;;  %vm5891_vm2 = vcmp.gt.f32.partialorder %v2228_v45, %v3056_v40 }
 0x271   : > { %vm5895_vm3 = vcmp.gt.f32.partialorder %v2229_v29, %v3057_v49  ;;  %v3150_v46 = vsel %vm3118_vm13, %v2165_v59, %v3054_v54  ;;  %v3151_v1 = vsel %vm3119_vm0, %v2227_v7, %v3055_v11  ;;  %v3152_v47 = vsel %vm5891_vm2, %v2228_v45, %v3056_v40 }
 0x272   : > { %v3153_v26 = vsel %vm5895_vm3, %v2229_v29, %v3057_v49  ;;  %v3237_v5 = vrot.slane %v3221_v8, 7  ;;  %v3268_v22 = vrot.slane %v2992_v28, 7  ;;  %v3269_v25 = vrot.slane %v2993_v12, 7 }
 0x273   : > { %v3298_v21 = vsel %vm3118_vm13, %v3236_v6, %v3266_v16  ;;  %v3299_v17 = vsel %vm3119_vm0, %v3217_v42, %v3267_v38  ;;  %v3330_v34 = vpack.c.bf16 %v3150_v46, %v3150_v46  ;;  %v3331_v58 = vpack.c.bf16 %v3151_v1, %v3151_v1  ;;  %v2077_v6 = vpop.f32.mrf.mxu0 }
 0x274   : > { %v3332_v13 = vpack.c.bf16 %v3152_v47, %v3152_v47  ;;  %v3333_v55 = vpack.c.bf16 %v3153_v26, %v3153_v26  ;;  %v3300_v59 = vsel %vm5891_vm2, %v3237_v5, %v3268_v22  ;;  %v3301_v7 = vsel %vm5895_vm3, %v3221_v8, %v3269_v25 }
 0x275   : > { %v6363_v45 = vrot.slane %v5783_v32, 6  ;;  %v3502_v27 = vperm.slane %v3298_v21, 1  ;;  %v3394_v57 = vunpack.c.l.b16 %v3330_v34  ;;  %v3395_v50 = vunpack.c.l.b16 %v3331_v58 }
 0x276   : > { %v3396_v42 = vunpack.c.l.b16 %v3332_v13  ;;  %v3397_v28 = vunpack.c.l.b16 %v3333_v55  ;;  %v3503_v23 = vperm.slane %v3299_v17, 1  ;;  %v3504_v12 = vperm.slane %v3300_v59, 1 }
 0x277   : > { %v3452_v29 = vsel %vm3405_vm7, %v6363_v45, %v5807_v19  ;;  %v3505_v54 = vperm.slane %v3301_v7, 1  ;;  %v6364_v11 = vperm.slane %v5772_v3, 1  ;;  %v3453_v19 = vrot.slane %v3394_v57, 5 }
 0x278   : > { %v3455_v40 = vrot.slane %v3395_v50, 4  ;;  %v3457_v49 = vrot.slane %v3396_v42, 3  ;;  %v3459_v8 = vrot.slane %v3397_v28, 2  ;;  %v6365_v16 = vperm.slane %v5776_v37, 1 }
 0x279   : > { %v3527_v32 = vsel %vm3402_vm1, %v6364_v11, %v5856_v48  ;;  %vm3535_vm8 = vcmask 64512   ;;  %vm3539_vm9 = vcmask 57344   ;;  %v2116_v20 = vmul.f32 %v5812_v51, %v2075_v35  ;;  %v6367_v48 = vld [vmem:[#allocation13_spill] sm:$0xff] }
 0x27a   : > { %v3528_v38 = vsel %vm3405_vm7, %v6365_v16, %v3527_v32  ;;  %v3454_v31 = vsel %vm3408_vm12, %v3453_v19, %v3452_v29  ;;  %v6366_v46 = vperm.slane %v5781_v9, 1  ;;  %3540 = vst.msk [vmem:[%s5915_s29 + $0x1f] sm:$0x1] %vm3539_vm9, %v3505_v54  ;;  %v5931_v1 = vadd.s32 16, %v6367_v48 }
 0x27b   : > { %v5934_v47 = vadd.s32 17, %v6367_v48  ;;  %v3456_v37 = vsel %vm3411_vm15, %v3455_v40, %v3454_v31  ;;  %v2136_v35 = vadd.f32 %v5796_v43, %v2116_v20  ;;  %v5940_v5 = vmul.f32 %v5812_v51, %v2077_v6  ;;  %v6369_v40 = vld [vmem:[#allocation24_spill] sm:$0xff] }
 0x27c   : > { %v3529_v3 = vsel %vm3408_vm12, %v6366_v46, %v3528_v38  ;;  %v3458_v9 = vsel %vm3414_vm4, %v3457_v49, %v3456_v37  ;;  %v2821_v25 = vperm.slane %v5931_v1, %v4930_v61  ;;  %v2825_v21 = vperm.slane %v5931_v1, %v4937_v0 }
 0x27d   : > { %v3530_v26 = vsel %vm3411_vm15, %v3502_v27, %v3529_v3  ;;  %v3460_v17 = vsel %vm3417_vm5, %v3459_v8, %v3458_v9  ;;  %v2152_v58 = vmax.f32 %v2136_v35, 0.0  ;;  %v3161_v13 = vperm.slane %v5934_v47, %v4930_v61 }
 0x27e   : > { %v3531_v22 = vsel %vm3414_vm4, %v3503_v23, %v3530_v26  ;;  %v3464_v55 = vpack.c.b16 %v3460_v17, %v3460_v17  ;;  %v2882_v59 = vrot.slane %v2821_v25, 1  ;;  %v2883_v7 = vrot.slane %v2825_v21, 1 }
 0x27f   : > { %v3532_v34 = vsel %vm3417_vm5, %v3504_v12, %v3531_v22  ;;  %v3165_v45 = vperm.slane %v5934_v47, %v4937_v0  ;;  %v2188_v29 = vrot.slane %v2152_v58, 2  ;;  %v2189_v27 = vrot.slane %v2152_v58, 4 }
 0x280   : > { %3538 = vst.msk [vmem:[%s5915_s29 + $0x17] sm:$0xff] %vm3535_vm8, %v3532_v34  ;;  %v2190_v57 = vrot.slane %v2152_v58, 6  ;;  %vm2750_vm10 = vcmp.gt.f32.partialorder %v2152_v58, %v5407_v15  ;;  %v6368_v42 = vrot.slane %v5396_v24, 9  ;;  %v3222_v23 = vrot.slane %v3161_v13, 7 }
 0x281   : > { %3473 = vst.msk [vmem:[%s5876_s25 + $0xc] sm:$0xf] %vm6206_vm6, %v3464_v55  ;;  %v2782_v50 = vsel %vm2750_vm10, %v2152_v58, %v5407_v15  ;;  %v3223_v12 = vrot.slane %v3165_v45, 7  ;;  %vm2751_vm11 = vcmp.gt.f32.partialorder %v2188_v29, %v5418_v18  ;;  %vm2752_vm13 = vcmp.gt.f32.partialorder %v2189_v27, %v5435_v10 }
 0x282   : > { %v2962_v28 = vsel %vm2750_vm10, %v2821_v25, %v6368_v42  ;;  %vm2753_vm0 = vcmp.gt.f32.partialorder %v2190_v57, %v5449_v2  ;;  %v3026_v54 = vrot.slane %v2782_v50, 7  ;;  %v2783_v11 = vsel %vm2751_vm11, %v2188_v29, %v5418_v18 }
 0x283   : > { %v2784_v32 = vsel %vm2752_vm13, %v2189_v27, %v5435_v10  ;;  %v2785_v19 = vsel %vm2753_vm0, %v2190_v57, %v5449_v2  ;;  %v2963_v15 = vsel %vm2751_vm11, %v2882_v59, %v6369_v40  ;;  %v6370_v24 = vrot.slane %v5403_v14, 9 }
 0x284   : > { %v2965_v8 = vsel %vm2753_vm0, %v2883_v7, %v5438_v44  ;;  %v3027_v6 = vrot.slane %v2783_v11, 7  ;;  %v3028_v16 = vrot.slane %v2784_v32, 7  ;;  %v3029_v38 = vrot.slane %v2785_v19, 7 }
 0x285   : > { %v2964_v49 = vsel %vm2752_vm13, %v2825_v21, %v6370_v24  ;;  %vm3090_vm2 = vcmp.gt.f32.partialorder %v2152_v58, %v3026_v54  ;;  %v3238_v20 = vrot.slane %v2962_v28, 7  ;;  %v3239_v31 = vrot.slane %v2963_v15, 7 }
 0x286   : > { %vm3091_vm3 = vcmp.gt.f32.partialorder %v2188_v29, %v3027_v6  ;;  %vm3092_vm9 = vcmp.gt.f32.partialorder %v2189_v27, %v3028_v16  ;;  %v3122_v18 = vsel %vm3090_vm2, %v2152_v58, %v3026_v54  ;;  %v3240_v46 = vrot.slane %v2964_v49, 7 }
 0x287   : > { %vm3093_vm10 = vcmp.gt.f32.partialorder %v2190_v57, %v3029_v38  ;;  %v3123_v10 = vsel %vm3091_vm3, %v2188_v29, %v3027_v6  ;;  %v3124_v2 = vsel %vm3092_vm9, %v2189_v27, %v3028_v16  ;;  %v3241_v3 = vrot.slane %v2965_v8, 7 }
 0x288   : > { %v3125_v48 = vsel %vm3093_vm10, %v2190_v57, %v3029_v38  ;;  %v3270_v37 = vsel %vm3090_vm2, %v3222_v23, %v3238_v20  ;;  %v3271_v14 = vsel %vm3091_vm3, %v3161_v13, %v3239_v31  ;;  %v3272_v26 = vsel %vm3092_vm9, %v3223_v12, %v3240_v46  ;;  %v6372_v20 = vld [vmem:[#allocation28_spill] sm:$0xff]  ;;  %v6373_v31 = vld [vmem:[#allocation30_spill] sm:$0xff] }
 0x289   : > { %v3273_v35 = vsel %vm3093_vm10, %v3165_v45, %v3241_v3  ;;  %v3302_v44 = vpack.c.bf16 %v3122_v18, %v3122_v18  ;;  %v3303_v9 = vpack.c.bf16 %v3123_v10, %v3123_v10  ;;  %v3304_v22 = vpack.c.bf16 %v3124_v2, %v3124_v2  ;;  %v6374_v18 = vld [vmem:[#allocation32_spill] sm:$0xff]  ;;  %v6375_v3 = vld [vmem:[#allocation25_spill] sm:$0xff] }
 0x28a   : > { %v3305_v25 = vpack.c.bf16 %v3125_v48, %v3125_v48  ;;  %v3474_v21 = vperm.slane %v3270_v37, 1  ;;  %v3475_v17 = vperm.slane %v3271_v14, 1  ;;  %v3476_v34 = vperm.slane %v3272_v26, 1  ;;  %v2085_v14 = vpop.f32.mrf.mxu1  ;;  %v6377_v26 = vld [vmem:[#allocation29_spill] sm:$0xff] }
 0x28b   : > { %v3490_v55 = vperm.slane %v5665_v41, 1  ;;  %v3366_v58 = vunpack.c.l.b16 %v3302_v44  ;;  %v3367_v59 = vunpack.c.l.b16 %v3303_v9  ;;  %v3368_v7 = vunpack.c.l.b16 %v3304_v22  ;;  %v6378_v44 = vld [vmem:[#allocation26_spill] sm:$0xff] }
 0x28c   : > { %v5973_v29 = vunpack.c.l.b16 %v3305_v25  ;;  %v3506_v27 = vsel %vm3402_vm1, %v3475_v17, %v3474_v21  ;;  %v2137_v13 = vadd.f32 %v5796_v43, %v5940_v5  ;;  %v2829_v45 = vperm.slane %v5931_v1, %v4989_v30  ;;  %v6380_v25 = vld [vmem:[#allocation31_spill] sm:$0xff] }
 0x28d   : > { %v3491_v57 = vperm.slane %v5667_v4, 1  ;;  %v3398_v50 = vrot.slane %v3366_v58, 1  ;;  %v3477_v42 = vperm.slane %v3273_v35, 1  ;;  %v2833_v28 = vperm.slane %v5931_v1, %v5018_v39  ;;  %v6371_v1 = vld [vmem:[#allocation27_spill] sm:$0xff] }
 0x28e   : > { %v3401_v23 = vrot.slane %v3368_v7, 7  ;;  %v3507_v12 = vsel %vm3405_vm7, %v3476_v34, %v3506_v27  ;;  %v2153_v54 = vmax.f32 %v2137_v13, 0.0  ;;  %v3169_v11 = vperm.slane %v5934_v47, %v4989_v30 }
 0x28f   : > { %v3400_v32 = vsel %vm3399_vm14, %v3367_v59, %v3398_v50  ;;  %v3404_v5 = vrot.slane %v5973_v29, 6  ;;  %v2884_v19 = vrot.slane %v2829_v45, 1  ;;  %v3173_v40 = vperm.slane %v5934_v47, %v5018_v39 }
 0x290   : > { %v2191_v15 = vrot.slane %v2153_v54, 2  ;;  %v2192_v24 = vrot.slane %v2153_v54, 4  ;;  %v2193_v49 = vrot.slane %v2153_v54, 6  ;;  %v2885_v8 = vrot.slane %v2833_v28, 1 }
 0x291   : > { %vm2754_vm11 = vcmp.gt.f32.partialorder %v2153_v54, %v6371_v1  ;;  %v3224_v6 = vrot.slane %v3169_v11, 7  ;;  %v3225_v16 = vrot.slane %v3173_v40, 7  ;;  %v3508_v38 = vsel %vm3408_vm12, %v3477_v42, %v3507_v12 }
 0x292   : > { %vm2755_vm13 = vcmp.gt.f32.partialorder %v2191_v15, %v6372_v20  ;;  %vm2756_vm0 = vcmp.gt.f32.partialorder %v2192_v24, %v6373_v31  ;;  %vm2757_vm2 = vcmp.gt.f32.partialorder %v2193_v49, %v6374_v18  ;;  %v2786_v46 = vsel %vm2754_vm11, %v2153_v54, %v6371_v1 }
 0x293   : > { %v2787_v47 = vsel %vm2755_vm13, %v2191_v15, %v6372_v20  ;;  %v2788_v10 = vsel %vm2756_vm0, %v2192_v24, %v6373_v31  ;;  %v2789_v2 = vsel %vm2757_vm2, %v2193_v49, %v6374_v18  ;;  %v6376_v48 = vrot.slane %v6375_v3, 9 }
 0x294   : > { %v2967_v35 = vsel %vm2755_vm13, %v2884_v19, %v6377_v26  ;;  %v6379_v9 = vrot.slane %v6378_v44, 9  ;;  %v2969_v21 = vsel %vm2757_vm2, %v2885_v8, %v6380_v25  ;;  %v3030_v17 = vrot.slane %v2786_v46, 7 }
 0x295   : > { %v2966_v37 = vsel %vm2754_vm11, %v2829_v45, %v6376_v48  ;;  %v3031_v34 = vrot.slane %v2787_v47, 7  ;;  %v3032_v58 = vrot.slane %v2788_v10, 7  ;;  %v3033_v59 = vrot.slane %v2789_v2, 7 }
 0x296   : > { %v2968_v22 = vsel %vm2756_vm0, %v2833_v28, %v6379_v9  ;;  %v3242_v7 = vrot.slane %v2966_v37, 7  ;;  %vm3094_vm3 = vcmp.gt.f32.partialorder %v2153_v54, %v3030_v17  ;;  %v3243_v29 = vrot.slane %v2967_v35, 7  ;;  %v6381_v9 = vld [vmem:[#allocation23_spill] sm:$0xff] }
 0x297   : > { %v3244_v27 = vrot.slane %v2968_v22, 7  ;;  %v3245_v13 = vrot.slane %v2969_v21, 7  ;;  %vm3095_vm9 = vcmp.gt.f32.partialorder %v2191_v15, %v3031_v34  ;;  %vm3096_vm10 = vcmp.gt.f32.partialorder %v2192_v24, %v3032_v58 }
 0x298   : > { %vm3097_vm11 = vcmp.gt.f32.partialorder %v2193_v49, %v3033_v59  ;;  %v3126_v45 = vsel %vm3094_vm3, %v2153_v54, %v3030_v17  ;;  %v3127_v50 = vsel %vm3095_vm9, %v2191_v15, %v3031_v34  ;;  %v3128_v42 = vsel %vm3096_vm10, %v2192_v24, %v3032_v58 }
 0x299   : > { %v3129_v12 = vsel %vm3097_vm11, %v2193_v49, %v3033_v59  ;;  %v3274_v19 = vsel %vm3094_vm3, %v3224_v6, %v3242_v7  ;;  %v3403_v28 = vsel %vm3402_vm1, %v3401_v23, %v3400_v32  ;;  %v3275_v8 = vsel %vm3095_vm9, %v3169_v11, %v3243_v29  ;;  %v2087_v32 = vpop.f32.mrf.mxu1 }
 0x29a   : > { %v3276_v1 = vsel %vm3096_vm10, %v3225_v16, %v3244_v27  ;;  %v3306_v20 = vpack.c.bf16 %v3126_v45, %v3126_v45  ;;  %v3307_v31 = vpack.c.bf16 %v3127_v50, %v3127_v50  ;;  %v3308_v18 = vpack.c.bf16 %v3128_v42, %v3128_v42 }
 0x29b   : > { %v3309_v46 = vpack.c.bf16 %v3129_v12, %v3129_v12  ;;  %v3478_v47 = vperm.slane %v3274_v19, 1  ;;  %v6006_v10 = vsel %vm3097_vm11, %v3173_v40, %v3245_v13  ;;  %v3479_v3 = vperm.slane %v3275_v8, 1  ;;  %v6382_v12 = vld [vmem:[#allocation33_spill] sm:$0xff] }
 0x29c   : > { %v3370_v2 = vunpack.c.l.b16 %v3306_v20  ;;  %v3480_v48 = vperm.slane %v3276_v1, 1  ;;  %v3371_v54 = vunpack.c.l.b16 %v3307_v31  ;;  %v3372_v15 = vunpack.c.l.b16 %v3308_v18  ;;  %v6383_v1 = vld [vmem:[#allocation35_spill] sm:$0xff] }
 0x29d   : > { %v3373_v24 = vunpack.c.l.b16 %v3309_v46  ;;  %v3509_v49 = vsel %vm3411_vm15, %v3478_v47, %v3508_v38  ;;  %vm3533_vm13 = vcmask 64513   ;;  %v2120_v11 = vmul.f32 %v5812_v51, %v2085_v14  ;;  %v6385_v46 = vld [vmem:[#allocation36_spill] sm:$0xff] }
 0x29e   : > { %v3407_v6 = vrot.slane %v3370_v2, 5  ;;  %v3510_v23 = vsel %vm3414_vm4, %v3479_v3, %v3509_v49  ;;  %v3406_v16 = vsel %vm3405_vm7, %v3404_v5, %v3403_v28  ;;  %v3410_v40 = vrot.slane %v3371_v54, 4  ;;  %v6386_v2 = vld [vmem:[#allocation34_spill] sm:$0xff]  ;;  %v6388_v54 = vld [vmem:[#allocation37_spill] sm:$0xff] }
 0x29f   : > { %v3413_v37 = vrot.slane %v3372_v15, 3  ;;  %v3511_v26 = vsel %vm3417_vm5, %v3480_v48, %v3510_v23  ;;  %v2140_v44 = vadd.f32 %v5796_v43, %v2120_v11  ;;  %v6017_v38 = vadd.s32 16, %v6381_v9 }
 0x2a0   : > { %v3409_v35 = vsel %vm3408_vm12, %v3407_v6, %v3406_v16  ;;  %3534 = vst.msk [vmem:[%s5915_s29 - $0x1] sm:$0xfe] %vm3533_vm13, %v3511_v26  ;;  %v6020_v22 = vadd.s32 17, %v6381_v9  ;;  %v3416_v25 = vrot.slane %v3373_v24, 2  ;;  %v3481_v5 = vperm.slane %v6006_v10, 1 }
 0x2a1   : > { %v3412_v14 = vsel %vm3411_vm15, %v3410_v40, %v3409_v35  ;;  %v2121_v21 = vmul.f32 %v5812_v51, %v2087_v32  ;;  %v2156_v34 = vmax.f32 %v2140_v44, 0.0  ;;  %v2837_v58 = vperm.slane %v6017_v38, %v4930_v61 }
 0x2a2   : > { %v3415_v17 = vsel %vm3414_vm4, %v3413_v37, %v3412_v14  ;;  %v2841_v59 = vperm.slane %v6017_v38, %v4937_v0  ;;  %v3177_v29 = vperm.slane %v6020_v22, %v4930_v61  ;;  %v3181_v27 = vperm.slane %v6020_v22, %v4937_v0 }
 0x2a3   : > { %v3418_v7 = vsel %vm3417_vm5, %v3416_v25, %v3415_v17  ;;  %v2141_v51 = vadd.f32 %v5796_v43, %v2121_v21  ;;  %v2200_v45 = vrot.slane %v2156_v34, 2  ;;  %v2201_v50 = vrot.slane %v2156_v34, 4 }
 0x2a4   : > { %v3461_v13 = vpack.c.b16 %v3418_v7, %v3418_v7  ;;  %v2202_v42 = vrot.slane %v2156_v34, 6  ;;  %vm2758_vm0 = vcmp.gt.f32.partialorder %v2156_v34, %v6382_v12  ;;  %v2886_v19 = vrot.slane %v2837_v58, 1 }
 0x2a5   : > { %v2887_v28 = vrot.slane %v2841_v59, 1  ;;  %v3226_v8 = vrot.slane %v3177_v29, 7  ;;  %vm2759_vm2 = vcmp.gt.f32.partialorder %v2200_v45, %v6383_v1  ;;  %vm2760_vm3 = vcmp.gt.f32.partialorder %v2201_v50, %v5559_v60 }
 0x2a6   : > { %3470 = vst.msk [vmem:[%s5876_s25] sm:$0xf] %vm6206_vm6, %v3461_v13  ;;  %vm2761_vm9 = vcmp.gt.f32.partialorder %v2202_v42, %v5576_v52  ;;  %v2790_v61 = vsel %vm2758_vm0, %v2156_v34, %v6382_v12  ;;  %v2791_v0 = vsel %vm2759_vm2, %v2200_v45, %v6383_v1  ;;  %v2792_v43 = vsel %vm2760_vm3, %v2201_v50, %v5559_v60 }
 0x2a7   : > { %v2793_v20 = vsel %vm2761_vm9, %v2202_v42, %v5576_v52  ;;  %v6384_v31 = vrot.slane %v5529_v36, 9  ;;  %v2971_v47 = vsel %vm2759_vm2, %v2886_v19, %v6385_v46  ;;  %v6387_v3 = vrot.slane %v6386_v2, 9  ;;  %v6391_v2 = vld [vmem:[#allocation44_spill] sm:$0xff] }
 0x2a8   : > { %v2973_v15 = vsel %vm2761_vm9, %v2887_v28, %v6388_v54  ;;  %v3034_v24 = vrot.slane %v2790_v61, 7  ;;  %v3035_v49 = vrot.slane %v2791_v0, 7  ;;  %v3036_v6 = vrot.slane %v2792_v43, 7 }
 0x2a9   : > { %v2970_v18 = vsel %vm2758_vm0, %v2837_v58, %v6384_v31  ;;  %v2972_v48 = vsel %vm2760_vm3, %v2841_v59, %v6387_v3  ;;  %v3037_v23 = vrot.slane %v2793_v20, 7  ;;  %v3227_v11 = vrot.slane %v3181_v27, 7  ;;  %v6392_v3 = vld [vmem:[#allocation45_spill] sm:$0xff] }
 0x2aa   : > { %vm3098_vm10 = vcmp.gt.f32.partialorder %v2156_v34, %v3034_v24  ;;  %v3246_v32 = vrot.slane %v2970_v18, 7  ;;  %v3247_v60 = vrot.slane %v2971_v47, 7  ;;  %v3248_v16 = vrot.slane %v2972_v48, 7  ;;  %v6390_v47 = vld [vmem:[#allocation42_spill] sm:$0xff] }
 0x2ab   : > { %vm3099_vm11 = vcmp.gt.f32.partialorder %v2200_v45, %v3035_v49  ;;  %vm3100_vm13 = vcmp.gt.f32.partialorder %v2201_v50, %v3036_v6  ;;  %vm3101_vm6 = vcmp.gt.f32.partialorder %v2202_v42, %v3037_v23  ;;  %v3130_v36 = vsel %vm3098_vm10, %v2156_v34, %v3034_v24  ;;  %v6393_v24 = vld [vmem:[#allocation38_spill] sm:$0xff] }
 0x2ac   : > { %v3131_v52 = vsel %vm3099_vm11, %v2200_v45, %v3035_v49  ;;  %v3132_v40 = vsel %vm3100_vm13, %v2201_v50, %v3036_v6  ;;  %v3133_v37 = vsel %vm3101_vm6, %v2202_v42, %v3037_v23  ;;  %v3249_v26 = vrot.slane %v2973_v15, 7  ;;  %v6395_v23 = vld [vmem:[#allocation41_spill] sm:$0xff] }
 0x2ad   : > { %v3278_v35 = vsel %vm3098_vm10, %v3226_v8, %v3246_v32  ;;  %v3279_v44 = vsel %vm3099_vm11, %v3177_v29, %v3247_v60  ;;  %v6052_v9 = vsel %vm3100_vm13, %v3227_v11, %v3248_v16  ;;  %v3310_v14 = vpack.c.bf16 %v3130_v36, %v3130_v36  ;;  %v6396_v32 = vld [vmem:[#allocation39_spill] sm:$0xff] }
 0x2ae   : > { %v3492_v25 = vperm.slane %v5669_v56, 1  ;;  %v3311_v21 = vpack.c.bf16 %v3131_v52, %v3131_v52  ;;  %v3312_v17 = vpack.c.bf16 %v3132_v40, %v3132_v40  ;;  %v3313_v58 = vpack.c.bf16 %v3133_v37, %v3133_v37  ;;  %v6398_v36 = vld [vmem:[#allocation43_spill] sm:$0xff] }
 0x2af   : > { %v6055_v59 = vsel %vm3101_vm6, %v3181_v27, %v3249_v26  ;;  %v3374_v7 = vunpack.c.l.b16 %v3310_v14  ;;  %v3482_v13 = vperm.slane %v3278_v35, 1  ;;  %v3483_v12 = vperm.slane %v3279_v44, 1 }
 0x2b0   : > { %v3375_v34 = vunpack.c.l.b16 %v3311_v21  ;;  %v3376_v45 = vunpack.c.l.b16 %v3312_v17  ;;  %v6057_v50 = vunpack.c.l.b16 %v3313_v58  ;;  %v3484_v42 = vperm.slane %v6052_v9, 1 }
 0x2b1   : > { %v3419_v29 = vrot.slane %v3374_v7, 1  ;;  %v3512_v19 = vsel %vm3399_vm14, %v3482_v13, %v3481_v5  ;;  %v2157_v28 = vmax.f32 %v2141_v51, 0.0  ;;  %v2845_v8 = vperm.slane %v6017_v38, %v4989_v30  ;;  %v6389_v5 = vld [vmem:[#allocation40_spill] sm:$0xff] }
 0x2b2   : > { %v3421_v27 = vrot.slane %v3376_v45, 7  ;;  %v3423_v1 = vrot.slane %v6057_v50, 6  ;;  %v3485_v61 = vperm.slane %v6055_v59, 1  ;;  %v2849_v0 = vperm.slane %v6017_v38, %v5018_v39 }
 0x2b3   : > { %v3513_v43 = vsel %vm3402_vm1, %v3483_v12, %v3512_v19  ;;  %v2203_v20 = vrot.slane %v2157_v28, 2  ;;  %v2204_v31 = vrot.slane %v2157_v28, 4  ;;  %v2205_v18 = vrot.slane %v2157_v28, 6 }
 0x2b4   : > { %v3420_v10 = vsel %vm3399_vm14, %v3375_v34, %v3419_v29  ;;  %vm2762_vm6 = vcmp.gt.f32.partialorder %v2157_v28, %v6389_v5  ;;  %v2888_v51 = vrot.slane %v2845_v8, 1  ;;  %v2889_v46 = vrot.slane %v2849_v0, 1 }
 0x2b5   : > { %vm2763_vm0 = vcmp.gt.f32.partialorder %v2203_v20, %v6390_v47  ;;  %vm2764_vm2 = vcmp.gt.f32.partialorder %v2204_v31, %v6391_v2  ;;  %vm2765_vm3 = vcmp.gt.f32.partialorder %v2205_v18, %v6392_v3  ;;  %v2794_v48 = vsel %vm2762_vm6, %v2157_v28, %v6389_v5 }
 0x2b6   : > { %v2795_v38 = vsel %vm2763_vm0, %v2203_v20, %v6390_v47  ;;  %v2796_v54 = vsel %vm2764_vm2, %v2204_v31, %v6391_v2  ;;  %v2797_v15 = vsel %vm2765_vm3, %v2205_v18, %v6392_v3  ;;  %v6394_v49 = vrot.slane %v6393_v24, 9 }
 0x2b7   : > { %v2975_v11 = vsel %vm2763_vm0, %v2888_v51, %v6395_v23  ;;  %v6397_v60 = vrot.slane %v6396_v32, 9  ;;  %v2977_v52 = vsel %vm2765_vm3, %v2889_v46, %v6398_v36  ;;  %v3038_v40 = vrot.slane %v2794_v48, 7 }
 0x2b8   : > { %v2974_v6 = vsel %vm2762_vm6, %v2845_v8, %v6394_v49  ;;  %v3039_v37 = vrot.slane %v2795_v38, 7  ;;  %v3040_v26 = vrot.slane %v2796_v54, 7  ;;  %v3041_v35 = vrot.slane %v2797_v15, 7 }
 0x2b9   : > { %v2976_v16 = vsel %vm2764_vm2, %v2849_v0, %v6397_v60  ;;  %v3185_v44 = vperm.slane %v6020_v22, %v4989_v30  ;;  %vm6087_vm9 = vcmp.gt.f32.partialorder %v2157_v28, %v3038_v40  ;;  %v3189_v21 = vperm.slane %v6020_v22, %v5018_v39 }
 0x2ba   : > { %v3250_v17 = vrot.slane %v2974_v6, 7  ;;  %v3251_v58 = vrot.slane %v2975_v11, 7  ;;  %vm3103_vm10 = vcmp.gt.f32.partialorder %v2203_v20, %v3039_v37  ;;  %vm6093_vm11 = vcmp.gt.f32.partialorder %v2204_v31, %v3040_v26 }
 0x2bb   : > { %vm6097_vm13 = vcmp.gt.f32.partialorder %v2205_v18, %v3041_v35  ;;  %v3134_v30 = vsel %vm6087_vm9, %v2157_v28, %v3038_v40  ;;  %v3135_v12 = vsel %vm3103_vm10, %v2203_v20, %v3039_v37  ;;  %v3136_v34 = vsel %vm6093_vm11, %v2204_v31, %v3040_v26 }
 0x2bc   : > { %v3137_v39 = vsel %vm6097_vm13, %v2205_v18, %v3041_v35  ;;  %v3228_v22 = vrot.slane %v3185_v44, 7  ;;  %v3229_v45 = vrot.slane %v3189_v21, 7  ;;  %v3252_v29 = vrot.slane %v2976_v16, 7 }
 0x2bd   : > { %v3253_v19 = vrot.slane %v2977_v52, 7  ;;  %v3283_v8 = vsel %vm3103_vm10, %v3185_v44, %v3251_v58  ;;  %v3314_v5 = vpack.c.bf16 %v3134_v30, %v3134_v30  ;;  %v3315_v51 = vpack.c.bf16 %v3135_v12, %v3135_v12 }
 0x2be   : > { %v3282_v0 = vsel %vm6087_vm9, %v3228_v22, %v3250_v17  ;;  %v3316_v46 = vpack.c.bf16 %v3136_v34, %v3136_v34  ;;  %v3422_v28 = vsel %vm3402_vm1, %v3421_v27, %v3420_v10  ;;  %v3284_v20 = vsel %vm6093_vm11, %v3229_v45, %v3252_v29 }
 0x2bf   : > { %v3285_v31 = vsel %vm6097_vm13, %v3189_v21, %v3253_v19  ;;  %v3317_v18 = vpack.c.bf16 %v3137_v39, %v3137_v39  ;;  %v3378_v47 = vunpack.c.l.b16 %v3314_v5  ;;  %v3379_v2 = vunpack.c.l.b16 %v3315_v51 }
 0x2c0   : > { %v3380_v3 = vunpack.c.l.b16 %v3316_v46  ;;  %v3486_v48 = vperm.slane %v3282_v0, 1  ;;  %v3487_v54 = vperm.slane %v3283_v8, 1  ;;  %v3488_v15 = vperm.slane %v3284_v20, 1 }
 0x2c1   : > { %v3381_v38 = vunpack.c.l.b16 %v3317_v18  ;;  %v3489_v24 = vperm.slane %v3285_v31, 1  ;;  %v3425_v49 = vrot.slane %v3378_v47, 5  ;;  %v3427_v6 = vrot.slane %v3379_v2, 4 }
 0x2c2   : > { %v3429_v23 = vrot.slane %v3380_v3, 3  ;;  %v3514_v27 = vsel %vm3405_vm7, %v3484_v42, %v3513_v43  ;;  %v3493_v10 = vperm.slane %v5671_v53, 1  ;;  %v3424_v11 = vsel %vm3405_vm7, %v3423_v1, %v3422_v28 }
 0x2c3   : > { %v3515_v32 = vsel %vm3408_vm12, %v3485_v61, %v3514_v27  ;;  %v3519_v60 = vsel %vm3399_vm14, %v3490_v55, %v3489_v24  ;;  %v3494_v16 = vperm.slane %v5836_v33, 1  ;;  %v3426_v9 = vsel %vm3408_vm12, %v3425_v49, %v3424_v11 }
 0x2c4   : > { %v3516_v42 = vsel %vm3411_vm15, %v3486_v48, %v3515_v32  ;;  %v3520_v53 = vsel %vm3402_vm1, %v3491_v57, %v3519_v60  ;;  %v3428_v59 = vsel %vm3411_vm15, %v3427_v6, %v3426_v9  ;;  %v3431_v50 = vrot.slane %v3381_v38, 2 }
 0x2c5   : > { %v3517_v41 = vsel %vm3414_vm4, %v3487_v54, %v3516_v42  ;;  %v3521_v55 = vsel %vm3405_vm7, %v3492_v25, %v3520_v53  ;;  %v3495_v33 = vperm.slane %v5838_v63, 1  ;;  %v3430_v1 = vsel %vm3414_vm4, %v3429_v23, %v3428_v59 }
 0x2c6   : > { %v3518_v61 = vsel %vm3417_vm5, %v3488_v15, %v3517_v41  ;;  %v3522_v4 = vsel %vm3408_vm12, %v3493_v10, %v3521_v55  ;;  %v3496_v57 = vperm.slane %v5840_v62, 1  ;;  %v3432_v43 = vsel %vm3417_vm5, %v3431_v50, %v3430_v1 }
 0x2c7   : > { %v3523_v36 = vsel %vm3411_vm15, %v3494_v16, %v3522_v4  ;;  %3536 = vst.msk [vmem:[%s5915_s29 + $0x7] sm:$0xff] %vm3535_vm8, %v3518_v61  ;;  %v3462_v52 = vpack.c.b16 %v3432_v43, %v3432_v43  ;;  %vm6405_vm14 = vcmask 60416  }
 0x2c8   : > { %v3524_v56 = vsel %vm3414_vm4, %v3495_v33, %v3523_v36 }
 0x2c9   : > { %v3525_v25 = vsel %vm3417_vm5, %v3496_v57, %v3524_v56  ;;  %3471 = vst.msk [vmem:[%s5876_s25 + $0x4] sm:$0xf] %vm6405_vm14, %v3462_v52 }
 0x2ca   : > { %3537 = vst.msk [vmem:[%s5915_s29 + $0xf] sm:$0xff] %vm3535_vm8, %v3525_v25 }
 0x2cb PF: > { %s16_s22 = sadd.s32 1, %s4135_s22   ;;  %s6406_s18 = smov %s4127_s20 }
 0x2cc   : > { %p13_p7 = scmp.ge.s32.totalorder %s16_s22, 6   ;;  %s6407_s19 = smov %s4131_s21 }
 0x2cd   : > { %s6408_s20 = smov %s6411_s23  ;;  %s6409_s21 = smov %s6415_s24 }
 0x2ce   :  { %15 = sbr.rel (!%p13_p7) target bundleno = 3 (0x3), region = 94 }

</bundles_post_ra>
